<compile_context>
chip_gen: v5e
topology: v5e:2x2
jax: 0.10.0
libtpu: 0.0.40
codegen_flags: <defaults>
</compile_context>

<pallas_src>
import functools
import math

import numpy as np
import jax
import jax.numpy as jnp
from jax.experimental import pallas as pl
from jax.experimental.pallas import tpu as pltpu

BN_EPS = 1e-5


# ---------------------------------------------------------------------------
# Fused whole-network kernel (single invocation, everything resident in VMEM)
# ---------------------------------------------------------------------------
def _fused_resnet_kernel(x_ref, wt_in_ref, b_in_ref, wt1_ref, b1_ref,
                         pre_s_ref, pre_b_ref, wt2_ref,
                         bno_s_ref, bno_b_ref, fcw_ref, fcb_ref,
                         o_ref, xpad_ref, *, compute_dtype):
    f32 = jnp.float32
    B, Hp2, N = xpad_ref.shape          # N = W * F (lane-dense, multiple of 128)
    H = Hp2 - 2
    M = B * H
    n_blocks = wt1_ref.shape[0]

    # One-time zero of the padded scratch.  Only the two halo rows per batch
    # sample must stay zero; every conv overwrites the interior rows.
    xpad_ref[...] = jnp.zeros_like(xpad_ref)

    def conv3x3(slab, w_of_dy, bias=None):
        # slab: (B*H, W*C) lane-dense activation.  Store it into the interior
        # of the persistent zero-padded scratch, then accumulate 3 row-shifted
        # block-Toeplitz matmuls (K = N = W*C, 128-aligned, f32 accumulate).
        xpad_ref[:, 1:H + 1, :] = slab.reshape(B, H, N)
        acc = jnp.zeros((M, N), f32)
        for dy in range(3):
            win = xpad_ref[:, dy:dy + H, :].reshape(M, N)
            acc = acc + jnp.dot(win.astype(compute_dtype), w_of_dy(dy),
                                preferred_element_type=f32)
        return acc if bias is None else acc + bias

    x = x_ref[...].astype(f32)

    # cvIn -> bnIn (scale folded into weights, shift as per-lane bias) -> relu
    h = jnp.maximum(conv3x3(x, lambda dy: wt_in_ref[dy], b_in_ref[...]), 0.0)

    # Residual blocks, unrolled at trace time (n_blocks is small here).
    # TODO(synk): switch to lax.fori_loop over the stacked weight refs if
    #             n_blocks grows beyond a handful (bounds live ranges).
    for i in range(n_blocks):
        if i == 0:
            a = h                                            # FirstResBlock: no bn1/relu
        else:
            a = jnp.maximum(h * pre_s_ref[i] + pre_b_ref[i], 0.0)   # relu(bn1(h))
        t = jnp.maximum(conv3x3(a, lambda dy, i=i: wt1_ref[i, dy],
                                b1_ref[i]), 0.0)             # relu(bn2(cv1(a)))
        h = conv3x3(t, lambda dy, i=i: wt2_ref[i, dy]) + h   # cv2(t) + residual

    # Head: relu(bnOut(h)); AvgPool + flatten + Linear are pre-folded into one
    # lane-dense (H*W*F, ncls_pad) weight -> a single MXU matmul.
    a = jnp.maximum(h * bno_s_ref[...] + bno_b_ref[...], 0.0)
    feat = a.reshape(B, H * N).astype(compute_dtype)
    logits = jnp.dot(feat, fcw_ref[...], preferred_element_type=f32) + fcb_ref[...]
    o_ref[...] = logits.astype(o_ref.dtype)


# ---------------------------------------------------------------------------
# Wrapper: weight folding (BN, Toeplitz, pooled FC) + one pallas_call
# ---------------------------------------------------------------------------
def one_rep_resnet_forward(x_nchw, params, pool=8, compute_dtype=jnp.float32):
    x = jnp.transpose(x_nchw, (0, 2, 3, 1)).astype(jnp.float32)    # NCHW -> NHWC
    B, H, W, Cin = x.shape
    F = params["cvIn"].shape[-1]
    ncls = params["fcw"].shape[-1]
    ncls_pad = max(128, ((ncls + 127) // 128) * 128)
    N = W * F
    M = B * H

    # Pad input channels up to F so every conv sees a uniform lane layout
    # (zero channels paired with zero weight rows contribute nothing).
    if Cin < F:
        x = jnp.pad(x, ((0, 0), (0, 0), (0, 0), (0, F - Cin)))
        w_cvin = jnp.pad(params["cvIn"], ((0, 0), (0, 0), (0, F - Cin), (0, 0)))
    else:
        w_cvin = params["cvIn"]
    x_slab = x.reshape(M, N)                                       # lane-dense slab

    # Block-Toeplitz lowering of the 3x3 SAME conv along the width axis:
    # P[dx, p, w] = 1 iff input column p == w + dx - 1 is inside the image
    # (out-of-range taps hit zero padding and are simply omitted).
    P = np.zeros((3, W, W), np.float32)
    for dx in range(3):
        for w in range(W):
            p = w + dx - 1
            if 0 <= p < W:
                P[dx, p, w] = 1.0
    P = jnp.asarray(P)

    def toeplitz(w_hwio, scale=None):
        """(3,3,C,Cout) HWIO conv weight -> (3, W*C, W*Cout) Toeplitz weight."""
        if scale is not None:
            w_hwio = w_hwio * scale        # fold post-conv BN scale into Cout
        Ci, Co = w_hwio.shape[2], w_hwio.shape[3]
        T = jnp.einsum("xpw,yxio->ypiwo", P, w_hwio)   # (3, W, Ci, W, Co)
        return T.reshape(3, W * Ci, W * Co).astype(compute_dtype)

    def tile_c(v):
        """Per-channel vector (F,) -> per-lane row (1, W*F) matching the slab."""
        return jnp.tile(v, W).reshape(1, W * v.shape[0])

    s_in, sh_in = params["bnIn"]
    wt_in = toeplitz(w_cvin, s_in)
    b_in = tile_c(sh_in)

    wt1s, b1s, wt2s, pss, pbs = [], [], [], [], []
    for blk in params["blocks"]:
        s2, sh2 = blk["bn2"]                 # post-BN of cv1
        wt1s.append(toeplitz(blk["w1"], s2))
        b1s.append(tile_c(sh2))
        wt2s.append(toeplitz(blk["w2"]))     # cv2 has no post-BN
        s1, sh1 = blk["bn1"]                 # pre-BN (unused for block 0)
        pss.append(tile_c(s1))
        pbs.append(tile_c(sh1))
    WT1, B1, WT2 = jnp.stack(wt1s), jnp.stack(b1s), jnp.stack(wt2s)
    PreS, PreB = jnp.stack(pss), jnp.stack(pbs)

    s_o, sh_o = params["bnOut"]
    bno_s, bno_b = tile_c(s_o), tile_c(sh_o)

    # Fold AvgPool(pool) + flatten + Linear into one (H*W*F, ncls_pad) weight.
    # NOTE: fcw is stored as (Hp, Wp, F, ncls) — an in-script-consistent
    # permutation of PyTorch's (C, Hp, Wp) flatten order; real checkpoints
    # must be transposed on import.
    fcw = params["fcw"] / float(pool * pool)                       # (Hp,Wp,F,ncls)
    fcw_full = jnp.repeat(jnp.repeat(fcw, pool, axis=0), pool, axis=1)  # (H,W,F,ncls)
    fcw_full = fcw_full.reshape(H * W * F, ncls)
    fcw_full = jnp.pad(fcw_full, ((0, 0), (0, ncls_pad - ncls))).astype(compute_dtype)
    fcb = jnp.pad(params["fcb"], (0, ncls_pad - ncls)).reshape(1, ncls_pad)

    kernel = functools.partial(_fused_resnet_kernel, compute_dtype=compute_dtype)
    vmem = pl.BlockSpec(memory_space=pltpu.MemorySpace.VMEM)
    out = pl.pallas_call(
        kernel,
        out_shape=jax.ShapeDtypeStruct((B, ncls_pad), jnp.float32),
        in_specs=[vmem] * 12,
        out_specs=vmem,
        scratch_shapes=[pltpu.VMEM((B, H + 2, N), jnp.float32)],   # padded slab
        compiler_params=pltpu.CompilerParams(vmem_limit_bytes=32 * 1024 * 1024),
    )(x_slab, wt_in, b_in, WT1, B1, PreS, PreB, WT2,
      bno_s, bno_b, fcw_full, fcb)
    return out[:, :ncls]


# ---------------------------------------------------------------------------
# Parameter initialization (deterministic, mirrors the module's init scheme)
# ---------------------------------------------------------------------------
def _bn_fold(gamma, beta, mean, var, eps=BN_EPS):
    scale = gamma / jnp.sqrt(var + eps)
    shift = beta - mean * scale
    return scale, shift


def init_params(key, in_ch, filters, n_blocks, n_classes, hp, wp):
    def conv_w(k, cin, cout):
        std = math.sqrt(2.0 / (cout * 9))   # kaiming_normal, fan_out, relu
        return std * jax.random.normal(k, (3, 3, cin, cout), jnp.float32)

    def bn(c):
        gamma = jnp.ones((c,), jnp.float32)
        beta = jnp.zeros((c,), jnp.float32)
        mean = jnp.zeros((c,), jnp.float32)
        var = jnp.ones((c,), jnp.float32)
        return _bn_fold(gamma, beta, mean, var)

    keys = jax.random.split(key, 2 * n_blocks + 2)
    params = {"cvIn": conv_w(keys[0], in_ch, filters), "bnIn": bn(filters)}
    blocks = []
    for i in range(n_blocks):
        blocks.append({
            "w1": conv_w(keys[1 + 2 * i], filters, filters),
            "w2": conv_w(keys[2 + 2 * i], filters, filters),
            "bn1": bn(filters),   # unused for block 0 (FirstResBlock has no bn1)
            "bn2": bn(filters),
        })
    params["blocks"] = blocks
    params["bnOut"] = bn(filters)
    feature = hp * wp * filters
    fk1, _ = jax.random.split(keys[-1])
    std = math.sqrt(2.0 / feature)          # kaiming_normal, fan_in
    params["fcw"] = std * jax.random.normal(fk1, (hp, wp, filters, n_classes),
                                            jnp.float32)
    params["fcb"] = jnp.zeros((n_classes,), jnp.float32)
    return params


# ---------------------------------------------------------------------------
# Pure-JAX reference (same semantics, no Pallas) for correctness checking
# ---------------------------------------------------------------------------
def _reference_forward(x_nchw, params, pool=8):
    x = jnp.transpose(x_nchw, (0, 2, 3, 1)).astype(jnp.float32)

    def conv(v, w):
        return jax.lax.conv_general_dilated(
            v, w, window_strides=(1, 1), padding="SAME",
            dimension_numbers=("NHWC", "HWIO", "NHWC"),
            precision=jax.lax.Precision.HIGHEST)

    def bn(v, p):
        s, b = p
        return v * s + b

    h = jax.nn.relu(bn(conv(x, params["cvIn"]), params["bnIn"]))
    for i, blk in enumerate(params["blocks"]):
        a = h if i == 0 else jax.nn.relu(bn(h, blk["bn1"]))
        t = jax.nn.relu(bn(conv(a, blk["w1"]), blk["bn2"]))
        h = conv(t, blk["w2"]) + h
    a = jax.nn.relu(bn(h, params["bnOut"]))
    B, H, W, F = a.shape
    Hp, Wp = H // pool, W // pool
    pooled = a.reshape(B, Hp, pool, Wp, pool, F).mean(axis=(2, 4))   # (B,Hp,Wp,F)
    feat = pooled.reshape(B, Hp * Wp * F)
    ncls = params["fcw"].shape[-1]
    return jnp.dot(feat, params["fcw"].reshape(Hp * Wp * F, ncls),
                   precision=jax.lax.Precision.HIGHEST) + params["fcb"]


# ---------------------------------------------------------------------------
if __name__ == "__main__":
    # Small shapes consistent with the module (CIFAR-like input, 3x3 same-convs,
    # 8x8 avg-pool, linear classifier).
    B, C_IN, HW = 2, 3, 16
    FILTERS, N_BLOCKS, N_CLASSES, POOL = 16, 3, 10, 8

    key = jax.random.PRNGKey(0)
    pkey, xkey = jax.random.split(key)
    params = init_params(pkey, C_IN, FILTERS, N_BLOCKS, N_CLASSES,
                         HW // POOL, HW // POOL)
    x = jax.random.normal(xkey, (B, C_IN, HW, HW), jnp.float32)

    fwd = jax.jit(functools.partial(one_rep_resnet_forward, pool=POOL))
    out = jax.block_until_ready(fwd(x, params))
    assert out.shape == (B, N_CLASSES)

    ref = _reference_forward(x, params, pool=POOL)
    max_err = float(jnp.max(jnp.abs(out - ref)))
    assert max_err < 1e-3, f"mismatch vs pure-JAX reference: max_err={max_err}"

    print("KERNEL_OK")
</pallas_src>

<mosaic_0001>
module attributes {stable_mosaic.version = 11 : i64} {
  func.func @_fused_resnet_kernel(%arg0: memref<32x256xf32, #tpu.memory_space<vmem>>, %arg1: memref<3x256x256xf32, #tpu.memory_space<vmem>>, %arg2: memref<1x256xf32, #tpu.memory_space<vmem>>, %arg3: memref<3x3x256x256xf32, #tpu.memory_space<vmem>>, %arg4: memref<3x1x256xf32, #tpu.memory_space<vmem>>, %arg5: memref<3x1x256xf32, #tpu.memory_space<vmem>>, %arg6: memref<3x1x256xf32, #tpu.memory_space<vmem>>, %arg7: memref<3x3x256x256xf32, #tpu.memory_space<vmem>>, %arg8: memref<1x256xf32, #tpu.memory_space<vmem>>, %arg9: memref<1x256xf32, #tpu.memory_space<vmem>>, %arg10: memref<4096x128xf32, #tpu.memory_space<vmem>>, %arg11: memref<1x128xf32, #tpu.memory_space<vmem>>, %arg12: memref<2x128xf32, #tpu.memory_space<vmem>>, %arg13: memref<2x18x256xf32, #tpu.memory_space<vmem>>) attributes {dimension_semantics = [], scalar_prefetch = 0 : i64, scratch_operands = 1 : i64, tpu.core_type = #tpu.core_type<tc>} {
    %cst = arith.constant 0.000000e+00 : f32
    %0 = vector.broadcast %cst : f32 to vector<2x18x256xf32>
    %c0 = arith.constant 0 : index
    %c0_0 = arith.constant 0 : index
    %c0_1 = arith.constant 0 : index
    %1 = vector.load %arg13[%c0, %c0_0, %c0_1] : memref<2x18x256xf32, #tpu.memory_space<vmem>>, vector<2x18x256xf32>
    tpu.vector_store %arg13[%c0, %c0_0, %c0_1], %0 {strides = array<i32>} : memref<2x18x256xf32, #tpu.memory_space<vmem>>, vector<2x18x256xf32>,
    %c0_2 = arith.constant 0 : index
    %c0_3 = arith.constant 0 : index
    %2 = vector.load %arg0[%c0_2, %c0_3] : memref<32x256xf32, #tpu.memory_space<vmem>>, vector<32x256xf32>
    %c0_4 = arith.constant 0 : index
    %c0_5 = arith.constant 0 : index
    %3 = vector.load %arg2[%c0_4, %c0_5] : memref<1x256xf32, #tpu.memory_space<vmem>>, vector<1x256xf32>
    %4 = vector.shape_cast %2 : vector<32x256xf32> to vector<2x16x256xf32>
    %c0_6 = arith.constant 0 : index
    %c1 = arith.constant 1 : index
    %c0_7 = arith.constant 0 : index
    %5 = vector.load %arg13[%c0_6, %c1, %c0_7] : memref<2x18x256xf32, #tpu.memory_space<vmem>>, vector<2x16x256xf32>
    tpu.vector_store %arg13[%c0_6, %c1, %c0_7], %4 {strides = array<i32>} : memref<2x18x256xf32, #tpu.memory_space<vmem>>, vector<2x16x256xf32>,
    %cst_8 = arith.constant 0.000000e+00 : f32
    %6 = vector.broadcast %cst_8 : f32 to vector<32x256xf32>
    %c0_9 = arith.constant 0 : index
    %c0_10 = arith.constant 0 : index
    %c0_11 = arith.constant 0 : index
    %7 = vector.load %arg13[%c0_9, %c0_10, %c0_11] : memref<2x18x256xf32, #tpu.memory_space<vmem>>, vector<2x16x256xf32>
    %8 = vector.shape_cast %7 : vector<2x16x256xf32> to vector<32x256xf32>
    %c0_12 = arith.constant 0 : index
    %c0_13 = arith.constant 0 : index
    %c0_14 = arith.constant 0 : index
    %9 = vector.load %arg1[%c0_12, %c0_13, %c0_14] : memref<3x256x256xf32, #tpu.memory_space<vmem>>, vector<1x256x256xf32>
    %10 = vector.shape_cast %9 : vector<1x256x256xf32> to vector<256x256xf32>
    %cst_15 = arith.constant dense<0.000000e+00> : vector<32x256xf32>
    %11 = tpu.matmul %8, %10, %cst_15 {dimension_numbers = #tpu.dot_dimension_numbers<[1], [0], [0], [1], [0, 0, 1, 1], [], []>} : vector<32x256xf32>, vector<256x256xf32>, vector<32x256xf32> -> vector<32x256xf32>
    %12 = arith.addf %6, %11 : vector<32x256xf32>
    %c0_16 = arith.constant 0 : index
    %c1_17 = arith.constant 1 : index
    %c0_18 = arith.constant 0 : index
    %13 = vector.load %arg13[%c0_16, %c1_17, %c0_18] : memref<2x18x256xf32, #tpu.memory_space<vmem>>, vector<2x16x256xf32>
    %14 = vector.shape_cast %13 : vector<2x16x256xf32> to vector<32x256xf32>
    %c1_19 = arith.constant 1 : index
    %c0_20 = arith.constant 0 : index
    %c0_21 = arith.constant 0 : index
    %15 = vector.load %arg1[%c1_19, %c0_20, %c0_21] : memref<3x256x256xf32, #tpu.memory_space<vmem>>, vector<1x256x256xf32>
    %16 = vector.shape_cast %15 : vector<1x256x256xf32> to vector<256x256xf32>
    %cst_22 = arith.constant dense<0.000000e+00> : vector<32x256xf32>
    %17 = tpu.matmul %14, %16, %cst_22 {dimension_numbers = #tpu.dot_dimension_numbers<[1], [0], [0], [1], [0, 0, 1, 1], [], []>} : vector<32x256xf32>, vector<256x256xf32>, vector<32x256xf32> -> vector<32x256xf32>
    %18 = arith.addf %12, %17 : vector<32x256xf32>
    %c0_23 = arith.constant 0 : index
    %c2 = arith.constant 2 : index
    %c0_24 = arith.constant 0 : index
    %19 = vector.load %arg13[%c0_23, %c2, %c0_24] : memref<2x18x256xf32, #tpu.memory_space<vmem>>, vector<2x16x256xf32>
    %20 = vector.shape_cast %19 : vector<2x16x256xf32> to vector<32x256xf32>
    %c2_25 = arith.constant 2 : index
    %c0_26 = arith.constant 0 : index
    %c0_27 = arith.constant 0 : index
    %21 = vector.load %arg1[%c2_25, %c0_26, %c0_27] : memref<3x256x256xf32, #tpu.memory_space<vmem>>, vector<1x256x256xf32>
    %22 = vector.shape_cast %21 : vector<1x256x256xf32> to vector<256x256xf32>
    %cst_28 = arith.constant dense<0.000000e+00> : vector<32x256xf32>
    %23 = tpu.matmul %20, %22, %cst_28 {dimension_numbers = #tpu.dot_dimension_numbers<[1], [0], [0], [1], [0, 0, 1, 1], [], []>} : vector<32x256xf32>, vector<256x256xf32>, vector<32x256xf32> -> vector<32x256xf32>
    %24 = arith.addf %18, %23 : vector<32x256xf32>
    %25 = vector.broadcast %3 : vector<1x256xf32> to vector<32x256xf32>
    %26 = arith.addf %24, %25 : vector<32x256xf32>
    %cst_29 = arith.constant 0.000000e+00 : f32
    %27 = vector.broadcast %cst_29 : f32 to vector<32x256xf32>
    %28 = arith.maximumf %26, %27 : vector<32x256xf32>
    %c0_30 = arith.constant 0 : index
    %c0_31 = arith.constant 0 : index
    %c0_32 = arith.constant 0 : index
    %29 = vector.load %arg4[%c0_30, %c0_31, %c0_32] : memref<3x1x256xf32, #tpu.memory_space<vmem>>, vector<1x1x256xf32>
    %30 = vector.shape_cast %29 : vector<1x1x256xf32> to vector<1x256xf32>
    %31 = vector.shape_cast %28 : vector<32x256xf32> to vector<2x16x256xf32>
    %c0_33 = arith.constant 0 : index
    %c1_34 = arith.constant 1 : index
    %c0_35 = arith.constant 0 : index
    %32 = vector.load %arg13[%c0_33, %c1_34, %c0_35] : memref<2x18x256xf32, #tpu.memory_space<vmem>>, vector<2x16x256xf32>
    tpu.vector_store %arg13[%c0_33, %c1_34, %c0_35], %31 {strides = array<i32>} : memref<2x18x256xf32, #tpu.memory_space<vmem>>, vector<2x16x256xf32>,
    %cst_36 = arith.constant 0.000000e+00 : f32
    %33 = vector.broadcast %cst_36 : f32 to vector<32x256xf32>
    %c0_37 = arith.constant 0 : index
    %c0_38 = arith.constant 0 : index
    %c0_39 = arith.constant 0 : index
    %34 = vector.load %arg13[%c0_37, %c0_38, %c0_39] : memref<2x18x256xf32, #tpu.memory_space<vmem>>, vector<2x16x256xf32>
    %35 = vector.shape_cast %34 : vector<2x16x256xf32> to vector<32x256xf32>
    %c0_40 = arith.constant 0 : index
    %c0_41 = arith.constant 0 : index
    %c0_42 = arith.constant 0 : index
    %c0_43 = arith.constant 0 : index
    %36 = vector.load %arg3[%c0_40, %c0_41, %c0_42, %c0_43] : memref<3x3x256x256xf32, #tpu.memory_space<vmem>>, vector<1x1x256x256xf32>
    %37 = vector.shape_cast %36 : vector<1x1x256x256xf32> to vector<256x256xf32>
    %cst_44 = arith.constant dense<0.000000e+00> : vector<32x256xf32>
    %38 = tpu.matmul %35, %37, %cst_44 {dimension_numbers = #tpu.dot_dimension_numbers<[1], [0], [0], [1], [0, 0, 1, 1], [], []>} : vector<32x256xf32>, vector<256x256xf32>, vector<32x256xf32> -> vector<32x256xf32>
    %39 = arith.addf %33, %38 : vector<32x256xf32>
    %c0_45 = arith.constant 0 : index
    %c1_46 = arith.constant 1 : index
    %c0_47 = arith.constant 0 : index
    %40 = vector.load %arg13[%c0_45, %c1_46, %c0_47] : memref<2x18x256xf32, #tpu.memory_space<vmem>>, vector<2x16x256xf32>
    %41 = vector.shape_cast %40 : vector<2x16x256xf32> to vector<32x256xf32>
    %c0_48 = arith.constant 0 : index
    %c1_49 = arith.constant 1 : index
    %c0_50 = arith.constant 0 : index
    %c0_51 = arith.constant 0 : index
    %42 = vector.load %arg3[%c0_48, %c1_49, %c0_50, %c0_51] : memref<3x3x256x256xf32, #tpu.memory_space<vmem>>, vector<1x1x256x256xf32>
    %43 = vector.shape_cast %42 : vector<1x1x256x256xf32> to vector<256x256xf32>
    %cst_52 = arith.constant dense<0.000000e+00> : vector<32x256xf32>
    %44 = tpu.matmul %41, %43, %cst_52 {dimension_numbers = #tpu.dot_dimension_numbers<[1], [0], [0], [1], [0, 0, 1, 1], [], []>} : vector<32x256xf32>, vector<256x256xf32>, vector<32x256xf32> -> vector<32x256xf32>
    %45 = arith.addf %39, %44 : vector<32x256xf32>
    %c0_53 = arith.constant 0 : index
    %c2_54 = arith.constant 2 : index
    %c0_55 = arith.constant 0 : index
    %46 = vector.load %arg13[%c0_53, %c2_54, %c0_55] : memref<2x18x256xf32, #tpu.memory_space<vmem>>, vector<2x16x256xf32>
    %47 = vector.shape_cast %46 : vector<2x16x256xf32> to vector<32x256xf32>
    %c0_56 = arith.constant 0 : index
    %c2_57 = arith.constant 2 : index
    %c0_58 = arith.constant 0 : index
    %c0_59 = arith.constant 0 : index
    %48 = vector.load %arg3[%c0_56, %c2_57, %c0_58, %c0_59] : memref<3x3x256x256xf32, #tpu.memory_space<vmem>>, vector<1x1x256x256xf32>
    %49 = vector.shape_cast %48 : vector<1x1x256x256xf32> to vector<256x256xf32>
    %cst_60 = arith.constant dense<0.000000e+00> : vector<32x256xf32>
    %50 = tpu.matmul %47, %49, %cst_60 {dimension_numbers = #tpu.dot_dimension_numbers<[1], [0], [0], [1], [0, 0, 1, 1], [], []>} : vector<32x256xf32>, vector<256x256xf32>, vector<32x256xf32> -> vector<32x256xf32>
    %51 = arith.addf %45, %50 : vector<32x256xf32>
    %52 = vector.broadcast %30 : vector<1x256xf32> to vector<32x256xf32>
    %53 = arith.addf %51, %52 : vector<32x256xf32>
    %cst_61 = arith.constant 0.000000e+00 : f32
    %54 = vector.broadcast %cst_61 : f32 to vector<32x256xf32>
    %55 = arith.maximumf %53, %54 : vector<32x256xf32>
    %56 = vector.shape_cast %55 : vector<32x256xf32> to vector<2x16x256xf32>
    %c0_62 = arith.constant 0 : index
    %c1_63 = arith.constant 1 : index
    %c0_64 = arith.constant 0 : index
    %57 = vector.load %arg13[%c0_62, %c1_63, %c0_64] : memref<2x18x256xf32, #tpu.memory_space<vmem>>, vector<2x16x256xf32>
    tpu.vector_store %arg13[%c0_62, %c1_63, %c0_64], %56 {strides = array<i32>} : memref<2x18x256xf32, #tpu.memory_space<vmem>>, vector<2x16x256xf32>,
    %cst_65 = arith.constant 0.000000e+00 : f32
    %58 = vector.broadcast %cst_65 : f32 to vector<32x256xf32>
    %c0_66 = arith.constant 0 : index
    %c0_67 = arith.constant 0 : index
    %c0_68 = arith.constant 0 : index
    %59 = vector.load %arg13[%c0_66, %c0_67, %c0_68] : memref<2x18x256xf32, #tpu.memory_space<vmem>>, vector<2x16x256xf32>
    %60 = vector.shape_cast %59 : vector<2x16x256xf32> to vector<32x256xf32>
    %c0_69 = arith.constant 0 : index
    %c0_70 = arith.constant 0 : index
    %c0_71 = arith.constant 0 : index
    %c0_72 = arith.constant 0 : index
    %61 = vector.load %arg7[%c0_69, %c0_70, %c0_71, %c0_72] : memref<3x3x256x256xf32, #tpu.memory_space<vmem>>, vector<1x1x256x256xf32>
    %62 = vector.shape_cast %61 : vector<1x1x256x256xf32> to vector<256x256xf32>
    %cst_73 = arith.constant dense<0.000000e+00> : vector<32x256xf32>
    %63 = tpu.matmul %60, %62, %cst_73 {dimension_numbers = #tpu.dot_dimension_numbers<[1], [0], [0], [1], [0, 0, 1, 1], [], []>} : vector<32x256xf32>, vector<256x256xf32>, vector<32x256xf32> -> vector<32x256xf32>
    %64 = arith.addf %58, %63 : vector<32x256xf32>
    %c0_74 = arith.constant 0 : index
    %c1_75 = arith.constant 1 : index
    %c0_76 = arith.constant 0 : index
    %65 = vector.load %arg13[%c0_74, %c1_75, %c0_76] : memref<2x18x256xf32, #tpu.memory_space<vmem>>, vector<2x16x256xf32>
    %66 = vector.shape_cast %65 : vector<2x16x256xf32> to vector<32x256xf32>
    %c0_77 = arith.constant 0 : index
    %c1_78 = arith.constant 1 : index
    %c0_79 = arith.constant 0 : index
    %c0_80 = arith.constant 0 : index
    %67 = vector.load %arg7[%c0_77, %c1_78, %c0_79, %c0_80] : memref<3x3x256x256xf32, #tpu.memory_space<vmem>>, vector<1x1x256x256xf32>
    %68 = vector.shape_cast %67 : vector<1x1x256x256xf32> to vector<256x256xf32>
    %cst_81 = arith.constant dense<0.000000e+00> : vector<32x256xf32>
    %69 = tpu.matmul %66, %68, %cst_81 {dimension_numbers = #tpu.dot_dimension_numbers<[1], [0], [0], [1], [0, 0, 1, 1], [], []>} : vector<32x256xf32>, vector<256x256xf32>, vector<32x256xf32> -> vector<32x256xf32>
    %70 = arith.addf %64, %69 : vector<32x256xf32>
    %c0_82 = arith.constant 0 : index
    %c2_83 = arith.constant 2 : index
    %c0_84 = arith.constant 0 : index
    %71 = vector.load %arg13[%c0_82, %c2_83, %c0_84] : memref<2x18x256xf32, #tpu.memory_space<vmem>>, vector<2x16x256xf32>
    %72 = vector.shape_cast %71 : vector<2x16x256xf32> to vector<32x256xf32>
    %c0_85 = arith.constant 0 : index
    %c2_86 = arith.constant 2 : index
    %c0_87 = arith.constant 0 : index
    %c0_88 = arith.constant 0 : index
    %73 = vector.load %arg7[%c0_85, %c2_86, %c0_87, %c0_88] : memref<3x3x256x256xf32, #tpu.memory_space<vmem>>, vector<1x1x256x256xf32>
    %74 = vector.shape_cast %73 : vector<1x1x256x256xf32> to vector<256x256xf32>
    %cst_89 = arith.constant dense<0.000000e+00> : vector<32x256xf32>
    %75 = tpu.matmul %72, %74, %cst_89 {dimension_numbers = #tpu.dot_dimension_numbers<[1], [0], [0], [1], [0, 0, 1, 1], [], []>} : vector<32x256xf32>, vector<256x256xf32>, vector<32x256xf32> -> vector<32x256xf32>
    %76 = arith.addf %70, %75 : vector<32x256xf32>
    %77 = arith.addf %76, %28 : vector<32x256xf32>
    %c1_90 = arith.constant 1 : index
    %c0_91 = arith.constant 0 : index
    %c0_92 = arith.constant 0 : index
    %78 = vector.load %arg5[%c1_90, %c0_91, %c0_92] : memref<3x1x256xf32, #tpu.memory_space<vmem>>, vector<1x1x256xf32>
    %79 = vector.shape_cast %78 : vector<1x1x256xf32> to vector<1x256xf32>
    %80 = vector.broadcast %79 : vector<1x256xf32> to vector<32x256xf32>
    %81 = arith.mulf %77, %80 : vector<32x256xf32>
    %c1_93 = arith.constant 1 : index
    %c0_94 = arith.constant 0 : index
    %c0_95 = arith.constant 0 : index
    %82 = vector.load %arg6[%c1_93, %c0_94, %c0_95] : memref<3x1x256xf32, #tpu.memory_space<vmem>>, vector<1x1x256xf32>
    %83 = vector.shape_cast %82 : vector<1x1x256xf32> to vector<1x256xf32>
    %84 = vector.broadcast %83 : vector<1x256xf32> to vector<32x256xf32>
    %85 = arith.addf %81, %84 : vector<32x256xf32>
    %cst_96 = arith.constant 0.000000e+00 : f32
    %86 = vector.broadcast %cst_96 : f32 to vector<32x256xf32>
    %87 = arith.maximumf %85, %86 : vector<32x256xf32>
    %c1_97 = arith.constant 1 : index
    %c0_98 = arith.constant 0 : index
    %c0_99 = arith.constant 0 : index
    %88 = vector.load %arg4[%c1_97, %c0_98, %c0_99] : memref<3x1x256xf32, #tpu.memory_space<vmem>>, vector<1x1x256xf32>
    %89 = vector.shape_cast %88 : vector<1x1x256xf32> to vector<1x256xf32>
    %90 = vector.shape_cast %87 : vector<32x256xf32> to vector<2x16x256xf32>
    %c0_100 = arith.constant 0 : index
    %c1_101 = arith.constant 1 : index
    %c0_102 = arith.constant 0 : index
    %91 = vector.load %arg13[%c0_100, %c1_101, %c0_102] : memref<2x18x256xf32, #tpu.memory_space<vmem>>, vector<2x16x256xf32>
    tpu.vector_store %arg13[%c0_100, %c1_101, %c0_102], %90 {strides = array<i32>} : memref<2x18x256xf32, #tpu.memory_space<vmem>>, vector<2x16x256xf32>,
    %cst_103 = arith.constant 0.000000e+00 : f32
    %92 = vector.broadcast %cst_103 : f32 to vector<32x256xf32>
    %c0_104 = arith.constant 0 : index
    %c0_105 = arith.constant 0 : index
    %c0_106 = arith.constant 0 : index
    %93 = vector.load %arg13[%c0_104, %c0_105, %c0_106] : memref<2x18x256xf32, #tpu.memory_space<vmem>>, vector<2x16x256xf32>
    %94 = vector.shape_cast %93 : vector<2x16x256xf32> to vector<32x256xf32>
    %c1_107 = arith.constant 1 : index
    %c0_108 = arith.constant 0 : index
    %c0_109 = arith.constant 0 : index
    %c0_110 = arith.constant 0 : index
    %95 = vector.load %arg3[%c1_107, %c0_108, %c0_109, %c0_110] : memref<3x3x256x256xf32, #tpu.memory_space<vmem>>, vector<1x1x256x256xf32>
    %96 = vector.shape_cast %95 : vector<1x1x256x256xf32> to vector<256x256xf32>
    %cst_111 = arith.constant dense<0.000000e+00> : vector<32x256xf32>
    %97 = tpu.matmul %94, %96, %cst_111 {dimension_numbers = #tpu.dot_dimension_numbers<[1], [0], [0], [1], [0, 0, 1, 1], [], []>} : vector<32x256xf32>, vector<256x256xf32>, vector<32x256xf32> -> vector<32x256xf32>
    %98 = arith.addf %92, %97 : vector<32x256xf32>
    %c0_112 = arith.constant 0 : index
    %c1_113 = arith.constant 1 : index
    %c0_114 = arith.constant 0 : index
    %99 = vector.load %arg13[%c0_112, %c1_113, %c0_114] : memref<2x18x256xf32, #tpu.memory_space<vmem>>, vector<2x16x256xf32>
    %100 = vector.shape_cast %99 : vector<2x16x256xf32> to vector<32x256xf32>
    %c1_115 = arith.constant 1 : index
    %c1_116 = arith.constant 1 : index
    %c0_117 = arith.constant 0 : index
    %c0_118 = arith.constant 0 : index
    %101 = vector.load %arg3[%c1_115, %c1_116, %c0_117, %c0_118] : memref<3x3x256x256xf32, #tpu.memory_space<vmem>>, vector<1x1x256x256xf32>
    %102 = vector.shape_cast %101 : vector<1x1x256x256xf32> to vector<256x256xf32>
    %cst_119 = arith.constant dense<0.000000e+00> : vector<32x256xf32>
    %103 = tpu.matmul %100, %102, %cst_119 {dimension_numbers = #tpu.dot_dimension_numbers<[1], [0], [0], [1], [0, 0, 1, 1], [], []>} : vector<32x256xf32>, vector<256x256xf32>, vector<32x256xf32> -> vector<32x256xf32>
    %104 = arith.addf %98, %103 : vector<32x256xf32>
    %c0_120 = arith.constant 0 : index
    %c2_121 = arith.constant 2 : index
    %c0_122 = arith.constant 0 : index
    %105 = vector.load %arg13[%c0_120, %c2_121, %c0_122] : memref<2x18x256xf32, #tpu.memory_space<vmem>>, vector<2x16x256xf32>
    %106 = vector.shape_cast %105 : vector<2x16x256xf32> to vector<32x256xf32>
    %c1_123 = arith.constant 1 : index
    %c2_124 = arith.constant 2 : index
    %c0_125 = arith.constant 0 : index
    %c0_126 = arith.constant 0 : index
    %107 = vector.load %arg3[%c1_123, %c2_124, %c0_125, %c0_126] : memref<3x3x256x256xf32, #tpu.memory_space<vmem>>, vector<1x1x256x256xf32>
    %108 = vector.shape_cast %107 : vector<1x1x256x256xf32> to vector<256x256xf32>
    %cst_127 = arith.constant dense<0.000000e+00> : vector<32x256xf32>
    %109 = tpu.matmul %106, %108, %cst_127 {dimension_numbers = #tpu.dot_dimension_numbers<[1], [0], [0], [1], [0, 0, 1, 1], [], []>} : vector<32x256xf32>, vector<256x256xf32>, vector<32x256xf32> -> vector<32x256xf32>
    %110 = arith.addf %104, %109 : vector<32x256xf32>
    %111 = vector.broadcast %89 : vector<1x256xf32> to vector<32x256xf32>
    %112 = arith.addf %110, %111 : vector<32x256xf32>
    %cst_128 = arith.constant 0.000000e+00 : f32
    %113 = vector.broadcast %cst_128 : f32 to vector<32x256xf32>
    %114 = arith.maximumf %112, %113 : vector<32x256xf32>
    %115 = vector.shape_cast %114 : vector<32x256xf32> to vector<2x16x256xf32>
    %c0_129 = arith.constant 0 : index
    %c1_130 = arith.constant 1 : index
    %c0_131 = arith.constant 0 : index
    %116 = vector.load %arg13[%c0_129, %c1_130, %c0_131] : memref<2x18x256xf32, #tpu.memory_space<vmem>>, vector<2x16x256xf32>
    tpu.vector_store %arg13[%c0_129, %c1_130, %c0_131], %115 {strides = array<i32>} : memref<2x18x256xf32, #tpu.memory_space<vmem>>, vector<2x16x256xf32>,
    %cst_132 = arith.constant 0.000000e+00 : f32
    %117 = vector.broadcast %cst_132 : f32 to vector<32x256xf32>
    %c0_133 = arith.constant 0 : index
    %c0_134 = arith.constant 0 : index
    %c0_135 = arith.constant 0 : index
    %118 = vector.load %arg13[%c0_133, %c0_134, %c0_135] : memref<2x18x256xf32, #tpu.memory_space<vmem>>, vector<2x16x256xf32>
    %119 = vector.shape_cast %118 : vector<2x16x256xf32> to vector<32x256xf32>
    %c1_136 = arith.constant 1 : index
    %c0_137 = arith.constant 0 : index
    %c0_138 = arith.constant 0 : index
    %c0_139 = arith.constant 0 : index
    %120 = vector.load %arg7[%c1_136, %c0_137, %c0_138, %c0_139] : memref<3x3x256x256xf32, #tpu.memory_space<vmem>>, vector<1x1x256x256xf32>
    %121 = vector.shape_cast %120 : vector<1x1x256x256xf32> to vector<256x256xf32>
    %cst_140 = arith.constant dense<0.000000e+00> : vector<32x256xf32>
    %122 = tpu.matmul %119, %121, %cst_140 {dimension_numbers = #tpu.dot_dimension_numbers<[1], [0], [0], [1], [0, 0, 1, 1], [], []>} : vector<32x256xf32>, vector<256x256xf32>, vector<32x256xf32> -> vector<32x256xf32>
    %123 = arith.addf %117, %122 : vector<32x256xf32>
    %c0_141 = arith.constant 0 : index
    %c1_142 = arith.constant 1 : index
    %c0_143 = arith.constant 0 : index
    %124 = vector.load %arg13[%c0_141, %c1_142, %c0_143] : memref<2x18x256xf32, #tpu.memory_space<vmem>>, vector<2x16x256xf32>
    %125 = vector.shape_cast %124 : vector<2x16x256xf32> to vector<32x256xf32>
    %c1_144 = arith.constant 1 : index
    %c1_145 = arith.constant 1 : index
    %c0_146 = arith.constant 0 : index
    %c0_147 = arith.constant 0 : index
    %126 = vector.load %arg7[%c1_144, %c1_145, %c0_146, %c0_147] : memref<3x3x256x256xf32, #tpu.memory_space<vmem>>, vector<1x1x256x256xf32>
    %127 = vector.shape_cast %126 : vector<1x1x256x256xf32> to vector<256x256xf32>
    %cst_148 = arith.constant dense<0.000000e+00> : vector<32x256xf32>
    %128 = tpu.matmul %125, %127, %cst_148 {dimension_numbers = #tpu.dot_dimension_numbers<[1], [0], [0], [1], [0, 0, 1, 1], [], []>} : vector<32x256xf32>, vector<256x256xf32>, vector<32x256xf32> -> vector<32x256xf32>
    %129 = arith.addf %123, %128 : vector<32x256xf32>
    %c0_149 = arith.constant 0 : index
    %c2_150 = arith.constant 2 : index
    %c0_151 = arith.constant 0 : index
    %130 = vector.load %arg13[%c0_149, %c2_150, %c0_151] : memref<2x18x256xf32, #tpu.memory_space<vmem>>, vector<2x16x256xf32>
    %131 = vector.shape_cast %130 : vector<2x16x256xf32> to vector<32x256xf32>
    %c1_152 = arith.constant 1 : index
    %c2_153 = arith.constant 2 : index
    %c0_154 = arith.constant 0 : index
    %c0_155 = arith.constant 0 : index
    %132 = vector.load %arg7[%c1_152, %c2_153, %c0_154, %c0_155] : memref<3x3x256x256xf32, #tpu.memory_space<vmem>>, vector<1x1x256x256xf32>
    %133 = vector.shape_cast %132 : vector<1x1x256x256xf32> to vector<256x256xf32>
    %cst_156 = arith.constant dense<0.000000e+00> : vector<32x256xf32>
    %134 = tpu.matmul %131, %133, %cst_156 {dimension_numbers = #tpu.dot_dimension_numbers<[1], [0], [0], [1], [0, 0, 1, 1], [], []>} : vector<32x256xf32>, vector<256x256xf32>, vector<32x256xf32> -> vector<32x256xf32>
    %135 = arith.addf %129, %134 : vector<32x256xf32>
    %136 = arith.addf %135, %77 : vector<32x256xf32>
    %c2_157 = arith.constant 2 : index
    %c0_158 = arith.constant 0 : index
    %c0_159 = arith.constant 0 : index
    %137 = vector.load %arg5[%c2_157, %c0_158, %c0_159] : memref<3x1x256xf32, #tpu.memory_space<vmem>>, vector<1x1x256xf32>
    %138 = vector.shape_cast %137 : vector<1x1x256xf32> to vector<1x256xf32>
    %139 = vector.broadcast %138 : vector<1x256xf32> to vector<32x256xf32>
    %140 = arith.mulf %136, %139 : vector<32x256xf32>
    %c2_160 = arith.constant 2 : index
    %c0_161 = arith.constant 0 : index
    %c0_162 = arith.constant 0 : index
    %141 = vector.load %arg6[%c2_160, %c0_161, %c0_162] : memref<3x1x256xf32, #tpu.memory_space<vmem>>, vector<1x1x256xf32>
    %142 = vector.shape_cast %141 : vector<1x1x256xf32> to vector<1x256xf32>
    %143 = vector.broadcast %142 : vector<1x256xf32> to vector<32x256xf32>
    %144 = arith.addf %140, %143 : vector<32x256xf32>
    %cst_163 = arith.constant 0.000000e+00 : f32
    %145 = vector.broadcast %cst_163 : f32 to vector<32x256xf32>
    %146 = arith.maximumf %144, %145 : vector<32x256xf32>
    %c2_164 = arith.constant 2 : index
    %c0_165 = arith.constant 0 : index
    %c0_166 = arith.constant 0 : index
    %147 = vector.load %arg4[%c2_164, %c0_165, %c0_166] : memref<3x1x256xf32, #tpu.memory_space<vmem>>, vector<1x1x256xf32>
    %148 = vector.shape_cast %147 : vector<1x1x256xf32> to vector<1x256xf32>
    %149 = vector.shape_cast %146 : vector<32x256xf32> to vector<2x16x256xf32>
    %c0_167 = arith.constant 0 : index
    %c1_168 = arith.constant 1 : index
    %c0_169 = arith.constant 0 : index
    %150 = vector.load %arg13[%c0_167, %c1_168, %c0_169] : memref<2x18x256xf32, #tpu.memory_space<vmem>>, vector<2x16x256xf32>
    tpu.vector_store %arg13[%c0_167, %c1_168, %c0_169], %149 {strides = array<i32>} : memref<2x18x256xf32, #tpu.memory_space<vmem>>, vector<2x16x256xf32>,
    %cst_170 = arith.constant 0.000000e+00 : f32
    %151 = vector.broadcast %cst_170 : f32 to vector<32x256xf32>
    %c0_171 = arith.constant 0 : index
    %c0_172 = arith.constant 0 : index
    %c0_173 = arith.constant 0 : index
    %152 = vector.load %arg13[%c0_171, %c0_172, %c0_173] : memref<2x18x256xf32, #tpu.memory_space<vmem>>, vector<2x16x256xf32>
    %153 = vector.shape_cast %152 : vector<2x16x256xf32> to vector<32x256xf32>
    %c2_174 = arith.constant 2 : index
    %c0_175 = arith.constant 0 : index
    %c0_176 = arith.constant 0 : index
    %c0_177 = arith.constant 0 : index
    %154 = vector.load %arg3[%c2_174, %c0_175, %c0_176, %c0_177] : memref<3x3x256x256xf32, #tpu.memory_space<vmem>>, vector<1x1x256x256xf32>
    %155 = vector.shape_cast %154 : vector<1x1x256x256xf32> to vector<256x256xf32>
    %cst_178 = arith.constant dense<0.000000e+00> : vector<32x256xf32>
    %156 = tpu.matmul %153, %155, %cst_178 {dimension_numbers = #tpu.dot_dimension_numbers<[1], [0], [0], [1], [0, 0, 1, 1], [], []>} : vector<32x256xf32>, vector<256x256xf32>, vector<32x256xf32> -> vector<32x256xf32>
    %157 = arith.addf %151, %156 : vector<32x256xf32>
    %c0_179 = arith.constant 0 : index
    %c1_180 = arith.constant 1 : index
    %c0_181 = arith.constant 0 : index
    %158 = vector.load %arg13[%c0_179, %c1_180, %c0_181] : memref<2x18x256xf32, #tpu.memory_space<vmem>>, vector<2x16x256xf32>
    %159 = vector.shape_cast %158 : vector<2x16x256xf32> to vector<32x256xf32>
    %c2_182 = arith.constant 2 : index
    %c1_183 = arith.constant 1 : index
    %c0_184 = arith.constant 0 : index
    %c0_185 = arith.constant 0 : index
    %160 = vector.load %arg3[%c2_182, %c1_183, %c0_184, %c0_185] : memref<3x3x256x256xf32, #tpu.memory_space<vmem>>, vector<1x1x256x256xf32>
    %161 = vector.shape_cast %160 : vector<1x1x256x256xf32> to vector<256x256xf32>
    %cst_186 = arith.constant dense<0.000000e+00> : vector<32x256xf32>
    %162 = tpu.matmul %159, %161, %cst_186 {dimension_numbers = #tpu.dot_dimension_numbers<[1], [0], [0], [1], [0, 0, 1, 1], [], []>} : vector<32x256xf32>, vector<256x256xf32>, vector<32x256xf32> -> vector<32x256xf32>
    %163 = arith.addf %157, %162 : vector<32x256xf32>
    %c0_187 = arith.constant 0 : index
    %c2_188 = arith.constant 2 : index
    %c0_189 = arith.constant 0 : index
    %164 = vector.load %arg13[%c0_187, %c2_188, %c0_189] : memref<2x18x256xf32, #tpu.memory_space<vmem>>, vector<2x16x256xf32>
    %165 = vector.shape_cast %164 : vector<2x16x256xf32> to vector<32x256xf32>
    %c2_190 = arith.constant 2 : index
    %c2_191 = arith.constant 2 : index
    %c0_192 = arith.constant 0 : index
    %c0_193 = arith.constant 0 : index
    %166 = vector.load %arg3[%c2_190, %c2_191, %c0_192, %c0_193] : memref<3x3x256x256xf32, #tpu.memory_space<vmem>>, vector<1x1x256x256xf32>
    %167 = vector.shape_cast %166 : vector<1x1x256x256xf32> to vector<256x256xf32>
    %cst_194 = arith.constant dense<0.000000e+00> : vector<32x256xf32>
    %168 = tpu.matmul %165, %167, %cst_194 {dimension_numbers = #tpu.dot_dimension_numbers<[1], [0], [0], [1], [0, 0, 1, 1], [], []>} : vector<32x256xf32>, vector<256x256xf32>, vector<32x256xf32> -> vector<32x256xf32>
    %169 = arith.addf %163, %168 : vector<32x256xf32>
    %170 = vector.broadcast %148 : vector<1x256xf32> to vector<32x256xf32>
    %171 = arith.addf %169, %170 : vector<32x256xf32>
    %cst_195 = arith.constant 0.000000e+00 : f32
    %172 = vector.broadcast %cst_195 : f32 to vector<32x256xf32>
    %173 = arith.maximumf %171, %172 : vector<32x256xf32>
    %174 = vector.shape_cast %173 : vector<32x256xf32> to vector<2x16x256xf32>
    %c0_196 = arith.constant 0 : index
    %c1_197 = arith.constant 1 : index
    %c0_198 = arith.constant 0 : index
    %175 = vector.load %arg13[%c0_196, %c1_197, %c0_198] : memref<2x18x256xf32, #tpu.memory_space<vmem>>, vector<2x16x256xf32>
    tpu.vector_store %arg13[%c0_196, %c1_197, %c0_198], %174 {strides = array<i32>} : memref<2x18x256xf32, #tpu.memory_space<vmem>>, vector<2x16x256xf32>,
    %cst_199 = arith.constant 0.000000e+00 : f32
    %176 = vector.broadcast %cst_199 : f32 to vector<32x256xf32>
    %c0_200 = arith.constant 0 : index
    %c0_201 = arith.constant 0 : index
    %c0_202 = arith.constant 0 : index
    %177 = vector.load %arg13[%c0_200, %c0_201, %c0_202] : memref<2x18x256xf32, #tpu.memory_space<vmem>>, vector<2x16x256xf32>
    %178 = vector.shape_cast %177 : vector<2x16x256xf32> to vector<32x256xf32>
    %c2_203 = arith.constant 2 : index
    %c0_204 = arith.constant 0 : index
    %c0_205 = arith.constant 0 : index
    %c0_206 = arith.constant 0 : index
    %179 = vector.load %arg7[%c2_203, %c0_204, %c0_205, %c0_206] : memref<3x3x256x256xf32, #tpu.memory_space<vmem>>, vector<1x1x256x256xf32>
    %180 = vector.shape_cast %179 : vector<1x1x256x256xf32> to vector<256x256xf32>
    %cst_207 = arith.constant dense<0.000000e+00> : vector<32x256xf32>
    %181 = tpu.matmul %178, %180, %cst_207 {dimension_numbers = #tpu.dot_dimension_numbers<[1], [0], [0], [1], [0, 0, 1, 1], [], []>} : vector<32x256xf32>, vector<256x256xf32>, vector<32x256xf32> -> vector<32x256xf32>
    %182 = arith.addf %176, %181 : vector<32x256xf32>
    %c0_208 = arith.constant 0 : index
    %c1_209 = arith.constant 1 : index
    %c0_210 = arith.constant 0 : index
    %183 = vector.load %arg13[%c0_208, %c1_209, %c0_210] : memref<2x18x256xf32, #tpu.memory_space<vmem>>, vector<2x16x256xf32>
    %184 = vector.shape_cast %183 : vector<2x16x256xf32> to vector<32x256xf32>
    %c2_211 = arith.constant 2 : index
    %c1_212 = arith.constant 1 : index
    %c0_213 = arith.constant 0 : index
    %c0_214 = arith.constant 0 : index
    %185 = vector.load %arg7[%c2_211, %c1_212, %c0_213, %c0_214] : memref<3x3x256x256xf32, #tpu.memory_space<vmem>>, vector<1x1x256x256xf32>
    %186 = vector.shape_cast %185 : vector<1x1x256x256xf32> to vector<256x256xf32>
    %cst_215 = arith.constant dense<0.000000e+00> : vector<32x256xf32>
    %187 = tpu.matmul %184, %186, %cst_215 {dimension_numbers = #tpu.dot_dimension_numbers<[1], [0], [0], [1], [0, 0, 1, 1], [], []>} : vector<32x256xf32>, vector<256x256xf32>, vector<32x256xf32> -> vector<32x256xf32>
    %188 = arith.addf %182, %187 : vector<32x256xf32>
    %c0_216 = arith.constant 0 : index
    %c2_217 = arith.constant 2 : index
    %c0_218 = arith.constant 0 : index
    %189 = vector.load %arg13[%c0_216, %c2_217, %c0_218] : memref<2x18x256xf32, #tpu.memory_space<vmem>>, vector<2x16x256xf32>
    %190 = vector.shape_cast %189 : vector<2x16x256xf32> to vector<32x256xf32>
    %c2_219 = arith.constant 2 : index
    %c2_220 = arith.constant 2 : index
    %c0_221 = arith.constant 0 : index
    %c0_222 = arith.constant 0 : index
    %191 = vector.load %arg7[%c2_219, %c2_220, %c0_221, %c0_222] : memref<3x3x256x256xf32, #tpu.memory_space<vmem>>, vector<1x1x256x256xf32>
    %192 = vector.shape_cast %191 : vector<1x1x256x256xf32> to vector<256x256xf32>
    %cst_223 = arith.constant dense<0.000000e+00> : vector<32x256xf32>
    %193 = tpu.matmul %190, %192, %cst_223 {dimension_numbers = #tpu.dot_dimension_numbers<[1], [0], [0], [1], [0, 0, 1, 1], [], []>} : vector<32x256xf32>, vector<256x256xf32>, vector<32x256xf32> -> vector<32x256xf32>
    %194 = arith.addf %188, %193 : vector<32x256xf32>
    %195 = arith.addf %194, %136 : vector<32x256xf32>
    %c0_224 = arith.constant 0 : index
    %c0_225 = arith.constant 0 : index
    %196 = vector.load %arg8[%c0_224, %c0_225] : memref<1x256xf32, #tpu.memory_space<vmem>>, vector<1x256xf32>
    %197 = vector.broadcast %196 : vector<1x256xf32> to vector<32x256xf32>
    %198 = arith.mulf %195, %197 : vector<32x256xf32>
    %c0_226 = arith.constant 0 : index
    %c0_227 = arith.constant 0 : index
    %199 = vector.load %arg9[%c0_226, %c0_227] : memref<1x256xf32, #tpu.memory_space<vmem>>, vector<1x256xf32>
    %200 = vector.broadcast %199 : vector<1x256xf32> to vector<32x256xf32>
    %201 = arith.addf %198, %200 : vector<32x256xf32>
    %cst_228 = arith.constant 0.000000e+00 : f32
    %202 = vector.broadcast %cst_228 : f32 to vector<32x256xf32>
    %203 = arith.maximumf %201, %202 : vector<32x256xf32>
    %204 = vector.shape_cast %203 : vector<32x256xf32> to vector<2x4096xf32>
    %c0_229 = arith.constant 0 : index
    %c0_230 = arith.constant 0 : index
    %205 = vector.load %arg10[%c0_229, %c0_230] : memref<4096x128xf32, #tpu.memory_space<vmem>>, vector<4096x128xf32>
    %cst_231 = arith.constant dense<0.000000e+00> : vector<2x128xf32>
    %206 = tpu.matmul %204, %205, %cst_231 {dimension_numbers = #tpu.dot_dimension_numbers<[1], [0], [0], [1], [0, 0, 1, 1], [], []>} : vector<2x4096xf32>, vector<4096x128xf32>, vector<2x128xf32> -> vector<2x128xf32>
    %c0_232 = arith.constant 0 : index
    %c0_233 = arith.constant 0 : index
    %207 = vector.load %arg11[%c0_232, %c0_233] : memref<1x128xf32, #tpu.memory_space<vmem>>, vector<1x128xf32>
    %208 = vector.broadcast %207 : vector<1x128xf32> to vector<2x128xf32>
    %209 = arith.addf %206, %208 : vector<2x128xf32>
    %c0_234 = arith.constant 0 : index
    %c0_235 = arith.constant 0 : index
    %210 = vector.load %arg12[%c0_234, %c0_235] : memref<2x128xf32, #tpu.memory_space<vmem>>, vector<2x128xf32>
    tpu.vector_store %arg12[%c0_234, %c0_235], %209 {strides = array<i32>} : memref<2x128xf32, #tpu.memory_space<vmem>>, vector<2x128xf32>,
    return
  }
}

</mosaic_0001>

<bundles_post_ra>
// kernel: tile.68
= control target key start
LH: loop header
LB: loop body
LE: loop exit
PB: predicated region body
PF: predicated region fallthrough
CT: control target
= control target key end

     0   :  { %s28_s0 = inlined_call_operand.vmem [shape: f32[16], index: 0, kind: input, shape index: {}]   ;;  %s29_s1 = inlined_call_operand.vmem [shape: f32[16,16], index: 1, kind: output, shape index: {}]  }
   0x1   :  { %v4_v0 = vld [vmem:[%s28_s0] ss:$0 sm:$0xff] }
   0x2   :  { %5 = vst [vmem:[%s29_s1] sm:$0xff] %v4_v0 }
   0x3   :  { %8 = vst [vmem:[%s29_s1 + $0x8] sm:$0xff] %v4_v0 }

// kernel: tile.101
= control target key start
LH: loop header
LB: loop body
LE: loop exit
PB: predicated region body
PF: predicated region fallthrough
CT: control target
= control target key end

     0   :  { %s7_s6 = smov 3  ;;  %s21_s9 = smov 3  ;;  %vm4_vm0 = vcmask 130048   ;;  %vm11_vm1 = vcmask 1048448   ;;  %vm18_vm2 = vcmask 917248   ;;  %vm25_vm3 = vcmask 786048   ;;  %s129_s0 = inlined_call_operand.vmem [shape: f32[16,16], index: 0, kind: input, shape index: {}]   ;;  %s130_s1 = inlined_call_operand.vmem [shape: f32[1,1,256], index: 1, kind: output, shape index: {}]  }
   0x1   :  { %v67_v0 = vld [vmem:[%s129_s0 + $0x7] ss:$8 sm:%s7_s6]   ;;  %s82_s10 = smov 112   ;;  %v69_v1 = vld [vmem:[%s129_s0 + $0x5] ss:$8 sm:%s21_s9]   ;;  %s83_s13 = smov 80  }
   0x2   :  { %9 = vrot.lane.b32.xlu0 %v67_v0, %s82_s10  ;;  %23 = vrot.lane.b32.xlu1 %v69_v1, %s83_s13  ;;  %s14_s14 = smov 3  ;;  %s28_s15 = smov 3  ;;  %vm32_vm4 = vcmask 654848   ;;  %vm39_vm5 = vcmask 523648   ;;  %vm46_vm6 = vcmask 392448   ;;  %vm53_vm7 = vcmask 261248  }
   0x3   :  { %s35_s16 = smov 3  ;;  %v68_v3 = vld [vmem:[%s129_s0 + $0x6] ss:$8 sm:%s14_s14]   ;;  %s84_s21 = smov 48   ;;  %v70_v4 = vld [vmem:[%s129_s0 + $0x4] ss:$8 sm:%s28_s15]  }
   0x4   :  { %v71_v2 = vld [vmem:[%s129_s0 + $0x3] ss:$8 sm:%s35_s16]   ;;  %s42_s24 = smov 3  ;;  %s85_s25 = smov 96  }
   0x5   :  { %37 = vrot.lane.b32.xlu2 %v71_v2, %s84_s21  ;;  %s86_s26 = smov 64   ;;  %s49_s27 = smov 3  ;;  %v72_v5 = vld [vmem:[%s129_s0 + $0x2] ss:$8 sm:%s42_s24]  }
   0x6   :  { %v73_v6 = vld [vmem:[%s129_s0 + $0x1] ss:$8 sm:%s49_s27]   ;;  %s87_s3 = smov 32   ;;  %s88_s4 = smov 16  }
   0x7   :  { %s2_s5 = smov 3 }
   0x8   :  { %v3_v7 = vld [vmem:[%s129_s0] ss:$8 sm:%s2_s5]  }
   0x9   :  { %5 = vst.msk [vmem:[#allocation0] ss:$8 sm:$0x3] %vm4_vm0, %v3_v7  }
   0xa   :  { %16 = vrot.lane.b32.xlu0 %v68_v3, %s85_s25  ;;  %30 = vrot.lane.b32.xlu1 %v70_v4, %s86_s26 }
   0xd   :  { %44 = vrot.lane.b32.xlu2 %v72_v5, %s87_s3 }
  0x12   :  { %51 = vrot.lane.b32.xlu0 %v73_v6, %s88_s4 }
  0x5f   :  { %v38_v8 = vpop.permute.xlu2 %37  }
  0x67   :  { %v45_v9 = vpop.permute.xlu2 %44  }
  0x74   :  { %v10_v10 = vpop.permute.xlu0 %9   ;;  %v24_v11 = vpop.permute.xlu1 %23  }
  0x75   :  { %12 = vst.msk [vmem:[#allocation0] ss:$8 sm:$0x3] %vm11_vm1, %v10_v10  }
  0x7c   :  { %v17_v12 = vpop.permute.xlu0 %16   ;;  %v31_v13 = vpop.permute.xlu1 %30  }
  0x7d   :  { %19 = vst.msk [vmem:[#allocation0] ss:$8 sm:$0x3] %vm18_vm2, %v17_v12  }
  0x7e   :  { %26 = vst.msk [vmem:[#allocation0] ss:$8 sm:$0x3] %vm25_vm3, %v24_v11  }
  0x7f   :  { %33 = vst.msk [vmem:[#allocation0] ss:$8 sm:$0x3] %vm32_vm4, %v31_v13  }
  0x80   :  { %40 = vst.msk [vmem:[#allocation0] ss:$8 sm:$0x3] %vm39_vm5, %v38_v8  }
  0x81   :  { %47 = vst.msk [vmem:[#allocation0] ss:$8 sm:$0x3] %vm46_vm6, %v45_v9  }
  0x84   :  { %v52_v14 = vpop.permute.xlu0 %51  }
  0x85   :  { %54 = vst.msk [vmem:[#allocation0] ss:$8 sm:$0x3] %vm53_vm7, %v52_v14  }
  0x8c   :  { %v57_v15 = vld [vmem:[#allocation0] sm:$0x1]  ;;  %v62_v16 = vld [vmem:[#allocation0 + $0x8] sm:$0x1] }
  0x8d   :  { %60 = vst [vmem:[%s130_s1] sm:$0x1] %v57_v15 }
  0x8e   :  { %74 = vst [vmem:[%s130_s1 + $0x1] sm:$0x1] %v62_v16 }

// kernel: tile.114
= control target key start
LH: loop header
LB: loop body
LE: loop exit
PB: predicated region body
PF: predicated region fallthrough
CT: control target
= control target key end

     0   :  { %s7_s6 = smov 3  ;;  %s21_s9 = smov 3  ;;  %vm4_vm0 = vcmask 130048   ;;  %vm11_vm1 = vcmask 1048448   ;;  %vm18_vm2 = vcmask 917248   ;;  %vm25_vm3 = vcmask 786048   ;;  %s129_s0 = inlined_call_operand.vmem [shape: f32[16,16], index: 0, kind: input, shape index: {}]   ;;  %s130_s1 = inlined_call_operand.vmem [shape: f32[1,256], index: 1, kind: output, shape index: {}]  }
   0x1   :  { %v67_v0 = vld [vmem:[%s129_s0 + $0x7] ss:$8 sm:%s7_s6]   ;;  %s82_s10 = smov 112   ;;  %v69_v1 = vld [vmem:[%s129_s0 + $0x5] ss:$8 sm:%s21_s9]   ;;  %s83_s13 = smov 80  }
   0x2   :  { %9 = vrot.lane.b32.xlu0 %v67_v0, %s82_s10  ;;  %23 = vrot.lane.b32.xlu1 %v69_v1, %s83_s13  ;;  %s14_s14 = smov 3  ;;  %s28_s15 = smov 3  ;;  %vm32_vm4 = vcmask 654848   ;;  %vm39_vm5 = vcmask 523648   ;;  %vm46_vm6 = vcmask 392448   ;;  %vm53_vm7 = vcmask 261248  }
   0x3   :  { %s35_s16 = smov 3  ;;  %v68_v3 = vld [vmem:[%s129_s0 + $0x6] ss:$8 sm:%s14_s14]   ;;  %s84_s21 = smov 48   ;;  %v70_v4 = vld [vmem:[%s129_s0 + $0x4] ss:$8 sm:%s28_s15]  }
   0x4   :  { %v71_v2 = vld [vmem:[%s129_s0 + $0x3] ss:$8 sm:%s35_s16]   ;;  %s42_s24 = smov 3  ;;  %s85_s25 = smov 96  }
   0x5   :  { %37 = vrot.lane.b32.xlu2 %v71_v2, %s84_s21  ;;  %s86_s26 = smov 64   ;;  %s49_s27 = smov 3  ;;  %v72_v5 = vld [vmem:[%s129_s0 + $0x2] ss:$8 sm:%s42_s24]  }
   0x6   :  { %v73_v6 = vld [vmem:[%s129_s0 + $0x1] ss:$8 sm:%s49_s27]   ;;  %s87_s3 = smov 32   ;;  %s88_s4 = smov 16  }
   0x7   :  { %s2_s5 = smov 3 }
   0x8   :  { %v3_v7 = vld [vmem:[%s129_s0] ss:$8 sm:%s2_s5]  }
   0x9   :  { %5 = vst.msk [vmem:[#allocation0] ss:$8 sm:$0x3] %vm4_vm0, %v3_v7  }
   0xa   :  { %16 = vrot.lane.b32.xlu0 %v68_v3, %s85_s25  ;;  %30 = vrot.lane.b32.xlu1 %v70_v4, %s86_s26 }
   0xd   :  { %44 = vrot.lane.b32.xlu2 %v72_v5, %s87_s3 }
  0x12   :  { %51 = vrot.lane.b32.xlu0 %v73_v6, %s88_s4 }
  0x5f   :  { %v38_v8 = vpop.permute.xlu2 %37  }
  0x67   :  { %v45_v9 = vpop.permute.xlu2 %44  }
  0x74   :  { %v10_v10 = vpop.permute.xlu0 %9   ;;  %v24_v11 = vpop.permute.xlu1 %23  }
  0x75   :  { %12 = vst.msk [vmem:[#allocation0] ss:$8 sm:$0x3] %vm11_vm1, %v10_v10  }
  0x7c   :  { %v17_v12 = vpop.permute.xlu0 %16   ;;  %v31_v13 = vpop.permute.xlu1 %30  }
  0x7d   :  { %19 = vst.msk [vmem:[#allocation0] ss:$8 sm:$0x3] %vm18_vm2, %v17_v12  }
  0x7e   :  { %26 = vst.msk [vmem:[#allocation0] ss:$8 sm:$0x3] %vm25_vm3, %v24_v11  }
  0x7f   :  { %33 = vst.msk [vmem:[#allocation0] ss:$8 sm:$0x3] %vm32_vm4, %v31_v13  }
  0x80   :  { %40 = vst.msk [vmem:[#allocation0] ss:$8 sm:$0x3] %vm39_vm5, %v38_v8  }
  0x81   :  { %47 = vst.msk [vmem:[#allocation0] ss:$8 sm:$0x3] %vm46_vm6, %v45_v9  }
  0x84   :  { %v52_v14 = vpop.permute.xlu0 %51  }
  0x85   :  { %54 = vst.msk [vmem:[#allocation0] ss:$8 sm:$0x3] %vm53_vm7, %v52_v14  }
  0x8c   :  { %v57_v15 = vld [vmem:[#allocation0] sm:$0x1]  ;;  %v62_v16 = vld [vmem:[#allocation0 + $0x8] sm:$0x1] }
  0x8d   :  { %60 = vst [vmem:[%s130_s1] sm:$0x1] %v57_v15 }
  0x8e   :  { %74 = vst [vmem:[%s130_s1 + $0x1] sm:$0x1] %v62_v16 }

// kernel: one_rep_resnet_forward.1
= control target key start
LH: loop header
LB: loop body
LE: loop exit
PB: predicated region body
PF: predicated region fallthrough
CT: control target
= control target key end

     0   :  { %v7660_v6 = vmov 0.0   ;;  %vm71_vm0 = vcmask 1040384   ;;  %vm200_vm1 = vcmask 1046528   ;;  %s14715_s0 = inlined_call_operand.vmem [shape: f32[32,256], index: 0, kind: input, shape index: {}]   ;;  %s14716_s1 = inlined_call_operand.vmem [shape: f32[3,256,256], index: 1, kind: input, shape index: {}]   ;;  %s14717_s2 = inlined_call_operand.vmem [shape: f32[1,256], index: 2, kind: input, shape index: {}]   ;;  %s14718_s3 = inlined_call_operand.vmem [shape: f32[3,3,256,256], index: 3, kind: input, shape index: {}]   ;;  %s14719_s4 = inlined_call_operand.vmem [shape: f32[3,1,256], index: 4, kind: input, shape index: {}]   ;;  %s14720_s5 = inlined_call_operand.vmem [shape: f32[3,1,256], index: 5, kind: input, shape index: {}]   ;;  %s14721_s6 = inlined_call_operand.vmem [shape: f32[3,1,256], index: 6, kind: input, shape index: {}]   ;;  %s14722_s7 = inlined_call_operand.vmem [shape: f32[3,3,256,256], index: 7, kind: input, shape index: {}]   ;;  %s14723_s8 = inlined_call_operand.vmem [shape: f32[1,256], index: 8, kind: input, shape index: {}]   ;;  %s14724_s9 = inlined_call_operand.vmem [shape: f32[1,256], index: 9, kind: input, shape index: {}]   ;;  %s14725_s10 = inlined_call_operand.vmem [shape: f32[4096,128], index: 10, kind: input, shape index: {}]   ;;  %s14726_s11 = inlined_call_operand.vmem [shape: f32[1,128], index: 11, kind: input, shape index: {}]   ;;  %s14727_s12 = inlined_call_operand.hbm [shape: f32[2,128], index: 12, kind: output, shape index: {}]  }
   0x1   :  { %v6502_v0 = vld [vmem:[%s14716_s1 + $0x2f0] sm:$0xff]  ;;  %v6503_v2 = vld [vmem:[%s14716_s1 + $0x2f8] sm:$0xff]  ;;  %v6500_v4 = vld [vmem:[%s14716_s1 + $0x2e0] sm:$0xff]  ;;  %42 = vst [vmem:[#allocation2 + $0x30] sm:$0xff] %v7660_v6 }
   0x2   :  { %v6534_v1 = vld [vmem:[%s14716_s1 + $0x3f0] sm:$0xff]  ;;  %294 = vmatpush.msra.mxu0 %v6502_v0  ;;  %v6535_v3 = vld [vmem:[%s14716_s1 + $0x3f8] sm:$0xff]  ;;  %v6532_v5 = vld [vmem:[%s14716_s1 + $0x3e0] sm:$0xff]  ;;  %352 = vmatpush.msra.mxu2 %v6503_v2  ;;  %43 = vst [vmem:[#allocation2] sm:$0xff] %v7660_v6 }
   0x3   :  { %323 = vmatpush.msra.mxu1 %v6534_v1  ;;  %381 = vmatpush.msra.mxu3 %v6535_v3  ;;  %v6501_v7 = vld [vmem:[%s14716_s1 + $0x2e8] sm:$0xff]  ;;  %v6498_v9 = vld [vmem:[%s14716_s1 + $0x2d0] sm:$0xff]  ;;  %v6499_v11 = vld [vmem:[%s14716_s1 + $0x2d8] sm:$0xff]  ;;  %46 = vst [vmem:[#allocation2 + $0x50] sm:$0x3] %v7660_v6 }
   0x4   :  { %v6533_v8 = vld [vmem:[%s14716_s1 + $0x3e8] sm:$0xff]  ;;  %295 = vmatpush.msra.mxu0 %v6500_v4  ;;  %v6530_v10 = vld [vmem:[%s14716_s1 + $0x3d0] sm:$0xff]  ;;  %v6531_v12 = vld [vmem:[%s14716_s1 + $0x3d8] sm:$0xff]  ;;  %353 = vmatpush.msra.mxu2 %v6501_v7  ;;  %47 = vst [vmem:[#allocation2 + $0x20] sm:$0x3] %v7660_v6 }
   0x5   :  { %324 = vmatpush.msra.mxu1 %v6532_v5  ;;  %382 = vmatpush.msra.mxu3 %v6533_v8  ;;  %v6496_v13 = vld [vmem:[%s14716_s1 + $0x2c0] sm:$0xff]  ;;  %v6497_v15 = vld [vmem:[%s14716_s1 + $0x2c8] sm:$0xff]  ;;  %48 = vst [vmem:[#allocation2 + $0x8] sm:$0xff] %v7660_v6  ;;  %v6494_v17 = vld [vmem:[%s14716_s1 + $0x2b0] sm:$0xff] }
   0x6   :  { %v6528_v14 = vld [vmem:[%s14716_s1 + $0x3c0] sm:$0xff]  ;;  %296 = vmatpush.msra.mxu0 %v6498_v9  ;;  %v6529_v16 = vld [vmem:[%s14716_s1 + $0x3c8] sm:$0xff]  ;;  %354 = vmatpush.msra.mxu2 %v6499_v11  ;;  %v6526_v18 = vld [vmem:[%s14716_s1 + $0x3b0] sm:$0xff]  ;;  %49 = vst [vmem:[#allocation2 + $0x38] sm:$0xff] %v7660_v6 }
   0x7   :  { %325 = vmatpush.msra.mxu1 %v6530_v10  ;;  %383 = vmatpush.msra.mxu3 %v6531_v12  ;;  %v6495_v19 = vld [vmem:[%s14716_s1 + $0x2b8] sm:$0xff]  ;;  %52 = vst [vmem:[#allocation2 + $0x10] sm:$0x3] %v7660_v6  ;;  %v6492_v21 = vld [vmem:[%s14716_s1 + $0x2a0] sm:$0xff]  ;;  %v6493_v23 = vld [vmem:[%s14716_s1 + $0x2a8] sm:$0xff] }
   0x8   :  { %297 = vmatpush.msra.mxu0 %v6496_v13  ;;  %v6527_v20 = vld [vmem:[%s14716_s1 + $0x3b8] sm:$0xff]  ;;  %355 = vmatpush.msra.mxu2 %v6497_v15  ;;  %v6524_v22 = vld [vmem:[%s14716_s1 + $0x3a0] sm:$0xff]  ;;  %53 = vst [vmem:[#allocation2 + $0x40] sm:$0x3] %v7660_v6  ;;  %v6525_v24 = vld [vmem:[%s14716_s1 + $0x3a8] sm:$0xff] }
   0x9   :  { %326 = vmatpush.msra.mxu1 %v6528_v14  ;;  %384 = vmatpush.msra.mxu3 %v6529_v16  ;;  %v6490_v25 = vld [vmem:[%s14716_s1 + $0x290] sm:$0xff]  ;;  %v6491_v27 = vld [vmem:[%s14716_s1 + $0x298] sm:$0xff]  ;;  %v6488_v29 = vld [vmem:[%s14716_s1 + $0x280] sm:$0xff] }
   0xa   :  { %298 = vmatpush.msra.mxu0 %v6494_v17  ;;  %356 = vmatpush.msra.mxu2 %v6495_v19  ;;  %v6522_v26 = vld [vmem:[%s14716_s1 + $0x390] sm:$0xff]  ;;  %v6523_v28 = vld [vmem:[%s14716_s1 + $0x398] sm:$0xff]  ;;  %v6520_v30 = vld [vmem:[%s14716_s1 + $0x380] sm:$0xff] }
   0xb   :  { %327 = vmatpush.msra.mxu1 %v6526_v18  ;;  %385 = vmatpush.msra.mxu3 %v6527_v20  ;;  %v6489_v31 = vld [vmem:[%s14716_s1 + $0x288] sm:$0xff]  ;;  %v6486_v33 = vld [vmem:[%s14716_s1 + $0x270] sm:$0xff]  ;;  %v6487_v35 = vld [vmem:[%s14716_s1 + $0x278] sm:$0xff] }
   0xc   :  { %299 = vmatpush.msra.mxu0 %v6492_v21  ;;  %357 = vmatpush.msra.mxu2 %v6493_v23  ;;  %v6521_v32 = vld [vmem:[%s14716_s1 + $0x388] sm:$0xff]  ;;  %v6518_v34 = vld [vmem:[%s14716_s1 + $0x370] sm:$0xff]  ;;  %v6519_v36 = vld [vmem:[%s14716_s1 + $0x378] sm:$0xff] }
   0xd   :  { %328 = vmatpush.msra.mxu1 %v6524_v22  ;;  %386 = vmatpush.msra.mxu3 %v6525_v24  ;;  %v6484_v37 = vld [vmem:[%s14716_s1 + $0x260] sm:$0xff]  ;;  %v6485_v39 = vld [vmem:[%s14716_s1 + $0x268] sm:$0xff]  ;;  %v6482_v41 = vld [vmem:[%s14716_s1 + $0x250] sm:$0xff] }
   0xe   :  { %300 = vmatpush.msra.mxu0 %v6490_v25  ;;  %358 = vmatpush.msra.mxu2 %v6491_v27  ;;  %v6516_v38 = vld [vmem:[%s14716_s1 + $0x360] sm:$0xff]  ;;  %v6517_v40 = vld [vmem:[%s14716_s1 + $0x368] sm:$0xff]  ;;  %v6514_v42 = vld [vmem:[%s14716_s1 + $0x350] sm:$0xff] }
   0xf   :  { %329 = vmatpush.msra.mxu1 %v6522_v26  ;;  %387 = vmatpush.msra.mxu3 %v6523_v28  ;;  %v6483_v43 = vld [vmem:[%s14716_s1 + $0x258] sm:$0xff]  ;;  %v6480_v45 = vld [vmem:[%s14716_s1 + $0x240] sm:$0xff]  ;;  %v6481_v47 = vld [vmem:[%s14716_s1 + $0x248] sm:$0xff] }
  0x10   :  { %301 = vmatpush.msra.mxu0 %v6488_v29  ;;  %359 = vmatpush.msra.mxu2 %v6489_v31  ;;  %v6515_v44 = vld [vmem:[%s14716_s1 + $0x358] sm:$0xff]  ;;  %v6512_v46 = vld [vmem:[%s14716_s1 + $0x340] sm:$0xff]  ;;  %v6513_v48 = vld [vmem:[%s14716_s1 + $0x348] sm:$0xff] }
  0x11   :  { %330 = vmatpush.msra.mxu1 %v6520_v30  ;;  %388 = vmatpush.msra.mxu3 %v6521_v32  ;;  %v6478_v49 = vld [vmem:[%s14716_s1 + $0x230] sm:$0xff]  ;;  %v54_v50 = vld [vmem:[%s14715_s0] sm:$0xff]  ;;  %v55_v55 = vld [vmem:[%s14715_s0 + $0x8] sm:$0xff] }
  0x12   :  { %302 = vmatpush.msra.mxu0 %v6486_v33  ;;  %360 = vmatpush.msra.mxu2 %v6487_v35  ;;  %v56_v51 = vld [vmem:[%s14715_s0 + $0x10] sm:$0xff]  ;;  %v72_v53 = vrot.slane %v54_v50, 7  ;;  %v57_v56 = vld [vmem:[%s14715_s0 + $0x18] sm:$0xff]  ;;  %v73_v59 = vrot.slane %v55_v55, 7  ;;  %v6476_v61 = vld [vmem:[%s14716_s1 + $0x220] sm:$0xff] }
  0x13   :  { %331 = vmatpush.msra.mxu1 %v6518_v34  ;;  %389 = vmatpush.msra.mxu3 %v6519_v36  ;;  %v6510_v52 = vld [vmem:[%s14716_s1 + $0x330] sm:$0xff]  ;;  %v74_v54 = vrot.slane %v56_v51, 7  ;;  %v6479_v57 = vld [vmem:[%s14716_s1 + $0x238] sm:$0xff]  ;;  %v76_v60 = vrot.slane %v57_v56, 7  ;;  %v6508_v62 = vld [vmem:[%s14716_s1 + $0x320] sm:$0xff] }
  0x14   :  { %303 = vmatpush.msra.mxu0 %v6484_v37  ;;  %361 = vmatpush.msra.mxu2 %v6485_v39  ;;  %v6511_v58 = vld [vmem:[%s14716_s1 + $0x338] sm:$0xff]  ;;  %96 = vst [vmem:[#allocation2 + $0x30] sm:$0xfe] %v72_v53  ;;  %v6477_v63 = vld [vmem:[%s14716_s1 + $0x228] sm:$0xff]  ;;  %v6474_v1 = vld [vmem:[%s14716_s1 + $0x210] sm:$0xff] }
  0x15   :  { %332 = vmatpush.msra.mxu1 %v6516_v38  ;;  %390 = vmatpush.msra.mxu3 %v6517_v40  ;;  %v6509_v0 = vld [vmem:[%s14716_s1 + $0x328] sm:$0xff]  ;;  %97 = vst [vmem:[#allocation2] sm:$0xfe] %v73_v59  ;;  %v6506_v2 = vld [vmem:[%s14716_s1 + $0x310] sm:$0xff]  ;;  %v6475_v3 = vld [vmem:[%s14716_s1 + $0x218] sm:$0xff]  ;;  %v7921_v5 = vsel %vm71_vm0, %v72_v53, %v74_v54  ;;  %v7930_v8 = vsel %vm71_vm0, %v73_v59, %v76_v60 }
  0x16   :  { %304 = vmatpush.msra.mxu0 %v6482_v41  ;;  %362 = vmatpush.msra.mxu2 %v6483_v43  ;;  %100 = vst [vmem:[#allocation2 + $0x50] sm:$0x1] %v74_v54  ;;  %v6507_v4 = vld [vmem:[%s14716_s1 + $0x318] sm:$0xff]  ;;  %v6472_v6 = vld [vmem:[%s14716_s1 + $0x200] sm:$0xff]  ;;  %v6473_v9 = vld [vmem:[%s14716_s1 + $0x208] sm:$0xff]  ;;  %v202_v11 = vrot.slane %v7921_v5, 1 }
  0x17   :  { %333 = vmatpush.msra.mxu1 %v6514_v42  ;;  %391 = vmatpush.msra.mxu3 %v6515_v44  ;;  %101 = vst [vmem:[#allocation2 + $0x20] sm:$0x1] %v76_v60  ;;  %v6504_v7 = vld [vmem:[%s14716_s1 + $0x300] sm:$0xff]  ;;  %v6505_v10 = vld [vmem:[%s14716_s1 + $0x308] sm:$0xff]  ;;  %v146_v12 = vld [vmem:[%s14716_s1 + $0xf0] sm:$0xff]  ;;  %v205_v15 = vrot.slane %v7930_v8, 1 }
  0x18   :  { %305 = vmatpush.msra.mxu0 %v6480_v45  ;;  %363 = vmatpush.msra.mxu2 %v6481_v47  ;;  %v178_v13 = vld [vmem:[%s14716_s1 + $0x1f0] sm:$0xff]  ;;  %v147_v16 = vld [vmem:[%s14716_s1 + $0xf8] sm:$0xff]  ;;  %v144_v20 = vld [vmem:[%s14716_s1 + $0xe0] sm:$0xff] }
  0x19   :  { %334 = vmatpush.msra.mxu1 %v6512_v46  ;;  %392 = vmatpush.msra.mxu3 %v6513_v48  ;;  %v179_v17 = vld [vmem:[%s14716_s1 + $0x1f8] sm:$0xff]  ;;  %v176_v22 = vld [vmem:[%s14716_s1 + $0x1e0] sm:$0xff]  ;;  %v145_v23 = vld [vmem:[%s14716_s1 + $0xe8] sm:$0xff] }
  0x1a   :  { %306 = vmatpush.msra.mxu0 %v6478_v49  ;;  %364 = vmatpush.msra.mxu2 %v6479_v57  ;;  %v177_v26 = vld [vmem:[%s14716_s1 + $0x1e8] sm:$0xff]  ;;  %v58_v28 = vld [vmem:[%s14715_s0 + $0x20] sm:$0xff]  ;;  %v60_v30 = vld [vmem:[%s14715_s0 + $0x30] sm:$0xff] }
  0x1b   :  { %335 = vmatpush.msra.mxu1 %v6510_v52  ;;  %393 = vmatpush.msra.mxu3 %v6511_v58  ;;  %v180_v14 = vld [vmem:[#allocation2 + $0x30] sm:$0xfe]  ;;  %v78_v31 = vrot.slane %v58_v28, 7  ;;  %v59_v32 = vld [vmem:[%s14715_s0 + $0x28] sm:$0xff]  ;;  %v142_v34 = vld [vmem:[%s14716_s1 + $0xd0] sm:$0xff]  ;;  %v80_v37 = vrot.slane %v60_v30, 7 }
  0x1c   :  { %307 = vmatpush.msra.mxu0 %v6476_v61  ;;  %365 = vmatpush.msra.mxu2 %v6477_v63  ;;  %v201_v18 = vrot.slane %v180_v14, 1  ;;  %v181_v19 = vld [vmem:[#allocation2] sm:$0xfe]  ;;  %v61_v33 = vld [vmem:[%s14715_s0 + $0x38] sm:$0xff]  ;;  %v174_v35 = vld [vmem:[%s14716_s1 + $0x1d0] sm:$0xff]  ;;  %v79_v38 = vrot.slane %v59_v32, 7 }
  0x1d   :  { %336 = vmatpush.msra.mxu1 %v6508_v62  ;;  %394 = vmatpush.msra.mxu3 %v6509_v0  ;;  %v204_v21 = vrot.slane %v181_v19, 1  ;;  %v182_v24 = vld [vmem:[#allocation2 + $0x50] sm:$0x1]  ;;  %v82_v39 = vrot.slane %v61_v33, 7  ;;  %102 = vst [vmem:[#allocation2 + $0x8] sm:$0xfe] %v78_v31  ;;  %v8017_v53 = vsel %vm71_vm0, %v78_v31, %v80_v37 }
  0x1e   :  { %308 = vmatpush.msra.mxu0 %v6474_v1  ;;  %366 = vmatpush.msra.mxu2 %v6475_v3  ;;  %v203_v25 = vsel %vm200_vm1, %v201_v18, %v202_v11  ;;  %v183_v27 = vld [vmem:[#allocation2 + $0x20] sm:$0x1]  ;;  %v207_v36 = vrot.slane %v182_v24, 1  ;;  %v143_v40 = vld [vmem:[%s14716_s1 + $0xd8] sm:$0xff]  ;;  %v140_v43 = vld [vmem:[%s14716_s1 + $0xc0] sm:$0xff]  ;;  %v212_v63 = vrot.slane %v8017_v53, 1 }
  0x1f   :  { %337 = vmatpush.msra.mxu1 %v6506_v2  ;;  %395 = vmatpush.msra.mxu3 %v6507_v4  ;;  %v206_v29 = vsel %vm200_vm1, %v204_v21, %v205_v15  ;;  %v175_v41 = vld [vmem:[%s14716_s1 + $0x1d8] sm:$0xff]  ;;  %v209_v42 = vrot.slane %v183_v27, 1  ;;  %v172_v44 = vld [vmem:[%s14716_s1 + $0x1c0] sm:$0xff]  ;;  %106 = vst [vmem:[#allocation2 + $0x10] sm:$0x1] %v80_v37  ;;  %v141_v45 = vld [vmem:[%s14716_s1 + $0xc8] sm:$0xff]  ;;  %v8020_v54 = vsel %vm71_vm0, %v79_v38, %v82_v39 }
  0x20   :  { %309 = vmatpush.msra.mxu0 %v6472_v6  ;;  %367 = vmatpush.msra.mxu2 %v6473_v9  ;;  %v173_v46 = vld [vmem:[%s14716_s1 + $0x1c8] sm:$0xff]  ;;  %103 = vst [vmem:[#allocation2 + $0x38] sm:$0xfe] %v79_v38  ;;  %v208_v47 = vsel %vm200_vm1, %v202_v11, %v207_v36  ;;  %v138_v49 = vld [vmem:[%s14716_s1 + $0xb0] sm:$0xff]  ;;  %v139_v51 = vld [vmem:[%s14716_s1 + $0xb8] sm:$0xff]  ;;  %v215_v1 = vrot.slane %v8020_v54, 1 }
  0x21   :  { %338 = vmatpush.msra.mxu1 %v6504_v7  ;;  %396 = vmatpush.msra.mxu3 %v6505_v10  ;;  %107 = vst [vmem:[#allocation2 + $0x40] sm:$0x1] %v82_v39  ;;  %v210_v48 = vsel %vm200_vm1, %v205_v15, %v209_v42  ;;  %v170_v50 = vld [vmem:[%s14716_s1 + $0x1b0] sm:$0xff]  ;;  %v171_v52 = vld [vmem:[%s14716_s1 + $0x1b8] sm:$0xff]  ;;  %v136_v55 = vld [vmem:[%s14716_s1 + $0xa0] sm:$0xff] }
  0x22   :  { %410 = vmatpush.msrb.mxu0 %v146_v12  ;;  %468 = vmatpush.msrb.mxu2 %v147_v16  ;;  %v168_v56 = vld [vmem:[%s14716_s1 + $0x1a0] sm:$0xff]  ;;  %v137_v58 = vld [vmem:[%s14716_s1 + $0xa8] sm:$0xff]  ;;  %v134_v60 = vld [vmem:[%s14716_s1 + $0x90] sm:$0xff] }
  0x23   :  { %439 = vmatpush.msrb.mxu1 %v178_v13  ;;  %497 = vmatpush.msrb.mxu3 %v179_v17  ;;  %v169_v59 = vld [vmem:[%s14716_s1 + $0x1a8] sm:$0xff]  ;;  %v166_v61 = vld [vmem:[%s14716_s1 + $0x190] sm:$0xff]  ;;  %v135_v2 = vld [vmem:[%s14716_s1 + $0x98] sm:$0xff] }
  0x24   :  { %310 = vmatmul.f32.vlgmr.msra.gmra.mxu0 %v203_v25  ;;  %368 = vmatmul.f32.vlgmr.msra.gmra.mxu2 %v203_v25  ;;  %v184_v57 = vld [vmem:[#allocation2 + $0x8] sm:$0xfe]  ;;  %v167_v3 = vld [vmem:[%s14716_s1 + $0x198] sm:$0xff]  ;;  %v132_v6 = vld [vmem:[%s14716_s1 + $0x80] sm:$0xff] }
  0x25   :  { %339 = vmatmul.f32.vlgmr.msra.gmra.mxu1 %v206_v29  ;;  %397 = vmatmul.f32.vlgmr.msra.gmra.mxu3 %v206_v29  ;;  %v211_v62 = vrot.slane %v184_v57, 1  ;;  %v164_v7 = vld [vmem:[%s14716_s1 + $0x180] sm:$0xff]  ;;  %v133_v9 = vld [vmem:[%s14716_s1 + $0x88] sm:$0xff]  ;;  %v130_v13 = vld [vmem:[%s14716_s1 + $0x70] sm:$0xff] }
  0x26   :  { %411 = vmatpush.msrb.mxu0 %v144_v20  ;;  %440 = vmatpush.msrb.mxu1 %v176_v22  ;;  %v165_v10 = vld [vmem:[%s14716_s1 + $0x188] sm:$0xff]  ;;  %v162_v14 = vld [vmem:[%s14716_s1 + $0x170] sm:$0xff]  ;;  %v131_v15 = vld [vmem:[%s14716_s1 + $0x78] sm:$0xff] }
  0x27   :  { %469 = vmatpush.msrb.mxu2 %v145_v23  ;;  %498 = vmatpush.msrb.mxu3 %v177_v26  ;;  %v185_v0 = vld [vmem:[#allocation2 + $0x38] sm:$0xfe]  ;;  %v213_v11 = vsel %vm200_vm1, %v211_v62, %v212_v63  ;;  %v163_v16 = vld [vmem:[%s14716_s1 + $0x178] sm:$0xff]  ;;  %v129_v21 = vld [vmem:[%s14716_s1 + $0x68] sm:$0xff] }
  0x28   :  { %412 = vmatpush.msrb.mxu0 %v142_v34  ;;  %441 = vmatpush.msrb.mxu1 %v174_v35  ;;  %v214_v4 = vrot.slane %v185_v0, 1  ;;  %v186_v17 = vld [vmem:[#allocation2 + $0x10] sm:$0x1]  ;;  %v187_v18 = vld [vmem:[#allocation2 + $0x40] sm:$0x1]  ;;  %v128_v19 = vld [vmem:[%s14716_s1 + $0x60] sm:$0xff] }
  0x29   :  { %470 = vmatpush.msrb.mxu2 %v143_v40  ;;  %499 = vmatpush.msrb.mxu3 %v175_v41  ;;  %v160_v20 = vld [vmem:[%s14716_s1 + $0x160] sm:$0xff]  ;;  %v161_v22 = vld [vmem:[%s14716_s1 + $0x168] sm:$0xff]  ;;  %v126_v23 = vld [vmem:[%s14716_s1 + $0x50] sm:$0xff]  ;;  %v217_v25 = vrot.slane %v186_v17, 1  ;;  %v219_v26 = vrot.slane %v187_v18, 1 }
  0x2a   :  { %413 = vmatpush.msrb.mxu0 %v140_v43  ;;  %442 = vmatpush.msrb.mxu1 %v172_v44  ;;  %v216_v12 = vsel %vm200_vm1, %v214_v4, %v215_v1  ;;  %v158_v24 = vld [vmem:[%s14716_s1 + $0x150] sm:$0xff]  ;;  %v127_v27 = vld [vmem:[%s14716_s1 + $0x58] sm:$0xff]  ;;  %v124_v29 = vld [vmem:[%s14716_s1 + $0x40] sm:$0xff] }
  0x2b   :  { %471 = vmatpush.msrb.mxu2 %v141_v45  ;;  %500 = vmatpush.msrb.mxu3 %v173_v46  ;;  %v159_v28 = vld [vmem:[%s14716_s1 + $0x158] sm:$0xff]  ;;  %v156_v30 = vld [vmem:[%s14716_s1 + $0x140] sm:$0xff]  ;;  %v125_v31 = vld [vmem:[%s14716_s1 + $0x48] sm:$0xff]  ;;  %v218_v33 = vsel %vm200_vm1, %v212_v63, %v217_v25  ;;  %v220_v34 = vsel %vm200_vm1, %v215_v1, %v219_v26 }
  0x2c   :  { %313 = vmatmul.f32.gmra.mxu0 %v208_v47  ;;  %371 = vmatmul.f32.gmra.mxu2 %v208_v47  ;;  %v157_v32 = vld [vmem:[%s14716_s1 + $0x148] sm:$0xff] }
  0x2d   :  { %342 = vmatmul.f32.gmra.mxu1 %v210_v48  ;;  %400 = vmatmul.f32.gmra.mxu3 %v210_v48 }
  0x2e   :  { %414 = vmatpush.msrb.mxu0 %v138_v49  ;;  %443 = vmatpush.msrb.mxu1 %v170_v50 }
  0x2f   :  { %472 = vmatpush.msrb.mxu2 %v139_v51  ;;  %501 = vmatpush.msrb.mxu3 %v171_v52 }
  0x30   :  { %415 = vmatpush.msrb.mxu0 %v136_v55  ;;  %444 = vmatpush.msrb.mxu1 %v168_v56 }
  0x31   :  { %473 = vmatpush.msrb.mxu2 %v137_v58  ;;  %502 = vmatpush.msrb.mxu3 %v169_v59 }
  0x32   :  { %416 = vmatpush.msrb.mxu0 %v134_v60  ;;  %445 = vmatpush.msrb.mxu1 %v166_v61 }
  0x33   :  { %474 = vmatpush.msrb.mxu2 %v135_v2  ;;  %503 = vmatpush.msrb.mxu3 %v167_v3 }
  0x34   :  { %417 = vmatpush.msrb.mxu0 %v132_v6  ;;  %446 = vmatpush.msrb.mxu1 %v164_v7 }
  0x35   :  { %475 = vmatpush.msrb.mxu2 %v133_v9  ;;  %504 = vmatpush.msrb.mxu3 %v165_v10 }
  0x36   :  { %316 = vmatmul.f32.gmra.mxu0 %v213_v11  ;;  %345 = vmatmul.f32.gmra.mxu1 %v216_v12 }
  0x37   :  { %374 = vmatmul.f32.gmra.mxu2 %v213_v11  ;;  %403 = vmatmul.f32.gmra.mxu3 %v216_v12 }
  0x38   :  { %418 = vmatpush.msrb.mxu0 %v130_v13  ;;  %447 = vmatpush.msrb.mxu1 %v162_v14 }
  0x39   :  { %476 = vmatpush.msrb.mxu2 %v131_v15  ;;  %505 = vmatpush.msrb.mxu3 %v163_v16 }
  0x3a   :  { %419 = vmatpush.msrb.mxu0 %v128_v19  ;;  %448 = vmatpush.msrb.mxu1 %v160_v20 }
  0x3b   :  { %477 = vmatpush.msrb.mxu2 %v129_v21  ;;  %506 = vmatpush.msrb.mxu3 %v161_v22 }
  0x3c   :  { %420 = vmatpush.msrb.mxu0 %v126_v23  ;;  %449 = vmatpush.msrb.mxu1 %v158_v24 }
  0x3d   :  { %478 = vmatpush.msrb.mxu2 %v127_v27  ;;  %507 = vmatpush.msrb.mxu3 %v159_v28 }
  0x3e   :  { %17 = vsyncpa [#allocation4], 0  ;;  %421 = vmatpush.msrb.mxu0 %v124_v29  ;;  %450 = vmatpush.msrb.mxu1 %v156_v30  ;;  %v122_v35 = vld [vmem:[%s14716_s1 + $0x30] sm:$0xff]  ;;  %v123_v37 = vld [vmem:[%s14716_s1 + $0x38] sm:$0xff]  ;;  %vm542_vm2 = vcmask 1045504   ;;  %vm5165_vm3 = vcmask 1043456  }
  0x3f   :  { %479 = vmatpush.msrb.mxu2 %v125_v31  ;;  %508 = vmatpush.msrb.mxu3 %v157_v32  ;;  %v154_v36 = vld [vmem:[%s14716_s1 + $0x130] sm:$0xff]  ;;  %v155_v38 = vld [vmem:[%s14716_s1 + $0x138] sm:$0xff]  ;;  %v120_v39 = vld [vmem:[%s14716_s1 + $0x20] sm:$0xff] }
  0x40   :  { %319 = vmatmul.f32.gmra.mxu0 %v218_v33  ;;  %348 = vmatmul.f32.gmra.mxu1 %v220_v34  ;;  %v152_v40 = vld [vmem:[%s14716_s1 + $0x120] sm:$0xff]  ;;  %v121_v41 = vld [vmem:[%s14716_s1 + $0x28] sm:$0xff]  ;;  %v118_v43 = vld [vmem:[%s14716_s1 + $0x10] sm:$0xff] }
  0x41   :  { %377 = vmatmul.f32.gmra.mxu2 %v218_v33  ;;  %406 = vmatmul.f32.gmra.mxu3 %v220_v34  ;;  %v153_v42 = vld [vmem:[%s14716_s1 + $0x128] sm:$0xff]  ;;  %v150_v44 = vld [vmem:[%s14716_s1 + $0x110] sm:$0xff]  ;;  %v119_v45 = vld [vmem:[%s14716_s1 + $0x18] sm:$0xff] }
  0x42   :  { %422 = vmatpush.msrb.mxu0 %v122_v35  ;;  %451 = vmatpush.msrb.mxu1 %v154_v36  ;;  %v151_v46 = vld [vmem:[%s14716_s1 + $0x118] sm:$0xff]  ;;  %v116_v47 = vld [vmem:[%s14716_s1] sm:$0xff]  ;;  %v117_v49 = vld [vmem:[%s14716_s1 + $0x8] sm:$0xff] }
  0x43   :  { %480 = vmatpush.msrb.mxu2 %v123_v37  ;;  %509 = vmatpush.msrb.mxu3 %v155_v38  ;;  %v148_v48 = vld [vmem:[%s14716_s1 + $0x100] sm:$0xff]  ;;  %v149_v50 = vld [vmem:[%s14716_s1 + $0x108] sm:$0xff]  ;;  %v108_v51 = vld [vmem:[#allocation2 + $0x30] sm:$0xff] }
  0x44   :  { %423 = vmatpush.msrb.mxu0 %v120_v39  ;;  %452 = vmatpush.msrb.mxu1 %v152_v40  ;;  %v109_v52 = vld [vmem:[#allocation2] sm:$0xff]  ;;  %v6566_v55 = vld [vmem:[%s14716_s1 + $0x4f0] sm:$0xff]  ;;  %v6567_v57 = vld [vmem:[%s14716_s1 + $0x4f8] sm:$0xff] }
  0x45   :  { %481 = vmatpush.msrb.mxu2 %v121_v41  ;;  %510 = vmatpush.msrb.mxu3 %v153_v42  ;;  %v6598_v56 = vld [vmem:[%s14716_s1 + $0x5f0] sm:$0xff]  ;;  %v6599_v58 = vld [vmem:[%s14716_s1 + $0x5f8] sm:$0xff]  ;;  %v6564_v59 = vld [vmem:[%s14716_s1 + $0x4e0] sm:$0xff] }
  0x46   :  { %424 = vmatpush.msrb.mxu0 %v118_v43  ;;  %453 = vmatpush.msrb.mxu1 %v150_v44  ;;  %v6596_v60 = vld [vmem:[%s14716_s1 + $0x5e0] sm:$0xff]  ;;  %v6565_v61 = vld [vmem:[%s14716_s1 + $0x4e8] sm:$0xff]  ;;  %v6562_v63 = vld [vmem:[%s14716_s1 + $0x4d0] sm:$0xff] }
  0x47   :  { %482 = vmatpush.msrb.mxu2 %v119_v45  ;;  %511 = vmatpush.msrb.mxu3 %v151_v46  ;;  %v6597_v62 = vld [vmem:[%s14716_s1 + $0x5e8] sm:$0xff]  ;;  %v6594_v0 = vld [vmem:[%s14716_s1 + $0x5d0] sm:$0xff]  ;;  %v6563_v1 = vld [vmem:[%s14716_s1 + $0x4d8] sm:$0xff] }
  0x48   :  { %425 = vmatpush.msrb.mxu0 %v116_v47  ;;  %454 = vmatpush.msrb.mxu1 %v148_v48  ;;  %v6595_v2 = vld [vmem:[%s14716_s1 + $0x5d8] sm:$0xff]  ;;  %v6560_v3 = vld [vmem:[%s14716_s1 + $0x4c0] sm:$0xff]  ;;  %v6561_v6 = vld [vmem:[%s14716_s1 + $0x4c8] sm:$0xff] }
  0x49   :  { %483 = vmatpush.msrb.mxu2 %v117_v49  ;;  %512 = vmatpush.msrb.mxu3 %v149_v50  ;;  %v6592_v4 = vld [vmem:[%s14716_s1 + $0x5c0] sm:$0xff]  ;;  %v6593_v7 = vld [vmem:[%s14716_s1 + $0x5c8] sm:$0xff]  ;;  %v6558_v9 = vld [vmem:[%s14716_s1 + $0x4b0] sm:$0xff] }
  0x4a   :  { %426 = vmatmul.f32.vlgmr.msrb.gmra.mxu0 %v108_v51  ;;  %455 = vmatmul.f32.vlgmr.msrb.gmra.mxu1 %v109_v52  ;;  %v6590_v10 = vld [vmem:[%s14716_s1 + $0x5b0] sm:$0xff]  ;;  %v6559_v11 = vld [vmem:[%s14716_s1 + $0x4b8] sm:$0xff]  ;;  %v6556_v13 = vld [vmem:[%s14716_s1 + $0x4a0] sm:$0xff] }
  0x4b   :  { %484 = vmatmul.f32.vlgmr.msrb.gmra.mxu2 %v108_v51  ;;  %513 = vmatmul.f32.vlgmr.msrb.gmra.mxu3 %v109_v52  ;;  %v6591_v12 = vld [vmem:[%s14716_s1 + $0x5b8] sm:$0xff]  ;;  %v6588_v14 = vld [vmem:[%s14716_s1 + $0x5a0] sm:$0xff]  ;;  %v6557_v15 = vld [vmem:[%s14716_s1 + $0x4a8] sm:$0xff] }
  0x4c   :  { %636 = vmatpush.msra.mxu0 %v6566_v55  ;;  %665 = vmatpush.msra.mxu1 %v6598_v56  ;;  %v6589_v16 = vld [vmem:[%s14716_s1 + $0x5a8] sm:$0xff]  ;;  %v6554_v17 = vld [vmem:[%s14716_s1 + $0x490] sm:$0xff]  ;;  %v6555_v19 = vld [vmem:[%s14716_s1 + $0x498] sm:$0xff] }
  0x4d   :  { %694 = vmatpush.msra.mxu2 %v6567_v57  ;;  %723 = vmatpush.msra.mxu3 %v6599_v58  ;;  %v6586_v18 = vld [vmem:[%s14716_s1 + $0x590] sm:$0xff]  ;;  %v6587_v20 = vld [vmem:[%s14716_s1 + $0x598] sm:$0xff]  ;;  %v6552_v21 = vld [vmem:[%s14716_s1 + $0x480] sm:$0xff]  ;;  %v544_v58 = vrot.slane %v7921_v5, 2 }
  0x4e   :  { %637 = vmatpush.msra.mxu0 %v6564_v59  ;;  %666 = vmatpush.msra.mxu1 %v6596_v60  ;;  %v6584_v22 = vld [vmem:[%s14716_s1 + $0x580] sm:$0xff]  ;;  %v6553_v23 = vld [vmem:[%s14716_s1 + $0x488] sm:$0xff]  ;;  %v112_v25 = vld [vmem:[#allocation2 + $0x8] sm:$0xff]  ;;  %v547_v60 = vrot.slane %v7930_v8, 2 }
  0x4f   :  { %695 = vmatpush.msra.mxu2 %v6565_v61  ;;  %724 = vmatpush.msra.mxu3 %v6597_v62  ;;  %v6585_v24 = vld [vmem:[%s14716_s1 + $0x588] sm:$0xff]  ;;  %v113_v26 = vld [vmem:[#allocation2 + $0x38] sm:$0xff]  ;;  %v6550_v27 = vld [vmem:[%s14716_s1 + $0x470] sm:$0xff] }
  0x50   :  { %638 = vmatpush.msra.mxu0 %v6562_v63  ;;  %667 = vmatpush.msra.mxu1 %v6594_v0  ;;  %v6582_v28 = vld [vmem:[%s14716_s1 + $0x570] sm:$0xff]  ;;  %v6551_v29 = vld [vmem:[%s14716_s1 + $0x478] sm:$0xff]  ;;  %v6548_v31 = vld [vmem:[%s14716_s1 + $0x460] sm:$0xff] }
  0x51   :  { %696 = vmatpush.msra.mxu2 %v6563_v1  ;;  %725 = vmatpush.msra.mxu3 %v6595_v2  ;;  %v6583_v30 = vld [vmem:[%s14716_s1 + $0x578] sm:$0xff]  ;;  %v6580_v32 = vld [vmem:[%s14716_s1 + $0x560] sm:$0xff]  ;;  %v6549_v33 = vld [vmem:[%s14716_s1 + $0x468] sm:$0xff] }
  0x52   :  { %639 = vmatpush.msra.mxu0 %v6560_v3  ;;  %668 = vmatpush.msra.mxu1 %v6592_v4  ;;  %v6581_v34 = vld [vmem:[%s14716_s1 + $0x568] sm:$0xff]  ;;  %v6546_v35 = vld [vmem:[%s14716_s1 + $0x450] sm:$0xff]  ;;  %v6547_v37 = vld [vmem:[%s14716_s1 + $0x458] sm:$0xff] }
  0x53   :  { %697 = vmatpush.msra.mxu2 %v6561_v6  ;;  %726 = vmatpush.msra.mxu3 %v6593_v7  ;;  %v6578_v36 = vld [vmem:[%s14716_s1 + $0x550] sm:$0xff]  ;;  %v6579_v38 = vld [vmem:[%s14716_s1 + $0x558] sm:$0xff]  ;;  %v6544_v39 = vld [vmem:[%s14716_s1 + $0x440] sm:$0xff] }
  0x54   :  { %429 = vmatmul.f32.gmra.mxu0 %v7921_v5  ;;  %458 = vmatmul.f32.gmra.mxu1 %v7930_v8  ;;  %v6576_v40 = vld [vmem:[%s14716_s1 + $0x540] sm:$0xff]  ;;  %v6545_v41 = vld [vmem:[%s14716_s1 + $0x448] sm:$0xff]  ;;  %v6542_v43 = vld [vmem:[%s14716_s1 + $0x430] sm:$0xff] }
  0x55   :  { %487 = vmatmul.f32.gmra.mxu2 %v7921_v5  ;;  %516 = vmatmul.f32.gmra.mxu3 %v7930_v8  ;;  %v6577_v42 = vld [vmem:[%s14716_s1 + $0x548] sm:$0xff]  ;;  %v6574_v44 = vld [vmem:[%s14716_s1 + $0x530] sm:$0xff]  ;;  %v6543_v45 = vld [vmem:[%s14716_s1 + $0x438] sm:$0xff] }
  0x56   :  { %640 = vmatpush.msra.mxu0 %v6558_v9  ;;  %669 = vmatpush.msra.mxu1 %v6590_v10  ;;  %v6575_v46 = vld [vmem:[%s14716_s1 + $0x538] sm:$0xff]  ;;  %v527_v48 = vld [vmem:[#allocation2] sm:$0xfc]  ;;  %v6540_v49 = vld [vmem:[%s14716_s1 + $0x420] sm:$0xff] }
  0x57   :  { %698 = vmatpush.msra.mxu2 %v6559_v11  ;;  %727 = vmatpush.msra.mxu3 %v6591_v12  ;;  %v526_v47 = vld [vmem:[#allocation2 + $0x30] sm:$0xfc]  ;;  %v6572_v50 = vld [vmem:[%s14716_s1 + $0x520] sm:$0xff]  ;;  %v6541_v51 = vld [vmem:[%s14716_s1 + $0x428] sm:$0xff]  ;;  %v546_v59 = vrot.slane %v527_v48, 2 }
  0x58   :  { %641 = vmatpush.msra.mxu0 %v6556_v13  ;;  %670 = vmatpush.msra.mxu1 %v6588_v14  ;;  %v6573_v52 = vld [vmem:[%s14716_s1 + $0x528] sm:$0xff]  ;;  %v6538_v55 = vld [vmem:[%s14716_s1 + $0x410] sm:$0xff]  ;;  %v543_v57 = vrot.slane %v526_v47, 2  ;;  %v6539_v61 = vld [vmem:[%s14716_s1 + $0x418] sm:$0xff]  ;;  %v554_v14 = vrot.slane %v8017_v53, 2 }
  0x59   :  { %699 = vmatpush.msra.mxu2 %v6557_v15  ;;  %728 = vmatpush.msra.mxu3 %v6589_v16  ;;  %v6570_v56 = vld [vmem:[%s14716_s1 + $0x510] sm:$0xff]  ;;  %v6571_v62 = vld [vmem:[%s14716_s1 + $0x518] sm:$0xff]  ;;  %v6536_v5 = vld [vmem:[%s14716_s1 + $0x400] sm:$0xff]  ;;  %v548_v2 = vsel %vm542_vm2, %v546_v59, %v547_v60  ;;  %v557_v16 = vrot.slane %v8020_v54, 2 }
  0x5a   :  { %642 = vmatpush.msra.mxu0 %v6554_v17  ;;  %671 = vmatpush.msra.mxu1 %v6586_v18  ;;  %v6568_v8 = vld [vmem:[%s14716_s1 + $0x500] sm:$0xff]  ;;  %v6537_v63 = vld [vmem:[%s14716_s1 + $0x408] sm:$0xff]  ;;  %v545_v1 = vsel %vm542_vm2, %v543_v57, %v544_v58  ;;  %v528_v3 = vld [vmem:[#allocation2 + $0x50] sm:$0x3] }
  0x5b   :  { %700 = vmatpush.msra.mxu2 %v6555_v19  ;;  %729 = vmatpush.msra.mxu3 %v6587_v20  ;;  %v6569_v0 = vld [vmem:[%s14716_s1 + $0x508] sm:$0xff]  ;;  %v549_v6 = vrot.slane %v528_v3, 2  ;;  %v530_v11 = vld [vmem:[#allocation2 + $0x8] sm:$0xfc]  ;;  %v531_v12 = vld [vmem:[#allocation2 + $0x38] sm:$0xfc] }
  0x5c   :  { %643 = vmatpush.msra.mxu0 %v6552_v21  ;;  %672 = vmatpush.msra.mxu1 %v6584_v22  ;;  %v529_v4 = vld [vmem:[#allocation2 + $0x20] sm:$0x3]  ;;  %v553_v13 = vrot.slane %v530_v11, 2  ;;  %v556_v15 = vrot.slane %v531_v12, 2  ;;  %v532_v19 = vld [vmem:[#allocation2 + $0x10] sm:$0x3] }
  0x5d   :  { %701 = vmatpush.msra.mxu2 %v6553_v23  ;;  %730 = vmatpush.msra.mxu3 %v6585_v24  ;;  %v551_v7 = vrot.slane %v529_v4, 2  ;;  %v550_v9 = vsel %vm542_vm2, %v544_v58, %v549_v6  ;;  %v533_v20 = vld [vmem:[#allocation2 + $0x40] sm:$0x3]  ;;  %v559_v21 = vrot.slane %v532_v19, 2  ;;  %v6624_v47 = vld [vmem:[%s14718_s3 + $0x2c0] sm:$0xff]  ;;  %v6662_v48 = vld [vmem:[%s14718_s3 + $0x3f0] sm:$0xff] }
  0x5e   :  { %432 = vmatmul.f32.gmra.mxu0 %v112_v25  ;;  %461 = vmatmul.f32.gmra.mxu1 %v113_v26  ;;  %v555_v17 = vsel %vm542_vm2, %v553_v13, %v554_v14  ;;  %v558_v18 = vsel %vm542_vm2, %v556_v15, %v557_v16  ;;  %v561_v22 = vrot.slane %v533_v20, 2  ;;  %v6623_v57 = vld [vmem:[%s14718_s3 + $0x2b8] sm:$0xff]  ;;  %v6661_v58 = vld [vmem:[%s14718_s3 + $0x3e8] sm:$0xff]  ;;  %v6616_v3 = vld [vmem:[%s14718_s3 + $0x280] sm:$0xff] }
  0x5f   :  { %490 = vmatmul.f32.gmra.mxu2 %v112_v25  ;;  %519 = vmatmul.f32.gmra.mxu3 %v113_v26  ;;  %v552_v10 = vsel %vm542_vm2, %v547_v60, %v551_v7  ;;  %v560_v23 = vsel %vm542_vm2, %v554_v14, %v559_v21  ;;  %v6654_v4 = vld [vmem:[%s14718_s3 + $0x3b0] sm:$0xff]  ;;  %v6617_v6 = vld [vmem:[%s14718_s3 + $0x288] sm:$0xff]  ;;  %v6655_v7 = vld [vmem:[%s14718_s3 + $0x3b8] sm:$0xff] }
  0x60   :  { %644 = vmatpush.msra.mxu0 %v6550_v27  ;;  %673 = vmatpush.msra.mxu1 %v6582_v28  ;;  %v562_v24 = vsel %vm542_vm2, %v557_v16, %v561_v22  ;;  %v6615_v11 = vld [vmem:[%s14718_s3 + $0x278] sm:$0xff]  ;;  %v6653_v14 = vld [vmem:[%s14718_s3 + $0x3a8] sm:$0xff]  ;;  %v6612_v15 = vld [vmem:[%s14718_s3 + $0x260] sm:$0xff] }
  0x61   :  { %702 = vmatpush.msra.mxu2 %v6551_v29  ;;  %731 = vmatpush.msra.mxu3 %v6583_v30  ;;  %v6650_v16 = vld [vmem:[%s14718_s3 + $0x390] sm:$0xff]  ;;  %v6648_v22 = vld [vmem:[%s14718_s3 + $0x380] sm:$0xff] }
  0x62   :  { %645 = vmatpush.msra.mxu0 %v6548_v31  ;;  %674 = vmatpush.msra.mxu1 %v6580_v32  ;;  %v6610_v21 = vld [vmem:[%s14718_s3 + $0x250] sm:$0xff] }
  0x63   :  { %703 = vmatpush.msra.mxu2 %v6549_v33  ;;  %732 = vmatpush.msra.mxu3 %v6581_v34 }
  0x64   :  { %646 = vmatpush.msra.mxu0 %v6546_v35  ;;  %675 = vmatpush.msra.mxu1 %v6578_v36 }
  0x65   :  { %704 = vmatpush.msra.mxu2 %v6547_v37  ;;  %733 = vmatpush.msra.mxu3 %v6579_v38 }
  0x66   :  { %647 = vmatpush.msra.mxu0 %v6544_v39  ;;  %676 = vmatpush.msra.mxu1 %v6576_v40 }
  0x67   :  { %705 = vmatpush.msra.mxu2 %v6545_v41  ;;  %734 = vmatpush.msra.mxu3 %v6577_v42  ;;  %v6630_v41 = vld [vmem:[%s14718_s3 + $0x2f0] sm:$0xff]  ;;  %v6631_v42 = vld [vmem:[%s14718_s3 + $0x2f8] sm:$0xff] }
  0x68   :  { %435 = vmatmul.f32.gmra.mxu0 %v8017_v53  ;;  %464 = vmatmul.f32.gmra.mxu1 %v8020_v54 }
  0x69   :  { %493 = vmatmul.f32.gmra.mxu2 %v8017_v53  ;;  %522 = vmatmul.f32.gmra.mxu3 %v8020_v54 }
  0x6a   :  { %648 = vmatpush.msra.mxu0 %v6542_v43  ;;  %677 = vmatpush.msra.mxu1 %v6574_v44  ;;  %v6628_v43 = vld [vmem:[%s14718_s3 + $0x2e0] sm:$0xff]  ;;  %v6629_v44 = vld [vmem:[%s14718_s3 + $0x2e8] sm:$0xff] }
  0x6b   :  { %706 = vmatpush.msra.mxu2 %v6543_v45  ;;  %735 = vmatpush.msra.mxu3 %v6575_v46  ;;  %v6626_v45 = vld [vmem:[%s14718_s3 + $0x2d0] sm:$0xff]  ;;  %v6627_v46 = vld [vmem:[%s14718_s3 + $0x2d8] sm:$0xff] }
  0x6c   :  { %649 = vmatpush.msra.mxu0 %v6540_v49  ;;  %678 = vmatpush.msra.mxu1 %v6572_v50  ;;  %v6625_v49 = vld [vmem:[%s14718_s3 + $0x2c8] sm:$0xff] }
  0x6d   :  { %707 = vmatpush.msra.mxu2 %v6541_v51  ;;  %736 = vmatpush.msra.mxu3 %v6573_v52  ;;  %v6663_v52 = vld [vmem:[%s14718_s3 + $0x3f8] sm:$0xff] }
  0x6e   :  { %650 = vmatpush.msra.mxu0 %v6538_v55  ;;  %679 = vmatpush.msra.mxu1 %v6570_v56  ;;  %v6622_v55 = vld [vmem:[%s14718_s3 + $0x2b0] sm:$0xff]  ;;  %v6660_v56 = vld [vmem:[%s14718_s3 + $0x3e0] sm:$0xff] }
  0x6f   :  { %708 = vmatpush.msra.mxu2 %v6539_v61  ;;  %737 = vmatpush.msra.mxu3 %v6571_v62  ;;  %v6620_v61 = vld [vmem:[%s14718_s3 + $0x2a0] sm:$0xff]  ;;  %v6658_v62 = vld [vmem:[%s14718_s3 + $0x3d0] sm:$0xff] }
  0x70   :  { %651 = vmatpush.msra.mxu0 %v6536_v5  ;;  %680 = vmatpush.msra.mxu1 %v6568_v8  ;;  %v6621_v5 = vld [vmem:[%s14718_s3 + $0x2a8] sm:$0xff]  ;;  %v6659_v8 = vld [vmem:[%s14718_s3 + $0x3d8] sm:$0xff] }
  0x71   :  { %709 = vmatpush.msra.mxu2 %v6537_v63  ;;  %738 = vmatpush.msra.mxu3 %v6569_v0  ;;  %v6618_v63 = vld [vmem:[%s14718_s3 + $0x290] sm:$0xff]  ;;  %v6656_v0 = vld [vmem:[%s14718_s3 + $0x3c0] sm:$0xff] }
  0x72   :  { %652 = vmatmul.f32.vlgmr.msra.gmra.mxu0 %v545_v1  ;;  %681 = vmatmul.f32.vlgmr.msra.gmra.mxu1 %v548_v2 }
  0x73   :  { %710 = vmatmul.f32.vlgmr.msra.gmra.mxu2 %v545_v1  ;;  %739 = vmatmul.f32.vlgmr.msra.gmra.mxu3 %v548_v2  ;;  %v6619_v1 = vld [vmem:[%s14718_s3 + $0x298] sm:$0xff]  ;;  %v6657_v2 = vld [vmem:[%s14718_s3 + $0x3c8] sm:$0xff] }
  0x74   :  { %1011 = vmatpush.msrb.mxu0 %v6630_v41  ;;  %1069 = vmatpush.msrb.mxu2 %v6631_v42  ;;  %v6608_v41 = vld [vmem:[%s14718_s3 + $0x240] sm:$0xff]  ;;  %v6646_v42 = vld [vmem:[%s14718_s3 + $0x370] sm:$0xff] }
  0x75   :  { %1040 = vmatpush.msrb.mxu1 %v6662_v48  ;;  %1098 = vmatpush.msrb.mxu3 %v6663_v52  ;;  %v6645_v48 = vld [vmem:[%s14718_s3 + $0x368] sm:$0xff]  ;;  %v6642_v52 = vld [vmem:[%s14718_s3 + $0x350] sm:$0xff] }
  0x76   :  { %1012 = vmatpush.msrb.mxu0 %v6628_v43  ;;  %1070 = vmatpush.msrb.mxu2 %v6629_v44  ;;  %v6609_v43 = vld [vmem:[%s14718_s3 + $0x248] sm:$0xff]  ;;  %v6647_v44 = vld [vmem:[%s14718_s3 + $0x378] sm:$0xff] }
  0x77   :  { %1041 = vmatpush.msrb.mxu1 %v6660_v56  ;;  %1099 = vmatpush.msrb.mxu3 %v6661_v58  ;;  %v6643_v58 = vld [vmem:[%s14718_s3 + $0x358] sm:$0xff] }
  0x78   :  { %1013 = vmatpush.msrb.mxu0 %v6626_v45  ;;  %1071 = vmatpush.msrb.mxu2 %v6627_v46  ;;  %v6606_v45 = vld [vmem:[%s14718_s3 + $0x230] sm:$0xff]  ;;  %v6644_v46 = vld [vmem:[%s14718_s3 + $0x360] sm:$0xff] }
  0x79   :  { %1042 = vmatpush.msrb.mxu1 %v6658_v62  ;;  %1100 = vmatpush.msrb.mxu3 %v6659_v8  ;;  %v6640_v62 = vld [vmem:[%s14718_s3 + $0x340] sm:$0xff]  ;;  %v6641_v8 = vld [vmem:[%s14718_s3 + $0x348] sm:$0xff] }
  0x7a   :  { %655 = vmatmul.f32.gmra.mxu0 %v550_v9  ;;  %684 = vmatmul.f32.gmra.mxu1 %v552_v10 }
  0x7b   :  { %713 = vmatmul.f32.gmra.mxu2 %v550_v9  ;;  %742 = vmatmul.f32.gmra.mxu3 %v552_v10  ;;  %v6614_v9 = vld [vmem:[%s14718_s3 + $0x270] sm:$0xff]  ;;  %v6652_v10 = vld [vmem:[%s14718_s3 + $0x3a0] sm:$0xff] }
  0x7c   :  { %1014 = vmatpush.msrb.mxu0 %v6624_v47  ;;  %1072 = vmatpush.msrb.mxu2 %v6625_v49  ;;  %v6607_v47 = vld [vmem:[%s14718_s3 + $0x238] sm:$0xff]  ;;  %v6604_v49 = vld [vmem:[%s14718_s3 + $0x220] sm:$0xff] }
  0x7d   :  { %1043 = vmatpush.msrb.mxu1 %v6656_v0  ;;  %1101 = vmatpush.msrb.mxu3 %v6657_v2  ;;  %v6638_v2 = vld [vmem:[%s14718_s3 + $0x330] sm:$0xff] }
  0x7e   :  { %1015 = vmatpush.msrb.mxu0 %v6622_v55  ;;  %1073 = vmatpush.msrb.mxu2 %v6623_v57  ;;  %v6605_v55 = vld [vmem:[%s14718_s3 + $0x228] sm:$0xff] }
  0x7f   :  { %1044 = vmatpush.msrb.mxu1 %v6654_v4  ;;  %1102 = vmatpush.msrb.mxu3 %v6655_v7  ;;  %v6639_v4 = vld [vmem:[%s14718_s3 + $0x338] sm:$0xff]  ;;  %v6637_v7 = vld [vmem:[%s14718_s3 + $0x328] sm:$0xff] }
  0x80   :  { %1016 = vmatpush.msrb.mxu0 %v6620_v61  ;;  %1074 = vmatpush.msrb.mxu2 %v6621_v5  ;;  %v6602_v61 = vld [vmem:[%s14718_s3 + $0x210] sm:$0xff]  ;;  %v6603_v5 = vld [vmem:[%s14718_s3 + $0x218] sm:$0xff] }
  0x81   :  { %1045 = vmatpush.msrb.mxu1 %v6652_v10  ;;  %1103 = vmatpush.msrb.mxu3 %v6653_v14  ;;  %v865_v10 = vld [vmem:[%s14718_s3 + $0xf8] sm:$0xff] }
  0x82   :  { %658 = vmatmul.f32.gmra.mxu0 %v555_v17  ;;  %687 = vmatmul.f32.gmra.mxu1 %v558_v18  ;;  %v6635_v14 = vld [vmem:[%s14718_s3 + $0x318] sm:$0xff] }
  0x83   :  { %716 = vmatmul.f32.gmra.mxu2 %v555_v17  ;;  %745 = vmatmul.f32.gmra.mxu3 %v558_v18  ;;  %v6613_v17 = vld [vmem:[%s14718_s3 + $0x268] sm:$0xff]  ;;  %v6651_v18 = vld [vmem:[%s14718_s3 + $0x398] sm:$0xff] }
  0x84   :  { %1017 = vmatpush.msrb.mxu0 %v6618_v63  ;;  %1075 = vmatpush.msrb.mxu2 %v6619_v1  ;;  %v6600_v1 = vld [vmem:[%s14718_s3 + $0x200] sm:$0xff] }
  0x85   :  { %1046 = vmatpush.msrb.mxu1 %v6650_v16  ;;  %1104 = vmatpush.msrb.mxu3 %v6651_v18  ;;  %v6632_v18 = vld [vmem:[%s14718_s3 + $0x300] sm:$0xff] }
  0x86   :  { %1018 = vmatpush.msrb.mxu0 %v6616_v3  ;;  %1076 = vmatpush.msrb.mxu2 %v6617_v6  ;;  %v6601_v3 = vld [vmem:[%s14718_s3 + $0x208] sm:$0xff]  ;;  %v6636_v6 = vld [vmem:[%s14718_s3 + $0x320] sm:$0xff] }
  0x87   :  { %1047 = vmatpush.msrb.mxu1 %v6648_v22 }
  0x88   :  { %1019 = vmatpush.msrb.mxu0 %v6614_v9  ;;  %1077 = vmatpush.msrb.mxu2 %v6615_v11  ;;  %v864_v9 = vld [vmem:[%s14718_s3 + $0xf0] sm:$0xff] }
  0x89   :  { %1048 = vmatpush.msrb.mxu1 %v6646_v42  ;;  %v6634_v11 = vld [vmem:[%s14718_s3 + $0x310] sm:$0xff] }
  0x8a   :  { %661 = vmatmul.f32.gmra.mxu0 %v560_v23  ;;  %690 = vmatmul.f32.gmra.mxu1 %v562_v24  ;;  %v896_v42 = vld [vmem:[%s14718_s3 + $0x1f0] sm:$0xff] }
  0x8b   :  { %719 = vmatmul.f32.gmra.mxu2 %v560_v23  ;;  %748 = vmatmul.f32.gmra.mxu3 %v562_v24  ;;  %v6611_v23 = vld [vmem:[%s14718_s3 + $0x258] sm:$0xff]  ;;  %v6649_v24 = vld [vmem:[%s14718_s3 + $0x388] sm:$0xff] }
  0x8c   :  { %1020 = vmatpush.msrb.mxu0 %v6612_v15  ;;  %1078 = vmatpush.msrb.mxu2 %v6613_v17  ;;  %v862_v15 = vld [vmem:[%s14718_s3 + $0xe0] sm:$0xff]  ;;  %v863_v17 = vld [vmem:[%s14718_s3 + $0xe8] sm:$0xff] }
  0x8d   :  { %1105 = vmatpush.msrb.mxu3 %v6649_v24  ;;  %1049 = vmatpush.msrb.mxu1 %v6644_v46  ;;  %v62_v24 = vld [vmem:[%s14717_s2] sm:$0x3] }
  0x8e   :  { %1021 = vmatpush.msrb.mxu0 %v6610_v21  ;;  %1079 = vmatpush.msrb.mxu2 %v6611_v23  ;;  %v6633_v21 = vld [vmem:[%s14718_s3 + $0x308] sm:$0xff] }
  0x8f   :  { %1106 = vmatpush.msrb.mxu3 %v6647_v44  ;;  %1050 = vmatpush.msrb.mxu1 %v6642_v52  ;;  %v897_v44 = vld [vmem:[%s14718_s3 + $0x1f8] sm:$0xff] }
  0x90   :  { %1022 = vmatpush.msrb.mxu0 %v6608_v41  ;;  %1080 = vmatpush.msrb.mxu2 %v6609_v43  ;;  %v861_v41 = vld [vmem:[%s14718_s3 + $0xd8] sm:$0xff]  ;;  %v859_v43 = vld [vmem:[%s14718_s3 + $0xc8] sm:$0xff] }
  0x91   :  { %1107 = vmatpush.msrb.mxu3 %v6645_v48  ;;  %1051 = vmatpush.msrb.mxu1 %v6640_v62  ;;  %v894_v48 = vld [vmem:[%s14718_s3 + $0x1e0] sm:$0xff] }
  0x92   :  { %1023 = vmatpush.msrb.mxu0 %v6606_v45  ;;  %1081 = vmatpush.msrb.mxu2 %v6607_v47  ;;  %v856_v47 = vld [vmem:[%s14718_s3 + $0xb0] sm:$0xff] }
  0x93   :  { %1108 = vmatpush.msrb.mxu3 %v6643_v58  ;;  %1052 = vmatpush.msrb.mxu1 %v6638_v2  ;;  %v8674_v58 = vperm.slane %v62_v24, 0 }
  0x94   :  { %1024 = vmatpush.msrb.mxu0 %v6604_v49  ;;  %1082 = vmatpush.msrb.mxu2 %v6605_v55  ;;  %v857_v49 = vld [vmem:[%s14718_s3 + $0xb8] sm:$0xff] }
  0x95   :  { %1109 = vmatpush.msrb.mxu3 %v6641_v8  ;;  %1053 = vmatpush.msrb.mxu1 %v6636_v6  ;;  %v855_v8 = vld [vmem:[%s14718_s3 + $0xa8] sm:$0xff] }
  0x96   :  { %1025 = vmatpush.msrb.mxu0 %v6602_v61  ;;  %1083 = vmatpush.msrb.mxu2 %v6603_v5  ;;  %v895_v61 = vld [vmem:[%s14718_s3 + $0x1e8] sm:$0xff]  ;;  %v854_v5 = vld [vmem:[%s14718_s3 + $0xa0] sm:$0xff] }
  0x97   :  { %1110 = vmatpush.msrb.mxu3 %v6639_v4  ;;  %1054 = vmatpush.msrb.mxu1 %v6634_v11  ;;  %v890_v4 = vld [vmem:[%s14718_s3 + $0x1c0] sm:$0xff] }
  0x98   :  { %1026 = vmatpush.msrb.mxu0 %v6600_v1  ;;  %1084 = vmatpush.msrb.mxu2 %v6601_v3  ;;  %v852_v3 = vld [vmem:[%s14718_s3 + $0x90] sm:$0xff] }
  0x99   :  { %1111 = vmatpush.msrb.mxu3 %v6637_v7  ;;  %1055 = vmatpush.msrb.mxu1 %v6632_v18  ;;  %v850_v7 = vld [vmem:[%s14718_s3 + $0x80] sm:$0xff]  ;;  %v8726_v18 = vperm.slane %v62_v24, 1 }
  0x9a   :  { %1127 = vmatpush.msra.mxu0 %v864_v9  ;;  %1185 = vmatpush.msra.mxu2 %v865_v10  ;;  %v888_v9 = vld [vmem:[%s14718_s3 + $0x1b0] sm:$0xff] }
  0x9b   :  { %1112 = vmatpush.msrb.mxu3 %v6635_v14  ;;  %1156 = vmatpush.msra.mxu1 %v896_v42 }
  0x9c   :  { %1128 = vmatpush.msra.mxu0 %v862_v15  ;;  %1186 = vmatpush.msra.mxu2 %v863_v17  ;;  %v889_v15 = vld [vmem:[%s14718_s3 + $0x1b8] sm:$0xff] }
  0x9d   :  { %1113 = vmatpush.msrb.mxu3 %v6633_v21  ;;  %1157 = vmatpush.msra.mxu1 %v894_v48 }
  0x9e   :  { %1187 = vmatpush.msra.mxu2 %v861_v41  ;;  %v886_v41 = vld [vmem:[%s14718_s3 + $0x1a0] sm:$0xff] }
  0x9f   :  { %1214 = vmatpush.msra.mxu3 %v897_v44 }
  0xa0   :  { %1188 = vmatpush.msra.mxu2 %v859_v43  ;;  %v887_v43 = vld [vmem:[%s14718_s3 + $0x1a8] sm:$0xff] }
  0xa1   :  { %v8372_v53 = vpop.f32.mrf.mxu0  ;;  %1215 = vmatpush.msra.mxu3 %v895_v61  ;;  %v883_v61 = vld [vmem:[%s14718_s3 + $0x188] sm:$0xff] }
  0xa2   :  { %v8374_v54 = vpop.f32.mrf.mxu1  ;;  %1189 = vmatpush.msra.mxu2 %v857_v49  ;;  %v844_v49 = vld [vmem:[%s14718_s3 + $0x50] sm:$0xff] }
  0xa3   :  { %v341_v16 = vadd.f32 %v8374_v54, %v8372_v53  ;;  %v860_v53 = vld [vmem:[%s14718_s3 + $0xd0] sm:$0xff] }
  0xa4   :  { %1129 = vmatpush.msra.mxu0 %v860_v53  ;;  %1190 = vmatpush.msra.mxu2 %v855_v8  ;;  %v880_v8 = vld [vmem:[%s14718_s3 + $0x170] sm:$0xff] }
  0xa7   :  { %v8376_v25 = vpop.f32.mrf.mxu2 }
  0xa8   :  { %v8378_v26 = vpop.f32.mrf.mxu3 }
  0xa9   :  { %v8380_v27 = vpop.f32.mrf.mxu0  ;;  %v399_v62 = vadd.f32 %v8378_v26, %v8376_v25  ;;  %v893_v25 = vld [vmem:[%s14718_s3 + $0x1d8] sm:$0xff] }
  0xaa   :  { %v8382_v28 = vpop.f32.mrf.mxu1  ;;  %1216 = vmatpush.msra.mxu3 %v893_v25 }
  0xab   :  { %v344_v1 = vadd.f32 %v8382_v28, %v8380_v27  ;;  %v853_v27 = vld [vmem:[%s14718_s3 + $0x98] sm:$0xff] }
  0xac   :  { %1191 = vmatpush.msra.mxu2 %v853_v27 }
  0xaf   :  { %v8384_v29 = vpop.f32.mrf.mxu2 }
  0xb0   :  { %v8386_v30 = vpop.f32.mrf.mxu3 }
  0xb1   :  { %v402_v44 = vadd.f32 %v8386_v30, %v8384_v29  ;;  %v885_v30 = vld [vmem:[%s14718_s3 + $0x198] sm:$0xff] }
  0xb3   :  { %v8388_v31 = vpop.f32.mrf.mxu0  ;;  %v8390_v32 = vpop.f32.mrf.mxu1 }
  0xb4   :  { %v347_v48 = vadd.f32 %v8390_v32, %v8388_v31  ;;  %v845_v32 = vld [vmem:[%s14718_s3 + $0x58] sm:$0xff] }
  0xba   :  { %v8392_v33 = vpop.f32.mrf.mxu2  ;;  %v8394_v34 = vpop.f32.mrf.mxu3 }
  0xbd   :  { %v8396_v35 = vpop.f32.mrf.mxu0  ;;  %v8398_v36 = vpop.f32.mrf.mxu1 }
  0xc4   :  { %v8400_v37 = vpop.f32.mrf.mxu2  ;;  %v8402_v38 = vpop.f32.mrf.mxu3 }
  0xc7   :  { %v8404_v39 = vpop.f32.mrf.mxu0  ;;  %v8406_v40 = vpop.f32.mrf.mxu1 }
  0xc8   :  { %v428_v54 = vadd.f32 %v8404_v39, %v341_v16  ;;  %v858_v39 = vld [vmem:[%s14718_s3 + $0xc0] sm:$0xff] }
  0xc9   :  { %1130 = vmatpush.msra.mxu0 %v858_v39  ;;  %v849_v39 = vld [vmem:[%s14718_s3 + $0x78] sm:$0xff] }
  0xca   :  { %v457_v52 = vadd.f32 %v8406_v40, %v428_v54  ;;  %v892_v40 = vld [vmem:[%s14718_s3 + $0x1d0] sm:$0xff] }
  0xcb   :  { %1131 = vmatpush.msra.mxu0 %v856_v47  ;;  %1158 = vmatpush.msra.mxu1 %v892_v40  ;;  %v848_v54 = vld [vmem:[%s14718_s3 + $0x70] sm:$0xff]  ;;  %v847_v47 = vld [vmem:[%s14718_s3 + $0x68] sm:$0xff]  ;;  %v842_v40 = vld [vmem:[%s14718_s3 + $0x40] sm:$0xff] }
  0xcd   :  { %1132 = vmatpush.msra.mxu0 %v854_v5  ;;  %1159 = vmatpush.msra.mxu1 %v890_v4  ;;  %v878_v4 = vld [vmem:[%s14718_s3 + $0x160] sm:$0xff] }
  0xce   :  { %v8435_v50 = vpop.f32.mrf.mxu2  ;;  %v8437_v51 = vpop.f32.mrf.mxu3 }
  0xcf   :  { %v486_v26 = vadd.f32 %v8435_v50, %v399_v62  ;;  %1133 = vmatpush.msra.mxu0 %v852_v3  ;;  %v891_v50 = vld [vmem:[%s14718_s3 + $0x1c8] sm:$0xff]  ;;  %1160 = vmatpush.msra.mxu1 %v888_v9  ;;  %v840_v3 = vld [vmem:[%s14718_s3 + $0x30] sm:$0xff] }
  0xd0   :  { %1217 = vmatpush.msra.mxu3 %v891_v50 }
  0xd1   :  { %v8454_v59 = vpop.f32.mrf.mxu0  ;;  %v8456_v60 = vpop.f32.mrf.mxu1  ;;  %1134 = vmatpush.msra.mxu0 %v850_v7  ;;  %v515_v16 = vadd.f32 %v8437_v51, %v486_v26  ;;  %1161 = vmatpush.msra.mxu1 %v886_v41  ;;  %v881_v26 = vld [vmem:[%s14718_s3 + $0x178] sm:$0xff] }
  0xd2   :  { %v431_v28 = vadd.f32 %v8454_v59, %v344_v1  ;;  %v851_v59 = vld [vmem:[%s14718_s3 + $0x88] sm:$0xff]  ;;  %1218 = vmatpush.msra.mxu3 %v889_v15 }
  0xd3   :  { %1192 = vmatpush.msra.mxu2 %v851_v59  ;;  %1135 = vmatpush.msra.mxu0 %v848_v54  ;;  %v841_v59 = vld [vmem:[%s14718_s3 + $0x38] sm:$0xff]  ;;  %v350_v54 = vadd.f32 %v8398_v36, %v8396_v35 }
  0xd4   :  { %v460_v51 = vadd.f32 %v8456_v60, %v431_v28  ;;  %1219 = vmatpush.msra.mxu3 %v887_v43  ;;  %v846_v60 = vld [vmem:[%s14718_s3 + $0x60] sm:$0xff]  ;;  %v837_v36 = vld [vmem:[%s14718_s3 + $0x18] sm:$0xff]  ;;  %v875_v43 = vld [vmem:[%s14718_s3 + $0x148] sm:$0xff] }
  0xd5   :  { %1193 = vmatpush.msra.mxu2 %v849_v39  ;;  %1136 = vmatpush.msra.mxu0 %v846_v60 }
  0xd6   :  { %1220 = vmatpush.msra.mxu3 %v885_v30 }
  0xd7   :  { %1194 = vmatpush.msra.mxu2 %v847_v47  ;;  %1137 = vmatpush.msra.mxu0 %v844_v49 }
  0xd8   :  { %v8503_v12 = vpop.f32.mrf.mxu2  ;;  %v8505_v13 = vpop.f32.mrf.mxu3  ;;  %1221 = vmatpush.msra.mxu3 %v883_v61  ;;  %v871_v61 = vld [vmem:[%s14718_s3 + $0x128] sm:$0xff] }
  0xd9   :  { %1195 = vmatpush.msra.mxu2 %v845_v32  ;;  %1138 = vmatpush.msra.mxu0 %v842_v40  ;;  %v870_v32 = vld [vmem:[%s14718_s3 + $0x120] sm:$0xff] }
  0xda   :  { %1222 = vmatpush.msra.mxu3 %v881_v26  ;;  %v6695_v26 = vld [vmem:[%s14718_s3 + $0x4f8] sm:$0xff] }
  0xdb   :  { %v8522_v19 = vpop.f32.mrf.mxu0  ;;  %v8524_v20 = vpop.f32.mrf.mxu1  ;;  %1139 = vmatpush.msra.mxu0 %v840_v3  ;;  %v408_v3 = vadd.f32 %v8402_v38, %v8400_v37 }
  0xdc   :  { %v434_v62 = vadd.f32 %v8522_v19, %v347_v48  ;;  %v843_v19 = vld [vmem:[%s14718_s3 + $0x48] sm:$0xff] }
  0xdd   :  { %1196 = vmatpush.msra.mxu2 %v843_v19 }
  0xdf   :  { %1197 = vmatpush.msra.mxu2 %v841_v59  ;;  %v6692_v59 = vld [vmem:[%s14718_s3 + $0x4e0] sm:$0xff] }
  0xe2   :  { %v8571_v56 = vpop.f32.mrf.mxu2  ;;  %v8573_v57 = vpop.f32.mrf.mxu3 }
  0xe5   :  { %v8590_v63 = vpop.f32.mrf.mxu0  ;;  %v8592_v0 = vpop.f32.mrf.mxu1 }
  0xe6   :  { %v437_v60 = vadd.f32 %v8590_v63, %v350_v54  ;;  %v835_v63 = vld [vmem:[%s14718_s3 + $0x8] sm:$0xff]  ;;  %v866_v54 = vld [vmem:[%s14718_s3 + $0x100] sm:$0xff] }
  0xec   :  { %v8642_v22 = vpop.f32.mrf.mxu2  ;;  %v8644_v23 = vpop.f32.mrf.mxu3 }
  0xef   :  { %v653_v45 = vpop.f32.mrf.mxu0  ;;  %v682_v46 = vpop.f32.mrf.mxu1 }
  0xf0   :  { %v683_v55 = vadd.f32 %v682_v46, %v653_v45  ;;  %v884_v46 = vld [vmem:[%s14718_s3 + $0x190] sm:$0xff] }
  0xf1   :  { %1162 = vmatpush.msra.mxu1 %v884_v46 }
  0xf2   :  { %v752_v2 = vadd.f32 %v683_v55, %v457_v52  ;;  %v882_v52 = vld [vmem:[%s14718_s3 + $0x180] sm:$0xff]  ;;  %v489_v55 = vadd.f32 %v8503_v12, %v402_v44 }
  0xf3   :  { %1163 = vmatpush.msra.mxu1 %v882_v52 }
  0xf4   :  { %v8707_v6 = vadd.f32 %v8674_v58, %v752_v2  ;;  %v518_v27 = vadd.f32 %v8505_v13, %v489_v55  ;;  %v838_v13 = vld [vmem:[%s14718_s3 + $0x20] sm:$0xff]  ;;  %v873_v55 = vld [vmem:[%s14718_s3 + $0x138] sm:$0xff] }
  0xf5   :  { %1164 = vmatpush.msra.mxu1 %v880_v8  ;;  %1140 = vmatpush.msra.mxu0 %v838_v13  ;;  %v6693_v13 = vld [vmem:[%s14718_s3 + $0x4e8] sm:$0xff] }
  0xf6   :  { %v773_v10 = vmax.f32 %v8707_v6, 0.0  ;;  %v711_v11 = vpop.f32.mrf.mxu2  ;;  %v740_v14 = vpop.f32.mrf.mxu3 }
  0xf7   :  { %v741_v17 = vadd.f32 %v740_v14, %v711_v11  ;;  %v656_v21 = vpop.f32.mrf.mxu0  ;;  %v685_v53 = vpop.f32.mrf.mxu1  ;;  %v879_v11 = vld [vmem:[%s14718_s3 + $0x168] sm:$0xff]  ;;  %v463_v14 = vadd.f32 %v8524_v20, %v434_v62  ;;  %1165 = vmatpush.msra.mxu1 %v878_v4  ;;  %v405_v20 = vadd.f32 %v8394_v34, %v8392_v33  ;;  %v466_v4 = vadd.f32 %v8592_v0, %v437_v60  ;;  %v6688_v60 = vld [vmem:[%s14718_s3 + $0x4c0] sm:$0xff] }
  0xf8   :  { %v8740_v24 = vrot.slane %v773_v10, 7  ;;  %v686_v42 = vadd.f32 %v685_v53, %v656_v21  ;;  %v839_v21 = vld [vmem:[%s14718_s3 + $0x28] sm:$0xff]  ;;  %v877_v53 = vld [vmem:[%s14718_s3 + $0x158] sm:$0xff]  ;;  %1223 = vmatpush.msra.mxu3 %v879_v11 }
  0xf9   :  { %v753_v45 = vadd.f32 %v741_v17, %v515_v16  ;;  %v876_v17 = vld [vmem:[%s14718_s3 + $0x150] sm:$0xff]  ;;  %v492_v44 = vadd.f32 %v8571_v56, %v405_v20  ;;  %1198 = vmatpush.msra.mxu2 %v839_v21  ;;  %v834_v56 = vld [vmem:[%s14718_s3] sm:$0xff] }
  0xfa   :  { %814 = vst [vmem:[#allocation2 + $0x30] sm:$0xfe] %v8740_v24  ;;  %v754_v29 = vadd.f32 %v686_v42, %v460_v51  ;;  %v836_v51 = vld [vmem:[%s14718_s3 + $0x10] sm:$0xff]  ;;  %v874_v42 = vld [vmem:[%s14718_s3 + $0x140] sm:$0xff]  ;;  %1166 = vmatpush.msra.mxu1 %v876_v17  ;;  %1224 = vmatpush.msra.mxu3 %v877_v53 }
  0xfb   :  { %v8770_v31 = vadd.f32 %v8726_v18, %v753_v45  ;;  %1141 = vmatpush.msra.mxu0 %v836_v51  ;;  %1199 = vmatpush.msra.mxu2 %v837_v36  ;;  %v521_v62 = vadd.f32 %v8573_v57, %v492_v44  ;;  %v868_v57 = vld [vmem:[%s14718_s3 + $0x110] sm:$0xff]  ;;  %v6727_v36 = vld [vmem:[%s14718_s3 + $0x5f8] sm:$0xff] }
  0xfc   :  { %v8780_v5 = vadd.f32 %v8674_v58, %v754_v29  ;;  %1167 = vmatpush.msra.mxu1 %v874_v42  ;;  %1225 = vmatpush.msra.mxu3 %v875_v43  ;;  %v872_v29 = vld [vmem:[%s14718_s3 + $0x130] sm:$0xff] }
  0xfd   :  { %v774_v12 = vmax.f32 %v8770_v31, 0.0  ;;  %1142 = vmatpush.msra.mxu0 %v834_v56  ;;  %1200 = vmatpush.msra.mxu2 %v835_v63  ;;  %v6686_v56 = vld [vmem:[%s14718_s3 + $0x4b0] sm:$0xff]  ;;  %v6724_v63 = vld [vmem:[%s14718_s3 + $0x5e0] sm:$0xff] }
  0xfe   :  { %v775_v1 = vmax.f32 %v8780_v5, 0.0  ;;  %v714_v2 = vpop.f32.mrf.mxu2  ;;  %v743_v25 = vpop.f32.mrf.mxu3  ;;  %1168 = vmatpush.msra.mxu1 %v872_v29  ;;  %1226 = vmatpush.msra.mxu3 %v873_v55 }
  0xff   :  { %v8805_v28 = vrot.slane %v774_v12, 7  ;;  %v744_v50 = vadd.f32 %v743_v25, %v714_v2  ;;  %v659_v7 = vpop.f32.mrf.mxu0  ;;  %v688_v9 = vpop.f32.mrf.mxu1  ;;  %v6694_v25 = vld [vmem:[%s14718_s3 + $0x4f0] sm:$0xff] }
 0x100   :  { %v792_v15 = vrot.slane %v775_v1, 7  ;;  %v689_v16 = vadd.f32 %v688_v9, %v659_v7  ;;  %v869_v9 = vld [vmem:[%s14718_s3 + $0x118] sm:$0xff]  ;;  %1169 = vmatpush.msra.mxu1 %v870_v32  ;;  %1227 = vmatpush.msra.mxu3 %v871_v61 }
 0x101   :  { %815 = vst [vmem:[#allocation2] sm:$0xfe] %v8805_v28  ;;  %v755_v41 = vadd.f32 %v744_v50, %v518_v27  ;;  %v898_v39 = vld [vmem:[#allocation2 + $0x30] sm:$0xfe] }
 0x102   :  { %v8841_v33 = vsel %vm71_vm0, %v8740_v24, %v792_v15  ;;  %818 = vst [vmem:[#allocation2 + $0x50] sm:$0x1] %v792_v15  ;;  %v756_v34 = vadd.f32 %v689_v16, %v463_v14  ;;  %v918_v35 = vrot.slane %v898_v39, 1  ;;  %1170 = vmatpush.msra.mxu1 %v868_v57  ;;  %1228 = vmatpush.msra.mxu3 %v869_v9  ;;  %v6691_v39 = vld [vmem:[%s14718_s3 + $0x4d8] sm:$0xff] }
 0x103   :  { %v8851_v45 = vadd.f32 %v8726_v18, %v755_v41  ;;  %v919_v24 = vrot.slane %v8841_v33, 1  ;;  %v6687_v61 = vld [vmem:[%s14718_s3 + $0x4b8] sm:$0xff] }
 0x104   :  { %v8856_v46 = vadd.f32 %v8674_v58, %v756_v34  ;;  %1171 = vmatpush.msra.mxu1 %v866_v54  ;;  %v6683_v9 = vld [vmem:[%s14718_s3 + $0x498] sm:$0xff] }
 0x105   :  { %v776_v47 = vmax.f32 %v8851_v45, 0.0  ;;  %v920_v48 = vsel %vm200_vm1, %v918_v35, %v919_v24  ;;  %v6726_v35 = vld [vmem:[%s14718_s3 + $0x5f0] sm:$0xff] }
 0x106   :  { %v777_v30 = vmax.f32 %v8856_v46, 0.0  ;;  %v717_v49 = vpop.f32.mrf.mxu2  ;;  %v746_v52 = vpop.f32.mrf.mxu3  ;;  %1027 = vmatmul.f32.vlgmr.msrb.gmra.mxu0 %v920_v48  ;;  %1085 = vmatmul.f32.vlgmr.msrb.gmra.mxu2 %v920_v48  ;;  %v6689_v48 = vld [vmem:[%s14718_s3 + $0x4c8] sm:$0xff]  ;;  %v6865_v46 = vld [vmem:[%s14718_s3 + $0x630] sm:$0xff] }
 0x107   :  { %v794_v40 = vrot.slane %v776_v47, 7  ;;  %v747_v8 = vadd.f32 %v746_v52, %v717_v49  ;;  %v662_v19 = vpop.f32.mrf.mxu0  ;;  %v691_v2 = vpop.f32.mrf.mxu1  ;;  %1352 = vmatpush.msrb.mxu0 %v6694_v25  ;;  %1410 = vmatpush.msrb.mxu2 %v6695_v26  ;;  %v6725_v49 = vld [vmem:[%s14718_s3 + $0x5e8] sm:$0xff]  ;;  %v6684_v25 = vld [vmem:[%s14718_s3 + $0x4a0] sm:$0xff]  ;;  %v6722_v26 = vld [vmem:[%s14718_s3 + $0x5d0] sm:$0xff] }
 0x108   :  { %v8896_v27 = vrot.slane %v777_v30, 7  ;;  %v692_v50 = vadd.f32 %v691_v2, %v662_v19  ;;  %v899_v7 = vld [vmem:[#allocation2] sm:$0xfe] }
 0x109   :  { %v8906_v37 = vsel %vm71_vm0, %v8805_v28, %v794_v40  ;;  %819 = vst [vmem:[#allocation2 + $0x20] sm:$0x1] %v794_v40  ;;  %v757_v38 = vadd.f32 %v747_v8, %v521_v62  ;;  %v921_v0 = vrot.slane %v899_v7, 1  ;;  %v900_v11 = vld [vmem:[#allocation2 + $0x50] sm:$0x1]  ;;  %v495_v28 = vadd.f32 %v8642_v22, %v408_v3  ;;  %1353 = vmatpush.msrb.mxu0 %v6692_v59  ;;  %v867_v22 = vld [vmem:[%s14718_s3 + $0x108] sm:$0xff] }
 0x10a   :  { %820 = vst [vmem:[#allocation2 + $0x8] sm:$0xfe] %v8896_v27  ;;  %v758_v14 = vadd.f32 %v692_v50, %v466_v4  ;;  %v922_v15 = vrot.slane %v8906_v37, 1  ;;  %v924_v16 = vrot.slane %v900_v11, 1  ;;  %1411 = vmatpush.msrb.mxu2 %v6693_v13  ;;  %1229 = vmatpush.msra.mxu3 %v867_v22  ;;  %v6685_v3 = vld [vmem:[%s14718_s3 + $0x4a8] sm:$0xff]  ;;  %v6723_v4 = vld [vmem:[%s14718_s3 + $0x5d8] sm:$0xff] }
 0x10b   :  { %v8915_v17 = vadd.f32 %v8726_v18, %v757_v38  ;;  %v524_v43 = vadd.f32 %v8644_v23, %v495_v28  ;;  %v6720_v50 = vld [vmem:[%s14718_s3 + $0x5c0] sm:$0xff]  ;;  %v6721_v59 = vld [vmem:[%s14718_s3 + $0x5c8] sm:$0xff]  ;;  %v6718_v11 = vld [vmem:[%s14718_s3 + $0x5b0] sm:$0xff] }
 0x10c   :  { %v8918_v21 = vadd.f32 %v8674_v58, %v758_v14  ;;  %v923_v53 = vsel %vm200_vm1, %v921_v0, %v922_v15  ;;  %v925_v20 = vsel %vm200_vm1, %v919_v24, %v924_v16  ;;  %v6690_v58 = vld [vmem:[%s14718_s3 + $0x4d0] sm:$0xff]  ;;  %1412 = vmatpush.msrb.mxu2 %v6691_v39  ;;  %v6680_v38 = vld [vmem:[%s14718_s3 + $0x480] sm:$0xff]  ;;  %v6681_v13 = vld [vmem:[%s14718_s3 + $0x488] sm:$0xff] }
 0x10d   :  { %v778_v41 = vmax.f32 %v8915_v17, 0.0  ;;  %1056 = vmatmul.f32.vlgmr.msrb.gmra.mxu1 %v923_v53  ;;  %1114 = vmatmul.f32.vlgmr.msrb.gmra.mxu3 %v923_v53  ;;  %v6719_v28 = vld [vmem:[%s14718_s3 + $0x5b8] sm:$0xff]  ;;  %v6716_v39 = vld [vmem:[%s14718_s3 + $0x5a0] sm:$0xff] }
 0x10e   :  { %v779_v51 = vmax.f32 %v8918_v21, 0.0  ;;  %v720_v42 = vpop.f32.mrf.mxu2  ;;  %v749_v34 = vpop.f32.mrf.mxu3  ;;  %1030 = vmatmul.f32.gmra.mxu0 %v925_v20  ;;  %1088 = vmatmul.f32.gmra.mxu2 %v925_v20  ;;  %v6899_v17 = vld [vmem:[%s14718_s3 + $0x740] sm:$0xff] }
 0x10f   :  { %v797_v44 = vrot.slane %v778_v41, 7  ;;  %v750_v24 = vadd.f32 %v749_v34, %v720_v42  ;;  %1354 = vmatpush.msrb.mxu0 %v6690_v58  ;;  %1381 = vmatpush.msrb.mxu1 %v6726_v35  ;;  %v6678_v58 = vld [vmem:[%s14718_s3 + $0x470] sm:$0xff]  ;;  %v6679_v42 = vld [vmem:[%s14718_s3 + $0x478] sm:$0xff]  ;;  %v6717_v34 = vld [vmem:[%s14718_s3 + $0x5a8] sm:$0xff] }
 0x110   :  { %v798_v23 = vrot.slane %v779_v51, 7  ;;  %v901_v29 = vld [vmem:[#allocation2 + $0x20] sm:$0x1]  ;;  %1439 = vmatpush.msrb.mxu3 %v6727_v36  ;;  %1413 = vmatpush.msrb.mxu2 %v6689_v48  ;;  %v6676_v35 = vld [vmem:[%s14718_s3 + $0x460] sm:$0xff]  ;;  %v6714_v36 = vld [vmem:[%s14718_s3 + $0x590] sm:$0xff] }
 0x111   :  { %821 = vst [vmem:[#allocation2 + $0x38] sm:$0xfe] %v797_v44  ;;  %v759_v52 = vadd.f32 %v750_v24, %v524_v43  ;;  %v926_v55 = vrot.slane %v901_v29, 1  ;;  %v902_v32 = vld [vmem:[#allocation2 + $0x8] sm:$0xfe]  ;;  %1355 = vmatpush.msrb.mxu0 %v6688_v60  ;;  %1382 = vmatpush.msrb.mxu1 %v6724_v63  ;;  %v6677_v43 = vld [vmem:[%s14718_s3 + $0x468] sm:$0xff] }
 0x112   :  { %v8967_v62 = vsel %vm71_vm0, %v8896_v27, %v798_v23  ;;  %824 = vst [vmem:[#allocation2 + $0x10] sm:$0x1] %v798_v23  ;;  %v928_v40 = vrot.slane %v902_v32, 1  ;;  %1440 = vmatpush.msrb.mxu3 %v6725_v49  ;;  %1414 = vmatpush.msrb.mxu2 %v6687_v61  ;;  %v6682_v27 = vld [vmem:[%s14718_s3 + $0x490] sm:$0xff]  ;;  %v6712_v48 = vld [vmem:[%s14718_s3 + $0x580] sm:$0xff]  ;;  %v6675_v23 = vld [vmem:[%s14718_s3 + $0x458] sm:$0xff] }
 0x113   :  { %v8970_v8 = vadd.f32 %v8726_v18, %v759_v52  ;;  %v927_v19 = vsel %vm200_vm1, %v922_v15, %v926_v55  ;;  %v929_v2 = vrot.slane %v8967_v62, 1  ;;  %1356 = vmatpush.msrb.mxu0 %v6686_v56  ;;  %1383 = vmatpush.msrb.mxu1 %v6722_v26  ;;  %v6674_v60 = vld [vmem:[%s14718_s3 + $0x450] sm:$0xff]  ;;  %v6713_v29 = vld [vmem:[%s14718_s3 + $0x588] sm:$0xff]  ;;  %v6672_v49 = vld [vmem:[%s14718_s3 + $0x440] sm:$0xff] }
 0x114   :  { %1415 = vmatpush.msrb.mxu2 %v6685_v3  ;;  %1441 = vmatpush.msrb.mxu3 %v6723_v4  ;;  %v6710_v52 = vld [vmem:[%s14718_s3 + $0x570] sm:$0xff]  ;;  %v826_v55 = vld [vmem:[#allocation2 + $0x30] sm:$0xff]  ;;  %v6673_v32 = vld [vmem:[%s14718_s3 + $0x448] sm:$0xff] }
 0x115   :  { %v780_v57 = vmax.f32 %v8970_v8, 0.0  ;;  %1059 = vmatmul.f32.gmra.mxu1 %v927_v19  ;;  %1117 = vmatmul.f32.gmra.mxu3 %v927_v19  ;;  %v930_v18 = vsel %vm200_vm1, %v928_v40, %v929_v2  ;;  %v6711_v61 = vld [vmem:[%s14718_s3 + $0x578] sm:$0xff]  ;;  %v6670_v40 = vld [vmem:[%s14718_s3 + $0x430] sm:$0xff]  ;;  %v6708_v19 = vld [vmem:[%s14718_s3 + $0x560] sm:$0xff] }
 0x116   :  { %1033 = vmatmul.f32.gmra.mxu0 %v930_v18  ;;  %1091 = vmatmul.f32.gmra.mxu2 %v930_v18  ;;  %v6668_v26 = vld [vmem:[%s14718_s3 + $0x420] sm:$0xff]  ;;  %v6706_v18 = vld [vmem:[%s14718_s3 + $0x550] sm:$0xff]  ;;  %v6669_v3 = vld [vmem:[%s14718_s3 + $0x428] sm:$0xff] }
 0x117   :  { %v800_v7 = vrot.slane %v780_v57, 7  ;;  %1357 = vmatpush.msrb.mxu0 %v6684_v25  ;;  %1384 = vmatpush.msrb.mxu1 %v6720_v50  ;;  %v6709_v25 = vld [vmem:[%s14718_s3 + $0x568] sm:$0xff]  ;;  %v6707_v4 = vld [vmem:[%s14718_s3 + $0x558] sm:$0xff]  ;;  %v6666_v50 = vld [vmem:[%s14718_s3 + $0x410] sm:$0xff] }
 0x118   :  { %v903_v0 = vld [vmem:[#allocation2 + $0x38] sm:$0xfe]  ;;  %1416 = vmatpush.msrb.mxu2 %v6683_v9  ;;  %1442 = vmatpush.msrb.mxu3 %v6721_v59  ;;  %v6667_v9 = vld [vmem:[%s14718_s3 + $0x418] sm:$0xff]  ;;  %v6705_v59 = vld [vmem:[%s14718_s3 + $0x548] sm:$0xff] }
 0x119   :  { %v9012_v14 = vsel %vm71_vm0, %v797_v44, %v800_v7  ;;  %825 = vst [vmem:[#allocation2 + $0x40] sm:$0x1] %v800_v7  ;;  %v931_v15 = vrot.slane %v903_v0, 1  ;;  %v904_v16 = vld [vmem:[#allocation2 + $0x10] sm:$0x1]  ;;  %1358 = vmatpush.msrb.mxu0 %v6682_v27  ;;  %1385 = vmatpush.msrb.mxu1 %v6718_v11  ;;  %v827_v27 = vld [vmem:[#allocation2] sm:$0xff] }
 0x11a   :  { %v932_v53 = vrot.slane %v9012_v14, 1  ;;  %v934_v20 = vrot.slane %v904_v16, 1  ;;  %1417 = vmatpush.msrb.mxu2 %v6681_v13  ;;  %1443 = vmatpush.msrb.mxu3 %v6719_v28  ;;  %v6715_v44 = vld [vmem:[%s14718_s3 + $0x598] sm:$0xff]  ;;  %v6704_v7 = vld [vmem:[%s14718_s3 + $0x540] sm:$0xff]  ;;  %v6702_v0 = vld [vmem:[%s14718_s3 + $0x530] sm:$0xff] }
 0x11b   :  { %1359 = vmatpush.msrb.mxu0 %v6680_v38  ;;  %1386 = vmatpush.msrb.mxu1 %v6716_v39  ;;  %v6664_v38 = vld [vmem:[%s14718_s3 + $0x400] sm:$0xff]  ;;  %v6665_v11 = vld [vmem:[%s14718_s3 + $0x408] sm:$0xff]  ;;  %v6703_v13 = vld [vmem:[%s14718_s3 + $0x538] sm:$0xff] }
 0x11c   :  { %v933_v54 = vsel %vm200_vm1, %v931_v15, %v932_v53  ;;  %v935_v22 = vsel %vm200_vm1, %v929_v2, %v934_v20  ;;  %1418 = vmatpush.msrb.mxu2 %v6679_v42  ;;  %1444 = vmatpush.msrb.mxu3 %v6717_v34  ;;  %v6671_v2 = vld [vmem:[%s14718_s3 + $0x438] sm:$0xff]  ;;  %v6700_v15 = vld [vmem:[%s14718_s3 + $0x520] sm:$0xff]  ;;  %v6701_v16 = vld [vmem:[%s14718_s3 + $0x528] sm:$0xff]  ;;  %v1260_v34 = vrot.slane %v8841_v33, 2 }
 0x11d   :  { %1062 = vmatmul.f32.gmra.mxu1 %v933_v54  ;;  %1120 = vmatmul.f32.gmra.mxu3 %v933_v54  ;;  %v6698_v28 = vld [vmem:[%s14718_s3 + $0x510] sm:$0xff]  ;;  %v6696_v54 = vld [vmem:[%s14718_s3 + $0x500] sm:$0xff]  ;;  %v1243_v39 = vld [vmem:[#allocation2 + $0x30] sm:$0xfc] }
 0x11e   :  { %1036 = vmatmul.f32.gmra.mxu0 %v935_v22  ;;  %1094 = vmatmul.f32.gmra.mxu2 %v935_v22  ;;  %v830_v20 = vld [vmem:[#allocation2 + $0x8] sm:$0xff]  ;;  %v6697_v22 = vld [vmem:[%s14718_s3 + $0x508] sm:$0xff]  ;;  %v1259_v42 = vrot.slane %v1243_v39, 2 }
 0x11f   :  { %1360 = vmatpush.msrb.mxu0 %v6678_v58  ;;  %1387 = vmatpush.msrb.mxu1 %v6714_v36  ;;  %v831_v58 = vld [vmem:[#allocation2 + $0x38] sm:$0xff]  ;;  %v1244_v36 = vld [vmem:[#allocation2] sm:$0xfc] }
 0x120   :  { %v905_v24 = vld [vmem:[#allocation2 + $0x40] sm:$0x1]  ;;  %1419 = vmatpush.msrb.mxu2 %v6677_v43  ;;  %1445 = vmatpush.msrb.mxu3 %v6715_v44  ;;  %v1245_v43 = vld [vmem:[#allocation2 + $0x50] sm:$0x3]  ;;  %v1262_v44 = vrot.slane %v1244_v36, 2 }
 0x121   :  { %v936_v56 = vrot.slane %v905_v24, 1  ;;  %1361 = vmatpush.msrb.mxu0 %v6676_v35  ;;  %1388 = vmatpush.msrb.mxu1 %v6712_v48  ;;  %v1261_v35 = vsel %vm542_vm2, %v1259_v42, %v1260_v34  ;;  %v1263_v24 = vrot.slane %v8906_v37, 2 }
 0x122   :  { %1420 = vmatpush.msrb.mxu2 %v6675_v23  ;;  %1446 = vmatpush.msrb.mxu3 %v6713_v29  ;;  %v1247_v23 = vld [vmem:[#allocation2 + $0x8] sm:$0xfc] }
 0x123   :  { %v937_v63 = vsel %vm200_vm1, %v932_v53, %v936_v56  ;;  %1362 = vmatpush.msrb.mxu0 %v6674_v60  ;;  %1389 = vmatpush.msrb.mxu1 %v6710_v52  ;;  %v6699_v53 = vld [vmem:[%s14718_s3 + $0x518] sm:$0xff]  ;;  %v1265_v60 = vrot.slane %v1245_v43, 2  ;;  %v1264_v48 = vsel %vm542_vm2, %v1262_v44, %v1263_v24  ;;  %v1246_v56 = vld [vmem:[#allocation2 + $0x20] sm:$0x3]  ;;  %v6752_v44 = vld [vmem:[%s14722_s7 + $0x2c0] sm:$0xff] }
 0x124   :  { %1421 = vmatpush.msrb.mxu2 %v6673_v32  ;;  %1447 = vmatpush.msrb.mxu3 %v6711_v61  ;;  %v1267_v29 = vrot.slane %v1246_v56, 2  ;;  %v1249_v32 = vld [vmem:[#allocation2 + $0x10] sm:$0x3]  ;;  %v6788_v56 = vld [vmem:[%s14722_s7 + $0x3e0] sm:$0xff] }
 0x125   :  { %1065 = vmatmul.f32.gmra.mxu1 %v937_v63  ;;  %1123 = vmatmul.f32.gmra.mxu3 %v937_v63  ;;  %v1269_v63 = vrot.slane %v1247_v23, 2  ;;  %v6751_v23 = vld [vmem:[%s14722_s7 + $0x2b8] sm:$0xff] }
 0x126   :  { %1143 = vmatmul.f32.vlgmr.msra.gmra.mxu0 %v826_v55  ;;  %1201 = vmatmul.f32.vlgmr.msra.gmra.mxu2 %v826_v55  ;;  %v1268_v52 = vsel %vm542_vm2, %v1263_v24, %v1267_v29  ;;  %v1248_v55 = vld [vmem:[#allocation2 + $0x38] sm:$0xfc]  ;;  %v6790_v24 = vld [vmem:[%s14722_s7 + $0x3f0] sm:$0xff]  ;;  %v6789_v29 = vld [vmem:[%s14722_s7 + $0x3e8] sm:$0xff] }
 0x127   :  { %1363 = vmatpush.msrb.mxu0 %v6672_v49  ;;  %1390 = vmatpush.msrb.mxu1 %v6708_v19  ;;  %v1270_v49 = vrot.slane %v8967_v62, 2  ;;  %v1272_v61 = vrot.slane %v1248_v55, 2  ;;  %v1275_v19 = vrot.slane %v1249_v32, 2  ;;  %v6787_v55 = vld [vmem:[%s14722_s7 + $0x3d8] sm:$0xff] }
 0x128   :  { %1422 = vmatpush.msrb.mxu2 %v6671_v2  ;;  %1448 = vmatpush.msrb.mxu3 %v6709_v25  ;;  %v1250_v25 = vld [vmem:[#allocation2 + $0x40] sm:$0x3] }
 0x129   :  { %1364 = vmatpush.msrb.mxu0 %v6670_v40  ;;  %1391 = vmatpush.msrb.mxu1 %v6706_v18  ;;  %v1273_v40 = vrot.slane %v9012_v14, 2 }
 0x12a   :  { %1423 = vmatpush.msrb.mxu2 %v6669_v3  ;;  %1449 = vmatpush.msrb.mxu3 %v6707_v4 }
 0x12b   :  { %1365 = vmatpush.msrb.mxu0 %v6668_v26  ;;  %1392 = vmatpush.msrb.mxu1 %v6704_v7  ;;  %v1274_v2 = vsel %vm542_vm2, %v1272_v61, %v1273_v40  ;;  %v1277_v26 = vrot.slane %v1250_v25, 2  ;;  %v6746_v61 = vld [vmem:[%s14722_s7 + $0x290] sm:$0xff] }
 0x12c   :  { %1424 = vmatpush.msrb.mxu2 %v6667_v9  ;;  %1450 = vmatpush.msrb.mxu3 %v6705_v59 }
 0x12d   :  { %1172 = vmatmul.f32.vlgmr.msra.gmra.mxu1 %v827_v27  ;;  %1230 = vmatmul.f32.vlgmr.msra.gmra.mxu3 %v827_v27  ;;  %v1278_v18 = vsel %vm542_vm2, %v1273_v40, %v1277_v26  ;;  %v6784_v40 = vld [vmem:[%s14722_s7 + $0x3c0] sm:$0xff] }
 0x12e   :  { %1146 = vmatmul.f32.gmra.mxu0 %v8841_v33  ;;  %1204 = vmatmul.f32.gmra.mxu2 %v8841_v33  ;;  %v1266_v33 = vsel %vm542_vm2, %v1260_v34, %v1265_v60  ;;  %v6754_v34 = vld [vmem:[%s14722_s7 + $0x2d0] sm:$0xff]  ;;  %v6753_v60 = vld [vmem:[%s14722_s7 + $0x2c8] sm:$0xff]  ;;  %v6744_v26 = vld [vmem:[%s14722_s7 + $0x280] sm:$0xff] }
 0x12f   :  { %1366 = vmatpush.msrb.mxu0 %v6666_v50  ;;  %1393 = vmatpush.msrb.mxu1 %v6702_v0 }
 0x130   :  { %1425 = vmatpush.msrb.mxu2 %v6665_v11  ;;  %1451 = vmatpush.msrb.mxu3 %v6703_v13 }
 0x131   :  { %1367 = vmatpush.msrb.mxu0 %v6664_v38  ;;  %1394 = vmatpush.msrb.mxu1 %v6700_v15 }
 0x132   :  { %1452 = vmatpush.msrb.mxu3 %v6701_v16 }
 0x133   :  { %1395 = vmatpush.msrb.mxu1 %v6698_v28 }
 0x134   :  { %1453 = vmatpush.msrb.mxu3 %v6699_v53 }
 0x135   :  { %1175 = vmatmul.f32.gmra.mxu1 %v8906_v37  ;;  %1233 = vmatmul.f32.gmra.mxu3 %v8906_v37  ;;  %v1271_v37 = vsel %vm542_vm2, %v1269_v63, %v1270_v49  ;;  %v6748_v63 = vld [vmem:[%s14722_s7 + $0x2a0] sm:$0xff] }
 0x136   :  { %1149 = vmatmul.f32.gmra.mxu0 %v830_v20  ;;  %1207 = vmatmul.f32.gmra.mxu2 %v830_v20  ;;  %v6758_v20 = vld [vmem:[%s14722_s7 + $0x2f0] sm:$0xff] }
 0x137   :  { %1396 = vmatpush.msrb.mxu1 %v6696_v54  ;;  %1454 = vmatpush.msrb.mxu3 %v6697_v22  ;;  %v6759_v54 = vld [vmem:[%s14722_s7 + $0x2f8] sm:$0xff]  ;;  %v6756_v22 = vld [vmem:[%s14722_s7 + $0x2e0] sm:$0xff] }
 0x138   :  { %1726 = vmatpush.msra.mxu0 %v6758_v20  ;;  %1784 = vmatpush.msra.mxu2 %v6759_v54  ;;  %v6745_v20 = vld [vmem:[%s14722_s7 + $0x288] sm:$0xff]  ;;  %v6783_v54 = vld [vmem:[%s14722_s7 + $0x3b8] sm:$0xff] }
 0x139   :  { %1755 = vmatpush.msra.mxu1 %v6790_v24  ;;  %v6778_v24 = vld [vmem:[%s14722_s7 + $0x390] sm:$0xff] }
 0x13a   :  { %1727 = vmatpush.msra.mxu0 %v6756_v22  ;;  %v6742_v22 = vld [vmem:[%s14722_s7 + $0x270] sm:$0xff] }
 0x13b   :  { %1756 = vmatpush.msra.mxu1 %v6788_v56 }
 0x13c   :  { %1728 = vmatpush.msra.mxu0 %v6754_v34  ;;  %v6743_v34 = vld [vmem:[%s14722_s7 + $0x278] sm:$0xff] }
 0x13d   :  { %1178 = vmatmul.f32.gmra.mxu1 %v831_v58  ;;  %1236 = vmatmul.f32.gmra.mxu3 %v831_v58  ;;  %v6757_v58 = vld [vmem:[%s14722_s7 + $0x2e8] sm:$0xff] }
 0x13e   :  { %1152 = vmatmul.f32.gmra.mxu0 %v8967_v62  ;;  %1210 = vmatmul.f32.gmra.mxu2 %v8967_v62  ;;  %v1276_v62 = vsel %vm542_vm2, %v1270_v49, %v1275_v19  ;;  %v6786_v49 = vld [vmem:[%s14722_s7 + $0x3d0] sm:$0xff]  ;;  %v6747_v19 = vld [vmem:[%s14722_s7 + $0x298] sm:$0xff] }
 0x13f   :  { %1785 = vmatpush.msra.mxu2 %v6757_v58  ;;  %1729 = vmatpush.msra.mxu0 %v6752_v44  ;;  %v6780_v58 = vld [vmem:[%s14722_s7 + $0x3a0] sm:$0xff] }
 0x140   :  { %1757 = vmatpush.msra.mxu1 %v6786_v49  ;;  %v6740_v44 = vld [vmem:[%s14722_s7 + $0x260] sm:$0xff] }
 0x142   :  { %1758 = vmatpush.msra.mxu1 %v6784_v40  ;;  %v6774_v40 = vld [vmem:[%s14722_s7 + $0x370] sm:$0xff] }
 0x145   :  { %1181 = vmatmul.f32.gmra.mxu1 %v9012_v14  ;;  %1239 = vmatmul.f32.gmra.mxu3 %v9012_v14 }
 0x146   :  { %1368 = vmatmul.f32.vlgmr.msrb.gmra.mxu0 %v1261_v35  ;;  %1426 = vmatmul.f32.vlgmr.msrb.gmra.mxu2 %v1261_v35  ;;  %v6755_v35 = vld [vmem:[%s14722_s7 + $0x2d8] sm:$0xff] }
 0x147   :  { %1786 = vmatpush.msra.mxu2 %v6755_v35  ;;  %v6781_v35 = vld [vmem:[%s14722_s7 + $0x3a8] sm:$0xff] }
 0x149   :  { %1787 = vmatpush.msra.mxu2 %v6753_v60  ;;  %v6741_v60 = vld [vmem:[%s14722_s7 + $0x268] sm:$0xff] }
 0x14b   :  { %1788 = vmatpush.msra.mxu2 %v6751_v23  ;;  %v6738_v23 = vld [vmem:[%s14722_s7 + $0x250] sm:$0xff] }
 0x14d   :  { %1397 = vmatmul.f32.vlgmr.msrb.gmra.mxu1 %v1264_v48  ;;  %1455 = vmatmul.f32.vlgmr.msrb.gmra.mxu3 %v1264_v48  ;;  %v6791_v48 = vld [vmem:[%s14722_s7 + $0x3f8] sm:$0xff] }
 0x14e   :  { %1371 = vmatmul.f32.gmra.mxu0 %v1266_v33  ;;  %1429 = vmatmul.f32.gmra.mxu2 %v1266_v33  ;;  %v6750_v33 = vld [vmem:[%s14722_s7 + $0x2b0] sm:$0xff] }
 0x14f   :  { %1813 = vmatpush.msra.mxu3 %v6791_v48  ;;  %1730 = vmatpush.msra.mxu0 %v6750_v33  ;;  %v6779_v33 = vld [vmem:[%s14722_s7 + $0x398] sm:$0xff] }
 0x151   :  { %1814 = vmatpush.msra.mxu3 %v6789_v29  ;;  %1731 = vmatpush.msra.mxu0 %v6748_v63  ;;  %v6776_v29 = vld [vmem:[%s14722_s7 + $0x380] sm:$0xff]  ;;  %v6739_v63 = vld [vmem:[%s14722_s7 + $0x258] sm:$0xff] }
 0x153   :  { %1815 = vmatpush.msra.mxu3 %v6787_v55  ;;  %1732 = vmatpush.msra.mxu0 %v6746_v61  ;;  %v6736_v61 = vld [vmem:[%s14722_s7 + $0x240] sm:$0xff] }
 0x155   :  { %1400 = vmatmul.f32.gmra.mxu1 %v1268_v52  ;;  %1458 = vmatmul.f32.gmra.mxu3 %v1268_v52  ;;  %v6749_v52 = vld [vmem:[%s14722_s7 + $0x2a8] sm:$0xff] }
 0x156   :  { %1374 = vmatmul.f32.gmra.mxu0 %v1271_v37  ;;  %1432 = vmatmul.f32.gmra.mxu2 %v1271_v37 }
 0x157   :  { %1789 = vmatpush.msra.mxu2 %v6749_v52  ;;  %1733 = vmatpush.msra.mxu0 %v6744_v26  ;;  %v6777_v52 = vld [vmem:[%s14722_s7 + $0x388] sm:$0xff]  ;;  %v6734_v26 = vld [vmem:[%s14722_s7 + $0x230] sm:$0xff] }
 0x159   :  { %1790 = vmatpush.msra.mxu2 %v6747_v19  ;;  %1734 = vmatpush.msra.mxu0 %v6742_v22  ;;  %v6737_v19 = vld [vmem:[%s14722_s7 + $0x248] sm:$0xff]  ;;  %v6732_v22 = vld [vmem:[%s14722_s7 + $0x220] sm:$0xff] }
 0x15b   :  { %1791 = vmatpush.msra.mxu2 %v6745_v20  ;;  %1735 = vmatpush.msra.mxu0 %v6740_v44  ;;  %v6735_v20 = vld [vmem:[%s14722_s7 + $0x238] sm:$0xff] }
 0x15c   :  { %v6771_v44 = vld [vmem:[%s14722_s7 + $0x358] sm:$0xff] }
 0x15d   :  { %1403 = vmatmul.f32.gmra.mxu1 %v1274_v2  ;;  %1461 = vmatmul.f32.gmra.mxu3 %v1274_v2 }
 0x15e   :  { %1377 = vmatmul.f32.gmra.mxu0 %v1276_v62  ;;  %1435 = vmatmul.f32.gmra.mxu2 %v1276_v62  ;;  %v6785_v62 = vld [vmem:[%s14722_s7 + $0x3c8] sm:$0xff] }
 0x15f   :  { %1816 = vmatpush.msra.mxu3 %v6785_v62  ;;  %1792 = vmatpush.msra.mxu2 %v6743_v34  ;;  %v6775_v62 = vld [vmem:[%s14722_s7 + $0x378] sm:$0xff]  ;;  %v6733_v34 = vld [vmem:[%s14722_s7 + $0x228] sm:$0xff] }
 0x160   :  { %1736 = vmatpush.msra.mxu0 %v6738_v23  ;;  %v6731_v23 = vld [vmem:[%s14722_s7 + $0x218] sm:$0xff] }
 0x161   :  { %1817 = vmatpush.msra.mxu3 %v6783_v54  ;;  %1793 = vmatpush.msra.mxu2 %v6741_v60  ;;  %v6773_v54 = vld [vmem:[%s14722_s7 + $0x368] sm:$0xff]  ;;  %v6730_v60 = vld [vmem:[%s14722_s7 + $0x210] sm:$0xff] }
 0x162   :  { %1737 = vmatpush.msra.mxu0 %v6736_v61  ;;  %v6766_v61 = vld [vmem:[%s14722_s7 + $0x330] sm:$0xff] }
 0x163   :  { %1818 = vmatpush.msra.mxu3 %v6781_v35  ;;  %1794 = vmatpush.msra.mxu2 %v6739_v63  ;;  %v6769_v63 = vld [vmem:[%s14722_s7 + $0x348] sm:$0xff] }
 0x164   :  { %1738 = vmatpush.msra.mxu0 %v6734_v26  ;;  %v6764_v26 = vld [vmem:[%s14722_s7 + $0x320] sm:$0xff] }
 0x165   :  { %1406 = vmatmul.f32.gmra.mxu1 %v1278_v18  ;;  %1464 = vmatmul.f32.gmra.mxu3 %v1278_v18  ;;  %v6782_v18 = vld [vmem:[%s14722_s7 + $0x3b0] sm:$0xff] }
 0x166   :  { %1759 = vmatpush.msra.mxu1 %v6782_v18  ;;  %1819 = vmatpush.msra.mxu3 %v6779_v33  ;;  %v6772_v18 = vld [vmem:[%s14722_s7 + $0x360] sm:$0xff] }
 0x167   :  { %1795 = vmatpush.msra.mxu2 %v6737_v19  ;;  %1739 = vmatpush.msra.mxu0 %v6732_v22  ;;  %v6768_v33 = vld [vmem:[%s14722_s7 + $0x340] sm:$0xff] }
 0x168   :  { %1760 = vmatpush.msra.mxu1 %v6780_v58  ;;  %1820 = vmatpush.msra.mxu3 %v6777_v52  ;;  %v6770_v58 = vld [vmem:[%s14722_s7 + $0x350] sm:$0xff]  ;;  %v6728_v52 = vld [vmem:[%s14722_s7 + $0x200] sm:$0xff] }
 0x169   :  { %1796 = vmatpush.msra.mxu2 %v6735_v20  ;;  %1740 = vmatpush.msra.mxu0 %v6730_v60  ;;  %v1579_v20 = vld [vmem:[%s14722_s7 + $0xf0] sm:$0xff] }
 0x16a   :  { %1761 = vmatpush.msra.mxu1 %v6778_v24  ;;  %1821 = vmatpush.msra.mxu3 %v6775_v62  ;;  %v6767_v62 = vld [vmem:[%s14722_s7 + $0x338] sm:$0xff] }
 0x16b   :  { %1797 = vmatpush.msra.mxu2 %v6733_v34  ;;  %1741 = vmatpush.msra.mxu0 %v6728_v52  ;;  %v6763_v34 = vld [vmem:[%s14722_s7 + $0x318] sm:$0xff]  ;;  %v1575_v52 = vld [vmem:[%s14722_s7 + $0xd0] sm:$0xff] }
 0x16c   :  { %1762 = vmatpush.msra.mxu1 %v6776_v29  ;;  %1822 = vmatpush.msra.mxu3 %v6773_v54  ;;  %v1580_v54 = vld [vmem:[%s14722_s7 + $0xf8] sm:$0xff] }
 0x16d   :  { %1798 = vmatpush.msra.mxu2 %v6731_v23  ;;  %1842 = vmatpush.msrb.mxu0 %v1579_v20  ;;  %v6760_v23 = vld [vmem:[%s14722_s7 + $0x300] sm:$0xff] }
 0x16e   :  { %1763 = vmatpush.msra.mxu1 %v6774_v40  ;;  %1823 = vmatpush.msra.mxu3 %v6771_v44  ;;  %v6729_v40 = vld [vmem:[%s14722_s7 + $0x208] sm:$0xff]  ;;  %v1577_v44 = vld [vmem:[%s14722_s7 + $0xe0] sm:$0xff] }
 0x16f   :  { %1799 = vmatpush.msra.mxu2 %v6729_v40  ;;  %1843 = vmatpush.msrb.mxu0 %v1577_v44  ;;  %v1573_v20 = vld [vmem:[%s14722_s7 + $0xc0] sm:$0xff] }
 0x170   :  { %1764 = vmatpush.msra.mxu1 %v6772_v18  ;;  %1824 = vmatpush.msra.mxu3 %v6769_v63  ;;  %v6765_v18 = vld [vmem:[%s14722_s7 + $0x328] sm:$0xff]  ;;  %v1609_v44 = vld [vmem:[%s14722_s7 + $0x1e0] sm:$0xff] }
 0x171   :  { %1900 = vmatpush.msrb.mxu2 %v1580_v54  ;;  %v6761_v63 = vld [vmem:[%s14722_s7 + $0x308] sm:$0xff]  ;;  %1844 = vmatpush.msrb.mxu0 %v1575_v52  ;;  %v1611_v54 = vld [vmem:[%s14722_s7 + $0x1f0] sm:$0xff]  ;;  %v1569_v52 = vld [vmem:[%s14722_s7 + $0xa0] sm:$0xff] }
 0x172   :  { %1765 = vmatpush.msra.mxu1 %v6770_v58  ;;  %1825 = vmatpush.msra.mxu3 %v6767_v62  ;;  %v6762_v58 = vld [vmem:[%s14722_s7 + $0x310] sm:$0xff] }
 0x173   :  { %1845 = vmatpush.msrb.mxu0 %v1573_v20 }
 0x174   :  { %1766 = vmatpush.msra.mxu1 %v6768_v33  ;;  %1826 = vmatpush.msra.mxu3 %v6765_v18 }
 0x176   :  { %1767 = vmatpush.msra.mxu1 %v6766_v61  ;;  %1827 = vmatpush.msra.mxu3 %v6763_v34  ;;  %v1571_v34 = vld [vmem:[%s14722_s7 + $0xb0] sm:$0xff] }
 0x177   :  { %1846 = vmatpush.msrb.mxu0 %v1571_v34 }
 0x178   :  { %1768 = vmatpush.msra.mxu1 %v6764_v26  ;;  %1828 = vmatpush.msra.mxu3 %v6761_v63 }
 0x179   :  { %1847 = vmatpush.msrb.mxu0 %v1569_v52 }
 0x17a   :  { %1769 = vmatpush.msra.mxu1 %v6762_v58 }
 0x17c   :  { %1770 = vmatpush.msra.mxu1 %v6760_v23 }
 0x17e   :  { %1871 = vmatpush.msrb.mxu1 %v1611_v54 }
 0x180   :  { %1872 = vmatpush.msrb.mxu1 %v1609_v44  ;;  %v1565_v44 = vld [vmem:[%s14722_s7 + $0x80] sm:$0xff] }
 0x183   :  { %v9155_v3 = vpop.f32.mrf.mxu0 }
 0x189   :  { %v9157_v4 = vpop.f32.mrf.mxu2 }
 0x18a   :  { %v9159_v14 = vpop.f32.mrf.mxu1 }
 0x18b   :  { %v9161_v27 = vpop.f32.mrf.mxu0  ;;  %v1058_v22 = vadd.f32 %v9159_v14, %v9155_v3  ;;  %v781_v3 = vld [vmem:[%s14719_s4] sm:$0x3]  ;;  %v1578_v14 = vld [vmem:[%s14722_s7 + $0xe8] sm:$0xff] }
 0x18c   :  { %1901 = vmatpush.msrb.mxu2 %v1578_v14  ;;  %v9436_v18 = vperm.slane %v781_v3, 0  ;;  %v1572_v14 = vld [vmem:[%s14722_s7 + $0xb8] sm:$0xff]  ;;  %v9482_v54 = vperm.slane %v781_v3, 1 }
 0x190   :  { %v9163_v50 = vpop.f32.mrf.mxu3 }
 0x191   :  { %v9165_v7 = vpop.f32.mrf.mxu2 }
 0x192   :  { %v9167_v9 = vpop.f32.mrf.mxu1 }
 0x193   :  { %v9169_v59 = vpop.f32.mrf.mxu0 }
 0x198   :  { %v9171_v38 = vpop.f32.mrf.mxu3 }
 0x199   :  { %v9173_v0 = vpop.f32.mrf.mxu2 }
 0x19a   :  { %v9175_v11 = vpop.f32.mrf.mxu1 }
 0x19b   :  { %v9177_v13 = vpop.f32.mrf.mxu0 }
 0x1a0   :  { %v9179_v15 = vpop.f32.mrf.mxu3 }
 0x1a1   :  { %v9181_v16 = vpop.f32.mrf.mxu2 }
 0x1a2   :  { %v9183_v28 = vpop.f32.mrf.mxu1 }
 0x1a3   :  { %v9185_v53 = vpop.f32.mrf.mxu0 }
 0x1a4   :  { %v1145_v33 = vadd.f32 %v9185_v53, %v1058_v22  ;;  %v1576_v53 = vld [vmem:[%s14722_s7 + $0xd8] sm:$0xff]  ;;  %v1574_v22 = vld [vmem:[%s14722_s7 + $0xc8] sm:$0xff] }
 0x1a5   :  { %1902 = vmatpush.msrb.mxu2 %v1576_v53 }
 0x1a7   :  { %1903 = vmatpush.msrb.mxu2 %v1574_v22  ;;  %v1567_v22 = vld [vmem:[%s14722_s7 + $0x90] sm:$0xff] }
 0x1a8   :  { %v9199_v39 = vpop.f32.mrf.mxu3  ;;  %1848 = vmatpush.msrb.mxu0 %v1567_v22 }
 0x1a9   :  { %v9201_v42 = vpop.f32.mrf.mxu2  ;;  %1904 = vmatpush.msrb.mxu2 %v1572_v14  ;;  %v1603_v14 = vld [vmem:[%s14722_s7 + $0x1b0] sm:$0xff] }
 0x1aa   :  { %v9209_v36 = vpop.f32.mrf.mxu1  ;;  %1849 = vmatpush.msrb.mxu0 %v1565_v44 }
 0x1ab   :  { %v9211_v43 = vpop.f32.mrf.mxu0  ;;  %v1174_v62 = vadd.f32 %v9209_v36, %v1145_v33  ;;  %v1612_v36 = vld [vmem:[%s14722_s7 + $0x1f8] sm:$0xff]  ;;  %v1061_v33 = vadd.f32 %v9167_v9, %v9161_v27  ;;  %v1607_v27 = vld [vmem:[%s14722_s7 + $0x1d0] sm:$0xff]  ;;  %v1570_v9 = vld [vmem:[%s14722_s7 + $0xa8] sm:$0xff] }
 0x1ac   :  { %1929 = vmatpush.msrb.mxu3 %v1612_v36  ;;  %1873 = vmatpush.msrb.mxu1 %v1607_v27  ;;  %v1568_v36 = vld [vmem:[%s14722_s7 + $0x98] sm:$0xff] }
 0x1ad   :  { %1905 = vmatpush.msrb.mxu2 %v1570_v9  ;;  %v1564_v9 = vld [vmem:[%s14722_s7 + $0x78] sm:$0xff] }
 0x1af   :  { %1906 = vmatpush.msrb.mxu2 %v1568_v36 }
 0x1b0   :  { %v9246_v37 = vpop.f32.mrf.mxu3 }
 0x1b1   :  { %v9251_v32 = vpop.f32.mrf.mxu2 }
 0x1b2   :  { %v9262_v2 = vpop.f32.mrf.mxu1 }
 0x1b3   :  { %v9267_v25 = vpop.f32.mrf.mxu0 }
 0x1b8   :  { %v9302_v48 = vpop.f32.mrf.mxu3 }
 0x1b9   :  { %v9307_v56 = vpop.f32.mrf.mxu2 }
 0x1ba   :  { %v9318_v49 = vpop.f32.mrf.mxu1 }
 0x1bb   :  { %v9323_v55 = vpop.f32.mrf.mxu0 }
 0x1c0   :  { %v9358_v35 = vpop.f32.mrf.mxu3 }
 0x1c1   :  { %v9363_v24 = vpop.f32.mrf.mxu2 }
 0x1c2   :  { %v9374_v29 = vpop.f32.mrf.mxu1 }
 0x1c3   :  { %v1369_v19 = vpop.f32.mrf.mxu0 }
 0x1c8   :  { %v9414_v60 = vpop.f32.mrf.mxu3 }
 0x1c9   :  { %v1427_v40 = vpop.f32.mrf.mxu2 }
 0x1ca   :  { %v1398_v61 = vpop.f32.mrf.mxu1 }
 0x1cb   :  { %v1399_v26 = vadd.f32 %v1398_v61, %v1369_v19  ;;  %v1116_v19 = vadd.f32 %v9163_v50, %v9157_v4  ;;  %v1372_v23 = vpop.f32.mrf.mxu0  ;;  %v1610_v4 = vld [vmem:[%s14722_s7 + $0x1e8] sm:$0xff]  ;;  %v1148_v61 = vadd.f32 %v9211_v43, %v1061_v33  ;;  %v1605_v43 = vld [vmem:[%s14722_s7 + $0x1c0] sm:$0xff] }
 0x1cc   :  { %1930 = vmatpush.msrb.mxu3 %v1610_v4  ;;  %1874 = vmatpush.msrb.mxu1 %v1605_v43  ;;  %v1566_v33 = vld [vmem:[%s14722_s7 + $0x88] sm:$0xff] }
 0x1cd   :  { %v1468_v58 = vadd.f32 %v1399_v26, %v1174_v62  ;;  %v1203_v50 = vadd.f32 %v9201_v42, %v1116_v19  ;;  %v1608_v42 = vld [vmem:[%s14722_s7 + $0x1d8] sm:$0xff]  ;;  %v1177_v3 = vadd.f32 %v9262_v2, %v1148_v61  ;;  %1907 = vmatpush.msrb.mxu2 %v1566_v33  ;;  %v1602_v61 = vld [vmem:[%s14722_s7 + $0x1a8] sm:$0xff] }
 0x1ce   :  { %1931 = vmatpush.msrb.mxu3 %v1608_v42  ;;  %1875 = vmatpush.msrb.mxu1 %v1603_v14  ;;  %v1604_v2 = vld [vmem:[%s14722_s7 + $0x1b8] sm:$0xff]  ;;  %v1562_v42 = vld [vmem:[%s14722_s7 + $0x68] sm:$0xff]  ;;  %v1595_v14 = vld [vmem:[%s14722_s7 + $0x170] sm:$0xff] }
 0x1cf   :  { %v1481_v63 = vadd.f32 %v9436_v18, %v1468_v58  ;;  %v1232_v62 = vadd.f32 %v9246_v37, %v1203_v50  ;;  %v1606_v37 = vld [vmem:[%s14722_s7 + $0x1c8] sm:$0xff]  ;;  %v1601_v50 = vld [vmem:[%s14722_s7 + $0x1a0] sm:$0xff]  ;;  %1908 = vmatpush.msrb.mxu2 %v1564_v9 }
 0x1d0   :  { %v1456_v53 = vpop.f32.mrf.mxu3  ;;  %1932 = vmatpush.msrb.mxu3 %v1606_v37  ;;  %1876 = vmatpush.msrb.mxu1 %v1601_v50  ;;  %v1598_v37 = vld [vmem:[%s14722_s7 + $0x188] sm:$0xff]  ;;  %v1593_v9 = vld [vmem:[%s14722_s7 + $0x160] sm:$0xff] }
 0x1d1   :  { %v1489_v26 = vmax.f32 %v1481_v63, 0.0  ;;  %v1457_v20 = vadd.f32 %v1456_v53, %v1427_v40  ;;  %v1430_v4 = vpop.f32.mrf.mxu2  ;;  %v1119_v63 = vadd.f32 %v9171_v38, %v9165_v7  ;;  %v1561_v53 = vld [vmem:[%s14722_s7 + $0x60] sm:$0xff]  ;;  %v1064_v7 = vadd.f32 %v9175_v11, %v9169_v59  ;;  %v1599_v38 = vld [vmem:[%s14722_s7 + $0x190] sm:$0xff]  ;;  %1909 = vmatpush.msrb.mxu2 %v1562_v42 }
 0x1d2   :  { %v1401_v19 = vpop.f32.mrf.mxu1  ;;  %1933 = vmatpush.msrb.mxu3 %v1604_v2  ;;  %v1559_v59 = vld [vmem:[%s14722_s7 + $0x50] sm:$0xff]  ;;  %v1597_v11 = vld [vmem:[%s14722_s7 + $0x180] sm:$0xff]  ;;  %1877 = vmatpush.msrb.mxu1 %v1599_v38 }
 0x1d3   :  { %v9497_v40 = vrot.slane %v1489_v26, 7  ;;  %v1469_v58 = vadd.f32 %v1457_v20, %v1232_v62  ;;  %v1402_v34 = vadd.f32 %v1401_v19, %v1372_v23  ;;  %v1563_v23 = vld [vmem:[%s14722_s7 + $0x70] sm:$0xff]  ;;  %v1600_v62 = vld [vmem:[%s14722_s7 + $0x198] sm:$0xff]  ;;  %v1206_v26 = vadd.f32 %v9251_v32, %v1119_v63  ;;  %v1375_v36 = vpop.f32.mrf.mxu0  ;;  %v1553_v42 = vld [vmem:[%s14722_s7 + $0x20] sm:$0xff] }
 0x1d4   :  { %1850 = vmatpush.msrb.mxu0 %v1563_v23  ;;  %1934 = vmatpush.msrb.mxu3 %v1602_v61  ;;  %v1151_v43 = vadd.f32 %v9267_v25, %v1064_v7  ;;  %v1560_v32 = vld [vmem:[%s14722_s7 + $0x58] sm:$0xff]  ;;  %v1557_v25 = vld [vmem:[%s14722_s7 + $0x40] sm:$0xff] }
 0x1d5   :  { %1529 = vst [vmem:[#allocation2 + $0x30] sm:$0xfe] %v9497_v40  ;;  %v1482_v52 = vadd.f32 %v9482_v54, %v1469_v58  ;;  %v1470_v27 = vadd.f32 %v1402_v34, %v1177_v3  ;;  %v1235_v3 = vadd.f32 %v9302_v48, %v1206_v26  ;;  %1878 = vmatpush.msrb.mxu1 %v1597_v11  ;;  %v1558_v48 = vld [vmem:[%s14722_s7 + $0x48] sm:$0xff]  ;;  %v1596_v63 = vld [vmem:[%s14722_s7 + $0x178] sm:$0xff]  ;;  %v1591_v11 = vld [vmem:[%s14722_s7 + $0x150] sm:$0xff] }
 0x1d6   :  { %1851 = vmatpush.msrb.mxu0 %v1561_v53  ;;  %1935 = vmatpush.msrb.mxu3 %v1600_v62  ;;  %v1180_v33 = vadd.f32 %v9318_v49, %v1151_v43  ;;  %v1555_v49 = vld [vmem:[%s14722_s7 + $0x30] sm:$0xff]  ;;  %v1556_v61 = vld [vmem:[%s14722_s7 + $0x38] sm:$0xff]  ;;  %v1067_v62 = vadd.f32 %v9183_v28, %v9177_v13  ;;  %v1554_v13 = vld [vmem:[%s14722_s7 + $0x28] sm:$0xff] }
 0x1d7   :  { %v1490_v20 = vmax.f32 %v1482_v52, 0.0  ;;  %v1483_v22 = vadd.f32 %v9436_v18, %v1470_v27  ;;  %1910 = vmatpush.msrb.mxu2 %v1560_v32  ;;  %v1122_v52 = vadd.f32 %v9179_v15, %v9173_v0  ;;  %1879 = vmatpush.msrb.mxu1 %v1595_v14  ;;  %v1594_v15 = vld [vmem:[%s14722_s7 + $0x168] sm:$0xff] }
 0x1d8   :  { %v1459_v19 = vpop.f32.mrf.mxu3  ;;  %1852 = vmatpush.msrb.mxu0 %v1559_v59  ;;  %1936 = vmatpush.msrb.mxu3 %v1598_v37  ;;  %v1154_v28 = vadd.f32 %v9323_v55, %v1067_v62  ;;  %v1551_v55 = vld [vmem:[%s14722_s7 + $0x10] sm:$0xff] }
 0x1d9   :  { %v9557_v58 = vrot.slane %v1490_v20, 7  ;;  %v1491_v34 = vmax.f32 %v1483_v22, 0.0  ;;  %v1460_v44 = vadd.f32 %v1459_v19, %v1430_v4  ;;  %1911 = vmatpush.msrb.mxu2 %v1558_v48  ;;  %v1433_v26 = vpop.f32.mrf.mxu2  ;;  %v1209_v20 = vadd.f32 %v9307_v56, %v1122_v52  ;;  %1880 = vmatpush.msrb.mxu1 %v1593_v9 }
 0x1da   :  { %v1404_v2 = vpop.f32.mrf.mxu1  ;;  %1853 = vmatpush.msrb.mxu0 %v1557_v25  ;;  %1937 = vmatpush.msrb.mxu3 %v1596_v63  ;;  %v1587_v63 = vld [vmem:[%s14722_s7 + $0x130] sm:$0xff] }
 0x1db   :  { %1530 = vst [vmem:[#allocation2] sm:$0xfe] %v9557_v58  ;;  %v1507_v4 = vrot.slane %v1491_v34, 7  ;;  %v1471_v23 = vadd.f32 %v1460_v44, %v1235_v3  ;;  %v1405_v50 = vadd.f32 %v1404_v2, %v1375_v36  ;;  %1912 = vmatpush.msrb.mxu2 %v1556_v61  ;;  %v1592_v36 = vld [vmem:[%s14722_s7 + $0x158] sm:$0xff]  ;;  %v1238_v19 = vadd.f32 %v9358_v35, %v1209_v20  ;;  %v1589_v34 = vld [vmem:[%s14722_s7 + $0x140] sm:$0xff]  ;;  %v1378_v25 = vpop.f32.mrf.mxu0  ;;  %v1590_v2 = vld [vmem:[%s14722_s7 + $0x148] sm:$0xff] }
 0x1dc   :  { %v1613_v27 = vld [vmem:[#allocation2 + $0x30] sm:$0xfe]  ;;  %1854 = vmatpush.msrb.mxu0 %v1555_v49  ;;  %1938 = vmatpush.msrb.mxu3 %v1594_v15  ;;  %v1183_v44 = vadd.f32 %v9374_v29, %v1154_v28  ;;  %v1125_v49 = vadd.f32 %v9199_v39, %v9181_v16  ;;  %v1586_v20 = vld [vmem:[%s14722_s7 + $0x128] sm:$0xff] }
 0x1dd   :  { %v9586_v53 = vsel %vm71_vm0, %v9497_v40, %v1507_v4  ;;  %1533 = vst [vmem:[#allocation2 + $0x50] sm:$0x1] %v1507_v4  ;;  %v1484_v7 = vadd.f32 %v9482_v54, %v1471_v23  ;;  %v1472_v38 = vadd.f32 %v1405_v50, %v1180_v33  ;;  %v1633_v0 = vrot.slane %v1613_v27, 1  ;;  %1881 = vmatpush.msrb.mxu1 %v1591_v11  ;;  %v1552_v35 = vld [vmem:[%s14722_s7 + $0x18] sm:$0xff]  ;;  %v1549_v50 = vld [vmem:[%s14722_s7] sm:$0xff] }
 0x1de   :  { %v1634_v40 = vrot.slane %v9586_v53, 1  ;;  %1855 = vmatpush.msrb.mxu0 %v1553_v42  ;;  %1913 = vmatpush.msrb.mxu2 %v1554_v13  ;;  %v1588_v16 = vld [vmem:[%s14722_s7 + $0x138] sm:$0xff] }
 0x1df   :  { %v1492_v22 = vmax.f32 %v1484_v7, 0.0  ;;  %v1485_v59 = vadd.f32 %v9436_v18, %v1472_v38  ;;  %1939 = vmatpush.msrb.mxu3 %v1592_v36  ;;  %1882 = vmatpush.msrb.mxu1 %v1589_v34  ;;  %v1550_v38 = vld [vmem:[%s14722_s7 + $0x8] sm:$0xff] }
 0x1e0   :  { %v1462_v43 = vpop.f32.mrf.mxu3  ;;  %v1635_v56 = vsel %vm200_vm1, %v1633_v0, %v1634_v40  ;;  %1856 = vmatpush.msrb.mxu0 %v1551_v55  ;;  %1914 = vmatpush.msrb.mxu2 %v1552_v35  ;;  %v1212_v0 = vadd.f32 %v9363_v24, %v1125_v49  ;;  %v6822_v24 = vld [vmem:[%s14722_s7 + $0x4f0] sm:$0xff]  ;;  %v1581_v55 = vld [vmem:[%s14722_s7 + $0x100] sm:$0xff]  ;;  %v1582_v35 = vld [vmem:[%s14722_s7 + $0x108] sm:$0xff] }
 0x1e1   :  { %v1509_v32 = vrot.slane %v1492_v22, 7  ;;  %v1493_v37 = vmax.f32 %v1485_v59, 0.0  ;;  %v1463_v3 = vadd.f32 %v1462_v43, %v1433_v26  ;;  %1742 = vmatmul.f32.vlgmr.msra.gmra.mxu0 %v1635_v56  ;;  %1800 = vmatmul.f32.vlgmr.msra.gmra.mxu2 %v1635_v56  ;;  %v1585_v26 = vld [vmem:[%s14722_s7 + $0x120] sm:$0xff]  ;;  %v1436_v22 = vpop.f32.mrf.mxu2  ;;  %v1583_v43 = vld [vmem:[%s14722_s7 + $0x110] sm:$0xff]  ;;  %v1584_v56 = vld [vmem:[%s14722_s7 + $0x118] sm:$0xff] }
 0x1e2   :  { %v1407_v14 = vpop.f32.mrf.mxu1  ;;  %v1614_v33 = vld [vmem:[#allocation2] sm:$0xfe]  ;;  %1940 = vmatpush.msrb.mxu3 %v1590_v2  ;;  %1857 = vmatpush.msrb.mxu0 %v1549_v50  ;;  %v6818_v2 = vld [vmem:[%s14722_s7 + $0x4d0] sm:$0xff]  ;;  %v6855_v49 = vld [vmem:[%s14722_s7 + $0x5f8] sm:$0xff] }
 0x1e3   :  { %v9629_v48 = vsel %vm71_vm0, %v9557_v58, %v1509_v32  ;;  %1534 = vst [vmem:[#allocation2 + $0x20] sm:$0x1] %v1509_v32  ;;  %v1511_v4 = vrot.slane %v1493_v37, 7  ;;  %v1473_v29 = vadd.f32 %v1463_v3, %v1238_v19  ;;  %v1408_v23 = vadd.f32 %v1407_v14, %v1378_v25  ;;  %1883 = vmatpush.msrb.mxu1 %v1587_v63  ;;  %v6821_v3 = vld [vmem:[%s14722_s7 + $0x4e8] sm:$0xff]  ;;  %v6854_v63 = vld [vmem:[%s14722_s7 + $0x5f0] sm:$0xff] }
 0x1e4   :  { %v1636_v52 = vrot.slane %v1614_v33, 1  ;;  %v1637_v58 = vrot.slane %v9629_v48, 1  ;;  %v1615_v27 = vld [vmem:[#allocation2 + $0x50] sm:$0x1]  ;;  %1915 = vmatpush.msrb.mxu2 %v1550_v38  ;;  %1941 = vmatpush.msrb.mxu3 %v1588_v16 }
 0x1e5   :  { %1535 = vst [vmem:[#allocation2 + $0x8] sm:$0xfe] %v1511_v4  ;;  %v1486_v9 = vadd.f32 %v9482_v54, %v1473_v29  ;;  %v1474_v61 = vadd.f32 %v1408_v23, %v1183_v44  ;;  %v1639_v7 = vrot.slane %v1615_v27, 1  ;;  %1884 = vmatpush.msrb.mxu1 %v1585_v26  ;;  %2067 = vmatpush.msra.mxu0 %v6822_v24  ;;  %v6816_v23 = vld [vmem:[%s14722_s7 + $0x4c0] sm:$0xff]  ;;  %v6814_v27 = vld [vmem:[%s14722_s7 + $0x4b0] sm:$0xff]  ;;  %v6851_v24 = vld [vmem:[%s14722_s7 + $0x5d8] sm:$0xff] }
 0x1e6   :  { %v1638_v39 = vsel %vm200_vm1, %v1636_v52, %v1637_v58  ;;  %1942 = vmatpush.msrb.mxu3 %v1586_v20  ;;  %v6850_v26 = vld [vmem:[%s14722_s7 + $0x5d0] sm:$0xff]  ;;  %v6813_v20 = vld [vmem:[%s14722_s7 + $0x4a8] sm:$0xff] }
 0x1e7   :  { %v1494_v15 = vmax.f32 %v1486_v9, 0.0  ;;  %v1487_v42 = vadd.f32 %v9436_v18, %v1474_v61  ;;  %1771 = vmatmul.f32.vlgmr.msra.gmra.mxu1 %v1638_v39  ;;  %1829 = vmatmul.f32.vlgmr.msra.gmra.mxu3 %v1638_v39  ;;  %v1640_v62 = vsel %vm200_vm1, %v1634_v40, %v1639_v7  ;;  %v6823_v18 = vld [vmem:[%s14722_s7 + $0x4f8] sm:$0xff]  ;;  %v1241_v40 = vadd.f32 %v9414_v60, %v1212_v0  ;;  %v6820_v60 = vld [vmem:[%s14722_s7 + $0x4e0] sm:$0xff]  ;;  %v6853_v7 = vld [vmem:[%s14722_s7 + $0x5e8] sm:$0xff] }
 0x1e8   :  { %v1465_v59 = vpop.f32.mrf.mxu3  ;;  %2125 = vmatpush.msra.mxu2 %v6823_v18  ;;  %1885 = vmatpush.msrb.mxu1 %v1583_v43  ;;  %v6852_v61 = vld [vmem:[%s14722_s7 + $0x5e0] sm:$0xff]  ;;  %v6815_v39 = vld [vmem:[%s14722_s7 + $0x4b8] sm:$0xff]  ;;  %v6810_v18 = vld [vmem:[%s14722_s7 + $0x490] sm:$0xff] }
 0x1e9   :  { %v1512_v11 = vrot.slane %v1494_v15, 7  ;;  %v1495_v13 = vmax.f32 %v1487_v42, 0.0  ;;  %v1466_v28 = vadd.f32 %v1465_v59, %v1436_v22  ;;  %1745 = vmatmul.f32.gmra.mxu0 %v1640_v62  ;;  %1803 = vmatmul.f32.gmra.mxu2 %v1640_v62  ;;  %v6812_v0 = vld [vmem:[%s14722_s7 + $0x4a0] sm:$0xff] }
 0x1ea   :  { %v1616_v36 = vld [vmem:[#allocation2 + $0x20] sm:$0x1]  ;;  %1943 = vmatpush.msrb.mxu3 %v1584_v56  ;;  %2068 = vmatpush.msra.mxu0 %v6820_v60  ;;  %v6846_v56 = vld [vmem:[%s14722_s7 + $0x5b0] sm:$0xff] }
 0x1eb   :  { %1536 = vst [vmem:[#allocation2 + $0x38] sm:$0xfe] %v1512_v11  ;;  %v1513_v19 = vrot.slane %v1495_v13, 7  ;;  %v1475_v32 = vadd.f32 %v1466_v28, %v1241_v40  ;;  %v1641_v37 = vrot.slane %v1616_v36, 1  ;;  %2126 = vmatpush.msra.mxu2 %v6821_v3  ;;  %1886 = vmatpush.msrb.mxu1 %v1581_v55  ;;  %v6848_v40 = vld [vmem:[%s14722_s7 + $0x5c0] sm:$0xff]  ;;  %v6849_v13 = vld [vmem:[%s14722_s7 + $0x5c8] sm:$0xff] }
 0x1ec   :  { %v1617_v34 = vld [vmem:[#allocation2 + $0x8] sm:$0xfe]  ;;  %1944 = vmatpush.msrb.mxu3 %v1582_v35  ;;  %2069 = vmatpush.msra.mxu0 %v6818_v2  ;;  %v6808_v28 = vld [vmem:[%s14722_s7 + $0x480] sm:$0xff]  ;;  %v6809_v36 = vld [vmem:[%s14722_s7 + $0x488] sm:$0xff] }
 0x1ed   :  { %v9682_v44 = vsel %vm71_vm0, %v1511_v4, %v1513_v19  ;;  %1539 = vst [vmem:[#allocation2 + $0x10] sm:$0x1] %v1513_v19  ;;  %v1488_v25 = vadd.f32 %v9482_v54, %v1475_v32  ;;  %v1642_v14 = vsel %vm200_vm1, %v1637_v58, %v1641_v37  ;;  %v1643_v33 = vrot.slane %v1617_v34, 1  ;;  %v6819_v54 = vld [vmem:[%s14722_s7 + $0x4d8] sm:$0xff]  ;;  %v6817_v58 = vld [vmem:[%s14722_s7 + $0x4c8] sm:$0xff]  ;;  %2096 = vmatpush.msra.mxu1 %v6854_v63  ;;  %v6806_v32 = vld [vmem:[%s14722_s7 + $0x470] sm:$0xff] }
 0x1ee   :  { %v1644_v29 = vrot.slane %v9682_v44, 1  ;;  %2127 = vmatpush.msra.mxu2 %v6819_v54  ;;  %2070 = vmatpush.msra.mxu0 %v6816_v23  ;;  %v6847_v19 = vld [vmem:[%s14722_s7 + $0x5b8] sm:$0xff]  ;;  %v6844_v3 = vld [vmem:[%s14722_s7 + $0x5a0] sm:$0xff]  ;;  %v6845_v34 = vld [vmem:[%s14722_s7 + $0x5a8] sm:$0xff] }
 0x1ef   :  { %v1496_v4 = vmax.f32 %v1488_v25, 0.0  ;;  %1774 = vmatmul.f32.gmra.mxu1 %v1642_v14  ;;  %1832 = vmatmul.f32.gmra.mxu3 %v1642_v14  ;;  %v6807_v55 = vld [vmem:[%s14722_s7 + $0x478] sm:$0xff]  ;;  %v6804_v25 = vld [vmem:[%s14722_s7 + $0x460] sm:$0xff]  ;;  %v6805_v35 = vld [vmem:[%s14722_s7 + $0x468] sm:$0xff] }
 0x1f0   :  { %v1645_v50 = vsel %vm200_vm1, %v1643_v33, %v1644_v29  ;;  %2154 = vmatpush.msra.mxu3 %v6855_v49  ;;  %2128 = vmatpush.msra.mxu2 %v6817_v58  ;;  %v1541_v14 = vld [vmem:[#allocation2 + $0x30] sm:$0xff]  ;;  %v6842_v33 = vld [vmem:[%s14722_s7 + $0x590] sm:$0xff]  ;;  %v6841_v23 = vld [vmem:[%s14722_s7 + $0x588] sm:$0xff] }
 0x1f1   :  { %v1515_v52 = vrot.slane %v1496_v4, 7  ;;  %1748 = vmatmul.f32.gmra.mxu0 %v1645_v50  ;;  %1806 = vmatmul.f32.gmra.mxu2 %v1645_v50  ;;  %v6843_v2 = vld [vmem:[%s14722_s7 + $0x598] sm:$0xff]  ;;  %v6840_v4 = vld [vmem:[%s14722_s7 + $0x580] sm:$0xff]  ;;  %v6838_v63 = vld [vmem:[%s14722_s7 + $0x570] sm:$0xff] }
 0x1f2   :  { %v1618_v9 = vld [vmem:[#allocation2 + $0x38] sm:$0xfe]  ;;  %2071 = vmatpush.msra.mxu0 %v6814_v27  ;;  %2097 = vmatpush.msra.mxu1 %v6852_v61  ;;  %v6803_v54 = vld [vmem:[%s14722_s7 + $0x458] sm:$0xff]  ;;  %v6801_v49 = vld [vmem:[%s14722_s7 + $0x448] sm:$0xff] }
 0x1f3   :  { %v9719_v38 = vsel %vm71_vm0, %v1512_v11, %v1515_v52  ;;  %1540 = vst [vmem:[#allocation2 + $0x40] sm:$0x1] %v1515_v52  ;;  %v1646_v16 = vrot.slane %v1618_v9, 1  ;;  %2155 = vmatpush.msra.mxu3 %v6853_v7  ;;  %2129 = vmatpush.msra.mxu2 %v6815_v39  ;;  %v6811_v11 = vld [vmem:[%s14722_s7 + $0x498] sm:$0xff]  ;;  %v6800_v50 = vld [vmem:[%s14722_s7 + $0x440] sm:$0xff]  ;;  %v1542_v52 = vld [vmem:[#allocation2] sm:$0xff] }
 0x1f4   :  { %v1647_v15 = vrot.slane %v9719_v38, 1  ;;  %v1619_v42 = vld [vmem:[#allocation2 + $0x10] sm:$0x1]  ;;  %2072 = vmatpush.msra.mxu0 %v6812_v0  ;;  %2098 = vmatpush.msra.mxu1 %v6850_v26  ;;  %v6798_v27 = vld [vmem:[%s14722_s7 + $0x430] sm:$0xff]  ;;  %v6836_v9 = vld [vmem:[%s14722_s7 + $0x560] sm:$0xff] }
 0x1f5   :  { %v1649_v62 = vrot.slane %v1619_v42, 1  ;;  %2130 = vmatpush.msra.mxu2 %v6813_v20  ;;  %2156 = vmatpush.msra.mxu3 %v6851_v24  ;;  %v6839_v58 = vld [vmem:[%s14722_s7 + $0x578] sm:$0xff]  ;;  %v6837_v7 = vld [vmem:[%s14722_s7 + $0x568] sm:$0xff]  ;;  %v6834_v39 = vld [vmem:[%s14722_s7 + $0x550] sm:$0xff] }
 0x1f6   :  { %v1648_v22 = vsel %vm200_vm1, %v1646_v16, %v1647_v15  ;;  %2073 = vmatpush.msra.mxu0 %v6810_v18  ;;  %2099 = vmatpush.msra.mxu1 %v6848_v40  ;;  %v6799_v61 = vld [vmem:[%s14722_s7 + $0x438] sm:$0xff]  ;;  %v6796_v16 = vld [vmem:[%s14722_s7 + $0x420] sm:$0xff]  ;;  %v6797_v0 = vld [vmem:[%s14722_s7 + $0x428] sm:$0xff] }
 0x1f7   :  { %1777 = vmatmul.f32.gmra.mxu1 %v1648_v22  ;;  %1835 = vmatmul.f32.gmra.mxu3 %v1648_v22  ;;  %v1650_v59 = vsel %vm200_vm1, %v1644_v29, %v1649_v62  ;;  %v6802_v29 = vld [vmem:[%s14722_s7 + $0x450] sm:$0xff]  ;;  %v6832_v62 = vld [vmem:[%s14722_s7 + $0x540] sm:$0xff]  ;;  %v6795_v26 = vld [vmem:[%s14722_s7 + $0x418] sm:$0xff] }
 0x1f8   :  { %2131 = vmatpush.msra.mxu2 %v6811_v11  ;;  %2157 = vmatpush.msra.mxu3 %v6849_v13  ;;  %v6794_v42 = vld [vmem:[%s14722_s7 + $0x410] sm:$0xff]  ;;  %v6833_v20 = vld [vmem:[%s14722_s7 + $0x548] sm:$0xff]  ;;  %v6792_v22 = vld [vmem:[%s14722_s7 + $0x400] sm:$0xff] }
 0x1f9   :  { %1751 = vmatmul.f32.gmra.mxu0 %v1650_v59  ;;  %1809 = vmatmul.f32.gmra.mxu2 %v1650_v59  ;;  %v1545_v59 = vld [vmem:[#allocation2 + $0x8] sm:$0xff]  ;;  %v6793_v18 = vld [vmem:[%s14722_s7 + $0x408] sm:$0xff]  ;;  %v6831_v40 = vld [vmem:[%s14722_s7 + $0x538] sm:$0xff] }
 0x1fa   :  { %v1620_v43 = vld [vmem:[#allocation2 + $0x40] sm:$0x1]  ;;  %2074 = vmatpush.msra.mxu0 %v6808_v28  ;;  %2100 = vmatpush.msra.mxu1 %v6846_v56  ;;  %v6830_v24 = vld [vmem:[%s14722_s7 + $0x530] sm:$0xff]  ;;  %v6828_v11 = vld [vmem:[%s14722_s7 + $0x520] sm:$0xff] }
 0x1fb   :  { %v1651_v60 = vrot.slane %v1620_v43, 1  ;;  %2132 = vmatpush.msra.mxu2 %v6809_v36  ;;  %2158 = vmatpush.msra.mxu3 %v6847_v19  ;;  %v6829_v13 = vld [vmem:[%s14722_s7 + $0x528] sm:$0xff]  ;;  %v6826_v28 = vld [vmem:[%s14722_s7 + $0x510] sm:$0xff]  ;;  %v6827_v43 = vld [vmem:[%s14722_s7 + $0x518] sm:$0xff] }
 0x1fc   :  { %2075 = vmatpush.msra.mxu0 %v6806_v32  ;;  %2101 = vmatpush.msra.mxu1 %v6844_v3  ;;  %v1546_v56 = vld [vmem:[#allocation2 + $0x38] sm:$0xff]  ;;  %v1958_v19 = vld [vmem:[#allocation2 + $0x30] sm:$0xfc]  ;;  %v1959_v3 = vld [vmem:[#allocation2] sm:$0xfc] }
 0x1fd   :  { %v1652_v37 = vsel %vm200_vm1, %v1647_v15, %v1651_v60  ;;  %2133 = vmatpush.msra.mxu2 %v6807_v55  ;;  %2159 = vmatpush.msra.mxu3 %v6845_v34  ;;  %v6835_v15 = vld [vmem:[%s14722_s7 + $0x558] sm:$0xff]  ;;  %v6824_v36 = vld [vmem:[%s14722_s7 + $0x500] sm:$0xff]  ;;  %v6825_v60 = vld [vmem:[%s14722_s7 + $0x508] sm:$0xff]  ;;  %v1974_v32 = vrot.slane %v1958_v19, 2 }
 0x1fe   :  { %2076 = vmatpush.msra.mxu0 %v6804_v25  ;;  %2102 = vmatpush.msra.mxu1 %v6842_v33  ;;  %v1960_v34 = vld [vmem:[#allocation2 + $0x50] sm:$0x3]  ;;  %v1977_v25 = vrot.slane %v1959_v3, 2 }
 0x1ff   :  { %1780 = vmatmul.f32.gmra.mxu1 %v1652_v37  ;;  %1838 = vmatmul.f32.gmra.mxu3 %v1652_v37  ;;  %v1975_v37 = vrot.slane %v9586_v53, 2  ;;  %v1980_v33 = vrot.slane %v1960_v34, 2  ;;  %v6950_v34 = vld [vmem:[%s14718_s3 + $0x8d8] sm:$0xff] }
 0x200   :  { %2134 = vmatpush.msra.mxu2 %v6805_v35  ;;  %2160 = vmatpush.msra.mxu3 %v6843_v2  ;;  %v1961_v2 = vld [vmem:[#allocation2 + $0x20] sm:$0x3] }
 0x201   :  { %1858 = vmatmul.f32.vlgmr.msrb.gmra.mxu0 %v1541_v14  ;;  %1916 = vmatmul.f32.vlgmr.msrb.gmra.mxu2 %v1541_v14  ;;  %v1976_v55 = vsel %vm542_vm2, %v1974_v32, %v1975_v37  ;;  %v1978_v14 = vrot.slane %v9629_v48, 2  ;;  %v6951_v32 = vld [vmem:[%s14718_s3 + $0x8e0] sm:$0xff] }
 0x202   :  { %2077 = vmatpush.msra.mxu0 %v6802_v29  ;;  %2103 = vmatpush.msra.mxu1 %v6840_v4  ;;  %v1962_v29 = vld [vmem:[#allocation2 + $0x8] sm:$0xfc]  ;;  %v1982_v4 = vrot.slane %v1961_v2, 2  ;;  %v6986_v2 = vld [vmem:[%s14718_s3 + $0x9f8] sm:$0xff] }
 0x203   :  { %2135 = vmatpush.msra.mxu2 %v6803_v54  ;;  %2161 = vmatpush.msra.mxu3 %v6841_v23  ;;  %v1979_v35 = vsel %vm542_vm2, %v1977_v25, %v1978_v14  ;;  %v1984_v54 = vrot.slane %v1962_v29, 2  ;;  %v1985_v23 = vrot.slane %v9682_v44, 2  ;;  %v6947_v25 = vld [vmem:[%s14718_s3 + $0x8c0] sm:$0xff] }
 0x204   :  { %2078 = vmatpush.msra.mxu0 %v6800_v50  ;;  %2104 = vmatpush.msra.mxu1 %v6838_v63  ;;  %v1983_v50 = vsel %vm542_vm2, %v1978_v14, %v1982_v4  ;;  %v6985_v14 = vld [vmem:[%s14718_s3 + $0x9f0] sm:$0xff]  ;;  %v6983_v29 = vld [vmem:[%s14718_s3 + $0x9e0] sm:$0xff] }
 0x205   :  { %2136 = vmatpush.msra.mxu2 %v6801_v49  ;;  %2162 = vmatpush.msra.mxu3 %v6839_v58  ;;  %v1986_v63 = vsel %vm542_vm2, %v1984_v54, %v1985_v23  ;;  %v1964_v49 = vld [vmem:[#allocation2 + $0x10] sm:$0x3]  ;;  %v1988_v58 = vrot.slane %v9719_v38, 2 }
 0x206   :  { %2079 = vmatpush.msra.mxu0 %v6798_v27  ;;  %2105 = vmatpush.msra.mxu1 %v6836_v9  ;;  %v1990_v27 = vrot.slane %v1964_v49, 2  ;;  %v6944_v49 = vld [vmem:[%s14718_s3 + $0x8a8] sm:$0xff] }
 0x207   :  { %1887 = vmatmul.f32.vlgmr.msrb.gmra.mxu1 %v1542_v52  ;;  %1945 = vmatmul.f32.vlgmr.msrb.gmra.mxu3 %v1542_v52 }
 0x208   :  { %2137 = vmatpush.msra.mxu2 %v6799_v61  ;;  %2163 = vmatpush.msra.mxu3 %v6837_v7  ;;  %v1965_v61 = vld [vmem:[#allocation2 + $0x40] sm:$0x3] }
 0x209   :  { %1861 = vmatmul.f32.gmra.mxu0 %v9586_v53  ;;  %1919 = vmatmul.f32.gmra.mxu2 %v9586_v53  ;;  %v1981_v53 = vsel %vm542_vm2, %v1975_v37, %v1980_v33  ;;  %v1992_v7 = vrot.slane %v1965_v61, 2  ;;  %v6952_v37 = vld [vmem:[%s14718_s3 + $0x8e8] sm:$0xff]  ;;  %v6942_v61 = vld [vmem:[%s14718_s3 + $0x898] sm:$0xff] }
 0x20a   :  { %2080 = vmatpush.msra.mxu0 %v6796_v16  ;;  %2106 = vmatpush.msra.mxu1 %v6834_v39 }
 0x20b   :  { %2138 = vmatpush.msra.mxu2 %v6797_v0  ;;  %2164 = vmatpush.msra.mxu3 %v6835_v15  ;;  %v1993_v16 = vsel %vm542_vm2, %v1988_v58, %v1992_v7  ;;  %v6939_v7 = vld [vmem:[%s14718_s3 + $0x880] sm:$0xff] }
 0x20c   :  { %2081 = vmatpush.msra.mxu0 %v6794_v42  ;;  %2107 = vmatpush.msra.mxu1 %v6832_v62 }
 0x20d   :  { %2139 = vmatpush.msra.mxu2 %v6795_v26  ;;  %2165 = vmatpush.msra.mxu3 %v6833_v20 }
 0x20e   :  { %2082 = vmatpush.msra.mxu0 %v6792_v22  ;;  %2108 = vmatpush.msra.mxu1 %v6830_v24 }
 0x20f   :  { %1890 = vmatmul.f32.gmra.mxu1 %v9629_v48  ;;  %1948 = vmatmul.f32.gmra.mxu3 %v9629_v48  ;;  %v1963_v48 = vld [vmem:[#allocation2 + $0x38] sm:$0xfc] }
 0x210   :  { %2140 = vmatpush.msra.mxu2 %v6793_v18  ;;  %2166 = vmatpush.msra.mxu3 %v6831_v40  ;;  %v1987_v52 = vrot.slane %v1963_v48, 2  ;;  %v6943_v48 = vld [vmem:[%s14718_s3 + $0x8a0] sm:$0xff] }
 0x211   :  { %1864 = vmatmul.f32.gmra.mxu0 %v1545_v59  ;;  %1922 = vmatmul.f32.gmra.mxu2 %v1545_v59 }
 0x212   :  { %2109 = vmatpush.msra.mxu1 %v6828_v11  ;;  %2167 = vmatpush.msra.mxu3 %v6829_v13  ;;  %v1989_v9 = vsel %vm542_vm2, %v1987_v52, %v1988_v58  ;;  %v6982_v58 = vld [vmem:[%s14718_s3 + $0x9d8] sm:$0xff] }
 0x214   :  { %2110 = vmatpush.msra.mxu1 %v6826_v28  ;;  %2168 = vmatpush.msra.mxu3 %v6827_v43 }
 0x216   :  { %2111 = vmatpush.msra.mxu1 %v6824_v36  ;;  %2169 = vmatpush.msra.mxu3 %v6825_v60  ;;  %v6954_v36 = vld [vmem:[%s14718_s3 + $0x8f8] sm:$0xff] }
 0x217   :  { %1893 = vmatmul.f32.gmra.mxu1 %v1546_v56  ;;  %1951 = vmatmul.f32.gmra.mxu3 %v1546_v56  ;;  %v6953_v56 = vld [vmem:[%s14718_s3 + $0x8f0] sm:$0xff] }
 0x218   :  { %2469 = vmatpush.msrb.mxu0 %v6953_v56  ;;  %2527 = vmatpush.msrb.mxu2 %v6954_v36  ;;  %v6940_v56 = vld [vmem:[%s14718_s3 + $0x888] sm:$0xff] }
 0x219   :  { %1867 = vmatmul.f32.gmra.mxu0 %v9682_v44  ;;  %1925 = vmatmul.f32.gmra.mxu2 %v9682_v44  ;;  %v1991_v44 = vsel %vm542_vm2, %v1985_v23, %v1990_v27  ;;  %v6946_v23 = vld [vmem:[%s14718_s3 + $0x8b8] sm:$0xff]  ;;  %v6941_v27 = vld [vmem:[%s14718_s3 + $0x890] sm:$0xff] }
 0x21a   :  { %2470 = vmatpush.msrb.mxu0 %v6951_v32  ;;  %2528 = vmatpush.msrb.mxu2 %v6952_v37  ;;  %v6978_v32 = vld [vmem:[%s14718_s3 + $0x9b8] sm:$0xff]  ;;  %v6937_v37 = vld [vmem:[%s14718_s3 + $0x870] sm:$0xff] }
 0x21b   :  { %2498 = vmatpush.msrb.mxu1 %v6985_v14  ;;  %2556 = vmatpush.msrb.mxu3 %v6986_v2  ;;  %v6935_v2 = vld [vmem:[%s14718_s3 + $0x860] sm:$0xff] }
 0x21c   :  { %2529 = vmatpush.msrb.mxu2 %v6950_v34  ;;  %v6938_v34 = vld [vmem:[%s14718_s3 + $0x878] sm:$0xff] }
 0x21d   :  { %2499 = vmatpush.msrb.mxu1 %v6983_v29  ;;  %v6936_v29 = vld [vmem:[%s14718_s3 + $0x868] sm:$0xff] }
 0x21f   :  { %1896 = vmatmul.f32.gmra.mxu1 %v9719_v38  ;;  %1954 = vmatmul.f32.gmra.mxu3 %v9719_v38 }
 0x221   :  { %2083 = vmatmul.f32.vlgmr.msra.gmra.mxu0 %v1976_v55  ;;  %2141 = vmatmul.f32.vlgmr.msra.gmra.mxu2 %v1976_v55  ;;  %v6949_v55 = vld [vmem:[%s14718_s3 + $0x8d0] sm:$0xff] }
 0x222   :  { %2471 = vmatpush.msrb.mxu0 %v6949_v55  ;;  %v6975_v55 = vld [vmem:[%s14718_s3 + $0x9a0] sm:$0xff] }
 0x224   :  { %2472 = vmatpush.msrb.mxu0 %v6947_v25 }
 0x227   :  { %2112 = vmatmul.f32.vlgmr.msra.gmra.mxu1 %v1979_v35  ;;  %2170 = vmatmul.f32.vlgmr.msra.gmra.mxu3 %v1979_v35  ;;  %v6948_v35 = vld [vmem:[%s14718_s3 + $0x8c8] sm:$0xff] }
 0x228   :  { %2530 = vmatpush.msrb.mxu2 %v6948_v35  ;;  %v6976_v35 = vld [vmem:[%s14718_s3 + $0x9a8] sm:$0xff] }
 0x229   :  { %2086 = vmatmul.f32.gmra.mxu0 %v1981_v53  ;;  %2144 = vmatmul.f32.gmra.mxu2 %v1981_v53  ;;  %v6945_v53 = vld [vmem:[%s14718_s3 + $0x8b0] sm:$0xff] }
 0x22a   :  { %2473 = vmatpush.msrb.mxu0 %v6945_v53  ;;  %2531 = vmatpush.msrb.mxu2 %v6946_v23  ;;  %v6973_v53 = vld [vmem:[%s14718_s3 + $0x990] sm:$0xff] }
 0x22c   :  { %2474 = vmatpush.msrb.mxu0 %v6943_v48  ;;  %2532 = vmatpush.msrb.mxu2 %v6944_v49  ;;  %v6933_v48 = vld [vmem:[%s14718_s3 + $0x850] sm:$0xff]  ;;  %v6934_v49 = vld [vmem:[%s14718_s3 + $0x858] sm:$0xff] }
 0x22e   :  { %2475 = vmatpush.msrb.mxu0 %v6941_v27  ;;  %2533 = vmatpush.msrb.mxu2 %v6942_v61  ;;  %v6931_v27 = vld [vmem:[%s14718_s3 + $0x840] sm:$0xff]  ;;  %v6932_v61 = vld [vmem:[%s14718_s3 + $0x848] sm:$0xff] }
 0x22f   :  { %2115 = vmatmul.f32.gmra.mxu1 %v1983_v50  ;;  %2173 = vmatmul.f32.gmra.mxu3 %v1983_v50  ;;  %v6984_v50 = vld [vmem:[%s14718_s3 + $0x9e8] sm:$0xff] }
 0x230   :  { %2557 = vmatpush.msrb.mxu3 %v6984_v50  ;;  %2476 = vmatpush.msrb.mxu0 %v6939_v7  ;;  %v6974_v50 = vld [vmem:[%s14718_s3 + $0x998] sm:$0xff] }
 0x231   :  { %2089 = vmatmul.f32.gmra.mxu0 %v1986_v63  ;;  %2147 = vmatmul.f32.gmra.mxu2 %v1986_v63  ;;  %v6981_v63 = vld [vmem:[%s14718_s3 + $0x9d0] sm:$0xff]  ;;  %v6970_v7 = vld [vmem:[%s14718_s3 + $0x978] sm:$0xff] }
 0x232   :  { %2500 = vmatpush.msrb.mxu1 %v6981_v63  ;;  %2558 = vmatpush.msrb.mxu3 %v6982_v58  ;;  %v6971_v63 = vld [vmem:[%s14718_s3 + $0x980] sm:$0xff]  ;;  %v6972_v58 = vld [vmem:[%s14718_s3 + $0x988] sm:$0xff] }
 0x233   :  { %2534 = vmatpush.msrb.mxu2 %v6940_v56  ;;  %2477 = vmatpush.msrb.mxu0 %v6937_v37  ;;  %v6967_v56 = vld [vmem:[%s14718_s3 + $0x960] sm:$0xff] }
 0x235   :  { %2535 = vmatpush.msrb.mxu2 %v6938_v34  ;;  %2478 = vmatpush.msrb.mxu0 %v6935_v2  ;;  %v6968_v34 = vld [vmem:[%s14718_s3 + $0x968] sm:$0xff]  ;;  %v6965_v2 = vld [vmem:[%s14718_s3 + $0x950] sm:$0xff] }
 0x237   :  { %2118 = vmatmul.f32.gmra.mxu1 %v1989_v9  ;;  %2176 = vmatmul.f32.gmra.mxu3 %v1989_v9  ;;  %v6979_v9 = vld [vmem:[%s14718_s3 + $0x9c0] sm:$0xff] }
 0x238   :  { %2501 = vmatpush.msrb.mxu1 %v6979_v9  ;;  %2536 = vmatpush.msrb.mxu2 %v6936_v29  ;;  %v6969_v9 = vld [vmem:[%s14718_s3 + $0x970] sm:$0xff] }
 0x239   :  { %2092 = vmatmul.f32.gmra.mxu0 %v1991_v44  ;;  %2150 = vmatmul.f32.gmra.mxu2 %v1991_v44  ;;  %v6980_v44 = vld [vmem:[%s14718_s3 + $0x9c8] sm:$0xff] }
 0x23a   :  { %2559 = vmatpush.msrb.mxu3 %v6980_v44  ;;  %2479 = vmatpush.msrb.mxu0 %v6933_v48  ;;  %v6925_v48 = vld [vmem:[%s14718_s3 + $0x810] sm:$0xff] }
 0x23b   :  { %2537 = vmatpush.msrb.mxu2 %v6934_v49  ;;  %v6926_v49 = vld [vmem:[%s14718_s3 + $0x818] sm:$0xff] }
 0x23c   :  { %2560 = vmatpush.msrb.mxu3 %v6978_v32  ;;  %2480 = vmatpush.msrb.mxu0 %v6931_v27  ;;  %v6930_v32 = vld [vmem:[%s14718_s3 + $0x838] sm:$0xff] }
 0x23d   :  { %2538 = vmatpush.msrb.mxu2 %v6932_v61  ;;  %v6961_v61 = vld [vmem:[%s14718_s3 + $0x930] sm:$0xff] }
 0x23e   :  { %2561 = vmatpush.msrb.mxu3 %v6976_v35  ;;  %v6927_v35 = vld [vmem:[%s14718_s3 + $0x820] sm:$0xff] }
 0x23f   :  { %2121 = vmatmul.f32.gmra.mxu1 %v1993_v16  ;;  %2179 = vmatmul.f32.gmra.mxu3 %v1993_v16  ;;  %v6977_v16 = vld [vmem:[%s14718_s3 + $0x9b0] sm:$0xff] }
 0x240   :  { %2502 = vmatpush.msrb.mxu1 %v6977_v16  ;;  %2562 = vmatpush.msrb.mxu3 %v6974_v50  ;;  %v6929_v16 = vld [vmem:[%s14718_s3 + $0x830] sm:$0xff]  ;;  %v6966_v50 = vld [vmem:[%s14718_s3 + $0x958] sm:$0xff] }
 0x241   :  { %2481 = vmatpush.msrb.mxu0 %v6929_v16  ;;  %2539 = vmatpush.msrb.mxu2 %v6930_v32  ;;  %v6960_v32 = vld [vmem:[%s14718_s3 + $0x928] sm:$0xff] }
 0x242   :  { %2503 = vmatpush.msrb.mxu1 %v6975_v55  ;;  %2563 = vmatpush.msrb.mxu3 %v6972_v58  ;;  %v6964_v58 = vld [vmem:[%s14718_s3 + $0x948] sm:$0xff] }
 0x243   :  { %2482 = vmatpush.msrb.mxu0 %v6927_v35 }
 0x244   :  { %2504 = vmatpush.msrb.mxu1 %v6973_v53  ;;  %2564 = vmatpush.msrb.mxu3 %v6970_v7  ;;  %v6928_v53 = vld [vmem:[%s14718_s3 + $0x828] sm:$0xff] }
 0x245   :  { %2540 = vmatpush.msrb.mxu2 %v6928_v53  ;;  %2483 = vmatpush.msrb.mxu0 %v6925_v48  ;;  %v6924_v7 = vld [vmem:[%s14718_s3 + $0x808] sm:$0xff]  ;;  %v6890_v53 = vld [vmem:[%s14718_s3 + $0x6f8] sm:$0xff] }
 0x246   :  { %2505 = vmatpush.msrb.mxu1 %v6971_v63  ;;  %2565 = vmatpush.msrb.mxu3 %v6968_v34  ;;  %v6963_v63 = vld [vmem:[%s14718_s3 + $0x940] sm:$0xff]  ;;  %v6889_v34 = vld [vmem:[%s14718_s3 + $0x6f0] sm:$0xff] }
 0x247   :  { %2541 = vmatpush.msrb.mxu2 %v6926_v49  ;;  %v6958_v49 = vld [vmem:[%s14718_s3 + $0x918] sm:$0xff] }
 0x248   :  { %2506 = vmatpush.msrb.mxu1 %v6969_v9  ;;  %2566 = vmatpush.msrb.mxu3 %v6966_v50  ;;  %v6923_v9 = vld [vmem:[%s14718_s3 + $0x800] sm:$0xff] }
 0x249   :  { %2484 = vmatpush.msrb.mxu0 %v6923_v9  ;;  %2542 = vmatpush.msrb.mxu2 %v6924_v7  ;;  %v6955_v7 = vld [vmem:[%s14718_s3 + $0x900] sm:$0xff] }
 0x24a   :  { %2507 = vmatpush.msrb.mxu1 %v6967_v56  ;;  %2567 = vmatpush.msrb.mxu3 %v6964_v58  ;;  %v6959_v56 = vld [vmem:[%s14718_s3 + $0x920] sm:$0xff] }
 0x24b   :  { %2585 = vmatpush.msra.mxu0 %v6889_v34  ;;  %2643 = vmatpush.msra.mxu2 %v6890_v53  ;;  %v6887_v58 = vld [vmem:[%s14718_s3 + $0x6e0] sm:$0xff]  ;;  %v6922_v53 = vld [vmem:[%s14718_s3 + $0x7f8] sm:$0xff] }
 0x24c   :  { %2508 = vmatpush.msrb.mxu1 %v6965_v2  ;;  %v6856_v2 = vld [vmem:[%s14720_s5 + $0x2] sm:$0x3] }
 0x24d   :  { %2586 = vmatpush.msra.mxu0 %v6887_v58  ;;  %v6882_v58 = vld [vmem:[%s14718_s3 + $0x6b8] sm:$0xff] }
 0x24e   :  { %2509 = vmatpush.msrb.mxu1 %v6963_v63  ;;  %v6957_v63 = vld [vmem:[%s14718_s3 + $0x910] sm:$0xff] }
 0x250   :  { %2510 = vmatpush.msrb.mxu1 %v6961_v61  ;;  %v10172_v61 = vperm.slane %v6856_v2, 0 }
 0x252   :  { %2511 = vmatpush.msrb.mxu1 %v6959_v56  ;;  %v6886_v56 = vld [vmem:[%s14718_s3 + $0x6d8] sm:$0xff] }
 0x254   :  { %2512 = vmatpush.msrb.mxu1 %v6957_v63 }
 0x256   :  { %2513 = vmatpush.msrb.mxu1 %v6955_v7  ;;  %v10225_v7 = vperm.slane %v6856_v2, 1 }
 0x25e   :  { %v9898_v39 = vpop.f32.mrf.mxu0 }
 0x264   :  { %v9900_v0 = vpop.f32.mrf.mxu1  ;;  %v9902_v38 = vpop.f32.mrf.mxu2 }
 0x265   :  { %v1773_v27 = vadd.f32 %v9900_v0, %v9898_v39  ;;  %v6962_v39 = vld [vmem:[%s14718_s3 + $0x938] sm:$0xff] }
 0x266   :  { %v9904_v15 = vpop.f32.mrf.mxu0  ;;  %2568 = vmatpush.msrb.mxu3 %v6962_v39  ;;  %v6956_v39 = vld [vmem:[%s14718_s3 + $0x908] sm:$0xff] }
 0x268   :  { %2569 = vmatpush.msrb.mxu3 %v6960_v32 }
 0x26a   :  { %v9906_v42 = vpop.f32.mrf.mxu3  ;;  %2570 = vmatpush.msrb.mxu3 %v6958_v49  ;;  %v6881_v49 = vld [vmem:[%s14718_s3 + $0x6b0] sm:$0xff] }
 0x26c   :  { %v9908_v62 = vpop.f32.mrf.mxu1  ;;  %v9910_v26 = vpop.f32.mrf.mxu2  ;;  %2571 = vmatpush.msrb.mxu3 %v6956_v39 }
 0x26e   :  { %v9912_v20 = vpop.f32.mrf.mxu0  ;;  %2672 = vmatpush.msra.mxu3 %v6922_v53 }
 0x272   :  { %v9914_v22 = vpop.f32.mrf.mxu3 }
 0x274   :  { %v9916_v59 = vpop.f32.mrf.mxu1  ;;  %v9918_v24 = vpop.f32.mrf.mxu2 }
 0x275   :  { %v1779_v31 = vadd.f32 %v9916_v59, %v9912_v20  ;;  %v6875_v20 = vld [vmem:[%s14718_s3 + $0x680] sm:$0xff]  ;;  %v6913_v59 = vld [vmem:[%s14718_s3 + $0x7b0] sm:$0xff] }
 0x276   :  { %v9920_v18 = vpop.f32.mrf.mxu0 }
 0x27a   :  { %v9922_v40 = vpop.f32.mrf.mxu3 }
 0x27c   :  { %v9924_v11 = vpop.f32.mrf.mxu1  ;;  %v9926_v13 = vpop.f32.mrf.mxu2 }
 0x27e   :  { %v9928_v28 = vpop.f32.mrf.mxu0 }
 0x27f   :  { %v1860_v0 = vadd.f32 %v9928_v28, %v1773_v27  ;;  %v6857_v27 = vld [vmem:[%s14721_s6 + $0x2] sm:$0x3] }
 0x282   :  { %v9930_v43 = vpop.f32.mrf.mxu3 }
 0x284   :  { %v9938_v60 = vpop.f32.mrf.mxu1  ;;  %v9940_v19 = vpop.f32.mrf.mxu2 }
 0x285   :  { %v1889_v50 = vadd.f32 %v9938_v60, %v1860_v0  ;;  %v6888_v60 = vld [vmem:[%s14718_s3 + $0x6e8] sm:$0xff]  ;;  %v6885_v0 = vld [vmem:[%s14718_s3 + $0x6d0] sm:$0xff] }
 0x286   :  { %v9948_v3 = vpop.f32.mrf.mxu0  ;;  %2644 = vmatpush.msra.mxu2 %v6888_v60  ;;  %2587 = vmatpush.msra.mxu0 %v6885_v0  ;;  %v6879_v0 = vld [vmem:[%s14718_s3 + $0x6a0] sm:$0xff] }
 0x288   :  { %2645 = vmatpush.msra.mxu2 %v6886_v56  ;;  %v1834_v56 = vadd.f32 %v9914_v22, %v9910_v26  ;;  %v6877_v26 = vld [vmem:[%s14718_s3 + $0x690] sm:$0xff]  ;;  %v6915_v22 = vld [vmem:[%s14718_s3 + $0x7c0] sm:$0xff] }
 0x28a   :  { %v9962_v33 = vpop.f32.mrf.mxu3 }
 0x28c   :  { %v9976_v4 = vpop.f32.mrf.mxu1  ;;  %v9978_v54 = vpop.f32.mrf.mxu2 }
 0x28e   :  { %v9995_v52 = vpop.f32.mrf.mxu0 }
 0x292   :  { %v10021_v36 = vpop.f32.mrf.mxu3 }
 0x294   :  { %v10035_v25 = vpop.f32.mrf.mxu1  ;;  %v10037_v14 = vpop.f32.mrf.mxu2 }
 0x296   :  { %v10051_v23 = vpop.f32.mrf.mxu0 }
 0x29a   :  { %v10077_v44 = vpop.f32.mrf.mxu3 }
 0x29c   :  { %v10091_v37 = vpop.f32.mrf.mxu1  ;;  %v10093_v55 = vpop.f32.mrf.mxu2 }
 0x29e   :  { %v2084_v29 = vpop.f32.mrf.mxu0 }
 0x2a2   :  { %v10133_v16 = vpop.f32.mrf.mxu3 }
 0x2a4   :  { %v2113_v35 = vpop.f32.mrf.mxu1  ;;  %v2142_v28 = vpop.f32.mrf.mxu2 }
 0x2a5   :  { %v2114_v48 = vadd.f32 %v2113_v35, %v2084_v29  ;;  %v1831_v29 = vadd.f32 %v9906_v42, %v9902_v38  ;;  %v1776_v38 = vadd.f32 %v9908_v62, %v9904_v15  ;;  %v10193_v35 = vperm.slane %v6857_v27, 0  ;;  %v6883_v15 = vld [vmem:[%s14718_s3 + $0x6c0] sm:$0xff]  ;;  %v6921_v62 = vld [vmem:[%s14718_s3 + $0x7f0] sm:$0xff] }
 0x2a6   :  { %v2087_v42 = vpop.f32.mrf.mxu0  ;;  %2588 = vmatpush.msra.mxu0 %v6883_v15  ;;  %2614 = vmatpush.msra.mxu1 %v6921_v62  ;;  %v10245_v62 = vperm.slane %v6857_v27, 1  ;;  %v6916_v27 = vld [vmem:[%s14718_s3 + $0x7c8] sm:$0xff] }
 0x2a7   :  { %v2183_v9 = vadd.f32 %v2114_v48, %v1889_v50  ;;  %v1918_v32 = vadd.f32 %v9940_v19, %v1831_v29  ;;  %v6884_v19 = vld [vmem:[%s14718_s3 + $0x6c8] sm:$0xff]  ;;  %v1863_v6 = vadd.f32 %v9948_v3, %v1776_v38  ;;  %v6919_v3 = vld [vmem:[%s14718_s3 + $0x7e0] sm:$0xff] }
 0x2a8   :  { %2646 = vmatpush.msra.mxu2 %v6884_v19  ;;  %2589 = vmatpush.msra.mxu0 %v6881_v49  ;;  %v6880_v38 = vld [vmem:[%s14718_s3 + $0x6a8] sm:$0xff]  ;;  %v6914_v49 = vld [vmem:[%s14718_s3 + $0x7b8] sm:$0xff] }
 0x2a9   :  { %v10191_v34 = vadd.f32 %v2183_v9, %v773_v10  ;;  %v1947_v50 = vadd.f32 %v9962_v33, %v1918_v32  ;;  %v1892_v33 = vadd.f32 %v9976_v4, %v1863_v6  ;;  %2615 = vmatpush.msra.mxu1 %v6919_v3  ;;  %v6917_v4 = vld [vmem:[%s14718_s3 + $0x7d0] sm:$0xff]  ;;  %v6878_v6 = vld [vmem:[%s14718_s3 + $0x698] sm:$0xff] }
 0x2aa   :  { %v2171_v10 = vpop.f32.mrf.mxu3  ;;  %2647 = vmatpush.msra.mxu2 %v6882_v58  ;;  %2590 = vmatpush.msra.mxu0 %v6879_v0  ;;  %v6873_v3 = vld [vmem:[%s14718_s3 + $0x670] sm:$0xff]  ;;  %v6911_v58 = vld [vmem:[%s14718_s3 + $0x7a0] sm:$0xff] }
 0x2ab   :  { %v2206_v48 = vmul.f32 %v10172_v61, %v10191_v34  ;;  %v2172_v63 = vadd.f32 %v2171_v10, %v2142_v28  ;;  %v6920_v28 = vld [vmem:[%s14718_s3 + $0x7e8] sm:$0xff]  ;;  %2616 = vmatpush.msra.mxu1 %v6917_v4  ;;  %v6909_v0 = vld [vmem:[%s14718_s3 + $0x790] sm:$0xff] }
 0x2ac   :  { %v2116_v60 = vpop.f32.mrf.mxu1  ;;  %2673 = vmatpush.msra.mxu3 %v6920_v28  ;;  %v2145_v2 = vpop.f32.mrf.mxu2  ;;  %2648 = vmatpush.msra.mxu2 %v6880_v38  ;;  %v6912_v28 = vld [vmem:[%s14718_s3 + $0x7a8] sm:$0xff]  ;;  %v6910_v38 = vld [vmem:[%s14718_s3 + $0x798] sm:$0xff] }
 0x2ad   :  { %v2221_v29 = vadd.f32 %v10193_v35, %v2206_v48  ;;  %v2184_v9 = vadd.f32 %v2172_v63, %v1947_v50  ;;  %v2117_v39 = vadd.f32 %v2116_v60, %v2087_v42  ;;  %v6918_v42 = vld [vmem:[%s14718_s3 + $0x7d8] sm:$0xff]  ;;  %2591 = vmatpush.msra.mxu0 %v6877_v26  ;;  %2617 = vmatpush.msra.mxu1 %v6915_v22  ;;  %v6872_v4 = vld [vmem:[%s14718_s3 + $0x668] sm:$0xff] }
 0x2ae   :  { %2674 = vmatpush.msra.mxu3 %v6918_v42  ;;  %2649 = vmatpush.msra.mxu2 %v6878_v6  ;;  %v1866_v48 = vadd.f32 %v9995_v52, %v1779_v31  ;;  %v6874_v60 = vld [vmem:[%s14718_s3 + $0x678] sm:$0xff]  ;;  %v1837_v26 = vadd.f32 %v9922_v40, %v9918_v24  ;;  %v6908_v6 = vld [vmem:[%s14718_s3 + $0x788] sm:$0xff]  ;;  %v6867_v24 = vld [vmem:[%s14718_s3 + $0x640] sm:$0xff] }
 0x2af   :  { %v2229_v32 = vmax.f32 %v2221_v29, 0.0  ;;  %v10243_v15 = vadd.f32 %v2184_v9, %v774_v12  ;;  %v2185_v19 = vadd.f32 %v2117_v39, %v1892_v33  ;;  %v1921_v12 = vadd.f32 %v9978_v54, %v1834_v56  ;;  %v6876_v54 = vld [vmem:[%s14718_s3 + $0x688] sm:$0xff]  ;;  %2592 = vmatpush.msra.mxu0 %v6875_v20  ;;  %2618 = vmatpush.msra.mxu1 %v6913_v59  ;;  %v6871_v29 = vld [vmem:[%s14718_s3 + $0x660] sm:$0xff]  ;;  %v6870_v22 = vld [vmem:[%s14718_s3 + $0x658] sm:$0xff] }
 0x2b0   :  { %2675 = vmatpush.msra.mxu3 %v6916_v27  ;;  %2650 = vmatpush.msra.mxu2 %v6876_v54  ;;  %v1895_v9 = vadd.f32 %v10035_v25, %v1866_v48  ;;  %v6905_v40 = vld [vmem:[%s14718_s3 + $0x770] sm:$0xff]  ;;  %v1782_v20 = vadd.f32 %v9924_v11, %v9920_v18  ;;  %v1924_v59 = vadd.f32 %v10037_v14, %v1837_v26  ;;  %v6868_v18 = vld [vmem:[%s14718_s3 + $0x648] sm:$0xff]  ;;  %v6906_v11 = vld [vmem:[%s14718_s3 + $0x778] sm:$0xff] }
 0x2b1   :  { %v10262_v10 = vrot.slane %v2229_v32, 7  ;;  %v2207_v53 = vmul.f32 %v10225_v7, %v10243_v15  ;;  %v10268_v50 = vadd.f32 %v2185_v19, %v775_v1  ;;  %v1950_v5 = vadd.f32 %v10021_v36, %v1921_v12  ;;  %v2090_v1 = vpop.f32.mrf.mxu0  ;;  %2593 = vmatpush.msra.mxu0 %v6873_v3  ;;  %2619 = vmatpush.msra.mxu1 %v6911_v58  ;;  %v6869_v32 = vld [vmem:[%s14718_s3 + $0x650] sm:$0xff]  ;;  %v6907_v19 = vld [vmem:[%s14718_s3 + $0x780] sm:$0xff]  ;;  %v6866_v58 = vld [vmem:[%s14718_s3 + $0x638] sm:$0xff] }
 0x2b2   :  { %v2174_v63 = vpop.f32.mrf.mxu3  ;;  %2676 = vmatpush.msra.mxu3 %v6914_v49  ;;  %2651 = vmatpush.msra.mxu2 %v6874_v60  ;;  %v1869_v14 = vadd.f32 %v10051_v23, %v1782_v20 }
 0x2b3   :  { %2271 = vst [vmem:[#allocation2 + $0x30] sm:$0xfe] %v10262_v10  ;;  %v2222_v52 = vadd.f32 %v10245_v62, %v2207_v53  ;;  %v2208_v36 = vmul.f32 %v10172_v61, %v10268_v50  ;;  %v2175_v33 = vadd.f32 %v2174_v63, %v2145_v2  ;;  %2594 = vmatpush.msra.mxu0 %v6871_v29 }
 0x2b4   :  { %v2119_v39 = vpop.f32.mrf.mxu1  ;;  %2677 = vmatpush.msra.mxu3 %v6912_v28  ;;  %2620 = vmatpush.msra.mxu1 %v6909_v0  ;;  %v2148_v54 = vpop.f32.mrf.mxu2 }
 0x2b5   :  { %v2230_v56 = vmax.f32 %v2222_v52, 0.0  ;;  %v2223_v2 = vadd.f32 %v10193_v35, %v2208_v36  ;;  %v2186_v42 = vadd.f32 %v2175_v33, %v1950_v5  ;;  %v2120_v25 = vadd.f32 %v2119_v39, %v2090_v1  ;;  %2652 = vmatpush.msra.mxu2 %v6872_v4  ;;  %2595 = vmatpush.msra.mxu0 %v6869_v32  ;;  %v6904_v52 = vld [vmem:[%s14718_s3 + $0x768] sm:$0xff]  ;;  %v6863_v4 = vld [vmem:[%s14718_s3 + $0x620] sm:$0xff] }
 0x2b6   :  { %2678 = vmatpush.msra.mxu3 %v6910_v38  ;;  %2621 = vmatpush.msra.mxu1 %v6907_v19  ;;  %v1953_v5 = vadd.f32 %v10077_v44, %v1924_v59  ;;  %v1898_v36 = vadd.f32 %v10091_v37, %v1869_v14  ;;  %v6901_v37 = vld [vmem:[%s14718_s3 + $0x750] sm:$0xff]  ;;  %v1840_v38 = vadd.f32 %v9930_v43, %v9926_v13  ;;  %v6902_v13 = vld [vmem:[%s14718_s3 + $0x758] sm:$0xff] }
 0x2b7   :  { %v10328_v31 = vrot.slane %v2230_v56, 7  ;;  %v2231_v12 = vmax.f32 %v2223_v2, 0.0  ;;  %v10332_v27 = vadd.f32 %v2186_v42, %v776_v47  ;;  %v2187_v53 = vadd.f32 %v2120_v25, %v1895_v9  ;;  %2653 = vmatpush.msra.mxu2 %v6870_v22  ;;  %2596 = vmatpush.msra.mxu0 %v6867_v24  ;;  %v6864_v2 = vld [vmem:[%s14718_s3 + $0x628] sm:$0xff]  ;;  %v6861_v43 = vld [vmem:[%s14718_s3 + $0x610] sm:$0xff] }
 0x2b8   :  { %2679 = vmatpush.msra.mxu3 %v6908_v6  ;;  %2622 = vmatpush.msra.mxu1 %v6905_v40  ;;  %v1927_v26 = vadd.f32 %v10093_v55, %v1840_v38  ;;  %v6862_v55 = vld [vmem:[%s14718_s3 + $0x618] sm:$0xff]  ;;  %v6900_v24 = vld [vmem:[%s14718_s3 + $0x748] sm:$0xff]  ;;  %v6891_v38 = vld [vmem:[%s14718_s3 + $0x700] sm:$0xff] }
 0x2b9   :  { %2272 = vst [vmem:[#allocation2] sm:$0xfe] %v10328_v31  ;;  %v2249_v45 = vrot.slane %v2231_v12, 7  ;;  %v2209_v47 = vmul.f32 %v10225_v7, %v10332_v27  ;;  %v10348_v48 = vadd.f32 %v2187_v53, %v777_v30  ;;  %v6903_v30 = vld [vmem:[%s14718_s3 + $0x760] sm:$0xff]  ;;  %v2093_v33 = vpop.f32.mrf.mxu0  ;;  %2654 = vmatpush.msra.mxu2 %v6868_v18  ;;  %2597 = vmatpush.msra.mxu0 %v6865_v46  ;;  %v6860_v46 = vld [vmem:[%s14718_s3 + $0x608] sm:$0xff] }
 0x2ba   :  { %v2177_v1 = vpop.f32.mrf.mxu3  ;;  %v2356_v63 = vld [vmem:[#allocation2 + $0x30] sm:$0xfe]  ;;  %2680 = vmatpush.msra.mxu3 %v6906_v11  ;;  %2623 = vmatpush.msra.mxu1 %v6903_v30  ;;  %v6897_v11 = vld [vmem:[%s14718_s3 + $0x730] sm:$0xff] }
 0x2bb   :  { %v10366_v49 = vsel %vm71_vm0, %v10262_v10, %v2249_v45  ;;  %2275 = vst [vmem:[#allocation2 + $0x50] sm:$0x1] %v2249_v45  ;;  %v2224_v23 = vadd.f32 %v10245_v62, %v2209_v47  ;;  %v2210_v44 = vmul.f32 %v10172_v61, %v10348_v48  ;;  %v2178_v3 = vadd.f32 %v2177_v1, %v2148_v54  ;;  %v6898_v30 = vld [vmem:[%s14718_s3 + $0x738] sm:$0xff] }
 0x2bc   :  { %v2122_v10 = vpop.f32.mrf.mxu1  ;;  %v2376_v60 = vrot.slane %v2356_v63, 1  ;;  %v2377_v28 = vrot.slane %v10366_v49, 1  ;;  %2655 = vmatpush.msra.mxu2 %v6866_v58  ;;  %2681 = vmatpush.msra.mxu3 %v6904_v52  ;;  %v2151_v40 = vpop.f32.mrf.mxu2  ;;  %v6896_v52 = vld [vmem:[%s14718_s3 + $0x728] sm:$0xff] }
 0x2bd   :  { %v2232_v29 = vmax.f32 %v2224_v23, 0.0  ;;  %v2225_v9 = vadd.f32 %v10193_v35, %v2210_v44  ;;  %v2188_v39 = vadd.f32 %v2178_v3, %v1953_v5  ;;  %v2123_v0 = vadd.f32 %v2122_v10, %v2093_v33  ;;  %2598 = vmatpush.msra.mxu0 %v6863_v4  ;;  %2624 = vmatpush.msra.mxu1 %v6901_v37  ;;  %v6895_v23 = vld [vmem:[%s14718_s3 + $0x720] sm:$0xff]  ;;  %v6893_v10 = vld [vmem:[%s14718_s3 + $0x710] sm:$0xff]  ;;  %v7016_v37 = vld [vmem:[%s14718_s3 + $0xae8] sm:$0xff] }
 0x2be   :  { %v2378_v56 = vsel %vm200_vm1, %v2376_v60, %v2377_v28  ;;  %2656 = vmatpush.msra.mxu2 %v6864_v2  ;;  %2682 = vmatpush.msra.mxu3 %v6902_v13  ;;  %v7049_v13 = vld [vmem:[%s14718_s3 + $0xbf0] sm:$0xff] }
 0x2bf   :  { %v2251_v42 = vrot.slane %v2232_v29, 7  ;;  %v2233_v25 = vmax.f32 %v2225_v9, 0.0  ;;  %v10394_v32 = vadd.f32 %v2188_v39, %v778_v41  ;;  %v2189_v19 = vadd.f32 %v2123_v0, %v1898_v36  ;;  %2485 = vmatmul.f32.vlgmr.msrb.gmra.mxu0 %v2378_v56  ;;  %2543 = vmatmul.f32.vlgmr.msrb.gmra.mxu2 %v2378_v56  ;;  %v7018_v36 = vld [vmem:[%s14718_s3 + $0xaf8] sm:$0xff]  ;;  %v7015_v29 = vld [vmem:[%s14718_s3 + $0xae0] sm:$0xff] }
 0x2c0   :  { %v2357_v22 = vld [vmem:[#allocation2] sm:$0xfe]  ;;  %2599 = vmatpush.msra.mxu0 %v6861_v43  ;;  %2625 = vmatpush.msra.mxu1 %v6899_v17 }
 0x2c1   :  { %v10408_v41 = vsel %vm71_vm0, %v10328_v31, %v2251_v42  ;;  %2276 = vst [vmem:[#allocation2 + $0x20] sm:$0x1] %v2251_v42  ;;  %v2253_v6 = vrot.slane %v2233_v25, 7  ;;  %v2211_v12 = vmul.f32 %v10225_v7, %v10394_v32  ;;  %v10414_v53 = vadd.f32 %v2189_v19, %v779_v51  ;;  %2657 = vmatpush.msra.mxu2 %v6862_v55  ;;  %v7013_v42 = vld [vmem:[%s14718_s3 + $0xad0] sm:$0xff]  ;;  %v7014_v19 = vld [vmem:[%s14718_s3 + $0xad8] sm:$0xff] }
 0x2c2   :  { %v1956_v31 = vadd.f32 %v10133_v16, %v1927_v26  ;;  %v2180_v20 = vpop.f32.mrf.mxu3  ;;  %v2379_v59 = vrot.slane %v2357_v22, 1  ;;  %v2380_v54 = vrot.slane %v10408_v41, 1  ;;  %v2358_v45 = vld [vmem:[#allocation2 + $0x50] sm:$0x1]  ;;  %v6859_v16 = vld [vmem:[%s14718_s3 + $0x600] sm:$0xff]  ;;  %2683 = vmatpush.msra.mxu3 %v6900_v24  ;;  %2626 = vmatpush.msra.mxu1 %v6897_v11 }
 0x2c3   :  { %2277 = vst [vmem:[#allocation2 + $0x8] sm:$0xfe] %v2253_v6  ;;  %v2226_v21 = vadd.f32 %v10245_v62, %v2211_v12  ;;  %v2212_v51 = vmul.f32 %v10172_v61, %v10414_v53  ;;  %v2181_v47 = vadd.f32 %v2180_v20, %v2151_v40  ;;  %v2382_v18 = vrot.slane %v2358_v45, 1  ;;  %2600 = vmatpush.msra.mxu0 %v6859_v16  ;;  %v7011_v26 = vld [vmem:[%s14718_s3 + $0xac0] sm:$0xff]  ;;  %v7050_v22 = vld [vmem:[%s14718_s3 + $0xbf8] sm:$0xff]  ;;  %v7048_v40 = vld [vmem:[%s14718_s3 + $0xbe8] sm:$0xff] }
 0x2c4   :  { %v2381_v14 = vsel %vm200_vm1, %v2379_v59, %v2380_v54  ;;  %2658 = vmatpush.msra.mxu2 %v6860_v46  ;;  %2684 = vmatpush.msra.mxu3 %v6898_v30  ;;  %v7047_v12 = vld [vmem:[%s14718_s3 + $0xbe0] sm:$0xff]  ;;  %v7010_v45 = vld [vmem:[%s14718_s3 + $0xab8] sm:$0xff]  ;;  %v7008_v16 = vld [vmem:[%s14718_s3 + $0xaa8] sm:$0xff] }
 0x2c5   :  { %v2234_v5 = vmax.f32 %v2226_v21, 0.0  ;;  %v2227_v1 = vadd.f32 %v10193_v35, %v2212_v51  ;;  %v2190_v63 = vadd.f32 %v2181_v47, %v1956_v31  ;;  %2514 = vmatmul.f32.vlgmr.msrb.gmra.mxu1 %v2381_v14  ;;  %2572 = vmatmul.f32.vlgmr.msrb.gmra.mxu3 %v2381_v14  ;;  %v2383_v61 = vsel %vm200_vm1, %v2377_v28, %v2382_v18  ;;  %v7017_v35 = vld [vmem:[%s14718_s3 + $0xaf0] sm:$0xff]  ;;  %v6894_v28 = vld [vmem:[%s14718_s3 + $0x718] sm:$0xff]  ;;  %v7007_v21 = vld [vmem:[%s14718_s3 + $0xaa0] sm:$0xff] }
 0x2c6   :  { %2627 = vmatpush.msra.mxu1 %v6895_v23  ;;  %2810 = vmatpush.msrb.mxu0 %v7017_v35  ;;  %v7009_v31 = vld [vmem:[%s14718_s3 + $0xab0] sm:$0xff]  ;;  %v7046_v11 = vld [vmem:[%s14718_s3 + $0xbd8] sm:$0xff]  ;;  %v7003_v46 = vld [vmem:[%s14718_s3 + $0xa80] sm:$0xff] }
 0x2c7   :  { %v2254_v44 = vrot.slane %v2234_v5, 7  ;;  %v2235_v3 = vmax.f32 %v2227_v1, 0.0  ;;  %v10450_v58 = vadd.f32 %v2190_v63, %v780_v57  ;;  %2488 = vmatmul.f32.gmra.mxu0 %v2383_v61  ;;  %2546 = vmatmul.f32.gmra.mxu2 %v2383_v61  ;;  %v7045_v18 = vld [vmem:[%s14718_s3 + $0xbd0] sm:$0xff]  ;;  %v7043_v5 = vld [vmem:[%s14718_s3 + $0xbc0] sm:$0xff]  ;;  %v7006_v1 = vld [vmem:[%s14718_s3 + $0xa98] sm:$0xff] }
 0x2c8   :  { %v2359_v33 = vld [vmem:[#allocation2 + $0x20] sm:$0x1]  ;;  %2685 = vmatpush.msra.mxu3 %v6896_v52  ;;  %2868 = vmatpush.msrb.mxu2 %v7018_v36  ;;  %v7005_v14 = vld [vmem:[%s14718_s3 + $0xa90] sm:$0xff]  ;;  %v7039_v36 = vld [vmem:[%s14718_s3 + $0xba0] sm:$0xff] }
 0x2c9   :  { %2278 = vst [vmem:[#allocation2 + $0x38] sm:$0xfe] %v2254_v44  ;;  %v2255_v8 = vrot.slane %v2235_v3, 7  ;;  %v2213_v57 = vmul.f32 %v10225_v7, %v10450_v58  ;;  %v2384_v60 = vrot.slane %v2359_v33, 1  ;;  %2628 = vmatpush.msra.mxu1 %v6893_v10  ;;  %2811 = vmatpush.msrb.mxu0 %v7015_v29  ;;  %v7044_v61 = vld [vmem:[%s14718_s3 + $0xbc8] sm:$0xff]  ;;  %v7041_v23 = vld [vmem:[%s14718_s3 + $0xbb0] sm:$0xff] }
 0x2ca   :  { %v2360_v9 = vld [vmem:[#allocation2 + $0x8] sm:$0xfe]  ;;  %2686 = vmatpush.msra.mxu3 %v6894_v28  ;;  %2869 = vmatpush.msrb.mxu2 %v7016_v37  ;;  %v7004_v35 = vld [vmem:[%s14718_s3 + $0xa88] sm:$0xff]  ;;  %v7042_v3 = vld [vmem:[%s14718_s3 + $0xbb8] sm:$0xff] }
 0x2cb   :  { %v10470_v39 = vsel %vm71_vm0, %v2253_v6, %v2255_v8  ;;  %2281 = vst [vmem:[#allocation2 + $0x10] sm:$0x1] %v2255_v8  ;;  %v2228_v7 = vadd.f32 %v10245_v62, %v2213_v57  ;;  %v2385_v0 = vsel %vm200_vm1, %v2380_v54, %v2384_v60  ;;  %v2386_v4 = vrot.slane %v2360_v9, 1  ;;  %v6892_v62 = vld [vmem:[%s14718_s3 + $0x708] sm:$0xff]  ;;  %2629 = vmatpush.msra.mxu1 %v6891_v38  ;;  %v7001_v52 = vld [vmem:[%s14718_s3 + $0xa70] sm:$0xff]  ;;  %v7002_v33 = vld [vmem:[%s14718_s3 + $0xa78] sm:$0xff] }
 0x2cc   :  { %v2387_v56 = vrot.slane %v10470_v39, 1  ;;  %2687 = vmatpush.msra.mxu3 %v6892_v62  ;;  %2812 = vmatpush.msrb.mxu0 %v7013_v42  ;;  %v7012_v6 = vld [vmem:[%s14718_s3 + $0xac8] sm:$0xff]  ;;  %v2283_v10 = vld [vmem:[#allocation2 + $0x30] sm:$0xff]  ;;  %v6999_v57 = vld [vmem:[%s14718_s3 + $0xa60] sm:$0xff] }
 0x2cd   :  { %v2236_v2 = vmax.f32 %v2228_v7, 0.0  ;;  %2517 = vmatmul.f32.gmra.mxu1 %v2385_v0  ;;  %2575 = vmatmul.f32.gmra.mxu3 %v2385_v0  ;;  %v7040_v8 = vld [vmem:[%s14718_s3 + $0xba8] sm:$0xff]  ;;  %v7037_v60 = vld [vmem:[%s14718_s3 + $0xb90] sm:$0xff]  ;;  %v7038_v29 = vld [vmem:[%s14718_s3 + $0xb98] sm:$0xff] }
 0x2ce   :  { %v2388_v25 = vsel %vm200_vm1, %v2386_v4, %v2387_v56  ;;  %2870 = vmatpush.msrb.mxu2 %v7014_v19  ;;  %2839 = vmatpush.msrb.mxu1 %v7049_v13  ;;  %v7000_v28 = vld [vmem:[%s14718_s3 + $0xa68] sm:$0xff]  ;;  %v6997_v9 = vld [vmem:[%s14718_s3 + $0xa50] sm:$0xff]  ;;  %v7035_v7 = vld [vmem:[%s14718_s3 + $0xb80] sm:$0xff] }
 0x2cf   :  { %v2257_v43 = vrot.slane %v2236_v2, 7  ;;  %2491 = vmatmul.f32.gmra.mxu0 %v2388_v25  ;;  %2549 = vmatmul.f32.gmra.mxu2 %v2388_v25  ;;  %v6998_v0 = vld [vmem:[%s14718_s3 + $0xa58] sm:$0xff]  ;;  %v7036_v4 = vld [vmem:[%s14718_s3 + $0xb88] sm:$0xff]  ;;  %v6995_v37 = vld [vmem:[%s14718_s3 + $0xa40] sm:$0xff] }
 0x2d0   :  { %v2361_v17 = vld [vmem:[#allocation2 + $0x38] sm:$0xfe]  ;;  %2813 = vmatpush.msrb.mxu0 %v7011_v26  ;;  %2897 = vmatpush.msrb.mxu3 %v7050_v22  ;;  %v2284_v38 = vld [vmem:[#allocation2] sm:$0xff]  ;;  %v7034_v62 = vld [vmem:[%s14718_s3 + $0xb78] sm:$0xff] }
 0x2d1   :  { %v10507_v55 = vsel %vm71_vm0, %v2254_v44, %v2257_v43  ;;  %2282 = vst [vmem:[#allocation2 + $0x40] sm:$0x1] %v2257_v43  ;;  %v2389_v24 = vrot.slane %v2361_v17, 1  ;;  %2871 = vmatpush.msrb.mxu2 %v7012_v6  ;;  %2840 = vmatpush.msrb.mxu1 %v7047_v12  ;;  %v6996_v2 = vld [vmem:[%s14718_s3 + $0xa48] sm:$0xff]  ;;  %v6993_v42 = vld [vmem:[%s14718_s3 + $0xa30] sm:$0xff]  ;;  %v7031_v25 = vld [vmem:[%s14718_s3 + $0xb60] sm:$0xff] }
 0x2d2   :  { %v2390_v20 = vrot.slane %v10507_v55, 1  ;;  %v2362_v59 = vld [vmem:[#allocation2 + $0x10] sm:$0x1]  ;;  %2814 = vmatpush.msrb.mxu0 %v7009_v31  ;;  %2898 = vmatpush.msrb.mxu3 %v7048_v40  ;;  %v7032_v13 = vld [vmem:[%s14718_s3 + $0xb68] sm:$0xff]  ;;  %v6991_v43 = vld [vmem:[%s14718_s3 + $0xa20] sm:$0xff] }
 0x2d3   :  { %v2392_v54 = vrot.slane %v2362_v59, 1  ;;  %2872 = vmatpush.msrb.mxu2 %v7010_v45  ;;  %2841 = vmatpush.msrb.mxu1 %v7045_v18  ;;  %v6994_v19 = vld [vmem:[%s14718_s3 + $0xa38] sm:$0xff]  ;;  %v7029_v26 = vld [vmem:[%s14718_s3 + $0xb50] sm:$0xff]  ;;  %v6992_v22 = vld [vmem:[%s14718_s3 + $0xa28] sm:$0xff] }
 0x2d4   :  { %v2391_v51 = vsel %vm200_vm1, %v2389_v24, %v2390_v20  ;;  %2815 = vmatpush.msrb.mxu0 %v7007_v21  ;;  %2899 = vmatpush.msrb.mxu3 %v7046_v11  ;;  %v7030_v17 = vld [vmem:[%s14718_s3 + $0xb58] sm:$0xff]  ;;  %v6989_v6 = vld [vmem:[%s14718_s3 + $0xa10] sm:$0xff]  ;;  %v7027_v12 = vld [vmem:[%s14718_s3 + $0xb40] sm:$0xff] }
 0x2d5   :  { %2520 = vmatmul.f32.gmra.mxu1 %v2391_v51  ;;  %2578 = vmatmul.f32.gmra.mxu3 %v2391_v51  ;;  %v2393_v47 = vsel %vm200_vm1, %v2387_v56, %v2392_v54  ;;  %v7033_v56 = vld [vmem:[%s14718_s3 + $0xb70] sm:$0xff]  ;;  %v6990_v24 = vld [vmem:[%s14718_s3 + $0xa18] sm:$0xff]  ;;  %v7028_v40 = vld [vmem:[%s14718_s3 + $0xb48] sm:$0xff] }
 0x2d6   :  { %2873 = vmatpush.msrb.mxu2 %v7008_v16  ;;  %2816 = vmatpush.msrb.mxu0 %v7005_v14  ;;  %v2287_v31 = vld [vmem:[#allocation2 + $0x8] sm:$0xff]  ;;  %v6988_v54 = vld [vmem:[%s14718_s3 + $0xa08] sm:$0xff]  ;;  %v7026_v45 = vld [vmem:[%s14718_s3 + $0xb38] sm:$0xff] }
 0x2d7   :  { %2494 = vmatmul.f32.gmra.mxu0 %v2393_v47  ;;  %2552 = vmatmul.f32.gmra.mxu2 %v2393_v47  ;;  %v7025_v59 = vld [vmem:[%s14718_s3 + $0xb30] sm:$0xff]  ;;  %v7023_v21 = vld [vmem:[%s14718_s3 + $0xb20] sm:$0xff]  ;;  %v7024_v51 = vld [vmem:[%s14718_s3 + $0xb28] sm:$0xff] }
 0x2d8   :  { %v2363_v63 = vld [vmem:[#allocation2 + $0x40] sm:$0x1]  ;;  %2842 = vmatpush.msrb.mxu1 %v7043_v5  ;;  %2874 = vmatpush.msrb.mxu2 %v7006_v1  ;;  %v7021_v47 = vld [vmem:[%s14718_s3 + $0xb10] sm:$0xff]  ;;  %v2288_v18 = vld [vmem:[#allocation2 + $0x38] sm:$0xff] }
 0x2d9   :  { %v2394_v30 = vrot.slane %v2363_v63, 1  ;;  %2900 = vmatpush.msrb.mxu3 %v7044_v61  ;;  %2817 = vmatpush.msrb.mxu0 %v7003_v46  ;;  %v7022_v16 = vld [vmem:[%s14718_s3 + $0xb18] sm:$0xff]  ;;  %v7019_v11 = vld [vmem:[%s14718_s3 + $0xb00] sm:$0xff]  ;;  %v7020_v5 = vld [vmem:[%s14718_s3 + $0xb08] sm:$0xff]  ;;  %v2718_v63 = vrot.slane %v10366_v49, 2 }
 0x2da   :  { %2843 = vmatpush.msrb.mxu1 %v7041_v23  ;;  %2875 = vmatpush.msrb.mxu2 %v7004_v35  ;;  %v2701_v14 = vld [vmem:[#allocation2 + $0x30] sm:$0xfc]  ;;  %v2702_v61 = vld [vmem:[#allocation2] sm:$0xfc]  ;;  %v2721_v35 = vrot.slane %v10408_v41, 2 }
 0x2db   :  { %v2395_v44 = vsel %vm200_vm1, %v2390_v20, %v2394_v30  ;;  %2901 = vmatpush.msrb.mxu3 %v7042_v3  ;;  %2818 = vmatpush.msrb.mxu0 %v7001_v52  ;;  %v6987_v20 = vld [vmem:[%s14718_s3 + $0xa00] sm:$0xff]  ;;  %v2717_v1 = vrot.slane %v2701_v14, 2  ;;  %v2703_v30 = vld [vmem:[#allocation2 + $0x50] sm:$0x3]  ;;  %v2720_v23 = vrot.slane %v2702_v61, 2  ;;  %v7177_v14 = vld [vmem:[%s14722_s7 + $0x9f0] sm:$0xff] }
 0x2dc   :  { %2844 = vmatpush.msrb.mxu1 %v7039_v36  ;;  %2876 = vmatpush.msrb.mxu2 %v7002_v33  ;;  %v2705_v36 = vld [vmem:[#allocation2 + $0x8] sm:$0xfc]  ;;  %v7175_v61 = vld [vmem:[%s14722_s7 + $0x9e0] sm:$0xff] }
 0x2dd   :  { %2523 = vmatmul.f32.gmra.mxu1 %v2395_v44  ;;  %2581 = vmatmul.f32.gmra.mxu3 %v2395_v44  ;;  %v2719_v46 = vsel %vm542_vm2, %v2717_v1, %v2718_v63  ;;  %v2723_v44 = vrot.slane %v2703_v30, 2  ;;  %v2722_v3 = vsel %vm542_vm2, %v2720_v23, %v2721_v35  ;;  %v7178_v1 = vld [vmem:[%s14722_s7 + $0x9f8] sm:$0xff]  ;;  %v7176_v30 = vld [vmem:[%s14722_s7 + $0x9e8] sm:$0xff] }
 0x2de   :  { %2902 = vmatpush.msrb.mxu3 %v7040_v8  ;;  %2819 = vmatpush.msrb.mxu0 %v6999_v57  ;;  %v2728_v8 = vrot.slane %v10470_v39, 2 }
 0x2df   :  { %2601 = vmatmul.f32.vlgmr.msra.gmra.mxu0 %v2283_v10  ;;  %2659 = vmatmul.f32.vlgmr.msra.gmra.mxu2 %v2283_v10  ;;  %v2724_v52 = vsel %vm542_vm2, %v2718_v63, %v2723_v44  ;;  %v2727_v10 = vrot.slane %v2705_v36, 2  ;;  %v7137_v63 = vld [vmem:[%s14722_s7 + $0x8b0] sm:$0xff] }
 0x2e0   :  { %2845 = vmatpush.msrb.mxu1 %v7037_v60  ;;  %2877 = vmatpush.msrb.mxu2 %v7000_v28  ;;  %v2707_v28 = vld [vmem:[#allocation2 + $0x10] sm:$0x3]  ;;  %v7173_v44 = vld [vmem:[%s14722_s7 + $0x9d0] sm:$0xff] }
 0x2e1   :  { %2903 = vmatpush.msrb.mxu3 %v7038_v29  ;;  %2820 = vmatpush.msrb.mxu0 %v6997_v9  ;;  %v2729_v60 = vsel %vm542_vm2, %v2727_v10, %v2728_v8  ;;  %v2731_v9 = vrot.slane %v10507_v55, 2  ;;  %v7171_v10 = vld [vmem:[%s14722_s7 + $0x9c0] sm:$0xff] }
 0x2e2   :  { %2846 = vmatpush.msrb.mxu1 %v7035_v7  ;;  %2878 = vmatpush.msrb.mxu2 %v6998_v0  ;;  %v2733_v7 = vrot.slane %v2707_v28, 2  ;;  %v7169_v28 = vld [vmem:[%s14722_s7 + $0x9b0] sm:$0xff] }
 0x2e3   :  { %2904 = vmatpush.msrb.mxu3 %v7036_v4  ;;  %2821 = vmatpush.msrb.mxu0 %v6995_v37  ;;  %v2708_v4 = vld [vmem:[#allocation2 + $0x40] sm:$0x3] }
 0x2e4   :  { %2847 = vmatpush.msrb.mxu1 %v7033_v56  ;;  %2879 = vmatpush.msrb.mxu2 %v6996_v2  ;;  %v2735_v37 = vrot.slane %v2708_v4, 2  ;;  %v7130_v4 = vld [vmem:[%s14722_s7 + $0x878] sm:$0xff] }
 0x2e5   :  { %2630 = vmatmul.f32.vlgmr.msra.gmra.mxu1 %v2284_v38  ;;  %2688 = vmatmul.f32.vlgmr.msra.gmra.mxu3 %v2284_v38 }
 0x2e6   :  { %2905 = vmatpush.msrb.mxu3 %v7034_v62  ;;  %2822 = vmatpush.msrb.mxu0 %v6993_v42  ;;  %v2736_v38 = vsel %vm542_vm2, %v2731_v9, %v2735_v37 }
 0x2e7   :  { %2604 = vmatmul.f32.gmra.mxu0 %v10366_v49  ;;  %2662 = vmatmul.f32.gmra.mxu2 %v10366_v49  ;;  %v2704_v49 = vld [vmem:[#allocation2 + $0x20] sm:$0x3] }
 0x2e8   :  { %2848 = vmatpush.msrb.mxu1 %v7031_v25  ;;  %2880 = vmatpush.msrb.mxu2 %v6994_v19  ;;  %v2725_v33 = vrot.slane %v2704_v49, 2  ;;  %v7174_v49 = vld [vmem:[%s14722_s7 + $0x9d8] sm:$0xff] }
 0x2e9   :  { %2906 = vmatpush.msrb.mxu3 %v7032_v13  ;;  %2823 = vmatpush.msrb.mxu0 %v6991_v43 }
 0x2ea   :  { %2849 = vmatpush.msrb.mxu1 %v7029_v26  ;;  %2881 = vmatpush.msrb.mxu2 %v6992_v22  ;;  %v2726_v57 = vsel %vm542_vm2, %v2721_v35, %v2725_v33  ;;  %v7135_v35 = vld [vmem:[%s14722_s7 + $0x8a0] sm:$0xff]  ;;  %v7133_v33 = vld [vmem:[%s14722_s7 + $0x890] sm:$0xff] }
 0x2eb   :  { %2907 = vmatpush.msrb.mxu3 %v7030_v17  ;;  %2824 = vmatpush.msrb.mxu0 %v6989_v6 }
 0x2ec   :  { %2850 = vmatpush.msrb.mxu1 %v7027_v12  ;;  %2882 = vmatpush.msrb.mxu2 %v6990_v24 }
 0x2ed   :  { %2633 = vmatmul.f32.gmra.mxu1 %v10408_v41  ;;  %2691 = vmatmul.f32.gmra.mxu3 %v10408_v41  ;;  %v2706_v41 = vld [vmem:[#allocation2 + $0x38] sm:$0xfc] }
 0x2ee   :  { %2908 = vmatpush.msrb.mxu3 %v7028_v40  ;;  %2825 = vmatpush.msrb.mxu0 %v6987_v20  ;;  %v2730_v29 = vrot.slane %v2706_v41, 2  ;;  %v7145_v40 = vld [vmem:[%s14722_s7 + $0x8f0] sm:$0xff]  ;;  %v7146_v20 = vld [vmem:[%s14722_s7 + $0x8f8] sm:$0xff] }
 0x2ef   :  { %2607 = vmatmul.f32.gmra.mxu0 %v2287_v31  ;;  %2665 = vmatmul.f32.gmra.mxu2 %v2287_v31 }
 0x2f0   :  { %2851 = vmatpush.msrb.mxu1 %v7025_v59  ;;  %2883 = vmatpush.msrb.mxu2 %v6988_v54  ;;  %v2732_v0 = vsel %vm542_vm2, %v2730_v29, %v2731_v9  ;;  %v7143_v54 = vld [vmem:[%s14722_s7 + $0x8e0] sm:$0xff]  ;;  %v7132_v29 = vld [vmem:[%s14722_s7 + $0x888] sm:$0xff]  ;;  %v7170_v9 = vld [vmem:[%s14722_s7 + $0x9b8] sm:$0xff] }
 0x2f1   :  { %2909 = vmatpush.msrb.mxu3 %v7026_v45  ;;  %3185 = vmatpush.msra.mxu0 %v7145_v40  ;;  %v7144_v45 = vld [vmem:[%s14722_s7 + $0x8e8] sm:$0xff]  ;;  %v7165_v40 = vld [vmem:[%s14722_s7 + $0x990] sm:$0xff] }
 0x2f2   :  { %2852 = vmatpush.msrb.mxu1 %v7023_v21  ;;  %3243 = vmatpush.msra.mxu2 %v7146_v20  ;;  %v7128_v20 = vld [vmem:[%s14722_s7 + $0x868] sm:$0xff] }
 0x2f3   :  { %2910 = vmatpush.msrb.mxu3 %v7024_v51  ;;  %3186 = vmatpush.msra.mxu0 %v7143_v54  ;;  %v7166_v54 = vld [vmem:[%s14722_s7 + $0x998] sm:$0xff] }
 0x2f4   :  { %2853 = vmatpush.msrb.mxu1 %v7021_v47  ;;  %3244 = vmatpush.msra.mxu2 %v7144_v45  ;;  %v7141_v47 = vld [vmem:[%s14722_s7 + $0x8d0] sm:$0xff] }
 0x2f5   :  { %2636 = vmatmul.f32.gmra.mxu1 %v2288_v18  ;;  %2694 = vmatmul.f32.gmra.mxu3 %v2288_v18  ;;  %v7142_v18 = vld [vmem:[%s14722_s7 + $0x8d8] sm:$0xff] }
 0x2f6   :  { %2911 = vmatpush.msrb.mxu3 %v7022_v16  ;;  %2854 = vmatpush.msrb.mxu1 %v7019_v11  ;;  %v7139_v11 = vld [vmem:[%s14722_s7 + $0x8c0] sm:$0xff] }
 0x2f7   :  { %2610 = vmatmul.f32.gmra.mxu0 %v10470_v39  ;;  %2668 = vmatmul.f32.gmra.mxu2 %v10470_v39  ;;  %v2734_v39 = vsel %vm542_vm2, %v2728_v8, %v2733_v7  ;;  %v7134_v8 = vld [vmem:[%s14722_s7 + $0x898] sm:$0xff]  ;;  %v7129_v7 = vld [vmem:[%s14722_s7 + $0x870] sm:$0xff] }
 0x2f8   :  { %2912 = vmatpush.msrb.mxu3 %v7020_v5  ;;  %3187 = vmatpush.msra.mxu0 %v7141_v47  ;;  %v7140_v5 = vld [vmem:[%s14722_s7 + $0x8c8] sm:$0xff] }
 0x2f9   :  { %3245 = vmatpush.msra.mxu2 %v7142_v18  ;;  %3214 = vmatpush.msra.mxu1 %v7177_v14  ;;  %v7125_v18 = vld [vmem:[%s14722_s7 + $0x850] sm:$0xff]  ;;  %v7126_v14 = vld [vmem:[%s14722_s7 + $0x858] sm:$0xff] }
 0x2fa   :  { %3188 = vmatpush.msra.mxu0 %v7139_v11  ;;  %3272 = vmatpush.msra.mxu3 %v7178_v1  ;;  %v7163_v11 = vld [vmem:[%s14722_s7 + $0x980] sm:$0xff] }
 0x2fb   :  { %3246 = vmatpush.msra.mxu2 %v7140_v5  ;;  %3215 = vmatpush.msra.mxu1 %v7175_v61  ;;  %v7164_v5 = vld [vmem:[%s14722_s7 + $0x988] sm:$0xff]  ;;  %v7161_v61 = vld [vmem:[%s14722_s7 + $0x970] sm:$0xff] }
 0x2fc   :  { %3189 = vmatpush.msra.mxu0 %v7137_v63  ;;  %3273 = vmatpush.msra.mxu3 %v7176_v30  ;;  %v7123_v63 = vld [vmem:[%s14722_s7 + $0x840] sm:$0xff]  ;;  %v7162_v30 = vld [vmem:[%s14722_s7 + $0x978] sm:$0xff] }
 0x2fd   :  { %2639 = vmatmul.f32.gmra.mxu1 %v10507_v55  ;;  %2697 = vmatmul.f32.gmra.mxu3 %v10507_v55 }
 0x2fe   :  { %3190 = vmatpush.msra.mxu0 %v7135_v35  ;;  %3216 = vmatpush.msra.mxu1 %v7173_v44  ;;  %v7121_v35 = vld [vmem:[%s14722_s7 + $0x830] sm:$0xff]  ;;  %v7159_v44 = vld [vmem:[%s14722_s7 + $0x960] sm:$0xff] }
 0x2ff   :  { %2826 = vmatmul.f32.vlgmr.msrb.gmra.mxu0 %v2719_v46  ;;  %2884 = vmatmul.f32.vlgmr.msrb.gmra.mxu2 %v2719_v46  ;;  %v7138_v46 = vld [vmem:[%s14722_s7 + $0x8b8] sm:$0xff] }
 0x300   :  { %3247 = vmatpush.msra.mxu2 %v7138_v46  ;;  %3274 = vmatpush.msra.mxu3 %v7174_v49  ;;  %v7124_v46 = vld [vmem:[%s14722_s7 + $0x848] sm:$0xff] }
 0x301   :  { %3191 = vmatpush.msra.mxu0 %v7133_v33  ;;  %3217 = vmatpush.msra.mxu1 %v7171_v10  ;;  %v7160_v49 = vld [vmem:[%s14722_s7 + $0x968] sm:$0xff]  ;;  %v7119_v10 = vld [vmem:[%s14722_s7 + $0x820] sm:$0xff] }
 0x303   :  { %3218 = vmatpush.msra.mxu1 %v7169_v28 }
 0x305   :  { %2855 = vmatmul.f32.vlgmr.msrb.gmra.mxu1 %v2722_v3  ;;  %2913 = vmatmul.f32.vlgmr.msrb.gmra.mxu3 %v2722_v3  ;;  %v7136_v3 = vld [vmem:[%s14722_s7 + $0x8a8] sm:$0xff] }
 0x306   :  { %3248 = vmatpush.msra.mxu2 %v7136_v3  ;;  %v7122_v3 = vld [vmem:[%s14722_s7 + $0x838] sm:$0xff] }
 0x307   :  { %2829 = vmatmul.f32.gmra.mxu0 %v2724_v52  ;;  %2887 = vmatmul.f32.gmra.mxu2 %v2724_v52 }
 0x308   :  { %3249 = vmatpush.msra.mxu2 %v7134_v8  ;;  %v7157_v8 = vld [vmem:[%s14722_s7 + $0x950] sm:$0xff] }
 0x30a   :  { %3250 = vmatpush.msra.mxu2 %v7132_v29 }
 0x30c   :  { %3251 = vmatpush.msra.mxu2 %v7130_v4  ;;  %v7156_v4 = vld [vmem:[%s14722_s7 + $0x948] sm:$0xff] }
 0x30d   :  { %2858 = vmatmul.f32.gmra.mxu1 %v2726_v57  ;;  %2916 = vmatmul.f32.gmra.mxu3 %v2726_v57  ;;  %v7172_v57 = vld [vmem:[%s14722_s7 + $0x9c8] sm:$0xff] }
 0x30e   :  { %3275 = vmatpush.msra.mxu3 %v7172_v57  ;;  %3252 = vmatpush.msra.mxu2 %v7128_v20  ;;  %v7120_v57 = vld [vmem:[%s14722_s7 + $0x828] sm:$0xff] }
 0x30f   :  { %2832 = vmatmul.f32.gmra.mxu0 %v2729_v60  ;;  %2890 = vmatmul.f32.gmra.mxu2 %v2729_v60  ;;  %v7131_v60 = vld [vmem:[%s14722_s7 + $0x880] sm:$0xff]  ;;  %v7116_v20 = vld [vmem:[%s14722_s7 + $0x808] sm:$0xff] }
 0x310   :  { %3192 = vmatpush.msra.mxu0 %v7131_v60  ;;  %3276 = vmatpush.msra.mxu3 %v7170_v9  ;;  %v7158_v60 = vld [vmem:[%s14722_s7 + $0x958] sm:$0xff]  ;;  %v7117_v9 = vld [vmem:[%s14722_s7 + $0x810] sm:$0xff] }
 0x311   :  { %3253 = vmatpush.msra.mxu2 %v7126_v14  ;;  %v7081_v14 = vld [vmem:[%s14722_s7 + $0x6f0] sm:$0xff] }
 0x312   :  { %3193 = vmatpush.msra.mxu0 %v7129_v7  ;;  %v7155_v7 = vld [vmem:[%s14722_s7 + $0x940] sm:$0xff] }
 0x313   :  { %3254 = vmatpush.msra.mxu2 %v7124_v46 }
 0x315   :  { %2861 = vmatmul.f32.gmra.mxu1 %v2732_v0  ;;  %2919 = vmatmul.f32.gmra.mxu3 %v2732_v0  ;;  %v7167_v0 = vld [vmem:[%s14722_s7 + $0x9a0] sm:$0xff] }
 0x316   :  { %3219 = vmatpush.msra.mxu1 %v7167_v0  ;;  %3255 = vmatpush.msra.mxu2 %v7122_v3  ;;  %v7118_v0 = vld [vmem:[%s14722_s7 + $0x818] sm:$0xff] }
 0x317   :  { %2835 = vmatmul.f32.gmra.mxu0 %v2734_v39  ;;  %2893 = vmatmul.f32.gmra.mxu2 %v2734_v39  ;;  %v7168_v39 = vld [vmem:[%s14722_s7 + $0x9a8] sm:$0xff] }
 0x318   :  { %3277 = vmatpush.msra.mxu3 %v7168_v39  ;;  %3220 = vmatpush.msra.mxu1 %v7165_v40  ;;  %v7153_v40 = vld [vmem:[%s14722_s7 + $0x930] sm:$0xff] }
 0x319   :  { %3256 = vmatpush.msra.mxu2 %v7120_v57 }
 0x31a   :  { %3278 = vmatpush.msra.mxu3 %v7166_v54  ;;  %3221 = vmatpush.msra.mxu1 %v7163_v11  ;;  %v7154_v54 = vld [vmem:[%s14722_s7 + $0x938] sm:$0xff]  ;;  %v7152_v11 = vld [vmem:[%s14722_s7 + $0x928] sm:$0xff] }
 0x31b   :  { %3257 = vmatpush.msra.mxu2 %v7118_v0  ;;  %v7075_v0 = vld [vmem:[%s14722_s7 + $0x6c0] sm:$0xff] }
 0x31c   :  { %3279 = vmatpush.msra.mxu3 %v7164_v5  ;;  %3222 = vmatpush.msra.mxu1 %v7161_v61  ;;  %v7082_v61 = vld [vmem:[%s14722_s7 + $0x6f8] sm:$0xff] }
 0x31d   :  { %2864 = vmatmul.f32.gmra.mxu1 %v2736_v38  ;;  %2922 = vmatmul.f32.gmra.mxu3 %v2736_v38  ;;  %v7127_v38 = vld [vmem:[%s14722_s7 + $0x860] sm:$0xff] }
 0x31e   :  { %3194 = vmatpush.msra.mxu0 %v7127_v38  ;;  %3280 = vmatpush.msra.mxu3 %v7162_v30  ;;  %v7115_v38 = vld [vmem:[%s14722_s7 + $0x800] sm:$0xff]  ;;  %v7149_v30 = vld [vmem:[%s14722_s7 + $0x910] sm:$0xff] }
 0x31f   :  { %3223 = vmatpush.msra.mxu1 %v7159_v44  ;;  %3258 = vmatpush.msra.mxu2 %v7116_v20  ;;  %v7080_v44 = vld [vmem:[%s14722_s7 + $0x6e8] sm:$0xff] }
 0x320   :  { %3195 = vmatpush.msra.mxu0 %v7125_v18  ;;  %3281 = vmatpush.msra.mxu3 %v7160_v49  ;;  %v7151_v18 = vld [vmem:[%s14722_s7 + $0x920] sm:$0xff] }
 0x321   :  { %3224 = vmatpush.msra.mxu1 %v7157_v8  ;;  %3359 = vmatpush.msrb.mxu2 %v7082_v61  ;;  %v7148_v8 = vld [vmem:[%s14722_s7 + $0x908] sm:$0xff]  ;;  %v7071_v61 = vld [vmem:[%s14722_s7 + $0x6a0] sm:$0xff] }
 0x322   :  { %3196 = vmatpush.msra.mxu0 %v7123_v63  ;;  %3282 = vmatpush.msra.mxu3 %v7158_v60  ;;  %v6858_v63 = vld [vmem:[%s14719_s4 + $0x2] sm:$0x3] }
 0x323   :  { %3225 = vmatpush.msra.mxu1 %v7155_v7  ;;  %3360 = vmatpush.msrb.mxu2 %v7080_v44  ;;  %v7078_v7 = vld [vmem:[%s14722_s7 + $0x6d8] sm:$0xff] }
 0x324   :  { %3197 = vmatpush.msra.mxu0 %v7121_v35  ;;  %3283 = vmatpush.msra.mxu3 %v7156_v4  ;;  %v7113_v4 = vld [vmem:[%s14722_s7 + $0x7f0] sm:$0xff]  ;;  %v7110_v44 = vld [vmem:[%s14722_s7 + $0x7d8] sm:$0xff] }
 0x325   :  { %3226 = vmatpush.msra.mxu1 %v7153_v40  ;;  %3361 = vmatpush.msrb.mxu2 %v7078_v7  ;;  %v7114_v40 = vld [vmem:[%s14722_s7 + $0x7f8] sm:$0xff]  ;;  %v7067_v7 = vld [vmem:[%s14722_s7 + $0x680] sm:$0xff] }
 0x326   :  { %3198 = vmatpush.msra.mxu0 %v7119_v10  ;;  %3284 = vmatpush.msra.mxu3 %v7154_v54  ;;  %v7147_v10 = vld [vmem:[%s14722_s7 + $0x900] sm:$0xff] }
 0x327   :  { %3227 = vmatpush.msra.mxu1 %v7151_v18  ;;  %v7073_v18 = vld [vmem:[%s14722_s7 + $0x6b0] sm:$0xff] }
 0x328   :  { %3199 = vmatpush.msra.mxu0 %v7117_v9  ;;  %3285 = vmatpush.msra.mxu3 %v7152_v11  ;;  %v10970_v9 = vperm.slane %v6858_v63, 0 }
 0x329   :  { %3228 = vmatpush.msra.mxu1 %v7149_v30  ;;  %v7072_v30 = vld [vmem:[%s14722_s7 + $0x6a8] sm:$0xff] }
 0x32a   :  { %3200 = vmatpush.msra.mxu0 %v7115_v38 }
 0x32b   :  { %3229 = vmatpush.msra.mxu1 %v7147_v10  ;;  %v7069_v10 = vld [vmem:[%s14722_s7 + $0x690] sm:$0xff] }
 0x32c   :  { %3301 = vmatpush.msrb.mxu0 %v7081_v14 }
 0x32d   :  { %3330 = vmatpush.msrb.mxu1 %v7113_v4 }
 0x33c   :  { %v10692_v56 = vpop.f32.mrf.mxu0 }
 0x342   :  { %v10694_v2 = vpop.f32.mrf.mxu1  ;;  %v10696_v55 = vpop.f32.mrf.mxu2 }
 0x343   :  { %v2516_v5 = vadd.f32 %v10694_v2, %v10692_v56  ;;  %v7150_v56 = vld [vmem:[%s14722_s7 + $0x918] sm:$0xff]  ;;  %v7079_v2 = vld [vmem:[%s14722_s7 + $0x6e0] sm:$0xff] }
 0x344   :  { %v10698_v62 = vpop.f32.mrf.mxu0  ;;  %3302 = vmatpush.msrb.mxu0 %v7079_v2  ;;  %3286 = vmatpush.msra.mxu3 %v7150_v56 }
 0x346   :  { %3287 = vmatpush.msra.mxu3 %v7148_v8 }
 0x348   :  { %v10700_v42 = vpop.f32.mrf.mxu3  ;;  %3388 = vmatpush.msrb.mxu3 %v7114_v40 }
 0x34a   :  { %v10702_v25 = vpop.f32.mrf.mxu1  ;;  %v10704_v19 = vpop.f32.mrf.mxu2 }
 0x34b   :  { %v2519_v20 = vadd.f32 %v10702_v25, %v10698_v62  ;;  %v7112_v62 = vld [vmem:[%s14722_s7 + $0x7e8] sm:$0xff] }
 0x34c   :  { %v10706_v13 = vpop.f32.mrf.mxu0  ;;  %3389 = vmatpush.msrb.mxu3 %v7112_v62 }
 0x34e   :  { %3390 = vmatpush.msrb.mxu3 %v7110_v44  ;;  %v7100_v44 = vld [vmem:[%s14722_s7 + $0x788] sm:$0xff] }
 0x350   :  { %v10708_v43 = vpop.f32.mrf.mxu3 }
 0x352   :  { %v10710_v26 = vpop.f32.mrf.mxu1  ;;  %v10712_v22 = vpop.f32.mrf.mxu2 }
 0x354   :  { %v10714_v17 = vpop.f32.mrf.mxu0 }
 0x358   :  { %v10716_v6 = vpop.f32.mrf.mxu3 }
 0x35a   :  { %v10718_v12 = vpop.f32.mrf.mxu1  ;;  %v10720_v24 = vpop.f32.mrf.mxu2 }
 0x35c   :  { %v10722_v31 = vpop.f32.mrf.mxu0 }
 0x35d   :  { %v2603_v35 = vadd.f32 %v10722_v31, %v2516_v5  ;;  %v7077_v31 = vld [vmem:[%s14722_s7 + $0x6d0] sm:$0xff] }
 0x35e   :  { %3303 = vmatpush.msrb.mxu0 %v7077_v31 }
 0x360   :  { %v10730_v59 = vpop.f32.mrf.mxu3  ;;  %3304 = vmatpush.msrb.mxu0 %v7075_v0  ;;  %v7105_v0 = vld [vmem:[%s14722_s7 + $0x7b0] sm:$0xff] }
 0x362   :  { %v10738_v21 = vpop.f32.mrf.mxu1  ;;  %v10740_v51 = vpop.f32.mrf.mxu2  ;;  %3305 = vmatpush.msrb.mxu0 %v7073_v18  ;;  %v7066_v18 = vld [vmem:[%s14722_s7 + $0x678] sm:$0xff] }
 0x363   :  { %v2632_v57 = vadd.f32 %v10738_v21, %v2603_v35  ;;  %v7076_v21 = vld [vmem:[%s14722_s7 + $0x6c8] sm:$0xff] }
 0x364   :  { %v10748_v16 = vpop.f32.mrf.mxu0  ;;  %3362 = vmatpush.msrb.mxu2 %v7076_v21  ;;  %3306 = vmatpush.msrb.mxu0 %v7071_v61  ;;  %v7106_v21 = vld [vmem:[%s14722_s7 + $0x7b8] sm:$0xff] }
 0x365   :  { %v2606_v25 = vadd.f32 %v10748_v16, %v2519_v20  ;;  %v11016_v16 = vperm.slane %v6858_v63, 1  ;;  %v7070_v63 = vld [vmem:[%s14722_s7 + $0x698] sm:$0xff] }
 0x366   :  { %3307 = vmatpush.msrb.mxu0 %v7069_v10 }
 0x368   :  { %v10774_v23 = vpop.f32.mrf.mxu3  ;;  %3308 = vmatpush.msrb.mxu0 %v7067_v7  ;;  %v7098_v7 = vld [vmem:[%s14722_s7 + $0x778] sm:$0xff] }
 0x36a   :  { %v10788_v52 = vpop.f32.mrf.mxu1  ;;  %v10790_v36 = vpop.f32.mrf.mxu2 }
 0x36c   :  { %v10804_v41 = vpop.f32.mrf.mxu0 }
 0x370   :  { %v10830_v37 = vpop.f32.mrf.mxu3 }
 0x372   :  { %v10844_v45 = vpop.f32.mrf.mxu1  ;;  %v10846_v47 = vpop.f32.mrf.mxu2 }
 0x374   :  { %v10860_v1 = vpop.f32.mrf.mxu0 }
 0x378   :  { %v10886_v33 = vpop.f32.mrf.mxu3 }
 0x37a   :  { %v10900_v28 = vpop.f32.mrf.mxu1  ;;  %v10902_v29 = vpop.f32.mrf.mxu2 }
 0x37c   :  { %v2827_v39 = vpop.f32.mrf.mxu0 }
 0x380   :  { %v10945_v46 = vpop.f32.mrf.mxu3 }
 0x382   :  { %v2856_v3 = vpop.f32.mrf.mxu1  ;;  %v2885_v49 = vpop.f32.mrf.mxu2 }
 0x383   :  { %v2857_v60 = vadd.f32 %v2856_v3, %v2827_v39  ;;  %v2574_v39 = vadd.f32 %v10700_v42, %v10696_v55  ;;  %v7111_v55 = vld [vmem:[%s14722_s7 + $0x7e0] sm:$0xff]  ;;  %v7074_v42 = vld [vmem:[%s14722_s7 + $0x6b8] sm:$0xff] }
 0x384   :  { %v2830_v54 = vpop.f32.mrf.mxu0  ;;  %3331 = vmatpush.msrb.mxu1 %v7111_v55  ;;  %3363 = vmatpush.msrb.mxu2 %v7074_v42  ;;  %v7104_v55 = vld [vmem:[%s14722_s7 + $0x7a8] sm:$0xff]  ;;  %v7101_v42 = vld [vmem:[%s14722_s7 + $0x790] sm:$0xff] }
 0x385   :  { %v2926_v38 = vadd.f32 %v2857_v60, %v2632_v57  ;;  %v2661_v11 = vadd.f32 %v10740_v51, %v2574_v39  ;;  %v7109_v51 = vld [vmem:[%s14722_s7 + $0x7d0] sm:$0xff]  ;;  %v7108_v60 = vld [vmem:[%s14722_s7 + $0x7c8] sm:$0xff] }
 0x386   :  { %3332 = vmatpush.msrb.mxu1 %v7109_v51  ;;  %3364 = vmatpush.msrb.mxu2 %v7072_v30  ;;  %v7065_v39 = vld [vmem:[%s14722_s7 + $0x670] sm:$0xff]  ;;  %v7099_v51 = vld [vmem:[%s14722_s7 + $0x780] sm:$0xff] }
 0x387   :  { %v2939_v14 = vadd.f32 %v10970_v9, %v2926_v38  ;;  %v2690_v56 = vadd.f32 %v10774_v23, %v2661_v11  ;;  %v7107_v23 = vld [vmem:[%s14722_s7 + $0x7c0] sm:$0xff]  ;;  %3391 = vmatpush.msrb.mxu3 %v7108_v60  ;;  %v2577_v38 = vadd.f32 %v10708_v43, %v10704_v19  ;;  %v2522_v19 = vadd.f32 %v10710_v26, %v10706_v13  ;;  %v7064_v13 = vld [vmem:[%s14722_s7 + $0x668] sm:$0xff]  ;;  %v7102_v26 = vld [vmem:[%s14722_s7 + $0x798] sm:$0xff] }
 0x388   :  { %v2914_v5 = vpop.f32.mrf.mxu3  ;;  %3333 = vmatpush.msrb.mxu1 %v7107_v23  ;;  %3365 = vmatpush.msrb.mxu2 %v7070_v63  ;;  %v7063_v43 = vld [vmem:[%s14722_s7 + $0x660] sm:$0xff] }
 0x389   :  { %v2947_v2 = vmax.f32 %v2939_v14, 0.0  ;;  %v2915_v35 = vadd.f32 %v2914_v5, %v2885_v49  ;;  %v2635_v49 = vadd.f32 %v10788_v52, %v2606_v25  ;;  %v7068_v52 = vld [vmem:[%s14722_s7 + $0x688] sm:$0xff]  ;;  %3392 = vmatpush.msrb.mxu3 %v7106_v21  ;;  %v2664_v11 = vadd.f32 %v10790_v36, %v2577_v38  ;;  %3309 = vmatpush.msrb.mxu0 %v7065_v39  ;;  %v7061_v36 = vld [vmem:[%s14722_s7 + $0x650] sm:$0xff]  ;;  %v7058_v39 = vld [vmem:[%s14722_s7 + $0x638] sm:$0xff] }
 0x38a   :  { %v2859_v3 = vpop.f32.mrf.mxu1  ;;  %v2888_v4 = vpop.f32.mrf.mxu2  ;;  %3334 = vmatpush.msrb.mxu1 %v7105_v0  ;;  %3366 = vmatpush.msrb.mxu2 %v7068_v52  ;;  %v2609_v25 = vadd.f32 %v10804_v41, %v2522_v19  ;;  %v7062_v41 = vld [vmem:[%s14722_s7 + $0x658] sm:$0xff]  ;;  %v7057_v0 = vld [vmem:[%s14722_s7 + $0x630] sm:$0xff]  ;;  %v2525_v38 = vadd.f32 %v10718_v12, %v10714_v17  ;;  %v7055_v17 = vld [vmem:[%s14722_s7 + $0x620] sm:$0xff] }
 0x38b   :  { %v11031_v8 = vrot.slane %v2947_v2, 7  ;;  %v2927_v31 = vadd.f32 %v2915_v35, %v2690_v56  ;;  %v2860_v57 = vadd.f32 %v2859_v3, %v2830_v54  ;;  %v7103_v54 = vld [vmem:[%s14722_s7 + $0x7a0] sm:$0xff]  ;;  %3393 = vmatpush.msrb.mxu3 %v7104_v55  ;;  %v2693_v30 = vadd.f32 %v10830_v37, %v2664_v11  ;;  %3310 = vmatpush.msrb.mxu0 %v7063_v43  ;;  %v7096_v55 = vld [vmem:[%s14722_s7 + $0x768] sm:$0xff]  ;;  %v7093_v43 = vld [vmem:[%s14722_s7 + $0x750] sm:$0xff] }
 0x38c   :  { %3335 = vmatpush.msrb.mxu1 %v7103_v54  ;;  %v2833_v5 = vpop.f32.mrf.mxu0  ;;  %3367 = vmatpush.msrb.mxu2 %v7066_v18  ;;  %v2638_v3 = vadd.f32 %v10844_v45, %v2609_v25  ;;  %v7059_v37 = vld [vmem:[%s14722_s7 + $0x640] sm:$0xff]  ;;  %v7060_v45 = vld [vmem:[%s14722_s7 + $0x648] sm:$0xff]  ;;  %v2612_v12 = vadd.f32 %v10860_v1, %v2525_v38 }
 0x38d   :  { %2987 = vst [vmem:[#allocation2 + $0x30] sm:$0xfe] %v11031_v8  ;;  %v2940_v40 = vadd.f32 %v11016_v16, %v2927_v31  ;;  %v2928_v20 = vadd.f32 %v2860_v57, %v2635_v49  ;;  %3394 = vmatpush.msrb.mxu3 %v7102_v26  ;;  %3311 = vmatpush.msrb.mxu0 %v7061_v36  ;;  %v7097_v31 = vld [vmem:[%s14722_s7 + $0x770] sm:$0xff]  ;;  %v7056_v1 = vld [vmem:[%s14722_s7 + $0x628] sm:$0xff]  ;;  %v7091_v36 = vld [vmem:[%s14722_s7 + $0x740] sm:$0xff] }
 0x38e   :  { %3336 = vmatpush.msrb.mxu1 %v7101_v42  ;;  %3368 = vmatpush.msrb.mxu2 %v7064_v13  ;;  %v2580_v57 = vadd.f32 %v10716_v6, %v10712_v22  ;;  %v7095_v6 = vld [vmem:[%s14722_s7 + $0x760] sm:$0xff]  ;;  %v7094_v13 = vld [vmem:[%s14722_s7 + $0x758] sm:$0xff]  ;;  %v2641_v26 = vadd.f32 %v10900_v28, %v2612_v12 }
 0x38f   :  { %v2948_v14 = vmax.f32 %v2940_v40, 0.0  ;;  %v2941_v62 = vadd.f32 %v10970_v9, %v2928_v20  ;;  %3395 = vmatpush.msrb.mxu3 %v7100_v44  ;;  %3312 = vmatpush.msrb.mxu0 %v7059_v37  ;;  %v2583_v44 = vadd.f32 %v10730_v59, %v10720_v24  ;;  %v7089_v24 = vld [vmem:[%s14722_s7 + $0x730] sm:$0xff]  ;;  %v7207_v12 = vld [vmem:[%s14722_s7 + $0xae0] sm:$0xff] }
 0x390   :  { %v2917_v61 = vpop.f32.mrf.mxu3  ;;  %3337 = vmatpush.msrb.mxu1 %v7099_v51  ;;  %3369 = vmatpush.msrb.mxu2 %v7062_v41  ;;  %v2667_v20 = vadd.f32 %v10846_v47, %v2580_v57  ;;  %v7092_v41 = vld [vmem:[%s14722_s7 + $0x748] sm:$0xff] }
 0x391   :  { %v11088_v56 = vrot.slane %v2948_v14, 7  ;;  %v2949_v2 = vmax.f32 %v2941_v62, 0.0  ;;  %v2918_v35 = vadd.f32 %v2917_v61, %v2888_v4  ;;  %3396 = vmatpush.msrb.mxu3 %v7098_v7  ;;  %3313 = vmatpush.msrb.mxu0 %v7057_v0  ;;  %v7052_v7 = vld [vmem:[%s14722_s7 + $0x608] sm:$0xff]  ;;  %v7090_v0 = vld [vmem:[%s14722_s7 + $0x738] sm:$0xff] }
 0x392   :  { %v2862_v10 = vpop.f32.mrf.mxu1  ;;  %v2891_v40 = vpop.f32.mrf.mxu2  ;;  %3338 = vmatpush.msrb.mxu1 %v7097_v31  ;;  %3370 = vmatpush.msrb.mxu2 %v7060_v45  ;;  %v2696_v42 = vadd.f32 %v10886_v33, %v2667_v20  ;;  %v7053_v33 = vld [vmem:[%s14722_s7 + $0x610] sm:$0xff]  ;;  %v2670_v31 = vadd.f32 %v10902_v29, %v2583_v44  ;;  %v7087_v29 = vld [vmem:[%s14722_s7 + $0x720] sm:$0xff] }
 0x393   :  { %2988 = vst [vmem:[#allocation2] sm:$0xfe] %v11088_v56  ;;  %v2965_v23 = vrot.slane %v2949_v2, 7  ;;  %v2929_v63 = vadd.f32 %v2918_v35, %v2693_v30  ;;  %v2863_v49 = vadd.f32 %v2862_v10, %v2833_v5  ;;  %3397 = vmatpush.msrb.mxu3 %v7096_v55  ;;  %3314 = vmatpush.msrb.mxu0 %v7055_v17  ;;  %v7054_v35 = vld [vmem:[%s14722_s7 + $0x618] sm:$0xff] }
 0x394   :  { %v3072_v60 = vld [vmem:[#allocation2 + $0x30] sm:$0xfe]  ;;  %3339 = vmatpush.msrb.mxu1 %v7095_v6  ;;  %3371 = vmatpush.msrb.mxu2 %v7058_v39  ;;  %v2836_v25 = vpop.f32.mrf.mxu0 }
 0x395   :  { %v11117_v4 = vsel %vm71_vm0, %v11031_v8, %v2965_v23  ;;  %2991 = vst [vmem:[#allocation2 + $0x50] sm:$0x1] %v2965_v23  ;;  %v2942_v52 = vadd.f32 %v11016_v16, %v2929_v63  ;;  %v2930_v21 = vadd.f32 %v2863_v49, %v2638_v3  ;;  %v3092_v22 = vrot.slane %v3072_v60, 1  ;;  %3398 = vmatpush.msrb.mxu3 %v7094_v13  ;;  %v7051_v49 = vld [vmem:[%s14722_s7 + $0x600] sm:$0xff]  ;;  %v7086_v17 = vld [vmem:[%s14722_s7 + $0x718] sm:$0xff] }
 0x396   :  { %v3093_v8 = vrot.slane %v11117_v4, 1  ;;  %3340 = vmatpush.msrb.mxu1 %v7093_v43  ;;  %3372 = vmatpush.msrb.mxu2 %v7056_v1 }
 0x397   :  { %v2950_v54 = vmax.f32 %v2942_v52, 0.0  ;;  %v2943_v18 = vadd.f32 %v10970_v9, %v2930_v21  ;;  %3315 = vmatpush.msrb.mxu0 %v7053_v33  ;;  %3399 = vmatpush.msrb.mxu3 %v7092_v41 }
 0x398   :  { %v2920_v19 = vpop.f32.mrf.mxu3  ;;  %v3094_v47 = vsel %vm200_vm1, %v3092_v22, %v3093_v8  ;;  %3341 = vmatpush.msrb.mxu1 %v7091_v36  ;;  %3373 = vmatpush.msrb.mxu2 %v7054_v35  ;;  %v2699_v22 = vadd.f32 %v10945_v46, %v2670_v31  ;;  %v7085_v46 = vld [vmem:[%s14722_s7 + $0x710] sm:$0xff]  ;;  %v7203_v36 = vld [vmem:[%s14722_s7 + $0xac0] sm:$0xff] }
 0x399   :  { %v2967_v11 = vrot.slane %v2950_v54, 7  ;;  %v2951_v14 = vmax.f32 %v2943_v18, 0.0  ;;  %v2921_v62 = vadd.f32 %v2920_v19, %v2891_v40  ;;  %3201 = vmatmul.f32.vlgmr.msra.gmra.mxu0 %v3094_v47  ;;  %3259 = vmatmul.f32.vlgmr.msra.gmra.mxu2 %v3094_v47  ;;  %v7088_v40 = vld [vmem:[%s14722_s7 + $0x728] sm:$0xff]  ;;  %v7239_v35 = vld [vmem:[%s14722_s7 + $0xbe0] sm:$0xff]  ;;  %v7237_v31 = vld [vmem:[%s14722_s7 + $0xbd0] sm:$0xff] }
 0x39a   :  { %v2865_v5 = vpop.f32.mrf.mxu1  ;;  %v3073_v61 = vld [vmem:[#allocation2] sm:$0xfe]  ;;  %v2894_v52 = vpop.f32.mrf.mxu2  ;;  %3316 = vmatpush.msrb.mxu0 %v7051_v49  ;;  %3342 = vmatpush.msrb.mxu1 %v7089_v24  ;;  %v7199_v49 = vld [vmem:[%s14722_s7 + $0xaa0] sm:$0xff] }
 0x39b   :  { %v11160_v51 = vsel %vm71_vm0, %v11088_v56, %v2967_v11  ;;  %2992 = vst [vmem:[#allocation2 + $0x20] sm:$0x1] %v2967_v11  ;;  %v2969_v30 = vrot.slane %v2951_v14, 7  ;;  %v2931_v28 = vadd.f32 %v2921_v62, %v2696_v42  ;;  %v2866_v2 = vadd.f32 %v2865_v5, %v2836_v25  ;;  %3374 = vmatpush.msrb.mxu2 %v7052_v7  ;;  %v7208_v14 = vld [vmem:[%s14722_s7 + $0xae8] sm:$0xff]  ;;  %v7083_v62 = vld [vmem:[%s14722_s7 + $0x700] sm:$0xff]  ;;  %v7206_v5 = vld [vmem:[%s14722_s7 + $0xad8] sm:$0xff] }
 0x39c   :  { %v3095_v3 = vrot.slane %v3073_v61, 1  ;;  %v3096_v56 = vrot.slane %v11160_v51, 1  ;;  %v3074_v10 = vld [vmem:[#allocation2 + $0x50] sm:$0x1]  ;;  %3400 = vmatpush.msrb.mxu3 %v7090_v0  ;;  %3343 = vmatpush.msrb.mxu1 %v7087_v29  ;;  %v7241_v61 = vld [vmem:[%s14722_s7 + $0xbf0] sm:$0xff]  ;;  %v7235_v7 = vld [vmem:[%s14722_s7 + $0xbc0] sm:$0xff] }
 0x39d   :  { %2993 = vst [vmem:[#allocation2 + $0x8] sm:$0xfe] %v2969_v30  ;;  %v2944_v37 = vadd.f32 %v11016_v16, %v2931_v28  ;;  %v2932_v23 = vadd.f32 %v2866_v2, %v2641_v26  ;;  %v3098_v63 = vrot.slane %v3074_v10, 1  ;;  %v7205_v26 = vld [vmem:[%s14722_s7 + $0xad0] sm:$0xff]  ;;  %v7204_v2 = vld [vmem:[%s14722_s7 + $0xac8] sm:$0xff]  ;;  %v7198_v0 = vld [vmem:[%s14722_s7 + $0xa98] sm:$0xff] }
 0x39e   :  { %v3097_v59 = vsel %vm200_vm1, %v3095_v3, %v3096_v56  ;;  %3401 = vmatpush.msrb.mxu3 %v7088_v40  ;;  %3344 = vmatpush.msrb.mxu1 %v7085_v46  ;;  %v7201_v3 = vld [vmem:[%s14722_s7 + $0xab0] sm:$0xff]  ;;  %v7195_v29 = vld [vmem:[%s14722_s7 + $0xa80] sm:$0xff]  ;;  %v2999_v46 = vld [vmem:[#allocation2 + $0x30] sm:$0xff] }
 0x39f   :  { %v2952_v45 = vmax.f32 %v2944_v37, 0.0  ;;  %v2945_v57 = vadd.f32 %v10970_v9, %v2932_v23  ;;  %3230 = vmatmul.f32.vlgmr.msra.gmra.mxu1 %v3097_v59  ;;  %3288 = vmatmul.f32.vlgmr.msra.gmra.mxu3 %v3097_v59  ;;  %v3099_v60 = vsel %vm200_vm1, %v3093_v8, %v3098_v63  ;;  %v7209_v9 = vld [vmem:[%s14722_s7 + $0xaf0] sm:$0xff]  ;;  %v7210_v8 = vld [vmem:[%s14722_s7 + $0xaf8] sm:$0xff] }
 0x3a0   :  { %v2923_v21 = vpop.f32.mrf.mxu3  ;;  %3526 = vmatpush.msra.mxu0 %v7209_v9  ;;  %3584 = vmatpush.msra.mxu2 %v7210_v8  ;;  %v7202_v63 = vld [vmem:[%s14722_s7 + $0xab8] sm:$0xff]  ;;  %v7193_v40 = vld [vmem:[%s14722_s7 + $0xa70] sm:$0xff]  ;;  %v7231_v8 = vld [vmem:[%s14722_s7 + $0xba0] sm:$0xff] }
 0x3a1   :  { %v2970_v6 = vrot.slane %v2952_v45, 7  ;;  %v2953_v39 = vmax.f32 %v2945_v57, 0.0  ;;  %v2924_v38 = vadd.f32 %v2923_v21, %v2894_v52  ;;  %3204 = vmatmul.f32.gmra.mxu0 %v3099_v60  ;;  %3262 = vmatmul.f32.gmra.mxu2 %v3099_v60  ;;  %v7200_v45 = vld [vmem:[%s14722_s7 + $0xaa8] sm:$0xff]  ;;  %v7238_v57 = vld [vmem:[%s14722_s7 + $0xbd8] sm:$0xff]  ;;  %v7197_v60 = vld [vmem:[%s14722_s7 + $0xa90] sm:$0xff] }
 0x3a2   :  { %v3075_v20 = vld [vmem:[#allocation2 + $0x20] sm:$0x1]  ;;  %3402 = vmatpush.msrb.mxu3 %v7086_v17  ;;  %3527 = vmatpush.msra.mxu0 %v7207_v12  ;;  %v7230_v12 = vld [vmem:[%s14722_s7 + $0xb98] sm:$0xff] }
 0x3a3   :  { %2994 = vst [vmem:[#allocation2 + $0x38] sm:$0xfe] %v2970_v6  ;;  %v2971_v54 = vrot.slane %v2953_v39, 7  ;;  %v2933_v18 = vadd.f32 %v2924_v38, %v2699_v22  ;;  %v3100_v55 = vrot.slane %v3075_v20, 1  ;;  %3585 = vmatpush.msra.mxu2 %v7208_v14  ;;  %3345 = vmatpush.msrb.mxu1 %v7083_v62  ;;  %v7236_v21 = vld [vmem:[%s14722_s7 + $0xbc8] sm:$0xff]  ;;  %v7233_v22 = vld [vmem:[%s14722_s7 + $0xbb0] sm:$0xff] }
 0x3a4   :  { %v3076_v19 = vld [vmem:[#allocation2 + $0x8] sm:$0xfe]  ;;  %3528 = vmatpush.msra.mxu0 %v7205_v26  ;;  %v7234_v38 = vld [vmem:[%s14722_s7 + $0xbb8] sm:$0xff]  ;;  %v7192_v17 = vld [vmem:[%s14722_s7 + $0xa68] sm:$0xff] }
 0x3a5   :  { %v11213_v47 = vsel %vm71_vm0, %v2969_v30, %v2971_v54  ;;  %2997 = vst [vmem:[#allocation2 + $0x10] sm:$0x1] %v2971_v54  ;;  %v2946_v43 = vadd.f32 %v11016_v16, %v2933_v18  ;;  %v3101_v42 = vsel %vm200_vm1, %v3096_v56, %v3100_v55  ;;  %v3102_v11 = vrot.slane %v3076_v19, 1  ;;  %v7084_v16 = vld [vmem:[%s14722_s7 + $0x708] sm:$0xff]  ;;  %v7242_v30 = vld [vmem:[%s14722_s7 + $0xbf8] sm:$0xff]  ;;  %3586 = vmatpush.msra.mxu2 %v7206_v5  ;;  %v7191_v18 = vld [vmem:[%s14722_s7 + $0xa60] sm:$0xff] }
 0x3a6   :  { %v3103_v1 = vrot.slane %v11213_v47, 1  ;;  %3403 = vmatpush.msrb.mxu3 %v7084_v16  ;;  %3555 = vmatpush.msra.mxu1 %v7241_v61  ;;  %v7240_v56 = vld [vmem:[%s14722_s7 + $0xbe8] sm:$0xff]  ;;  %v7194_v20 = vld [vmem:[%s14722_s7 + $0xa78] sm:$0xff]  ;;  %v7229_v55 = vld [vmem:[%s14722_s7 + $0xb90] sm:$0xff] }
 0x3a7   :  { %v2954_v13 = vmax.f32 %v2946_v43, 0.0  ;;  %3233 = vmatmul.f32.gmra.mxu1 %v3101_v42  ;;  %3291 = vmatmul.f32.gmra.mxu3 %v3101_v42  ;;  %v7232_v54 = vld [vmem:[%s14722_s7 + $0xba8] sm:$0xff]  ;;  %v7189_v19 = vld [vmem:[%s14722_s7 + $0xa50] sm:$0xff]  ;;  %v7227_v43 = vld [vmem:[%s14722_s7 + $0xb80] sm:$0xff] }
 0x3a8   :  { %v3104_v25 = vsel %vm200_vm1, %v3102_v11, %v3103_v1  ;;  %3529 = vmatpush.msra.mxu0 %v7203_v36  ;;  %3613 = vmatpush.msra.mxu3 %v7242_v30  ;;  %v7190_v42 = vld [vmem:[%s14722_s7 + $0xa58] sm:$0xff]  ;;  %v7228_v11 = vld [vmem:[%s14722_s7 + $0xb88] sm:$0xff]  ;;  %v7187_v14 = vld [vmem:[%s14722_s7 + $0xa40] sm:$0xff] }
 0x3a9   :  { %v2973_v33 = vrot.slane %v2954_v13, 7  ;;  %3207 = vmatmul.f32.gmra.mxu0 %v3104_v25  ;;  %3265 = vmatmul.f32.gmra.mxu2 %v3104_v25  ;;  %v3000_v62 = vld [vmem:[#allocation2] sm:$0xff]  ;;  %v7226_v16 = vld [vmem:[%s14722_s7 + $0xb78] sm:$0xff]  ;;  %v7185_v26 = vld [vmem:[%s14722_s7 + $0xa30] sm:$0xff] }
 0x3aa   :  { %v3077_v28 = vld [vmem:[#allocation2 + $0x38] sm:$0xfe]  ;;  %3587 = vmatpush.msra.mxu2 %v7204_v2  ;;  %3556 = vmatpush.msra.mxu1 %v7239_v35  ;;  %v7188_v13 = vld [vmem:[%s14722_s7 + $0xa48] sm:$0xff]  ;;  %v7186_v5 = vld [vmem:[%s14722_s7 + $0xa38] sm:$0xff] }
 0x3ab   :  { %v11250_v41 = vsel %vm71_vm0, %v2970_v6, %v2973_v33  ;;  %2998 = vst [vmem:[#allocation2 + $0x40] sm:$0x1] %v2973_v33  ;;  %v3105_v44 = vrot.slane %v3077_v28, 1  ;;  %3530 = vmatpush.msra.mxu0 %v7201_v3  ;;  %3614 = vmatpush.msra.mxu3 %v7240_v56  ;;  %v7196_v6 = vld [vmem:[%s14722_s7 + $0xa88] sm:$0xff]  ;;  %v7223_v25 = vld [vmem:[%s14722_s7 + $0xb60] sm:$0xff]  ;;  %v7221_v36 = vld [vmem:[%s14722_s7 + $0xb50] sm:$0xff] }
 0x3ac   :  { %v3106_v10 = vrot.slane %v11250_v41, 1  ;;  %v3078_v37 = vld [vmem:[#allocation2 + $0x10] sm:$0x1]  ;;  %3588 = vmatpush.msra.mxu2 %v7202_v63  ;;  %3557 = vmatpush.msra.mxu1 %v7237_v31  ;;  %v7224_v61 = vld [vmem:[%s14722_s7 + $0xb68] sm:$0xff]  ;;  %v7183_v33 = vld [vmem:[%s14722_s7 + $0xa20] sm:$0xff] }
 0x3ad   :  { %v3108_v23 = vrot.slane %v3078_v37, 1  ;;  %3531 = vmatpush.msra.mxu0 %v7199_v49  ;;  %3615 = vmatpush.msra.mxu3 %v7238_v57  ;;  %v7184_v30 = vld [vmem:[%s14722_s7 + $0xa28] sm:$0xff]  ;;  %v7222_v28 = vld [vmem:[%s14722_s7 + $0xb58] sm:$0xff]  ;;  %v7181_v2 = vld [vmem:[%s14722_s7 + $0xa10] sm:$0xff] }
 0x3ae   :  { %v3107_v24 = vsel %vm200_vm1, %v3105_v44, %v3106_v10  ;;  %3589 = vmatpush.msra.mxu2 %v7200_v45  ;;  %3558 = vmatpush.msra.mxu1 %v7235_v7  ;;  %v7219_v35 = vld [vmem:[%s14722_s7 + $0xb40] sm:$0xff]  ;;  %v7182_v44 = vld [vmem:[%s14722_s7 + $0xa18] sm:$0xff]  ;;  %v3003_v3 = vld [vmem:[#allocation2 + $0x8] sm:$0xff] }
 0x3af   :  { %3236 = vmatmul.f32.gmra.mxu1 %v3107_v24  ;;  %3294 = vmatmul.f32.gmra.mxu3 %v3107_v24  ;;  %v3109_v59 = vsel %vm200_vm1, %v3103_v1, %v3108_v23  ;;  %v7225_v1 = vld [vmem:[%s14722_s7 + $0xb70] sm:$0xff]  ;;  %v7220_v56 = vld [vmem:[%s14722_s7 + $0xb48] sm:$0xff]  ;;  %v7218_v63 = vld [vmem:[%s14722_s7 + $0xb38] sm:$0xff] }
 0x3b0   :  { %3532 = vmatpush.msra.mxu0 %v7197_v60  ;;  %3590 = vmatpush.msra.mxu2 %v7198_v0  ;;  %v7217_v37 = vld [vmem:[%s14722_s7 + $0xb30] sm:$0xff]  ;;  %v7180_v23 = vld [vmem:[%s14722_s7 + $0xa08] sm:$0xff]  ;;  %v7215_v49 = vld [vmem:[%s14722_s7 + $0xb20] sm:$0xff] }
 0x3b1   :  { %3210 = vmatmul.f32.gmra.mxu0 %v3109_v59  ;;  %3268 = vmatmul.f32.gmra.mxu2 %v3109_v59  ;;  %v7216_v24 = vld [vmem:[%s14722_s7 + $0xb28] sm:$0xff]  ;;  %v7213_v59 = vld [vmem:[%s14722_s7 + $0xb10] sm:$0xff]  ;;  %v3004_v31 = vld [vmem:[#allocation2 + $0x38] sm:$0xff] }
 0x3b2   :  { %v3079_v52 = vld [vmem:[#allocation2 + $0x40] sm:$0x1]  ;;  %3616 = vmatpush.msra.mxu3 %v7236_v21  ;;  %3533 = vmatpush.msra.mxu0 %v7195_v29  ;;  %v7214_v45 = vld [vmem:[%s14722_s7 + $0xb18] sm:$0xff]  ;;  %v7211_v57 = vld [vmem:[%s14722_s7 + $0xb00] sm:$0xff] }
 0x3b3   :  { %v3110_v9 = vrot.slane %v3079_v52, 1  ;;  %3559 = vmatpush.msra.mxu1 %v7233_v22  ;;  %3591 = vmatpush.msra.mxu2 %v7196_v6  ;;  %v3417_v60 = vld [vmem:[#allocation2 + $0x30] sm:$0xfc]  ;;  %v7212_v7 = vld [vmem:[%s14722_s7 + $0xb08] sm:$0xff]  ;;  %v3434_v52 = vrot.slane %v11117_v4, 2  ;;  %v3437_v6 = vrot.slane %v11160_v51, 2 }
 0x3b4   :  { %3617 = vmatpush.msra.mxu3 %v7234_v38  ;;  %3534 = vmatpush.msra.mxu0 %v7193_v40  ;;  %v3433_v0 = vrot.slane %v3417_v60, 2  ;;  %v3418_v21 = vld [vmem:[#allocation2] sm:$0xfc]  ;;  %v7334_v60 = vld [vmem:[%s14718_s3 + $0xec0] sm:$0xff] }
 0x3b5   :  { %v3111_v39 = vsel %vm200_vm1, %v3106_v10, %v3110_v9  ;;  %3560 = vmatpush.msra.mxu1 %v7231_v8  ;;  %3592 = vmatpush.msra.mxu2 %v7194_v20  ;;  %v7179_v10 = vld [vmem:[%s14722_s7 + $0xa00] sm:$0xff]  ;;  %v3419_v9 = vld [vmem:[#allocation2 + $0x50] sm:$0x3]  ;;  %v3436_v22 = vrot.slane %v3418_v21, 2  ;;  %v3421_v8 = vld [vmem:[#allocation2 + $0x8] sm:$0xfc] }
 0x3b6   :  { %3618 = vmatpush.msra.mxu3 %v7232_v54  ;;  %3535 = vmatpush.msra.mxu0 %v7191_v18  ;;  %v3435_v29 = vsel %vm542_vm2, %v3433_v0, %v3434_v52  ;;  %v3444_v54 = vrot.slane %v11213_v47, 2  ;;  %v7335_v0 = vld [vmem:[%s14718_s3 + $0xec8] sm:$0xff] }
 0x3b7   :  { %3239 = vmatmul.f32.gmra.mxu1 %v3111_v39  ;;  %3297 = vmatmul.f32.gmra.mxu3 %v3111_v39  ;;  %v3439_v39 = vrot.slane %v3419_v9, 2  ;;  %v3438_v38 = vsel %vm542_vm2, %v3436_v22, %v3437_v6  ;;  %v7332_v9 = vld [vmem:[%s14718_s3 + $0xeb0] sm:$0xff]  ;;  %v7370_v22 = vld [vmem:[%s14718_s3 + $0xfe0] sm:$0xff] }
 0x3b8   :  { %3561 = vmatpush.msra.mxu1 %v7229_v55  ;;  %3593 = vmatpush.msra.mxu2 %v7192_v17  ;;  %v3423_v17 = vld [vmem:[#allocation2 + $0x10] sm:$0x3] }
 0x3b9   :  { %3317 = vmatmul.f32.vlgmr.msrb.gmra.mxu0 %v2999_v46  ;;  %3375 = vmatmul.f32.vlgmr.msrb.gmra.mxu2 %v2999_v46  ;;  %v3440_v40 = vsel %vm542_vm2, %v3434_v52, %v3439_v39  ;;  %v3443_v46 = vrot.slane %v3421_v8, 2  ;;  %v7373_v52 = vld [vmem:[%s14718_s3 + $0xff8] sm:$0xff]  ;;  %v7371_v39 = vld [vmem:[%s14718_s3 + $0xfe8] sm:$0xff] }
 0x3ba   :  { %3619 = vmatpush.msra.mxu3 %v7230_v12  ;;  %3536 = vmatpush.msra.mxu0 %v7189_v19  ;;  %v3447_v19 = vrot.slane %v11250_v41, 2  ;;  %v7331_v8 = vld [vmem:[%s14718_s3 + $0xea8] sm:$0xff] }
 0x3bb   :  { %3562 = vmatpush.msra.mxu1 %v7227_v43  ;;  %3594 = vmatpush.msra.mxu2 %v7190_v42  ;;  %v3445_v55 = vsel %vm542_vm2, %v3443_v46, %v3444_v54  ;;  %v3449_v43 = vrot.slane %v3423_v17, 2  ;;  %v7328_v46 = vld [vmem:[%s14718_s3 + $0xe90] sm:$0xff]  ;;  %v7326_v17 = vld [vmem:[%s14718_s3 + $0xe80] sm:$0xff] }
 0x3bc   :  { %3620 = vmatpush.msra.mxu3 %v7228_v11  ;;  %3537 = vmatpush.msra.mxu0 %v7187_v14  ;;  %v3424_v11 = vld [vmem:[#allocation2 + $0x40] sm:$0x3] }
 0x3bd   :  { %3563 = vmatpush.msra.mxu1 %v7225_v1  ;;  %3595 = vmatpush.msra.mxu2 %v7188_v13  ;;  %v3451_v14 = vrot.slane %v3424_v11, 2 }
 0x3be   :  { %3621 = vmatpush.msra.mxu3 %v7226_v16  ;;  %3538 = vmatpush.msra.mxu0 %v7185_v26 }
 0x3bf   :  { %3346 = vmatmul.f32.vlgmr.msrb.gmra.mxu1 %v3000_v62  ;;  %3404 = vmatmul.f32.vlgmr.msrb.gmra.mxu3 %v3000_v62  ;;  %v3452_v62 = vsel %vm542_vm2, %v3447_v19, %v3451_v14  ;;  %v7362_v14 = vld [vmem:[%s14718_s3 + $0xfa0] sm:$0xff] }
 0x3c0   :  { %3564 = vmatpush.msra.mxu1 %v7223_v25  ;;  %3596 = vmatpush.msra.mxu2 %v7186_v5 }
 0x3c1   :  { %3320 = vmatmul.f32.gmra.mxu0 %v11117_v4  ;;  %3378 = vmatmul.f32.gmra.mxu2 %v11117_v4  ;;  %v3420_v4 = vld [vmem:[#allocation2 + $0x20] sm:$0x3] }
 0x3c2   :  { %3622 = vmatpush.msra.mxu3 %v7224_v61  ;;  %3539 = vmatpush.msra.mxu0 %v7183_v33  ;;  %v3441_v20 = vrot.slane %v3420_v4, 2  ;;  %v7330_v4 = vld [vmem:[%s14718_s3 + $0xea0] sm:$0xff] }
 0x3c3   :  { %3565 = vmatpush.msra.mxu1 %v7221_v36  ;;  %3597 = vmatpush.msra.mxu2 %v7184_v30 }
 0x3c4   :  { %3623 = vmatpush.msra.mxu3 %v7222_v28  ;;  %3540 = vmatpush.msra.mxu0 %v7181_v2  ;;  %v3442_v18 = vsel %vm542_vm2, %v3437_v6, %v3441_v20  ;;  %v7333_v6 = vld [vmem:[%s14718_s3 + $0xeb8] sm:$0xff] }
 0x3c5   :  { %3566 = vmatpush.msra.mxu1 %v7219_v35  ;;  %3598 = vmatpush.msra.mxu2 %v7182_v44  ;;  %v7369_v20 = vld [vmem:[%s14718_s3 + $0xfd8] sm:$0xff] }
 0x3c6   :  { %3624 = vmatpush.msra.mxu3 %v7220_v56  ;;  %3541 = vmatpush.msra.mxu0 %v7179_v10 }
 0x3c7   :  { %3349 = vmatmul.f32.gmra.mxu1 %v11160_v51  ;;  %3407 = vmatmul.f32.gmra.mxu3 %v11160_v51  ;;  %v3422_v51 = vld [vmem:[#allocation2 + $0x38] sm:$0xfc] }
 0x3c8   :  { %3567 = vmatpush.msra.mxu1 %v7217_v37  ;;  %3599 = vmatpush.msra.mxu2 %v7180_v23  ;;  %v3446_v12 = vrot.slane %v3422_v51, 2  ;;  %v7340_v23 = vld [vmem:[%s14718_s3 + $0xef0] sm:$0xff]  ;;  %v7367_v51 = vld [vmem:[%s14718_s3 + $0xfc8] sm:$0xff] }
 0x3c9   :  { %3323 = vmatmul.f32.gmra.mxu0 %v3003_v3  ;;  %3381 = vmatmul.f32.gmra.mxu2 %v3003_v3 }
 0x3ca   :  { %3625 = vmatpush.msra.mxu3 %v7218_v63  ;;  %3568 = vmatpush.msra.mxu1 %v7215_v49  ;;  %v3448_v42 = vsel %vm542_vm2, %v3446_v12, %v3447_v19  ;;  %v7341_v63 = vld [vmem:[%s14718_s3 + $0xef8] sm:$0xff]  ;;  %v7364_v12 = vld [vmem:[%s14718_s3 + $0xfb0] sm:$0xff]  ;;  %v7327_v19 = vld [vmem:[%s14718_s3 + $0xe88] sm:$0xff] }
 0x3cb   :  { %3928 = vmatpush.msrb.mxu0 %v7340_v23  ;;  %3986 = vmatpush.msrb.mxu2 %v7341_v63  ;;  %v7363_v23 = vld [vmem:[%s14718_s3 + $0xfa8] sm:$0xff] }
 0x3cc   :  { %3626 = vmatpush.msra.mxu3 %v7216_v24  ;;  %3569 = vmatpush.msra.mxu1 %v7213_v59  ;;  %v7338_v24 = vld [vmem:[%s14718_s3 + $0xee0] sm:$0xff]  ;;  %v7339_v59 = vld [vmem:[%s14718_s3 + $0xee8] sm:$0xff] }
 0x3cd   :  { %3929 = vmatpush.msrb.mxu0 %v7338_v24  ;;  %3987 = vmatpush.msrb.mxu2 %v7339_v59  ;;  %v7322_v24 = vld [vmem:[%s14718_s3 + $0xe60] sm:$0xff]  ;;  %v7360_v59 = vld [vmem:[%s14718_s3 + $0xf90] sm:$0xff] }
 0x3ce   :  { %3627 = vmatpush.msra.mxu3 %v7214_v45  ;;  %3570 = vmatpush.msra.mxu1 %v7211_v57  ;;  %v7337_v45 = vld [vmem:[%s14718_s3 + $0xed8] sm:$0xff] }
 0x3cf   :  { %3352 = vmatmul.f32.gmra.mxu1 %v3004_v31  ;;  %3410 = vmatmul.f32.gmra.mxu3 %v3004_v31  ;;  %v7336_v31 = vld [vmem:[%s14718_s3 + $0xed0] sm:$0xff] }
 0x3d0   :  { %3628 = vmatpush.msra.mxu3 %v7212_v7  ;;  %3930 = vmatpush.msrb.mxu0 %v7336_v31  ;;  %v7372_v7 = vld [vmem:[%s14718_s3 + $0xff0] sm:$0xff]  ;;  %v7323_v31 = vld [vmem:[%s14718_s3 + $0xe68] sm:$0xff] }
 0x3d1   :  { %3326 = vmatmul.f32.gmra.mxu0 %v11213_v47  ;;  %3384 = vmatmul.f32.gmra.mxu2 %v11213_v47  ;;  %v3450_v47 = vsel %vm542_vm2, %v3444_v54, %v3449_v43  ;;  %v7366_v54 = vld [vmem:[%s14718_s3 + $0xfc0] sm:$0xff]  ;;  %v7365_v43 = vld [vmem:[%s14718_s3 + $0xfb8] sm:$0xff] }
 0x3d2   :  { %3988 = vmatpush.msrb.mxu2 %v7337_v45  ;;  %3931 = vmatpush.msrb.mxu0 %v7334_v60  ;;  %v7361_v45 = vld [vmem:[%s14718_s3 + $0xf98] sm:$0xff]  ;;  %v7320_v60 = vld [vmem:[%s14718_s3 + $0xe50] sm:$0xff] }
 0x3d3   :  { %3957 = vmatpush.msrb.mxu1 %v7372_v7  ;;  %4015 = vmatpush.msrb.mxu3 %v7373_v52  ;;  %v7358_v7 = vld [vmem:[%s14718_s3 + $0xf80] sm:$0xff]  ;;  %v7359_v52 = vld [vmem:[%s14718_s3 + $0xf88] sm:$0xff] }
 0x3d4   :  { %3989 = vmatpush.msrb.mxu2 %v7335_v0  ;;  %3932 = vmatpush.msrb.mxu0 %v7332_v9  ;;  %v7321_v0 = vld [vmem:[%s14718_s3 + $0xe58] sm:$0xff] }
 0x3d5   :  { %3958 = vmatpush.msrb.mxu1 %v7370_v22  ;;  %4016 = vmatpush.msrb.mxu3 %v7371_v39  ;;  %v7318_v22 = vld [vmem:[%s14718_s3 + $0xe40] sm:$0xff]  ;;  %v7319_v39 = vld [vmem:[%s14718_s3 + $0xe48] sm:$0xff] }
 0x3d6   :  { %3990 = vmatpush.msrb.mxu2 %v7333_v6  ;;  %3933 = vmatpush.msrb.mxu0 %v7330_v4  ;;  %v7356_v6 = vld [vmem:[%s14718_s3 + $0xf70] sm:$0xff]  ;;  %v7357_v4 = vld [vmem:[%s14718_s3 + $0xf78] sm:$0xff] }
 0x3d7   :  { %3355 = vmatmul.f32.gmra.mxu1 %v11250_v41  ;;  %3413 = vmatmul.f32.gmra.mxu3 %v11250_v41 }
 0x3d8   :  { %3991 = vmatpush.msrb.mxu2 %v7331_v8  ;;  %4017 = vmatpush.msrb.mxu3 %v7369_v20  ;;  %v7316_v20 = vld [vmem:[%s14718_s3 + $0xe30] sm:$0xff] }
 0x3d9   :  { %3542 = vmatmul.f32.vlgmr.msra.gmra.mxu0 %v3435_v29  ;;  %3600 = vmatmul.f32.vlgmr.msra.gmra.mxu2 %v3435_v29 }
 0x3da   :  { %3934 = vmatpush.msrb.mxu0 %v7328_v46  ;;  %4018 = vmatpush.msrb.mxu3 %v7367_v51  ;;  %v7354_v46 = vld [vmem:[%s14718_s3 + $0xf60] sm:$0xff] }
 0x3dc   :  { %3935 = vmatpush.msrb.mxu0 %v7326_v17  ;;  %4019 = vmatpush.msrb.mxu3 %v7365_v43  ;;  %v7314_v17 = vld [vmem:[%s14718_s3 + $0xe20] sm:$0xff]  ;;  %v7353_v43 = vld [vmem:[%s14718_s3 + $0xf58] sm:$0xff] }
 0x3de   :  { %4020 = vmatpush.msrb.mxu3 %v7363_v23 }
 0x3df   :  { %3571 = vmatmul.f32.vlgmr.msra.gmra.mxu1 %v3438_v38  ;;  %3629 = vmatmul.f32.vlgmr.msra.gmra.mxu3 %v3438_v38 }
 0x3e0   :  { %4021 = vmatpush.msrb.mxu3 %v7361_v45  ;;  %v7348_v45 = vld [vmem:[%s14718_s3 + $0xf30] sm:$0xff] }
 0x3e1   :  { %3545 = vmatmul.f32.gmra.mxu0 %v3440_v40  ;;  %3603 = vmatmul.f32.gmra.mxu2 %v3440_v40  ;;  %v7368_v40 = vld [vmem:[%s14718_s3 + $0xfd0] sm:$0xff] }
 0x3e2   :  { %3959 = vmatpush.msrb.mxu1 %v7368_v40  ;;  %4022 = vmatpush.msrb.mxu3 %v7359_v52 }
 0x3e4   :  { %3960 = vmatpush.msrb.mxu1 %v7366_v54  ;;  %4023 = vmatpush.msrb.mxu3 %v7357_v4  ;;  %v7317_v54 = vld [vmem:[%s14718_s3 + $0xe38] sm:$0xff] }
 0x3e6   :  { %3961 = vmatpush.msrb.mxu1 %v7364_v12  ;;  %v7352_v12 = vld [vmem:[%s14718_s3 + $0xf50] sm:$0xff] }
 0x3e7   :  { %3574 = vmatmul.f32.gmra.mxu1 %v3442_v18  ;;  %3632 = vmatmul.f32.gmra.mxu3 %v3442_v18  ;;  %v7329_v18 = vld [vmem:[%s14718_s3 + $0xe98] sm:$0xff] }
 0x3e8   :  { %3992 = vmatpush.msrb.mxu2 %v7329_v18  ;;  %3962 = vmatpush.msrb.mxu1 %v7362_v14  ;;  %v7355_v18 = vld [vmem:[%s14718_s3 + $0xf68] sm:$0xff]  ;;  %v7350_v14 = vld [vmem:[%s14718_s3 + $0xf40] sm:$0xff] }
 0x3e9   :  { %3548 = vmatmul.f32.gmra.mxu0 %v3445_v55  ;;  %3606 = vmatmul.f32.gmra.mxu2 %v3445_v55 }
 0x3ea   :  { %3993 = vmatpush.msrb.mxu2 %v7327_v19  ;;  %3963 = vmatpush.msrb.mxu1 %v7360_v59  ;;  %v7315_v19 = vld [vmem:[%s14718_s3 + $0xe28] sm:$0xff] }
 0x3eb   :  { %4024 = vmatpush.msrb.mxu3 %v7355_v18  ;;  %v7274_v18 = vld [vmem:[%s14718_s3 + $0xce0] sm:$0xff] }
 0x3ec   :  { %3964 = vmatpush.msrb.mxu1 %v7358_v7  ;;  %v7349_v7 = vld [vmem:[%s14718_s3 + $0xf38] sm:$0xff] }
 0x3ed   :  { %4025 = vmatpush.msrb.mxu3 %v7353_v43 }
 0x3ee   :  { %3965 = vmatpush.msrb.mxu1 %v7356_v6  ;;  %v7276_v6 = vld [vmem:[%s14718_s3 + $0xcf0] sm:$0xff] }
 0x3ef   :  { %3577 = vmatmul.f32.gmra.mxu1 %v3448_v42  ;;  %3635 = vmatmul.f32.gmra.mxu3 %v3448_v42 }
 0x3f0   :  { %3966 = vmatpush.msrb.mxu1 %v7354_v46  ;;  %v7277_v46 = vld [vmem:[%s14718_s3 + $0xcf8] sm:$0xff] }
 0x3f1   :  { %3551 = vmatmul.f32.gmra.mxu0 %v3450_v47  ;;  %3609 = vmatmul.f32.gmra.mxu2 %v3450_v47  ;;  %v7324_v47 = vld [vmem:[%s14718_s3 + $0xe70] sm:$0xff] }
 0x3f2   :  { %3936 = vmatpush.msrb.mxu0 %v7324_v47  ;;  %3967 = vmatpush.msrb.mxu1 %v7352_v12  ;;  %v7312_v47 = vld [vmem:[%s14718_s3 + $0xe10] sm:$0xff] }
 0x3f4   :  { %3937 = vmatpush.msrb.mxu0 %v7322_v24  ;;  %3968 = vmatpush.msrb.mxu1 %v7350_v14  ;;  %v7351_v24 = vld [vmem:[%s14718_s3 + $0xf48] sm:$0xff]  ;;  %v7272_v14 = vld [vmem:[%s14718_s3 + $0xcd0] sm:$0xff] }
 0x3f5   :  { %4026 = vmatpush.msrb.mxu3 %v7351_v24 }
 0x3f6   :  { %3938 = vmatpush.msrb.mxu0 %v7320_v60  ;;  %v11676_v60 = vld [vmem:[%s14720_s5 + $0x4] sm:$0x3]  ;;  %3969 = vmatpush.msrb.mxu1 %v7348_v45  ;;  %v7271_v45 = vld [vmem:[%s14718_s3 + $0xcc8] sm:$0xff] }
 0x3f7   :  { %3580 = vmatmul.f32.gmra.mxu1 %v3452_v62  ;;  %3638 = vmatmul.f32.gmra.mxu3 %v3452_v62  ;;  %v7325_v62 = vld [vmem:[%s14718_s3 + $0xe78] sm:$0xff]  ;;  %v11711_v12 = vperm.slane %v11676_v60, 0 }
 0x3f8   :  { %3994 = vmatpush.msrb.mxu2 %v7325_v62  ;;  %3939 = vmatpush.msrb.mxu0 %v7318_v22  ;;  %v7313_v62 = vld [vmem:[%s14718_s3 + $0xe18] sm:$0xff]  ;;  %v7346_v22 = vld [vmem:[%s14718_s3 + $0xf20] sm:$0xff] }
 0x3f9   :  { %4027 = vmatpush.msrb.mxu3 %v7349_v7  ;;  %3970 = vmatpush.msrb.mxu1 %v7346_v22  ;;  %v7309_v7 = vld [vmem:[%s14718_s3 + $0xdf8] sm:$0xff] }
 0x3fa   :  { %3995 = vmatpush.msrb.mxu2 %v7323_v31  ;;  %3940 = vmatpush.msrb.mxu0 %v7316_v20  ;;  %v7310_v31 = vld [vmem:[%s14718_s3 + $0xe00] sm:$0xff] }
 0x3fb   :  { %v11694_v20 = vld [vmem:[%s14721_s6 + $0x4] sm:$0x3] }
 0x3fc   :  { %3996 = vmatpush.msrb.mxu2 %v7321_v0  ;;  %3941 = vmatpush.msrb.mxu0 %v7314_v17 }
 0x3fe   :  { %3997 = vmatpush.msrb.mxu2 %v7319_v39  ;;  %3942 = vmatpush.msrb.mxu0 %v7312_v47 }
 0x400   :  { %3998 = vmatpush.msrb.mxu2 %v7317_v54  ;;  %3943 = vmatpush.msrb.mxu0 %v7310_v31  ;;  %v7344_v54 = vld [vmem:[%s14718_s3 + $0xf10] sm:$0xff] }
 0x401   :  { %3971 = vmatpush.msrb.mxu1 %v7344_v54 }
 0x402   :  { %3999 = vmatpush.msrb.mxu2 %v7315_v19  ;;  %4044 = vmatpush.msra.mxu0 %v7276_v6  ;;  %v7275_v19 = vld [vmem:[%s14718_s3 + $0xce8] sm:$0xff] }
 0x404   :  { %4000 = vmatpush.msrb.mxu2 %v7313_v62  ;;  %4045 = vmatpush.msra.mxu0 %v7274_v18  ;;  %v7266_v18 = vld [vmem:[%s14718_s3 + $0xca0] sm:$0xff] }
 0x406   :  { %4046 = vmatpush.msra.mxu0 %v7272_v14 }
 0x416   :  { %v11435_v1 = vpop.f32.mrf.mxu0 }
 0x41c   :  { %v11437_v13 = vpop.f32.mrf.mxu1  ;;  %v11439_v41 = vpop.f32.mrf.mxu2 }
 0x41d   :  { %v3232_v23 = vadd.f32 %v11437_v13, %v11435_v1  ;;  %v7311_v1 = vld [vmem:[%s14718_s3 + $0xe08] sm:$0xff] }
 0x41e   :  { %v11441_v16 = vpop.f32.mrf.mxu0  ;;  %4001 = vmatpush.msrb.mxu2 %v7311_v1 }
 0x420   :  { %4102 = vmatpush.msra.mxu2 %v7277_v46  ;;  %v7307_v46 = vld [vmem:[%s14718_s3 + $0xde8] sm:$0xff] }
 0x422   :  { %v11443_v26 = vpop.f32.mrf.mxu3  ;;  %4103 = vmatpush.msra.mxu2 %v7275_v19 }
 0x424   :  { %v11445_v25 = vpop.f32.mrf.mxu1  ;;  %v11447_v5 = vpop.f32.mrf.mxu2 }
 0x425   :  { %v3235_v43 = vadd.f32 %v11445_v25, %v11441_v16  ;;  %v11732_v16 = vperm.slane %v11694_v20, 0  ;;  %v7273_v25 = vld [vmem:[%s14718_s3 + $0xcd8] sm:$0xff] }
 0x426   :  { %v11449_v61 = vpop.f32.mrf.mxu0  ;;  %4104 = vmatpush.msra.mxu2 %v7273_v25  ;;  %v7300_v25 = vld [vmem:[%s14718_s3 + $0xdb0] sm:$0xff] }
 0x428   :  { %4105 = vmatpush.msra.mxu2 %v7271_v45  ;;  %v7301_v45 = vld [vmem:[%s14718_s3 + $0xdb8] sm:$0xff] }
 0x42a   :  { %v11451_v33 = vpop.f32.mrf.mxu3 }
 0x42b   :  { %v3293_v54 = vadd.f32 %v11451_v33, %v11447_v5  ;;  %v11785_v5 = vperm.slane %v11694_v20, 1  ;;  %v7302_v20 = vld [vmem:[%s14718_s3 + $0xdc0] sm:$0xff] }
 0x42c   :  { %v11453_v36 = vpop.f32.mrf.mxu1  ;;  %v11455_v30 = vpop.f32.mrf.mxu2 }
 0x42e   :  { %v11457_v28 = vpop.f32.mrf.mxu0 }
 0x432   :  { %v11459_v2 = vpop.f32.mrf.mxu3 }
 0x434   :  { %v11461_v35 = vpop.f32.mrf.mxu1  ;;  %v11463_v44 = vpop.f32.mrf.mxu2 }
 0x436   :  { %v11465_v3 = vpop.f32.mrf.mxu0 }
 0x437   :  { %v3319_v13 = vadd.f32 %v11465_v3, %v3232_v23  ;;  %v7347_v3 = vld [vmem:[%s14718_s3 + $0xf28] sm:$0xff] }
 0x438   :  { %4028 = vmatpush.msrb.mxu3 %v7347_v3  ;;  %v7268_v3 = vld [vmem:[%s14718_s3 + $0xcb0] sm:$0xff] }
 0x43a   :  { %v11467_v56 = vpop.f32.mrf.mxu3 }
 0x43c   :  { %v11469_v10 = vpop.f32.mrf.mxu1  ;;  %v11471_v37 = vpop.f32.mrf.mxu2 }
 0x43d   :  { %v3348_v39 = vadd.f32 %v11469_v10, %v3319_v13  ;;  %v7345_v10 = vld [vmem:[%s14718_s3 + $0xf18] sm:$0xff] }
 0x43e   :  { %v11479_v49 = vpop.f32.mrf.mxu0  ;;  %4029 = vmatpush.msrb.mxu3 %v7345_v10 }
 0x43f   :  { %v3322_v24 = vadd.f32 %v11479_v49, %v3235_v43  ;;  %v7305_v43 = vld [vmem:[%s14718_s3 + $0xdd8] sm:$0xff] }
 0x442   :  { %v11493_v57 = vpop.f32.mrf.mxu3 }
 0x444   :  { %v11507_v21 = vpop.f32.mrf.mxu1  ;;  %v11509_v29 = vpop.f32.mrf.mxu2 }
 0x446   :  { %v11523_v38 = vpop.f32.mrf.mxu0 }
 0x44a   :  { %v11549_v55 = vpop.f32.mrf.mxu3 }
 0x44c   :  { %v11563_v42 = vpop.f32.mrf.mxu1  ;;  %v11565_v11 = vpop.f32.mrf.mxu2 }
 0x44e   :  { %v11579_v63 = vpop.f32.mrf.mxu0 }
 0x452   :  { %v11605_v9 = vpop.f32.mrf.mxu3 }
 0x454   :  { %v11619_v40 = vpop.f32.mrf.mxu1  ;;  %v11621_v8 = vpop.f32.mrf.mxu2 }
 0x456   :  { %v3543_v51 = vpop.f32.mrf.mxu0 }
 0x45a   :  { %v11661_v59 = vpop.f32.mrf.mxu3 }
 0x45c   :  { %v3572_v0 = vpop.f32.mrf.mxu1  ;;  %v3601_v52 = vpop.f32.mrf.mxu2 }
 0x45d   :  { %v3573_v4 = vadd.f32 %v3572_v0, %v3543_v51  ;;  %v3290_v51 = vadd.f32 %v11443_v26, %v11439_v41  ;;  %v7342_v41 = vld [vmem:[%s14718_s3 + $0xf00] sm:$0xff]  ;;  %v7343_v26 = vld [vmem:[%s14718_s3 + $0xf08] sm:$0xff]  ;;  %v3351_v0 = vadd.f32 %v11507_v21, %v3322_v24  ;;  %v11765_v21 = vperm.slane %v11676_v60, 1  ;;  %v7304_v60 = vld [vmem:[%s14718_s3 + $0xdd0] sm:$0xff] }
 0x45e   :  { %v3546_v47 = vpop.f32.mrf.mxu0  ;;  %3972 = vmatpush.msrb.mxu1 %v7342_v41  ;;  %4030 = vmatpush.msrb.mxu3 %v7343_v26  ;;  %v3380_v41 = vadd.f32 %v11509_v29, %v3293_v54  ;;  %v7265_v26 = vld [vmem:[%s14718_s3 + $0xc98] sm:$0xff]  ;;  %v7303_v29 = vld [vmem:[%s14718_s3 + $0xdc8] sm:$0xff] }
 0x45f   :  { %v3642_v17 = vadd.f32 %v3573_v4, %v3348_v39  ;;  %v3377_v62 = vadd.f32 %v11471_v37, %v3290_v51  ;;  %v7270_v37 = vld [vmem:[%s14718_s3 + $0xcc0] sm:$0xff]  ;;  %v7267_v51 = vld [vmem:[%s14718_s3 + $0xca8] sm:$0xff]  ;;  %v7297_v54 = vld [vmem:[%s14718_s3 + $0xd98] sm:$0xff] }
 0x460   :  { %4047 = vmatpush.msra.mxu0 %v7270_v37  ;;  %4131 = vmatpush.msra.mxu3 %v7309_v7  ;;  %v7261_v7 = vld [vmem:[%s14718_s3 + $0xc78] sm:$0xff] }
 0x461   :  { %v11729_v23 = vadd.f32 %v3642_v17, %v10191_v34  ;;  %v7308_v34 = vld [vmem:[%s14718_s3 + $0xdf0] sm:$0xff]  ;;  %v3406_v1 = vadd.f32 %v11493_v57, %v3377_v62  ;;  %v7306_v57 = vld [vmem:[%s14718_s3 + $0xde0] sm:$0xff] }
 0x462   :  { %v3630_v31 = vpop.f32.mrf.mxu3  ;;  %4073 = vmatpush.msra.mxu1 %v7308_v34  ;;  %4048 = vmatpush.msra.mxu0 %v7268_v3  ;;  %v7262_v62 = vld [vmem:[%s14718_s3 + $0xc80] sm:$0xff]  ;;  %v7263_v34 = vld [vmem:[%s14718_s3 + $0xc88] sm:$0xff] }
 0x463   :  { %v3665_v49 = vmul.f32 %v11711_v12, %v11729_v23  ;;  %v3631_v13 = vadd.f32 %v3630_v31, %v3601_v52  ;;  %v7269_v52 = vld [vmem:[%s14718_s3 + $0xcb8] sm:$0xff]  ;;  %4132 = vmatpush.msra.mxu3 %v7307_v46  ;;  %v3409_v31 = vadd.f32 %v11549_v55, %v3380_v41 }
 0x464   :  { %v3575_v22 = vpop.f32.mrf.mxu1  ;;  %4074 = vmatpush.msra.mxu1 %v7306_v57  ;;  %v3604_v10 = vpop.f32.mrf.mxu2  ;;  %4106 = vmatpush.msra.mxu2 %v7269_v52  ;;  %v7258_v57 = vld [vmem:[%s14718_s3 + $0xc60] sm:$0xff]  ;;  %v7296_v52 = vld [vmem:[%s14718_s3 + $0xd90] sm:$0xff] }
 0x465   :  { %v3680_v6 = vadd.f32 %v11732_v16, %v3665_v49  ;;  %v3643_v39 = vadd.f32 %v3631_v13, %v3406_v1  ;;  %v3576_v4 = vadd.f32 %v3575_v22, %v3546_v47  ;;  %4049 = vmatpush.msra.mxu0 %v7266_v18  ;;  %v3238_v47 = vadd.f32 %v11453_v36, %v11449_v61  ;;  %v7260_v1 = vld [vmem:[%s14718_s3 + $0xc70] sm:$0xff]  ;;  %v7298_v13 = vld [vmem:[%s14718_s3 + $0xda0] sm:$0xff] }
 0x466   :  { %4075 = vmatpush.msra.mxu1 %v7304_v60  ;;  %4107 = vmatpush.msra.mxu2 %v7267_v51  ;;  %v7256_v18 = vld [vmem:[%s14718_s3 + $0xc50] sm:$0xff]  ;;  %v7294_v60 = vld [vmem:[%s14718_s3 + $0xd80] sm:$0xff] }
 0x467   :  { %v3688_v17 = vmax.f32 %v3680_v6, 0.0  ;;  %v11782_v19 = vadd.f32 %v3643_v39, %v10243_v15  ;;  %v3644_v33 = vadd.f32 %v3576_v4, %v3351_v0  ;;  %4133 = vmatpush.msra.mxu3 %v7305_v43  ;;  %v7264_v15 = vld [vmem:[%s14718_s3 + $0xc90] sm:$0xff]  ;;  %v3325_v24 = vadd.f32 %v11523_v38, %v3238_v47  ;;  %v7299_v0 = vld [vmem:[%s14718_s3 + $0xda8] sm:$0xff] }
 0x468   :  { %4050 = vmatpush.msra.mxu0 %v7264_v15  ;;  %4076 = vmatpush.msra.mxu1 %v7302_v20  ;;  %v3241_v47 = vadd.f32 %v11461_v35, %v11457_v28  ;;  %v7254_v28 = vld [vmem:[%s14718_s3 + $0xc40] sm:$0xff]  ;;  %v7292_v35 = vld [vmem:[%s14718_s3 + $0xd70] sm:$0xff] }
 0x469   :  { %v11802_v14 = vrot.slane %v3688_v17, 7  ;;  %v3666_v61 = vmul.f32 %v11765_v21, %v11782_v19  ;;  %v11807_v36 = vadd.f32 %v3644_v33, %v10268_v50  ;;  %v3549_v50 = vpop.f32.mrf.mxu0  ;;  %4108 = vmatpush.msra.mxu2 %v7265_v26  ;;  %4134 = vmatpush.msra.mxu3 %v7303_v29  ;;  %v3354_v22 = vadd.f32 %v11563_v42, %v3325_v24  ;;  %v7259_v42 = vld [vmem:[%s14718_s3 + $0xc68] sm:$0xff] }
 0x46a   :  { %v3633_v37 = vpop.f32.mrf.mxu3  ;;  %4051 = vmatpush.msra.mxu0 %v7262_v62  ;;  %4077 = vmatpush.msra.mxu1 %v7300_v25  ;;  %v7293_v25 = vld [vmem:[%s14718_s3 + $0xd78] sm:$0xff] }
 0x46b   :  { %3730 = vst [vmem:[#allocation2 + $0x30] sm:$0xfe] %v11802_v14  ;;  %v3681_v38 = vadd.f32 %v11785_v5, %v3666_v61  ;;  %v3667_v55 = vmul.f32 %v11711_v12, %v11807_v36  ;;  %v3634_v49 = vadd.f32 %v3633_v37, %v3604_v10  ;;  %4109 = vmatpush.msra.mxu2 %v7263_v34  ;;  %v7290_v37 = vld [vmem:[%s14718_s3 + $0xd60] sm:$0xff] }
 0x46c   :  { %v3578_v3 = vpop.f32.mrf.mxu1  ;;  %4135 = vmatpush.msra.mxu3 %v7301_v45  ;;  %4052 = vmatpush.msra.mxu0 %v7260_v1  ;;  %v3296_v10 = vadd.f32 %v11459_v2, %v11455_v30  ;;  %v7257_v30 = vld [vmem:[%s14718_s3 + $0xc58] sm:$0xff]  ;;  %v7295_v2 = vld [vmem:[%s14718_s3 + $0xd88] sm:$0xff]  ;;  %v3607_v15 = vpop.f32.mrf.mxu2 }
 0x46d   :  { %v3689_v6 = vmax.f32 %v3681_v38, 0.0  ;;  %v3682_v39 = vadd.f32 %v11732_v16, %v3667_v55  ;;  %v3645_v4 = vadd.f32 %v3634_v49, %v3409_v31  ;;  %v3579_v46 = vadd.f32 %v3578_v3, %v3549_v50  ;;  %4078 = vmatpush.msra.mxu1 %v7298_v13  ;;  %4110 = vmatpush.msra.mxu2 %v7261_v7  ;;  %v7252_v50 = vld [vmem:[%s14718_s3 + $0xc30] sm:$0xff] }
 0x46e   :  { %4136 = vmatpush.msra.mxu3 %v7299_v0  ;;  %4053 = vmatpush.msra.mxu0 %v7258_v57  ;;  %v3383_v41 = vadd.f32 %v11565_v11, %v3296_v10  ;;  %v3328_v11 = vadd.f32 %v11579_v63, %v3241_v47  ;;  %v7253_v0 = vld [vmem:[%s14718_s3 + $0xc38] sm:$0xff]  ;;  %v7250_v57 = vld [vmem:[%s14718_s3 + $0xc20] sm:$0xff] }
 0x46f   :  { %v11864_v51 = vrot.slane %v3689_v6, 7  ;;  %v3690_v17 = vmax.f32 %v3682_v39, 0.0  ;;  %v11867_v33 = vadd.f32 %v3645_v4, %v10332_v27  ;;  %v3646_v43 = vadd.f32 %v3579_v46, %v3354_v22  ;;  %4079 = vmatpush.msra.mxu1 %v7296_v52  ;;  %4111 = vmatpush.msra.mxu2 %v7259_v42 }
 0x470   :  { %4137 = vmatpush.msra.mxu3 %v7297_v54  ;;  %4054 = vmatpush.msra.mxu0 %v7256_v18  ;;  %v3412_v61 = vadd.f32 %v11605_v9, %v3383_v41  ;;  %v3357_v34 = vadd.f32 %v11619_v40, %v3328_v11  ;;  %v7291_v40 = vld [vmem:[%s14718_s3 + $0xd68] sm:$0xff]  ;;  %v3299_v22 = vadd.f32 %v11467_v56, %v11463_v44  ;;  %v7288_v44 = vld [vmem:[%s14718_s3 + $0xd50] sm:$0xff] }
 0x471   :  { %3731 = vst [vmem:[#allocation2] sm:$0xfe] %v11864_v51  ;;  %v3708_v27 = vrot.slane %v3690_v17, 7  ;;  %v3668_v20 = vmul.f32 %v11765_v21, %v11867_v33  ;;  %v11882_v26 = vadd.f32 %v3646_v43, %v10348_v48  ;;  %4080 = vmatpush.msra.mxu1 %v7294_v60  ;;  %4112 = vmatpush.msra.mxu2 %v7257_v30  ;;  %v7255_v48 = vld [vmem:[%s14718_s3 + $0xc48] sm:$0xff]  ;;  %v3552_v45 = vpop.f32.mrf.mxu0  ;;  %v7286_v17 = vld [vmem:[%s14718_s3 + $0xd40] sm:$0xff] }
 0x472   :  { %v3636_v29 = vpop.f32.mrf.mxu3  ;;  %v3815_v62 = vld [vmem:[#allocation2 + $0x30] sm:$0xfe]  ;;  %4138 = vmatpush.msra.mxu3 %v7295_v2  ;;  %4055 = vmatpush.msra.mxu0 %v7254_v28  ;;  %v7251_v56 = vld [vmem:[%s14718_s3 + $0xc28] sm:$0xff]  ;;  %v3386_v46 = vadd.f32 %v11621_v8, %v3299_v22  ;;  %v7248_v8 = vld [vmem:[%s14718_s3 + $0xc10] sm:$0xff] }
 0x473   :  { %v11900_v24 = vsel %vm71_vm0, %v11802_v14, %v3708_v27  ;;  %3734 = vst [vmem:[#allocation2 + $0x50] sm:$0x1] %v3708_v27  ;;  %v3683_v63 = vadd.f32 %v11785_v5, %v3668_v20  ;;  %v3669_v9 = vmul.f32 %v11711_v12, %v11882_v26  ;;  %v3637_v31 = vadd.f32 %v3636_v29, %v3607_v15  ;;  %v7287_v28 = vld [vmem:[%s14718_s3 + $0xd48] sm:$0xff]  ;;  %v7402_v22 = vld [vmem:[%s14718_s3 + $0x10e0] sm:$0xff] }
 0x474   :  { %v3581_v14 = vpop.f32.mrf.mxu1  ;;  %v3835_v1 = vrot.slane %v3815_v62, 1  ;;  %v3836_v38 = vrot.slane %v11900_v24, 1  ;;  %4081 = vmatpush.msra.mxu1 %v7292_v35  ;;  %4113 = vmatpush.msra.mxu2 %v7255_v48  ;;  %v3610_v43 = vpop.f32.mrf.mxu2  ;;  %v7246_v62 = vld [vmem:[%s14718_s3 + $0xc00] sm:$0xff]  ;;  %v7284_v48 = vld [vmem:[%s14718_s3 + $0xd30] sm:$0xff] }
 0x475   :  { %v3691_v55 = vmax.f32 %v3683_v63, 0.0  ;;  %v3684_v49 = vadd.f32 %v11732_v16, %v3669_v9  ;;  %v3647_v13 = vadd.f32 %v3637_v31, %v3412_v61  ;;  %v3582_v7 = vadd.f32 %v3581_v14, %v3552_v45  ;;  %4139 = vmatpush.msra.mxu3 %v7293_v25  ;;  %4056 = vmatpush.msra.mxu0 %v7252_v50  ;;  %v7247_v25 = vld [vmem:[%s14718_s3 + $0xc08] sm:$0xff]  ;;  %v7282_v50 = vld [vmem:[%s14718_s3 + $0xd20] sm:$0xff] }
 0x476   :  { %v3837_v3 = vsel %vm200_vm1, %v3835_v1, %v3836_v38  ;;  %4082 = vmatpush.msra.mxu1 %v7290_v37  ;;  %4114 = vmatpush.msra.mxu2 %v7253_v0  ;;  %v7404_v37 = vld [vmem:[%s14718_s3 + $0x10f0] sm:$0xff]  ;;  %v7283_v45 = vld [vmem:[%s14718_s3 + $0xd28] sm:$0xff] }
 0x477   :  { %v3710_v52 = vrot.slane %v3691_v55, 7  ;;  %v3692_v6 = vmax.f32 %v3684_v49, 0.0  ;;  %v11927_v39 = vadd.f32 %v3647_v13, %v10394_v32  ;;  %v3648_v4 = vadd.f32 %v3582_v7, %v3357_v34  ;;  %3944 = vmatmul.f32.vlgmr.msrb.gmra.mxu0 %v3837_v3  ;;  %4002 = vmatmul.f32.vlgmr.msrb.gmra.mxu2 %v3837_v3  ;;  %v7289_v32 = vld [vmem:[%s14718_s3 + $0xd58] sm:$0xff]  ;;  %v7280_v55 = vld [vmem:[%s14718_s3 + $0xd10] sm:$0xff] }
 0x478   :  { %v3816_v42 = vld [vmem:[#allocation2] sm:$0xfe]  ;;  %4140 = vmatpush.msra.mxu3 %v7291_v40  ;;  %4057 = vmatpush.msra.mxu0 %v7250_v57  ;;  %v7281_v40 = vld [vmem:[%s14718_s3 + $0xd18] sm:$0xff] }
 0x479   :  { %v11941_v54 = vsel %vm71_vm0, %v11864_v51, %v3710_v52  ;;  %3735 = vst [vmem:[#allocation2 + $0x20] sm:$0x1] %v3710_v52  ;;  %v3712_v10 = vrot.slane %v3692_v6, 7  ;;  %v3670_v18 = vmul.f32 %v11765_v21, %v11927_v39  ;;  %v11946_v60 = vadd.f32 %v3648_v4, %v10414_v53  ;;  %4083 = vmatpush.msra.mxu1 %v7288_v44  ;;  %v7278_v52 = vld [vmem:[%s14718_s3 + $0xd00] sm:$0xff]  ;;  %v7279_v4 = vld [vmem:[%s14718_s3 + $0xd08] sm:$0xff]  ;;  %v7400_v44 = vld [vmem:[%s14718_s3 + $0x10d0] sm:$0xff] }
 0x47a   :  { %v3415_v51 = vadd.f32 %v11661_v59, %v3386_v46  ;;  %v3639_v30 = vpop.f32.mrf.mxu3  ;;  %v3838_v2 = vrot.slane %v3816_v42, 1  ;;  %v3839_v47 = vrot.slane %v11941_v54, 1  ;;  %v3817_v41 = vld [vmem:[#allocation2 + $0x50] sm:$0x1]  ;;  %4115 = vmatpush.msra.mxu2 %v7251_v56  ;;  %4141 = vmatpush.msra.mxu3 %v7289_v32  ;;  %v7436_v42 = vld [vmem:[%s14718_s3 + $0x11f0] sm:$0xff] }
 0x47b   :  { %3736 = vst [vmem:[#allocation2 + $0x8] sm:$0xfe] %v3712_v10  ;;  %v3685_v53 = vadd.f32 %v11785_v5, %v3670_v18  ;;  %v3671_v15 = vmul.f32 %v11711_v12, %v11946_v60  ;;  %v3640_v27 = vadd.f32 %v3639_v30, %v3610_v43  ;;  %v3841_v20 = vrot.slane %v3817_v41, 1  ;;  %v7249_v59 = vld [vmem:[%s14718_s3 + $0xc18] sm:$0xff]  ;;  %4058 = vmatpush.msra.mxu0 %v7248_v8  ;;  %v7434_v43 = vld [vmem:[%s14718_s3 + $0x11e0] sm:$0xff]  ;;  %v7396_v41 = vld [vmem:[%s14718_s3 + $0x10b0] sm:$0xff] }
 0x47c   :  { %v3840_v35 = vsel %vm200_vm1, %v3838_v2, %v3839_v47  ;;  %4084 = vmatpush.msra.mxu1 %v7286_v17  ;;  %4116 = vmatpush.msra.mxu2 %v7249_v59  ;;  %v7401_v46 = vld [vmem:[%s14718_s3 + $0x10d8] sm:$0xff]  ;;  %v7394_v59 = vld [vmem:[%s14718_s3 + $0x10a0] sm:$0xff] }
 0x47d   :  { %v3693_v11 = vmax.f32 %v3685_v53, 0.0  ;;  %v3686_v61 = vadd.f32 %v11732_v16, %v3671_v15  ;;  %v3649_v29 = vadd.f32 %v3640_v27, %v3415_v51  ;;  %3973 = vmatmul.f32.vlgmr.msrb.gmra.mxu1 %v3840_v35  ;;  %4031 = vmatmul.f32.vlgmr.msrb.gmra.mxu3 %v3840_v35  ;;  %v3842_v12 = vsel %vm200_vm1, %v3836_v38, %v3841_v20  ;;  %v7285_v16 = vld [vmem:[%s14718_s3 + $0xd38] sm:$0xff]  ;;  %v7399_v51 = vld [vmem:[%s14718_s3 + $0x10c8] sm:$0xff] }
 0x47e   :  { %4142 = vmatpush.msra.mxu3 %v7287_v28  ;;  %4059 = vmatpush.msra.mxu0 %v7246_v62  ;;  %v7405_v38 = vld [vmem:[%s14718_s3 + $0x10f8] sm:$0xff]  ;;  %v7435_v20 = vld [vmem:[%s14718_s3 + $0x11e8] sm:$0xff]  ;;  %v7432_v28 = vld [vmem:[%s14718_s3 + $0x11d0] sm:$0xff] }
 0x47f   :  { %v3713_v63 = vrot.slane %v3693_v11, 7  ;;  %v3694_v9 = vmax.f32 %v3686_v61, 0.0  ;;  %v11981_v31 = vadd.f32 %v3649_v29, %v10450_v58  ;;  %3947 = vmatmul.f32.gmra.mxu0 %v3842_v12  ;;  %4005 = vmatmul.f32.gmra.mxu2 %v3842_v12  ;;  %v7437_v18 = vld [vmem:[%s14718_s3 + $0x11f8] sm:$0xff]  ;;  %v7395_v35 = vld [vmem:[%s14718_s3 + $0x10a8] sm:$0xff]  ;;  %v7392_v61 = vld [vmem:[%s14718_s3 + $0x1090] sm:$0xff] }
 0x480   :  { %v3818_v34 = vld [vmem:[#allocation2 + $0x20] sm:$0x1]  ;;  %4085 = vmatpush.msra.mxu1 %v7284_v48  ;;  %4117 = vmatpush.msra.mxu2 %v7247_v25  ;;  %v7397_v53 = vld [vmem:[%s14718_s3 + $0x10b8] sm:$0xff]  ;;  %v7430_v12 = vld [vmem:[%s14718_s3 + $0x11c0] sm:$0xff] }
 0x481   :  { %3737 = vst [vmem:[#allocation2 + $0x38] sm:$0xfe] %v3713_v63  ;;  %v3714_v58 = vrot.slane %v3694_v9, 7  ;;  %v3672_v14 = vmul.f32 %v11765_v21, %v11981_v31  ;;  %v3843_v1 = vrot.slane %v3818_v34, 1  ;;  %4143 = vmatpush.msra.mxu3 %v7285_v16  ;;  %4269 = vmatpush.msrb.mxu0 %v7404_v37  ;;  %v7433_v11 = vld [vmem:[%s14718_s3 + $0x11d8] sm:$0xff]  ;;  %v7431_v25 = vld [vmem:[%s14718_s3 + $0x11c8] sm:$0xff] }
 0x482   :  { %v3819_v49 = vld [vmem:[#allocation2 + $0x8] sm:$0xfe]  ;;  %4086 = vmatpush.msra.mxu1 %v7282_v50  ;;  %4327 = vmatpush.msrb.mxu2 %v7405_v38  ;;  %v7393_v62 = vld [vmem:[%s14718_s3 + $0x1098] sm:$0xff]  ;;  %v7390_v16 = vld [vmem:[%s14718_s3 + $0x1080] sm:$0xff] }
 0x483   :  { %v12001_v13 = vsel %vm71_vm0, %v3712_v10, %v3714_v58  ;;  %3740 = vst [vmem:[#allocation2 + $0x10] sm:$0x1] %v3714_v58  ;;  %v3687_v21 = vadd.f32 %v11785_v5, %v3672_v14  ;;  %v3844_v7 = vsel %vm200_vm1, %v3839_v47, %v3843_v1  ;;  %v3845_v0 = vrot.slane %v3819_v49, 1  ;;  %4144 = vmatpush.msra.mxu3 %v7283_v45  ;;  %v7403_v5 = vld [vmem:[%s14718_s3 + $0x10e8] sm:$0xff]  ;;  %v7398_v10 = vld [vmem:[%s14718_s3 + $0x10c0] sm:$0xff]  ;;  %v7428_v9 = vld [vmem:[%s14718_s3 + $0x11b0] sm:$0xff] }
 0x484   :  { %v3846_v3 = vrot.slane %v12001_v13, 1  ;;  %4087 = vmatpush.msra.mxu1 %v7280_v55  ;;  %4270 = vmatpush.msrb.mxu0 %v7402_v22  ;;  %v7391_v50 = vld [vmem:[%s14718_s3 + $0x1088] sm:$0xff]  ;;  %v7429_v37 = vld [vmem:[%s14718_s3 + $0x11b8] sm:$0xff]  ;;  %v7388_v34 = vld [vmem:[%s14718_s3 + $0x1070] sm:$0xff] }
 0x485   :  { %v3695_v57 = vmax.f32 %v3687_v21, 0.0  ;;  %3976 = vmatmul.f32.gmra.mxu1 %v3844_v7  ;;  %4034 = vmatmul.f32.gmra.mxu3 %v3844_v7  ;;  %v3742_v45 = vld [vmem:[#allocation2 + $0x30] sm:$0xff]  ;;  %v7426_v58 = vld [vmem:[%s14718_s3 + $0x11a0] sm:$0xff]  ;;  %v7427_v1 = vld [vmem:[%s14718_s3 + $0x11a8] sm:$0xff] }
 0x486   :  { %v3847_v6 = vsel %vm200_vm1, %v3845_v0, %v3846_v3  ;;  %4145 = vmatpush.msra.mxu3 %v7281_v40  ;;  %4328 = vmatpush.msrb.mxu2 %v7403_v5  ;;  %v7389_v14 = vld [vmem:[%s14718_s3 + $0x1078] sm:$0xff]  ;;  %v7386_v38 = vld [vmem:[%s14718_s3 + $0x1060] sm:$0xff]  ;;  %v7424_v55 = vld [vmem:[%s14718_s3 + $0x1190] sm:$0xff] }
 0x487   :  { %v3716_v56 = vrot.slane %v3695_v57, 7  ;;  %3950 = vmatmul.f32.gmra.mxu0 %v3847_v6  ;;  %4008 = vmatmul.f32.gmra.mxu2 %v3847_v6  ;;  %v7387_v49 = vld [vmem:[%s14718_s3 + $0x1068] sm:$0xff]  ;;  %v7425_v21 = vld [vmem:[%s14718_s3 + $0x1198] sm:$0xff]  ;;  %v7384_v7 = vld [vmem:[%s14718_s3 + $0x1050] sm:$0xff] }
 0x488   :  { %v3820_v32 = vld [vmem:[#allocation2 + $0x38] sm:$0xfe]  ;;  %4088 = vmatpush.msra.mxu1 %v7278_v52  ;;  %4146 = vmatpush.msra.mxu3 %v7279_v4  ;;  %v7385_v40 = vld [vmem:[%s14718_s3 + $0x1058] sm:$0xff]  ;;  %v3743_v22 = vld [vmem:[#allocation2] sm:$0xff] }
 0x489   :  { %v12038_v8 = vsel %vm71_vm0, %v3713_v63, %v3716_v56  ;;  %3741 = vst [vmem:[#allocation2 + $0x40] sm:$0x1] %v3716_v56  ;;  %v3848_v17 = vrot.slane %v3820_v32, 1  ;;  %4271 = vmatpush.msrb.mxu0 %v7400_v44  ;;  %4329 = vmatpush.msrb.mxu2 %v7401_v46  ;;  %v7422_v0 = vld [vmem:[%s14718_s3 + $0x1180] sm:$0xff]  ;;  %v7420_v5 = vld [vmem:[%s14718_s3 + $0x1170] sm:$0xff]  ;;  %v7383_v52 = vld [vmem:[%s14718_s3 + $0x1048] sm:$0xff] }
 0x48a   :  { %v3849_v30 = vrot.slane %v12038_v8, 1  ;;  %v3821_v2 = vld [vmem:[#allocation2 + $0x10] sm:$0x1]  ;;  %4298 = vmatpush.msrb.mxu1 %v7436_v42  ;;  %4356 = vmatpush.msrb.mxu3 %v7437_v18  ;;  %v7382_v57 = vld [vmem:[%s14718_s3 + $0x1040] sm:$0xff]  ;;  %v7380_v4 = vld [vmem:[%s14718_s3 + $0x1030] sm:$0xff] }
 0x48b   :  { %v3851_v47 = vrot.slane %v3821_v2, 1  ;;  %4272 = vmatpush.msrb.mxu0 %v7398_v10  ;;  %4330 = vmatpush.msrb.mxu2 %v7399_v51  ;;  %v7421_v6 = vld [vmem:[%s14718_s3 + $0x1178] sm:$0xff]  ;;  %v7418_v44 = vld [vmem:[%s14718_s3 + $0x1160] sm:$0xff]  ;;  %v7419_v46 = vld [vmem:[%s14718_s3 + $0x1168] sm:$0xff] }
 0x48c   :  { %v3850_v15 = vsel %vm200_vm1, %v3848_v17, %v3849_v30  ;;  %4299 = vmatpush.msrb.mxu1 %v7434_v43  ;;  %4357 = vmatpush.msrb.mxu3 %v7435_v20  ;;  %v7381_v56 = vld [vmem:[%s14718_s3 + $0x1038] sm:$0xff]  ;;  %v7378_v42 = vld [vmem:[%s14718_s3 + $0x1020] sm:$0xff]  ;;  %v7416_v32 = vld [vmem:[%s14718_s3 + $0x1150] sm:$0xff] }
 0x48d   :  { %3979 = vmatmul.f32.gmra.mxu1 %v3850_v15  ;;  %4037 = vmatmul.f32.gmra.mxu3 %v3850_v15  ;;  %v3852_v27 = vsel %vm200_vm1, %v3846_v3, %v3851_v47  ;;  %v7423_v3 = vld [vmem:[%s14718_s3 + $0x1188] sm:$0xff]  ;;  %v7417_v18 = vld [vmem:[%s14718_s3 + $0x1158] sm:$0xff]  ;;  %v7376_v17 = vld [vmem:[%s14718_s3 + $0x1010] sm:$0xff] }
 0x48e   :  { %4273 = vmatpush.msrb.mxu0 %v7396_v41  ;;  %4331 = vmatpush.msrb.mxu2 %v7397_v53  ;;  %v7379_v10 = vld [vmem:[%s14718_s3 + $0x1028] sm:$0xff]  ;;  %v3746_v51 = vld [vmem:[#allocation2 + $0x8] sm:$0xff]  ;;  %v7414_v43 = vld [vmem:[%s14718_s3 + $0x1140] sm:$0xff] }
 0x48f   :  { %3953 = vmatmul.f32.gmra.mxu0 %v3852_v27  ;;  %4011 = vmatmul.f32.gmra.mxu2 %v3852_v27  ;;  %v7415_v2 = vld [vmem:[%s14718_s3 + $0x1148] sm:$0xff]  ;;  %v7374_v47 = vld [vmem:[%s14718_s3 + $0x1000] sm:$0xff]  ;;  %v7412_v41 = vld [vmem:[%s14718_s3 + $0x1130] sm:$0xff] }
 0x490   :  { %v3822_v29 = vld [vmem:[#allocation2 + $0x40] sm:$0x1]  ;;  %4274 = vmatpush.msrb.mxu0 %v7394_v59  ;;  %4300 = vmatpush.msrb.mxu1 %v7432_v28  ;;  %v7413_v15 = vld [vmem:[%s14718_s3 + $0x1138] sm:$0xff]  ;;  %v7410_v27 = vld [vmem:[%s14718_s3 + $0x1120] sm:$0xff] }
 0x491   :  { %v3853_v48 = vrot.slane %v3822_v29, 1  ;;  %4332 = vmatpush.msrb.mxu2 %v7395_v35  ;;  %4358 = vmatpush.msrb.mxu3 %v7433_v11  ;;  %v7375_v53 = vld [vmem:[%s14718_s3 + $0x1008] sm:$0xff]  ;;  %v3747_v59 = vld [vmem:[#allocation2 + $0x38] sm:$0xff]  ;;  %v7408_v28 = vld [vmem:[%s14718_s3 + $0x1110] sm:$0xff] }
 0x492   :  { %4275 = vmatpush.msrb.mxu0 %v7392_v61  ;;  %4301 = vmatpush.msrb.mxu1 %v7430_v12  ;;  %v7411_v20 = vld [vmem:[%s14718_s3 + $0x1128] sm:$0xff]  ;;  %v7409_v35 = vld [vmem:[%s14718_s3 + $0x1118] sm:$0xff]  ;;  %v7406_v61 = vld [vmem:[%s14718_s3 + $0x1100] sm:$0xff] }
 0x493   :  { %v3854_v63 = vsel %vm200_vm1, %v3849_v30, %v3853_v48  ;;  %4333 = vmatpush.msrb.mxu2 %v7393_v62  ;;  %4359 = vmatpush.msrb.mxu3 %v7431_v25  ;;  %v7377_v30 = vld [vmem:[%s14718_s3 + $0x1018] sm:$0xff]  ;;  %v7407_v29 = vld [vmem:[%s14718_s3 + $0x1108] sm:$0xff]  ;;  %v4177_v62 = vrot.slane %v11900_v24, 2  ;;  %s6463_s3 = sshll.u32 %s14727_s12, 4  ;;  %s6464_s3 = int_to_ptr.hbm [resolvable:$true] %s6463_s3 }
 0x494   :  { %4276 = vmatpush.msrb.mxu0 %v7390_v16  ;;  %4302 = vmatpush.msrb.mxu1 %v7428_v9  ;;  %v4160_v11 = vld [vmem:[#allocation2 + $0x30] sm:$0xfc]  ;;  %v4161_v48 = vld [vmem:[#allocation2] sm:$0xfc]  ;;  %v4162_v16 = vld [vmem:[#allocation2 + $0x50] sm:$0x3] }
 0x495   :  { %3982 = vmatmul.f32.gmra.mxu1 %v3854_v63  ;;  %4040 = vmatmul.f32.gmra.mxu3 %v3854_v63  ;;  %v4176_v12 = vrot.slane %v4160_v11, 2  ;;  %v4179_v63 = vrot.slane %v4161_v48, 2  ;;  %v4180_v9 = vrot.slane %v11941_v54, 2  ;;  %v7526_v11 = vld [vmem:[%s14722_s7 + $0xec0] sm:$0xff] }
 0x496   :  { %4334 = vmatpush.msrb.mxu2 %v7391_v50  ;;  %4360 = vmatpush.msrb.mxu3 %v7429_v37  ;;  %v4182_v50 = vrot.slane %v4162_v16, 2  ;;  %v7562_v48 = vld [vmem:[%s14722_s7 + $0xfe0] sm:$0xff]  ;;  %v7563_v16 = vld [vmem:[%s14722_s7 + $0xfe8] sm:$0xff] }
 0x497   :  { %4060 = vmatmul.f32.vlgmr.msra.gmra.mxu0 %v3742_v45  ;;  %4118 = vmatmul.f32.vlgmr.msra.gmra.mxu2 %v3742_v45  ;;  %v4178_v25 = vsel %vm542_vm2, %v4176_v12, %v4177_v62  ;;  %v4181_v37 = vsel %vm542_vm2, %v4179_v63, %v4180_v9  ;;  %v4164_v45 = vld [vmem:[#allocation2 + $0x8] sm:$0xfc]  ;;  %v7565_v12 = vld [vmem:[%s14722_s7 + $0xff8] sm:$0xff] }
 0x498   :  { %4277 = vmatpush.msrb.mxu0 %v7388_v34  ;;  %4303 = vmatpush.msrb.mxu1 %v7426_v58  ;;  %v4183_v34 = vsel %vm542_vm2, %v4177_v62, %v4182_v50  ;;  %v7524_v62 = vld [vmem:[%s14722_s7 + $0xeb0] sm:$0xff] }
 0x499   :  { %4335 = vmatpush.msrb.mxu2 %v7389_v14  ;;  %4361 = vmatpush.msrb.mxu3 %v7427_v1  ;;  %v4186_v14 = vrot.slane %v4164_v45, 2  ;;  %v4187_v1 = vrot.slane %v12001_v13, 2  ;;  %v7560_v50 = vld [vmem:[%s14722_s7 + $0xfd0] sm:$0xff] }
 0x49a   :  { %4278 = vmatpush.msrb.mxu0 %v7386_v38  ;;  %4304 = vmatpush.msrb.mxu1 %v7424_v55 }
 0x49b   :  { %4336 = vmatpush.msrb.mxu2 %v7387_v49  ;;  %4362 = vmatpush.msrb.mxu3 %v7425_v21  ;;  %v4188_v55 = vsel %vm542_vm2, %v4186_v14, %v4187_v1  ;;  %v4166_v49 = vld [vmem:[#allocation2 + $0x10] sm:$0x3]  ;;  %v7558_v14 = vld [vmem:[%s14722_s7 + $0xfc0] sm:$0xff] }
 0x49c   :  { %4279 = vmatpush.msrb.mxu0 %v7384_v7  ;;  %4305 = vmatpush.msrb.mxu1 %v7422_v0  ;;  %v4190_v7 = vrot.slane %v12038_v8, 2  ;;  %v4192_v0 = vrot.slane %v4166_v49, 2  ;;  %v7556_v49 = vld [vmem:[%s14722_s7 + $0xfb0] sm:$0xff] }
 0x49d   :  { %4089 = vmatmul.f32.vlgmr.msra.gmra.mxu1 %v3743_v22  ;;  %4147 = vmatmul.f32.vlgmr.msra.gmra.mxu3 %v3743_v22  ;;  %v4167_v22 = vld [vmem:[#allocation2 + $0x40] sm:$0x3] }
 0x49e   :  { %4337 = vmatpush.msrb.mxu2 %v7385_v40  ;;  %4363 = vmatpush.msrb.mxu3 %v7423_v3  ;;  %v4194_v3 = vrot.slane %v4167_v22, 2  ;;  %v7517_v22 = vld [vmem:[%s14722_s7 + $0xe78] sm:$0xff] }
 0x49f   :  { %4063 = vmatmul.f32.gmra.mxu0 %v11900_v24  ;;  %4121 = vmatmul.f32.gmra.mxu2 %v11900_v24  ;;  %v4163_v24 = vld [vmem:[#allocation2 + $0x20] sm:$0x3] }
 0x4a0   :  { %4280 = vmatpush.msrb.mxu0 %v7382_v57  ;;  %4306 = vmatpush.msrb.mxu1 %v7420_v5  ;;  %v4184_v58 = vrot.slane %v4163_v24, 2  ;;  %v4195_v57 = vsel %vm542_vm2, %v4190_v7, %v4194_v3  ;;  %v7561_v24 = vld [vmem:[%s14722_s7 + $0xfd8] sm:$0xff] }
 0x4a1   :  { %4338 = vmatpush.msrb.mxu2 %v7383_v52  ;;  %4364 = vmatpush.msrb.mxu3 %v7421_v6 }
 0x4a2   :  { %4281 = vmatpush.msrb.mxu0 %v7380_v4  ;;  %4307 = vmatpush.msrb.mxu1 %v7418_v44  ;;  %v4185_v38 = vsel %vm542_vm2, %v4180_v9, %v4184_v58  ;;  %v7522_v9 = vld [vmem:[%s14722_s7 + $0xea0] sm:$0xff]  ;;  %v7520_v58 = vld [vmem:[%s14722_s7 + $0xe90] sm:$0xff] }
 0x4a3   :  { %4339 = vmatpush.msrb.mxu2 %v7381_v56  ;;  %4365 = vmatpush.msrb.mxu3 %v7419_v46 }
 0x4a4   :  { %4282 = vmatpush.msrb.mxu0 %v7378_v42  ;;  %4308 = vmatpush.msrb.mxu1 %v7416_v32 }
 0x4a5   :  { %4092 = vmatmul.f32.gmra.mxu1 %v11941_v54  ;;  %4150 = vmatmul.f32.gmra.mxu3 %v11941_v54  ;;  %v4165_v54 = vld [vmem:[#allocation2 + $0x38] sm:$0xfc] }
 0x4a6   :  { %4340 = vmatpush.msrb.mxu2 %v7379_v10  ;;  %4366 = vmatpush.msrb.mxu3 %v7417_v18  ;;  %v4189_v21 = vrot.slane %v4165_v54, 2 }
 0x4a7   :  { %4066 = vmatmul.f32.gmra.mxu0 %v3746_v51  ;;  %4124 = vmatmul.f32.gmra.mxu2 %v3746_v51 }
 0x4a8   :  { %4283 = vmatpush.msrb.mxu0 %v7376_v17  ;;  %4309 = vmatpush.msrb.mxu1 %v7414_v43  ;;  %v4191_v40 = vsel %vm542_vm2, %v4189_v21, %v4190_v7  ;;  %v7519_v21 = vld [vmem:[%s14722_s7 + $0xe88] sm:$0xff]  ;;  %v7557_v7 = vld [vmem:[%s14722_s7 + $0xfb8] sm:$0xff] }
 0x4a9   :  { %4341 = vmatpush.msrb.mxu2 %v7377_v30  ;;  %4367 = vmatpush.msrb.mxu3 %v7415_v2  ;;  %v7532_v2 = vld [vmem:[%s14722_s7 + $0xef0] sm:$0xff] }
 0x4aa   :  { %4284 = vmatpush.msrb.mxu0 %v7374_v47  ;;  %4310 = vmatpush.msrb.mxu1 %v7412_v41  ;;  %v7533_v47 = vld [vmem:[%s14722_s7 + $0xef8] sm:$0xff] }
 0x4ab   :  { %4342 = vmatpush.msrb.mxu2 %v7375_v53  ;;  %4368 = vmatpush.msrb.mxu3 %v7413_v15  ;;  %v7530_v53 = vld [vmem:[%s14722_s7 + $0xee0] sm:$0xff]  ;;  %v7531_v15 = vld [vmem:[%s14722_s7 + $0xee8] sm:$0xff] }
 0x4ac   :  { %4311 = vmatpush.msrb.mxu1 %v7410_v27  ;;  %4644 = vmatpush.msra.mxu0 %v7532_v2  ;;  %v7552_v2 = vld [vmem:[%s14722_s7 + $0xf90] sm:$0xff] }
 0x4ad   :  { %4095 = vmatmul.f32.gmra.mxu1 %v3747_v59  ;;  %4153 = vmatmul.f32.gmra.mxu3 %v3747_v59  ;;  %v7528_v59 = vld [vmem:[%s14722_s7 + $0xed0] sm:$0xff] }
 0x4ae   :  { %4369 = vmatpush.msrb.mxu3 %v7411_v20  ;;  %4312 = vmatpush.msrb.mxu1 %v7408_v28  ;;  %v7529_v28 = vld [vmem:[%s14722_s7 + $0xed8] sm:$0xff] }
 0x4af   :  { %4069 = vmatmul.f32.gmra.mxu0 %v12001_v13  ;;  %4127 = vmatmul.f32.gmra.mxu2 %v12001_v13  ;;  %v4193_v13 = vsel %vm542_vm2, %v4187_v1, %v4192_v0  ;;  %v7521_v1 = vld [vmem:[%s14722_s7 + $0xe98] sm:$0xff]  ;;  %v7516_v0 = vld [vmem:[%s14722_s7 + $0xe70] sm:$0xff] }
 0x4b0   :  { %4370 = vmatpush.msrb.mxu3 %v7409_v35  ;;  %4313 = vmatpush.msrb.mxu1 %v7406_v61  ;;  %v7564_v61 = vld [vmem:[%s14722_s7 + $0xff0] sm:$0xff] }
 0x4b1   :  { %4702 = vmatpush.msra.mxu2 %v7533_v47  ;;  %4645 = vmatpush.msra.mxu0 %v7530_v53  ;;  %v7515_v47 = vld [vmem:[%s14722_s7 + $0xe68] sm:$0xff]  ;;  %v7553_v53 = vld [vmem:[%s14722_s7 + $0xf98] sm:$0xff] }
 0x4b2   :  { %4371 = vmatpush.msrb.mxu3 %v7407_v29  ;;  %v7527_v29 = vld [vmem:[%s14722_s7 + $0xec8] sm:$0xff]  ;;  %4673 = vmatpush.msra.mxu1 %v7564_v61  ;;  %v7513_v61 = vld [vmem:[%s14722_s7 + $0xe58] sm:$0xff] }
 0x4b3   :  { %4703 = vmatpush.msra.mxu2 %v7531_v15  ;;  %4646 = vmatpush.msra.mxu0 %v7528_v59 }
 0x4b4   :  { %4731 = vmatpush.msra.mxu3 %v7565_v12  ;;  %4674 = vmatpush.msra.mxu1 %v7562_v48  ;;  %v7548_v48 = vld [vmem:[%s14722_s7 + $0xf70] sm:$0xff] }
 0x4b5   :  { %4098 = vmatmul.f32.gmra.mxu1 %v12038_v8  ;;  %4156 = vmatmul.f32.gmra.mxu3 %v12038_v8 }
 0x4b6   :  { %4704 = vmatpush.msra.mxu2 %v7529_v28  ;;  %4647 = vmatpush.msra.mxu0 %v7526_v11  ;;  %v7512_v28 = vld [vmem:[%s14722_s7 + $0xe50] sm:$0xff]  ;;  %v7550_v11 = vld [vmem:[%s14722_s7 + $0xf80] sm:$0xff] }
 0x4b7   :  { %4285 = vmatmul.f32.vlgmr.msrb.gmra.mxu0 %v4178_v25  ;;  %4343 = vmatmul.f32.vlgmr.msrb.gmra.mxu2 %v4178_v25  ;;  %v7525_v25 = vld [vmem:[%s14722_s7 + $0xeb8] sm:$0xff] }
 0x4b8   :  { %4705 = vmatpush.msra.mxu2 %v7527_v29  ;;  %4648 = vmatpush.msra.mxu0 %v7524_v62  ;;  %v7551_v29 = vld [vmem:[%s14722_s7 + $0xf88] sm:$0xff]  ;;  %v7510_v62 = vld [vmem:[%s14722_s7 + $0xe40] sm:$0xff] }
 0x4b9   :  { %4732 = vmatpush.msra.mxu3 %v7563_v16  ;;  %4675 = vmatpush.msra.mxu1 %v7560_v50  ;;  %v7549_v16 = vld [vmem:[%s14722_s7 + $0xf78] sm:$0xff]  ;;  %v7546_v50 = vld [vmem:[%s14722_s7 + $0xf60] sm:$0xff] }
 0x4ba   :  { %4706 = vmatpush.msra.mxu2 %v7525_v25  ;;  %4649 = vmatpush.msra.mxu0 %v7522_v9  ;;  %v7511_v25 = vld [vmem:[%s14722_s7 + $0xe48] sm:$0xff]  ;;  %v7508_v9 = vld [vmem:[%s14722_s7 + $0xe30] sm:$0xff] }
 0x4bb   :  { %4733 = vmatpush.msra.mxu3 %v7561_v24  ;;  %4676 = vmatpush.msra.mxu1 %v7558_v14  ;;  %v7547_v24 = vld [vmem:[%s14722_s7 + $0xf68] sm:$0xff]  ;;  %v7506_v14 = vld [vmem:[%s14722_s7 + $0xe20] sm:$0xff] }
 0x4bc   :  { %4650 = vmatpush.msra.mxu0 %v7520_v58 }
 0x4bd   :  { %4314 = vmatmul.f32.vlgmr.msrb.gmra.mxu1 %v4181_v37  ;;  %4372 = vmatmul.f32.vlgmr.msrb.gmra.mxu3 %v4181_v37  ;;  %v7523_v37 = vld [vmem:[%s14722_s7 + $0xea8] sm:$0xff] }
 0x4be   :  { %4707 = vmatpush.msra.mxu2 %v7523_v37  ;;  %4677 = vmatpush.msra.mxu1 %v7556_v49  ;;  %v7509_v37 = vld [vmem:[%s14722_s7 + $0xe38] sm:$0xff] }
 0x4bf   :  { %4288 = vmatmul.f32.gmra.mxu0 %v4183_v34  ;;  %4346 = vmatmul.f32.gmra.mxu2 %v4183_v34 }
 0x4c0   :  { %4708 = vmatpush.msra.mxu2 %v7521_v1  ;;  %v7544_v1 = vld [vmem:[%s14722_s7 + $0xf50] sm:$0xff] }
 0x4c2   :  { %4709 = vmatpush.msra.mxu2 %v7519_v21 }
 0x4c4   :  { %4710 = vmatpush.msra.mxu2 %v7517_v22  ;;  %v7543_v22 = vld [vmem:[%s14722_s7 + $0xf48] sm:$0xff] }
 0x4c5   :  { %4317 = vmatmul.f32.gmra.mxu1 %v4185_v38  ;;  %4375 = vmatmul.f32.gmra.mxu3 %v4185_v38  ;;  %v7559_v38 = vld [vmem:[%s14722_s7 + $0xfc8] sm:$0xff] }
 0x4c6   :  { %4734 = vmatpush.msra.mxu3 %v7559_v38  ;;  %4711 = vmatpush.msra.mxu2 %v7515_v47  ;;  %v7507_v38 = vld [vmem:[%s14722_s7 + $0xe28] sm:$0xff] }
 0x4c7   :  { %4291 = vmatmul.f32.gmra.mxu0 %v4188_v55  ;;  %4349 = vmatmul.f32.gmra.mxu2 %v4188_v55  ;;  %v7518_v55 = vld [vmem:[%s14722_s7 + $0xe80] sm:$0xff]  ;;  %v7503_v47 = vld [vmem:[%s14722_s7 + $0xe08] sm:$0xff] }
 0x4c8   :  { %4651 = vmatpush.msra.mxu0 %v7518_v55  ;;  %4735 = vmatpush.msra.mxu3 %v7557_v7  ;;  %v7545_v55 = vld [vmem:[%s14722_s7 + $0xf58] sm:$0xff]  ;;  %v7504_v7 = vld [vmem:[%s14722_s7 + $0xe10] sm:$0xff] }
 0x4c9   :  { %4712 = vmatpush.msra.mxu2 %v7513_v61  ;;  %v7468_v61 = vld [vmem:[%s14722_s7 + $0xcf0] sm:$0xff] }
 0x4ca   :  { %4652 = vmatpush.msra.mxu0 %v7516_v0  ;;  %v7542_v0 = vld [vmem:[%s14722_s7 + $0xf40] sm:$0xff] }
 0x4cb   :  { %4713 = vmatpush.msra.mxu2 %v7511_v25 }
 0x4cd   :  { %4320 = vmatmul.f32.gmra.mxu1 %v4191_v40  ;;  %4378 = vmatmul.f32.gmra.mxu3 %v4191_v40  ;;  %v7554_v40 = vld [vmem:[%s14722_s7 + $0xfa0] sm:$0xff] }
 0x4ce   :  { %4678 = vmatpush.msra.mxu1 %v7554_v40  ;;  %4714 = vmatpush.msra.mxu2 %v7509_v37  ;;  %v7505_v40 = vld [vmem:[%s14722_s7 + $0xe18] sm:$0xff] }
 0x4cf   :  { %4294 = vmatmul.f32.gmra.mxu0 %v4193_v13  ;;  %4352 = vmatmul.f32.gmra.mxu2 %v4193_v13  ;;  %v7555_v13 = vld [vmem:[%s14722_s7 + $0xfa8] sm:$0xff] }
 0x4d0   :  { %4736 = vmatpush.msra.mxu3 %v7555_v13  ;;  %4679 = vmatpush.msra.mxu1 %v7552_v2  ;;  %v7540_v2 = vld [vmem:[%s14722_s7 + $0xf30] sm:$0xff] }
 0x4d1   :  { %4715 = vmatpush.msra.mxu2 %v7507_v38 }
 0x4d2   :  { %4737 = vmatpush.msra.mxu3 %v7553_v53  ;;  %4680 = vmatpush.msra.mxu1 %v7550_v11  ;;  %v7541_v53 = vld [vmem:[%s14722_s7 + $0xf38] sm:$0xff]  ;;  %v7539_v11 = vld [vmem:[%s14722_s7 + $0xf28] sm:$0xff] }
 0x4d3   :  { %4716 = vmatpush.msra.mxu2 %v7505_v40  ;;  %v7462_v40 = vld [vmem:[%s14722_s7 + $0xcc0] sm:$0xff] }
 0x4d4   :  { %4738 = vmatpush.msra.mxu3 %v7551_v29  ;;  %4681 = vmatpush.msra.mxu1 %v7548_v48  ;;  %v7469_v48 = vld [vmem:[%s14722_s7 + $0xcf8] sm:$0xff] }
 0x4d5   :  { %4323 = vmatmul.f32.gmra.mxu1 %v4195_v57  ;;  %4381 = vmatmul.f32.gmra.mxu3 %v4195_v57  ;;  %v7514_v57 = vld [vmem:[%s14722_s7 + $0xe60] sm:$0xff] }
 0x4d6   :  { %4653 = vmatpush.msra.mxu0 %v7514_v57  ;;  %4739 = vmatpush.msra.mxu3 %v7549_v16  ;;  %v7502_v57 = vld [vmem:[%s14722_s7 + $0xe00] sm:$0xff]  ;;  %v7536_v16 = vld [vmem:[%s14722_s7 + $0xf10] sm:$0xff] }
 0x4d7   :  { %4682 = vmatpush.msra.mxu1 %v7546_v50  ;;  %4717 = vmatpush.msra.mxu2 %v7503_v47  ;;  %v7467_v50 = vld [vmem:[%s14722_s7 + $0xce8] sm:$0xff] }
 0x4d8   :  { %4654 = vmatpush.msra.mxu0 %v7512_v28  ;;  %4740 = vmatpush.msra.mxu3 %v7547_v24  ;;  %v7538_v28 = vld [vmem:[%s14722_s7 + $0xf20] sm:$0xff] }
 0x4d9   :  { %4683 = vmatpush.msra.mxu1 %v7544_v1  ;;  %4818 = vmatpush.msrb.mxu2 %v7469_v48  ;;  %v7535_v1 = vld [vmem:[%s14722_s7 + $0xf08] sm:$0xff]  ;;  %v7458_v48 = vld [vmem:[%s14722_s7 + $0xca0] sm:$0xff] }
 0x4da   :  { %4655 = vmatpush.msra.mxu0 %v7510_v62  ;;  %4741 = vmatpush.msra.mxu3 %v7545_v55  ;;  %v7245_v62 = vld [vmem:[%s14719_s4 + $0x4] sm:$0x3] }
 0x4db   :  { %4684 = vmatpush.msra.mxu1 %v7542_v0  ;;  %4819 = vmatpush.msrb.mxu2 %v7467_v50  ;;  %v7465_v0 = vld [vmem:[%s14722_s7 + $0xcd8] sm:$0xff] }
 0x4dc   :  { %4656 = vmatpush.msra.mxu0 %v7508_v9  ;;  %4742 = vmatpush.msra.mxu3 %v7543_v22  ;;  %v7500_v22 = vld [vmem:[%s14722_s7 + $0xdf0] sm:$0xff]  ;;  %v7497_v50 = vld [vmem:[%s14722_s7 + $0xdd8] sm:$0xff] }
 0x4dd   :  { %4685 = vmatpush.msra.mxu1 %v7540_v2  ;;  %4820 = vmatpush.msrb.mxu2 %v7465_v0  ;;  %v7501_v2 = vld [vmem:[%s14722_s7 + $0xdf8] sm:$0xff] }
 0x4de   :  { %4657 = vmatpush.msra.mxu0 %v7506_v14  ;;  %4743 = vmatpush.msra.mxu3 %v7541_v53  ;;  %v7534_v14 = vld [vmem:[%s14722_s7 + $0xf00] sm:$0xff] }
 0x4df   :  { %4686 = vmatpush.msra.mxu1 %v7538_v28  ;;  %v7460_v28 = vld [vmem:[%s14722_s7 + $0xcb0] sm:$0xff] }
 0x4e0   :  { %4658 = vmatpush.msra.mxu0 %v7504_v7  ;;  %4744 = vmatpush.msra.mxu3 %v7539_v11  ;;  %v12507_v7 = vperm.slane %v7245_v62, 0 }
 0x4e1   :  { %4687 = vmatpush.msra.mxu1 %v7536_v16  ;;  %v7459_v16 = vld [vmem:[%s14722_s7 + $0xca8] sm:$0xff] }
 0x4e2   :  { %4659 = vmatpush.msra.mxu0 %v7502_v57 }
 0x4e3   :  { %4688 = vmatpush.msra.mxu1 %v7534_v14  ;;  %v7456_v14 = vld [vmem:[%s14722_s7 + $0xc90] sm:$0xff] }
 0x4e4   :  { %4760 = vmatpush.msrb.mxu0 %v7468_v61 }
 0x4e5   :  { %4789 = vmatpush.msrb.mxu1 %v7500_v22  ;;  %v7455_v22 = vld [vmem:[%s14722_s7 + $0xc88] sm:$0xff] }
 0x4f4   :  { %v12229_v5 = vpop.f32.mrf.mxu0 }
 0x4fa   :  { %v12231_v52 = vpop.f32.mrf.mxu1  ;;  %v12233_v8 = vpop.f32.mrf.mxu2 }
 0x4fb   :  { %v3975_v29 = vadd.f32 %v12231_v52, %v12229_v5  ;;  %v7537_v5 = vld [vmem:[%s14722_s7 + $0xf18] sm:$0xff]  ;;  %v7466_v52 = vld [vmem:[%s14722_s7 + $0xce0] sm:$0xff] }
 0x4fc   :  { %v12235_v6 = vpop.f32.mrf.mxu0  ;;  %4761 = vmatpush.msrb.mxu0 %v7466_v52  ;;  %4745 = vmatpush.msra.mxu3 %v7537_v5 }
 0x4fe   :  { %4746 = vmatpush.msra.mxu3 %v7535_v1 }
 0x500   :  { %v12237_v4 = vpop.f32.mrf.mxu3  ;;  %4847 = vmatpush.msrb.mxu3 %v7501_v2  ;;  %v7493_v2 = vld [vmem:[%s14722_s7 + $0xdb8] sm:$0xff] }
 0x502   :  { %v12239_v44 = vpop.f32.mrf.mxu1  ;;  %v12241_v56 = vpop.f32.mrf.mxu2 }
 0x503   :  { %v3978_v47 = vadd.f32 %v12239_v44, %v12235_v6  ;;  %v7499_v6 = vld [vmem:[%s14722_s7 + $0xde8] sm:$0xff] }
 0x504   :  { %v12243_v46 = vpop.f32.mrf.mxu0  ;;  %4848 = vmatpush.msrb.mxu3 %v7499_v6  ;;  %v7489_v6 = vld [vmem:[%s14722_s7 + $0xd98] sm:$0xff] }
 0x506   :  { %4849 = vmatpush.msrb.mxu3 %v7497_v50  ;;  %v7487_v50 = vld [vmem:[%s14722_s7 + $0xd88] sm:$0xff] }
 0x508   :  { %v12245_v42 = vpop.f32.mrf.mxu3 }
 0x50a   :  { %v12247_v32 = vpop.f32.mrf.mxu1  ;;  %v12249_v10 = vpop.f32.mrf.mxu2 }
 0x50c   :  { %v12251_v18 = vpop.f32.mrf.mxu0 }
 0x510   :  { %v12253_v17 = vpop.f32.mrf.mxu3 }
 0x512   :  { %v12255_v51 = vpop.f32.mrf.mxu1  ;;  %v12257_v43 = vpop.f32.mrf.mxu2 }
 0x514   :  { %v12259_v30 = vpop.f32.mrf.mxu0 }
 0x515   :  { %v4062_v9 = vadd.f32 %v12259_v30, %v3975_v29  ;;  %v7464_v30 = vld [vmem:[%s14722_s7 + $0xcd0] sm:$0xff] }
 0x516   :  { %4762 = vmatpush.msrb.mxu0 %v7464_v30 }
 0x518   :  { %v12267_v41 = vpop.f32.mrf.mxu3  ;;  %4763 = vmatpush.msrb.mxu0 %v7462_v40  ;;  %v7454_v40 = vld [vmem:[%s14722_s7 + $0xc80] sm:$0xff] }
 0x51a   :  { %v12275_v27 = vpop.f32.mrf.mxu1  ;;  %v12277_v20 = vpop.f32.mrf.mxu2  ;;  %4764 = vmatpush.msrb.mxu0 %v7460_v28  ;;  %v7491_v28 = vld [vmem:[%s14722_s7 + $0xda8] sm:$0xff] }
 0x51b   :  { %v4091_v38 = vadd.f32 %v12275_v27, %v4062_v9  ;;  %v7463_v27 = vld [vmem:[%s14722_s7 + $0xcc8] sm:$0xff] }
 0x51c   :  { %v12285_v35 = vpop.f32.mrf.mxu0  ;;  %4821 = vmatpush.msrb.mxu2 %v7463_v27  ;;  %4765 = vmatpush.msrb.mxu0 %v7458_v48  ;;  %v4036_v27 = vadd.f32 %v12245_v42, %v12241_v56  ;;  %v3981_v56 = vadd.f32 %v12247_v32, %v12243_v46  ;;  %v7453_v42 = vld [vmem:[%s14722_s7 + $0xc78] sm:$0xff]  ;;  %v7488_v46 = vld [vmem:[%s14722_s7 + $0xd90] sm:$0xff]  ;;  %v7451_v32 = vld [vmem:[%s14722_s7 + $0xc68] sm:$0xff] }
 0x51d   :  { %v4065_v44 = vadd.f32 %v12285_v35, %v3978_v47  ;;  %v12553_v35 = vperm.slane %v7245_v62, 1  ;;  %v7457_v62 = vld [vmem:[%s14722_s7 + $0xc98] sm:$0xff]  ;;  %v7452_v47 = vld [vmem:[%s14722_s7 + $0xc70] sm:$0xff] }
 0x51e   :  { %4766 = vmatpush.msrb.mxu0 %v7456_v14  ;;  %v7448_v48 = vld [vmem:[%s14722_s7 + $0xc50] sm:$0xff] }
 0x520   :  { %v12311_v63 = vpop.f32.mrf.mxu3  ;;  %4767 = vmatpush.msrb.mxu0 %v7454_v40  ;;  %v7444_v40 = vld [vmem:[%s14722_s7 + $0xc30] sm:$0xff] }
 0x522   :  { %v12325_v34 = vpop.f32.mrf.mxu1  ;;  %v12327_v45 = vpop.f32.mrf.mxu2  ;;  %4768 = vmatpush.msrb.mxu0 %v7452_v47 }
 0x524   :  { %v12341_v54 = vpop.f32.mrf.mxu0 }
 0x528   :  { %v12367_v3 = vpop.f32.mrf.mxu3 }
 0x52a   :  { %v12381_v15 = vpop.f32.mrf.mxu1  ;;  %v12383_v59 = vpop.f32.mrf.mxu2 }
 0x52c   :  { %v12397_v12 = vpop.f32.mrf.mxu0 }
 0x530   :  { %v12423_v58 = vpop.f32.mrf.mxu3 }
 0x532   :  { %v12437_v49 = vpop.f32.mrf.mxu1  ;;  %v12439_v21 = vpop.f32.mrf.mxu2 }
 0x534   :  { %v4286_v13 = vpop.f32.mrf.mxu0 }
 0x538   :  { %v12482_v25 = vpop.f32.mrf.mxu3 }
 0x53a   :  { %v4315_v37 = vpop.f32.mrf.mxu1  ;;  %v4344_v24 = vpop.f32.mrf.mxu2 }
 0x53b   :  { %v4316_v55 = vadd.f32 %v4315_v37, %v4286_v13  ;;  %v4033_v13 = vadd.f32 %v12237_v4, %v12233_v8  ;;  %v7498_v8 = vld [vmem:[%s14722_s7 + $0xde0] sm:$0xff]  ;;  %v7461_v4 = vld [vmem:[%s14722_s7 + $0xcb8] sm:$0xff] }
 0x53c   :  { %v4289_v53 = vpop.f32.mrf.mxu0  ;;  %4790 = vmatpush.msrb.mxu1 %v7498_v8  ;;  %4822 = vmatpush.msrb.mxu2 %v7461_v4  ;;  %v7450_v8 = vld [vmem:[%s14722_s7 + $0xc60] sm:$0xff]  ;;  %v4123_v4 = vadd.f32 %v12327_v45, %v4036_v27 }
 0x53d   :  { %v4385_v57 = vadd.f32 %v4316_v55, %v4091_v38  ;;  %v4120_v11 = vadd.f32 %v12277_v20, %v4033_v13  ;;  %v7496_v20 = vld [vmem:[%s14722_s7 + $0xdd0] sm:$0xff]  ;;  %v7495_v55 = vld [vmem:[%s14722_s7 + $0xdc8] sm:$0xff]  ;;  %4769 = vmatpush.msrb.mxu0 %v7450_v8 }
 0x53e   :  { %4791 = vmatpush.msrb.mxu1 %v7496_v20  ;;  %4823 = vmatpush.msrb.mxu2 %v7459_v16  ;;  %v7486_v20 = vld [vmem:[%s14722_s7 + $0xd80] sm:$0xff]  ;;  %v4152_v16 = vadd.f32 %v12367_v3, %v4123_v4  ;;  %v7480_v8 = vld [vmem:[%s14722_s7 + $0xd50] sm:$0xff] }
 0x53f   :  { %v4398_v61 = vadd.f32 %v12507_v7, %v4385_v57  ;;  %v4149_v5 = vadd.f32 %v12311_v63, %v4120_v11  ;;  %v7494_v63 = vld [vmem:[%s14722_s7 + $0xdc0] sm:$0xff]  ;;  %4850 = vmatpush.msrb.mxu3 %v7495_v55  ;;  %4770 = vmatpush.msrb.mxu0 %v7448_v48 }
 0x540   :  { %v4373_v29 = vpop.f32.mrf.mxu3  ;;  %4792 = vmatpush.msrb.mxu1 %v7494_v63  ;;  %4824 = vmatpush.msrb.mxu2 %v7457_v62  ;;  %v7446_v3 = vld [vmem:[%s14722_s7 + $0xc40] sm:$0xff] }
 0x541   :  { %v4406_v52 = vmax.f32 %v4398_v61, 0.0  ;;  %v4374_v9 = vadd.f32 %v4373_v29, %v4344_v24  ;;  %v4094_v24 = vadd.f32 %v12325_v34, %v4065_v44  ;;  %v7492_v34 = vld [vmem:[%s14722_s7 + $0xdb0] sm:$0xff]  ;;  %4851 = vmatpush.msrb.mxu3 %v7493_v2  ;;  %v4068_v44 = vadd.f32 %v12341_v54, %v3981_v56  ;;  %v7449_v54 = vld [vmem:[%s14722_s7 + $0xc58] sm:$0xff]  ;;  %4771 = vmatpush.msrb.mxu0 %v7446_v3  ;;  %v7478_v48 = vld [vmem:[%s14722_s7 + $0xd40] sm:$0xff] }
 0x542   :  { %v4318_v37 = vpop.f32.mrf.mxu1  ;;  %v4347_v0 = vpop.f32.mrf.mxu2  ;;  %4793 = vmatpush.msrb.mxu1 %v7492_v34  ;;  %4825 = vmatpush.msrb.mxu2 %v7455_v22 }
 0x543   :  { %v12568_v1 = vrot.slane %v4406_v52, 7  ;;  %v4386_v30 = vadd.f32 %v4374_v9, %v4149_v5  ;;  %v4319_v38 = vadd.f32 %v4318_v37, %v4289_v53  ;;  %v7490_v53 = vld [vmem:[%s14722_s7 + $0xda0] sm:$0xff]  ;;  %4852 = vmatpush.msrb.mxu3 %v7491_v28  ;;  %v4097_v37 = vadd.f32 %v12381_v15, %v4068_v44  ;;  %v7447_v15 = vld [vmem:[%s14722_s7 + $0xc48] sm:$0xff]  ;;  %4772 = vmatpush.msrb.mxu0 %v7444_v40  ;;  %v7477_v40 = vld [vmem:[%s14722_s7 + $0xd38] sm:$0xff] }
 0x544   :  { %4794 = vmatpush.msrb.mxu1 %v7490_v53  ;;  %v4292_v45 = vpop.f32.mrf.mxu0  ;;  %4826 = vmatpush.msrb.mxu2 %v7453_v42  ;;  %v7483_v42 = vld [vmem:[%s14722_s7 + $0xd68] sm:$0xff] }
 0x545   :  { %4446 = vst [vmem:[#allocation2 + $0x30] sm:$0xfe] %v12568_v1  ;;  %v4399_v13 = vadd.f32 %v12553_v35, %v4386_v30  ;;  %v4387_v57 = vadd.f32 %v4319_v38, %v4094_v24  ;;  %4853 = vmatpush.msrb.mxu3 %v7489_v6  ;;  %v7484_v30 = vld [vmem:[%s14722_s7 + $0xd70] sm:$0xff]  ;;  %v4039_v38 = vadd.f32 %v12253_v17, %v12249_v10  ;;  %v7482_v17 = vld [vmem:[%s14722_s7 + $0xd60] sm:$0xff] }
 0x546   :  { %4795 = vmatpush.msrb.mxu1 %v7488_v46  ;;  %4827 = vmatpush.msrb.mxu2 %v7451_v32  ;;  %v7481_v32 = vld [vmem:[%s14722_s7 + $0xd58] sm:$0xff] }
 0x547   :  { %v4407_v11 = vmax.f32 %v4399_v13, 0.0  ;;  %v4400_v61 = vadd.f32 %v12507_v7, %v4387_v57  ;;  %4854 = vmatpush.msrb.mxu3 %v7487_v50  ;;  %v7445_v13 = vld [vmem:[%s14722_s7 + $0xc38] sm:$0xff]  ;;  %v3984_v57 = vadd.f32 %v12255_v51, %v12251_v18  ;;  %v4126_v47 = vadd.f32 %v12383_v59, %v4039_v38  ;;  %v7442_v18 = vld [vmem:[%s14722_s7 + $0xc20] sm:$0xff] }
 0x548   :  { %v4376_v29 = vpop.f32.mrf.mxu3  ;;  %4796 = vmatpush.msrb.mxu1 %v7486_v20  ;;  %4828 = vmatpush.msrb.mxu2 %v7449_v54  ;;  %v7479_v54 = vld [vmem:[%s14722_s7 + $0xd48] sm:$0xff]  ;;  %v4042_v50 = vadd.f32 %v12267_v41, %v12257_v43  ;;  %v7476_v43 = vld [vmem:[%s14722_s7 + $0xd30] sm:$0xff] }
 0x549   :  { %v12625_v5 = vrot.slane %v4407_v11, 7  ;;  %v4408_v52 = vmax.f32 %v4400_v61, 0.0  ;;  %v4377_v9 = vadd.f32 %v4376_v29, %v4347_v0  ;;  %v7485_v0 = vld [vmem:[%s14722_s7 + $0xd78] sm:$0xff]  ;;  %v4071_v51 = vadd.f32 %v12397_v12, %v3984_v57  ;;  %v7443_v12 = vld [vmem:[%s14722_s7 + $0xc28] sm:$0xff]  ;;  %4773 = vmatpush.msrb.mxu0 %v7442_v18 }
 0x54a   :  { %v4321_v14 = vpop.f32.mrf.mxu1  ;;  %v4350_v2 = vpop.f32.mrf.mxu2  ;;  %4797 = vmatpush.msrb.mxu1 %v7484_v30  ;;  %4829 = vmatpush.msrb.mxu2 %v7447_v15  ;;  %v4155_v4 = vadd.f32 %v12423_v58, %v4126_v47  ;;  %v7440_v58 = vld [vmem:[%s14722_s7 + $0xc10] sm:$0xff]  ;;  %v4129_v30 = vadd.f32 %v12439_v21, %v4042_v50  ;;  %v7474_v21 = vld [vmem:[%s14722_s7 + $0xd20] sm:$0xff]  ;;  %v7473_v18 = vld [vmem:[%s14722_s7 + $0xd18] sm:$0xff] }
 0x54b   :  { %4447 = vst [vmem:[#allocation2] sm:$0xfe] %v12625_v5  ;;  %v4424_v63 = vrot.slane %v4408_v52, 7  ;;  %v4388_v62 = vadd.f32 %v4377_v9, %v4152_v16  ;;  %v4322_v24 = vadd.f32 %v4321_v14, %v4292_v45  ;;  %4855 = vmatpush.msrb.mxu3 %v7485_v0  ;;  %v4100_v6 = vadd.f32 %v12437_v49, %v4071_v51  ;;  %v7441_v9 = vld [vmem:[%s14722_s7 + $0xc18] sm:$0xff]  ;;  %v7439_v0 = vld [vmem:[%s14722_s7 + $0xc08] sm:$0xff]  ;;  %v7594_v51 = vld [vmem:[%s14722_s7 + $0x10e0] sm:$0xff] }
 0x54c   :  { %v4531_v55 = vld [vmem:[#allocation2 + $0x30] sm:$0xfe]  ;;  %4798 = vmatpush.msrb.mxu1 %v7482_v17  ;;  %4830 = vmatpush.msrb.mxu2 %v7445_v13  ;;  %v4295_v44 = vpop.f32.mrf.mxu0 }
 0x54d   :  { %v12654_v34 = vsel %vm71_vm0, %v12568_v1, %v4424_v63  ;;  %4450 = vst [vmem:[#allocation2 + $0x50] sm:$0x1] %v4424_v63  ;;  %v4401_v22 = vadd.f32 %v12553_v35, %v4388_v62  ;;  %v4389_v27 = vadd.f32 %v4322_v24, %v4097_v37  ;;  %v4551_v10 = vrot.slane %v4531_v55, 1  ;;  %4856 = vmatpush.msrb.mxu3 %v7483_v42  ;;  %v7438_v24 = vld [vmem:[%s14722_s7 + $0xc00] sm:$0xff] }
 0x54e   :  { %v4552_v1 = vrot.slane %v12654_v34, 1  ;;  %4799 = vmatpush.msrb.mxu1 %v7480_v8  ;;  %4831 = vmatpush.msrb.mxu2 %v7443_v12 }
 0x54f   :  { %v4409_v53 = vmax.f32 %v4401_v22, 0.0  ;;  %v4402_v56 = vadd.f32 %v12507_v7, %v4389_v27  ;;  %4857 = vmatpush.msrb.mxu3 %v7481_v32  ;;  %4774 = vmatpush.msrb.mxu0 %v7440_v58 }
 0x550   :  { %v4379_v28 = vpop.f32.mrf.mxu3  ;;  %v4553_v59 = vsel %vm200_vm1, %v4551_v10, %v4552_v1  ;;  %4800 = vmatpush.msrb.mxu1 %v7478_v48  ;;  %4832 = vmatpush.msrb.mxu2 %v7441_v9  ;;  %v4158_v10 = vadd.f32 %v12482_v25, %v4129_v30  ;;  %v7472_v25 = vld [vmem:[%s14722_s7 + $0xd10] sm:$0xff]  ;;  %v7590_v48 = vld [vmem:[%s14722_s7 + $0x10c0] sm:$0xff] }
 0x551   :  { %v4426_v11 = vrot.slane %v4409_v53, 7  ;;  %v4410_v61 = vmax.f32 %v4402_v56, 0.0  ;;  %v4380_v46 = vadd.f32 %v4379_v28, %v4350_v2  ;;  %4660 = vmatmul.f32.vlgmr.msra.gmra.mxu0 %v4553_v59  ;;  %4718 = vmatmul.f32.vlgmr.msra.gmra.mxu2 %v4553_v59  ;;  %v7475_v2 = vld [vmem:[%s14722_s7 + $0xd28] sm:$0xff]  ;;  %v7626_v9 = vld [vmem:[%s14722_s7 + $0x11e0] sm:$0xff]  ;;  %v7624_v30 = vld [vmem:[%s14722_s7 + $0x11d0] sm:$0xff] }
 0x552   :  { %v4324_v45 = vpop.f32.mrf.mxu1  ;;  %v4532_v29 = vld [vmem:[#allocation2] sm:$0xfe]  ;;  %4858 = vmatpush.msrb.mxu3 %v7479_v54  ;;  %v4353_v22 = vpop.f32.mrf.mxu2  ;;  %4775 = vmatpush.msrb.mxu0 %v7438_v24  ;;  %v7586_v24 = vld [vmem:[%s14722_s7 + $0x10a0] sm:$0xff] }
 0x553   :  { %v12697_v20 = vsel %vm71_vm0, %v12625_v5, %v4426_v11  ;;  %4451 = vst [vmem:[#allocation2 + $0x20] sm:$0x1] %v4426_v11  ;;  %v4428_v16 = vrot.slane %v4410_v61, 7  ;;  %v4390_v49 = vadd.f32 %v4380_v46, %v4155_v4  ;;  %v4325_v52 = vadd.f32 %v4324_v45, %v4295_v44  ;;  %4801 = vmatpush.msrb.mxu1 %v7476_v43  ;;  %v7595_v61 = vld [vmem:[%s14722_s7 + $0x10e8] sm:$0xff]  ;;  %v7470_v46 = vld [vmem:[%s14722_s7 + $0xd00] sm:$0xff]  ;;  %v7593_v45 = vld [vmem:[%s14722_s7 + $0x10d8] sm:$0xff] }
 0x554   :  { %v4554_v37 = vrot.slane %v4532_v29, 1  ;;  %v4555_v5 = vrot.slane %v12697_v20, 1  ;;  %v4533_v14 = vld [vmem:[#allocation2 + $0x50] sm:$0x1]  ;;  %4833 = vmatpush.msrb.mxu2 %v7439_v0  ;;  %4859 = vmatpush.msrb.mxu3 %v7477_v40  ;;  %v7628_v29 = vld [vmem:[%s14722_s7 + $0x11f0] sm:$0xff]  ;;  %v7622_v0 = vld [vmem:[%s14722_s7 + $0x11c0] sm:$0xff] }
 0x555   :  { %4452 = vst [vmem:[#allocation2 + $0x8] sm:$0xfe] %v4428_v16  ;;  %v4403_v3 = vadd.f32 %v12553_v35, %v4390_v49  ;;  %v4391_v63 = vadd.f32 %v4325_v52, %v4100_v6  ;;  %v4557_v62 = vrot.slane %v4533_v14, 1  ;;  %4802 = vmatpush.msrb.mxu1 %v7474_v21  ;;  %v7592_v6 = vld [vmem:[%s14722_s7 + $0x10d0] sm:$0xff]  ;;  %v7591_v52 = vld [vmem:[%s14722_s7 + $0x10c8] sm:$0xff]  ;;  %v7585_v40 = vld [vmem:[%s14722_s7 + $0x1098] sm:$0xff] }
 0x556   :  { %v4556_v41 = vsel %vm200_vm1, %v4554_v37, %v4555_v5  ;;  %4860 = vmatpush.msrb.mxu3 %v7475_v2  ;;  %v7588_v37 = vld [vmem:[%s14722_s7 + $0x10b0] sm:$0xff]  ;;  %v7582_v21 = vld [vmem:[%s14722_s7 + $0x1080] sm:$0xff] }
 0x557   :  { %v4411_v15 = vmax.f32 %v4403_v3, 0.0  ;;  %v4404_v38 = vadd.f32 %v12507_v7, %v4391_v63  ;;  %4689 = vmatmul.f32.vlgmr.msra.gmra.mxu1 %v4556_v41  ;;  %4747 = vmatmul.f32.vlgmr.msra.gmra.mxu3 %v4556_v41  ;;  %v4558_v55 = vsel %vm200_vm1, %v4552_v1, %v4557_v62  ;;  %v7596_v7 = vld [vmem:[%s14722_s7 + $0x10f0] sm:$0xff]  ;;  %v7597_v1 = vld [vmem:[%s14722_s7 + $0x10f8] sm:$0xff] }
 0x558   :  { %v4382_v27 = vpop.f32.mrf.mxu3  ;;  %4985 = vmatpush.msra.mxu0 %v7596_v7  ;;  %5043 = vmatpush.msra.mxu2 %v7597_v1  ;;  %v7589_v62 = vld [vmem:[%s14722_s7 + $0x10b8] sm:$0xff]  ;;  %v7580_v2 = vld [vmem:[%s14722_s7 + $0x1070] sm:$0xff]  ;;  %v7618_v1 = vld [vmem:[%s14722_s7 + $0x11a0] sm:$0xff] }
 0x559   :  { %v4429_v17 = vrot.slane %v4411_v15, 7  ;;  %v4412_v13 = vmax.f32 %v4404_v38, 0.0  ;;  %v4383_v57 = vadd.f32 %v4382_v27, %v4353_v22  ;;  %4663 = vmatmul.f32.gmra.mxu0 %v4558_v55  ;;  %4721 = vmatmul.f32.gmra.mxu2 %v4558_v55  ;;  %v7587_v15 = vld [vmem:[%s14722_s7 + $0x10a8] sm:$0xff]  ;;  %v7625_v38 = vld [vmem:[%s14722_s7 + $0x11d8] sm:$0xff]  ;;  %v7584_v55 = vld [vmem:[%s14722_s7 + $0x1090] sm:$0xff] }
 0x55a   :  { %v4534_v47 = vld [vmem:[#allocation2 + $0x20] sm:$0x1]  ;;  %4803 = vmatpush.msrb.mxu1 %v7472_v25  ;;  %4861 = vmatpush.msrb.mxu3 %v7473_v18  ;;  %v4458_v25 = vld [vmem:[#allocation2 + $0x30] sm:$0xff] }
 0x55b   :  { %4453 = vst [vmem:[#allocation2 + $0x38] sm:$0xfe] %v4429_v17  ;;  %v4430_v53 = vrot.slane %v4412_v13, 7  ;;  %v4392_v56 = vadd.f32 %v4383_v57, %v4158_v10  ;;  %v4559_v42 = vrot.slane %v4534_v47, 1  ;;  %4986 = vmatpush.msra.mxu0 %v7594_v51  ;;  %5044 = vmatpush.msra.mxu2 %v7595_v61  ;;  %v7623_v27 = vld [vmem:[%s14722_s7 + $0x11c8] sm:$0xff]  ;;  %v7620_v10 = vld [vmem:[%s14722_s7 + $0x11b0] sm:$0xff] }
 0x55c   :  { %v4535_v28 = vld [vmem:[#allocation2 + $0x8] sm:$0xfe]  ;;  %4804 = vmatpush.msrb.mxu1 %v7470_v46  ;;  %v7621_v57 = vld [vmem:[%s14722_s7 + $0x11b8] sm:$0xff]  ;;  %v7579_v18 = vld [vmem:[%s14722_s7 + $0x1068] sm:$0xff] }
 0x55d   :  { %v12750_v59 = vsel %vm71_vm0, %v4428_v16, %v4430_v53  ;;  %4456 = vst [vmem:[#allocation2 + $0x10] sm:$0x1] %v4430_v53  ;;  %v4405_v8 = vadd.f32 %v12553_v35, %v4392_v56  ;;  %v4560_v4 = vsel %vm200_vm1, %v4555_v5, %v4559_v42  ;;  %v4561_v11 = vrot.slane %v4535_v28, 1  ;;  %v7471_v35 = vld [vmem:[%s14722_s7 + $0xd08] sm:$0xff]  ;;  %v7629_v16 = vld [vmem:[%s14722_s7 + $0x11f8] sm:$0xff]  ;;  %4987 = vmatpush.msra.mxu0 %v7592_v6  ;;  %v7578_v56 = vld [vmem:[%s14722_s7 + $0x1060] sm:$0xff] }
 0x55e   :  { %v4562_v12 = vrot.slane %v12750_v59, 1  ;;  %4862 = vmatpush.msrb.mxu3 %v7471_v35  ;;  %5045 = vmatpush.msra.mxu2 %v7593_v45  ;;  %v7627_v5 = vld [vmem:[%s14722_s7 + $0x11e8] sm:$0xff]  ;;  %v7581_v47 = vld [vmem:[%s14722_s7 + $0x1078] sm:$0xff]  ;;  %v7616_v42 = vld [vmem:[%s14722_s7 + $0x1190] sm:$0xff] }
 0x55f   :  { %v4413_v32 = vmax.f32 %v4405_v8, 0.0  ;;  %4692 = vmatmul.f32.gmra.mxu1 %v4560_v4  ;;  %4750 = vmatmul.f32.gmra.mxu3 %v4560_v4  ;;  %v7619_v53 = vld [vmem:[%s14722_s7 + $0x11a8] sm:$0xff]  ;;  %v7617_v51 = vld [vmem:[%s14722_s7 + $0x1198] sm:$0xff]  ;;  %v7576_v28 = vld [vmem:[%s14722_s7 + $0x1050] sm:$0xff] }
 0x560   :  { %v4563_v44 = vsel %vm200_vm1, %v4561_v11, %v4562_v12  ;;  %5014 = vmatpush.msra.mxu1 %v7628_v29  ;;  %4988 = vmatpush.msra.mxu0 %v7590_v48  ;;  %v7614_v8 = vld [vmem:[%s14722_s7 + $0x1180] sm:$0xff]  ;;  %v7577_v4 = vld [vmem:[%s14722_s7 + $0x1058] sm:$0xff]  ;;  %v7615_v11 = vld [vmem:[%s14722_s7 + $0x1188] sm:$0xff] }
 0x561   :  { %v4432_v58 = vrot.slane %v4413_v32, 7  ;;  %4666 = vmatmul.f32.gmra.mxu0 %v4563_v44  ;;  %4724 = vmatmul.f32.gmra.mxu2 %v4563_v44  ;;  %v7574_v61 = vld [vmem:[%s14722_s7 + $0x1040] sm:$0xff]  ;;  %v4459_v46 = vld [vmem:[#allocation2] sm:$0xff]  ;;  %v7613_v35 = vld [vmem:[%s14722_s7 + $0x1178] sm:$0xff] }
 0x562   :  { %v4536_v49 = vld [vmem:[#allocation2 + $0x38] sm:$0xfe]  ;;  %5072 = vmatpush.msra.mxu3 %v7629_v16  ;;  %5046 = vmatpush.msra.mxu2 %v7591_v52  ;;  %v7575_v32 = vld [vmem:[%s14722_s7 + $0x1048] sm:$0xff]  ;;  %v7572_v6 = vld [vmem:[%s14722_s7 + $0x1030] sm:$0xff] }
 0x563   :  { %v12787_v54 = vsel %vm71_vm0, %v4429_v17, %v4432_v58  ;;  %4457 = vst [vmem:[#allocation2 + $0x40] sm:$0x1] %v4432_v58  ;;  %v4564_v50 = vrot.slane %v4536_v49, 1  ;;  %5015 = vmatpush.msra.mxu1 %v7626_v9  ;;  %4989 = vmatpush.msra.mxu0 %v7588_v37  ;;  %v7583_v17 = vld [vmem:[%s14722_s7 + $0x1088] sm:$0xff]  ;;  %v7610_v44 = vld [vmem:[%s14722_s7 + $0x1160] sm:$0xff]  ;;  %v7573_v45 = vld [vmem:[%s14722_s7 + $0x1038] sm:$0xff] }
 0x564   :  { %v4565_v14 = vrot.slane %v12787_v54, 1  ;;  %v4537_v3 = vld [vmem:[#allocation2 + $0x10] sm:$0x1]  ;;  %5073 = vmatpush.msra.mxu3 %v7627_v5  ;;  %5047 = vmatpush.msra.mxu2 %v7589_v62  ;;  %v7611_v29 = vld [vmem:[%s14722_s7 + $0x1168] sm:$0xff]  ;;  %v7570_v58 = vld [vmem:[%s14722_s7 + $0x1020] sm:$0xff] }
 0x565   :  { %v4567_v63 = vrot.slane %v4537_v3, 1  ;;  %4990 = vmatpush.msra.mxu0 %v7586_v24  ;;  %5016 = vmatpush.msra.mxu1 %v7624_v30  ;;  %v7608_v48 = vld [vmem:[%s14722_s7 + $0x1150] sm:$0xff]  ;;  %v7571_v16 = vld [vmem:[%s14722_s7 + $0x1028] sm:$0xff]  ;;  %v7609_v49 = vld [vmem:[%s14722_s7 + $0x1158] sm:$0xff] }
 0x566   :  { %v4566_v43 = vsel %vm200_vm1, %v4564_v50, %v4565_v14  ;;  %5048 = vmatpush.msra.mxu2 %v7587_v15  ;;  %5074 = vmatpush.msra.mxu3 %v7625_v38  ;;  %v7568_v52 = vld [vmem:[%s14722_s7 + $0x1010] sm:$0xff]  ;;  %v7606_v9 = vld [vmem:[%s14722_s7 + $0x1140] sm:$0xff]  ;;  %v7569_v50 = vld [vmem:[%s14722_s7 + $0x1018] sm:$0xff] }
 0x567   :  { %4695 = vmatmul.f32.gmra.mxu1 %v4566_v43  ;;  %4753 = vmatmul.f32.gmra.mxu3 %v4566_v43  ;;  %v4568_v41 = vsel %vm200_vm1, %v4562_v12, %v4567_v63  ;;  %v7612_v12 = vld [vmem:[%s14722_s7 + $0x1170] sm:$0xff]  ;;  %v7607_v5 = vld [vmem:[%s14722_s7 + $0x1148] sm:$0xff]  ;;  %v7605_v62 = vld [vmem:[%s14722_s7 + $0x1138] sm:$0xff] }
 0x568   :  { %4991 = vmatpush.msra.mxu0 %v7584_v55  ;;  %5017 = vmatpush.msra.mxu1 %v7622_v0  ;;  %v4462_v37 = vld [vmem:[#allocation2 + $0x8] sm:$0xff]  ;;  %v7567_v63 = vld [vmem:[%s14722_s7 + $0x1008] sm:$0xff]  ;;  %v7602_v24 = vld [vmem:[%s14722_s7 + $0x1120] sm:$0xff] }
 0x569   :  { %4669 = vmatmul.f32.gmra.mxu0 %v4568_v41  ;;  %4727 = vmatmul.f32.gmra.mxu2 %v4568_v41  ;;  %v7604_v3 = vld [vmem:[%s14722_s7 + $0x1130] sm:$0xff]  ;;  %v7603_v43 = vld [vmem:[%s14722_s7 + $0x1128] sm:$0xff]  ;;  %v4463_v30 = vld [vmem:[#allocation2 + $0x38] sm:$0xff] }
 0x56a   :  { %v4538_v22 = vld [vmem:[#allocation2 + $0x40] sm:$0x1]  ;;  %5049 = vmatpush.msra.mxu2 %v7585_v40  ;;  %5075 = vmatpush.msra.mxu3 %v7623_v27  ;;  %v7600_v41 = vld [vmem:[%s14722_s7 + $0x1110] sm:$0xff]  ;;  %v7601_v15 = vld [vmem:[%s14722_s7 + $0x1118] sm:$0xff] }
 0x56b   :  { %v4569_v7 = vrot.slane %v4538_v22, 1  ;;  %4992 = vmatpush.msra.mxu0 %v7582_v21  ;;  %5018 = vmatpush.msra.mxu1 %v7620_v10  ;;  %v7598_v38 = vld [vmem:[%s14722_s7 + $0x1100] sm:$0xff]  ;;  %v4876_v55 = vld [vmem:[#allocation2 + $0x30] sm:$0xfc]  ;;  %v7599_v0 = vld [vmem:[%s14722_s7 + $0x1108] sm:$0xff]  ;;  %v4893_v22 = vrot.slane %v12654_v34, 2 }
 0x56c   :  { %5050 = vmatpush.msra.mxu2 %v7583_v17  ;;  %5076 = vmatpush.msra.mxu3 %v7621_v57  ;;  %v4892_v40 = vrot.slane %v4876_v55, 2  ;;  %v4877_v27 = vld [vmem:[#allocation2] sm:$0xfc]  ;;  %v4896_v17 = vrot.slane %v12697_v20, 2 }
 0x56d   :  { %v4570_v13 = vsel %vm200_vm1, %v4565_v14, %v4569_v7  ;;  %4993 = vmatpush.msra.mxu0 %v7580_v2  ;;  %5019 = vmatpush.msra.mxu1 %v7618_v1  ;;  %v7566_v14 = vld [vmem:[%s14722_s7 + $0x1000] sm:$0xff]  ;;  %v4878_v7 = vld [vmem:[#allocation2 + $0x50] sm:$0x3]  ;;  %v4895_v10 = vrot.slane %v4877_v27, 2  ;;  %v4880_v1 = vld [vmem:[#allocation2 + $0x8] sm:$0xfc] }
 0x56e   :  { %5051 = vmatpush.msra.mxu2 %v7581_v47  ;;  %5077 = vmatpush.msra.mxu3 %v7619_v53  ;;  %v4894_v21 = vsel %vm542_vm2, %v4892_v40, %v4893_v22  ;;  %v4903_v53 = vrot.slane %v12750_v59, 2  ;;  %v5246_v27 = vld [vmem:[%s14725_s10 + $0xe0] sm:$0xff] }
 0x56f   :  { %4698 = vmatmul.f32.gmra.mxu1 %v4570_v13  ;;  %4756 = vmatmul.f32.gmra.mxu3 %v4570_v13  ;;  %v4898_v13 = vrot.slane %v4878_v7, 2  ;;  %v4897_v57 = vsel %vm542_vm2, %v4895_v10, %v4896_v17  ;;  %v5278_v10 = vld [vmem:[%s14725_s10 + $0x1e0] sm:$0xff] }
 0x570   :  { %4994 = vmatpush.msra.mxu0 %v7578_v56  ;;  %5020 = vmatpush.msra.mxu1 %v7616_v42 }
 0x571   :  { %4776 = vmatmul.f32.vlgmr.msrb.gmra.mxu0 %v4458_v25  ;;  %4834 = vmatmul.f32.vlgmr.msrb.gmra.mxu2 %v4458_v25  ;;  %v4899_v2 = vsel %vm542_vm2, %v4893_v22, %v4898_v13  ;;  %v4902_v25 = vrot.slane %v4880_v1, 2  ;;  %v5230_v22 = vld [vmem:[%s14725_s10 + $0x60] sm:$0xff]  ;;  %v5245_v13 = vld [vmem:[%s14725_s10 + $0xd8] sm:$0xff]  ;;  %v5244_v1 = vld [vmem:[%s14725_s10 + $0xd0] sm:$0xff] }
 0x572   :  { %5052 = vmatpush.msra.mxu2 %v7579_v18  ;;  %5078 = vmatpush.msra.mxu3 %v7617_v51  ;;  %v4882_v18 = vld [vmem:[#allocation2 + $0x10] sm:$0x3] }
 0x573   :  { %4995 = vmatpush.msra.mxu0 %v7576_v28  ;;  %5021 = vmatpush.msra.mxu1 %v7614_v8  ;;  %v4904_v42 = vsel %vm542_vm2, %v4902_v25, %v4903_v53  ;;  %v4906_v28 = vrot.slane %v12787_v54, 2  ;;  %v4908_v8 = vrot.slane %v4882_v18, 2  ;;  %v5276_v25 = vld [vmem:[%s14725_s10 + $0x1d0] sm:$0xff]  ;;  %v5259_v18 = vld [vmem:[%s14725_s10 + $0x148] sm:$0xff] }
 0x574   :  { %5053 = vmatpush.msra.mxu2 %v7577_v4  ;;  %5079 = vmatpush.msra.mxu3 %v7615_v11  ;;  %v4883_v11 = vld [vmem:[#allocation2 + $0x40] sm:$0x3] }
 0x575   :  { %4996 = vmatpush.msra.mxu0 %v7574_v61  ;;  %5022 = vmatpush.msra.mxu1 %v7612_v12  ;;  %v4910_v61 = vrot.slane %v4883_v11, 2 }
 0x576   :  { %5054 = vmatpush.msra.mxu2 %v7575_v32  ;;  %5080 = vmatpush.msra.mxu3 %v7613_v35 }
 0x577   :  { %4805 = vmatmul.f32.vlgmr.msrb.gmra.mxu1 %v4459_v46  ;;  %4863 = vmatmul.f32.vlgmr.msrb.gmra.mxu3 %v4459_v46  ;;  %v4911_v46 = vsel %vm542_vm2, %v4906_v28, %v4910_v61  ;;  %v5242_v61 = vld [vmem:[%s14725_s10 + $0xc0] sm:$0xff] }
 0x578   :  { %4997 = vmatpush.msra.mxu0 %v7572_v6  ;;  %5023 = vmatpush.msra.mxu1 %v7610_v44 }
 0x579   :  { %4779 = vmatmul.f32.gmra.mxu0 %v12654_v34  ;;  %4837 = vmatmul.f32.gmra.mxu2 %v12654_v34  ;;  %v4879_v34 = vld [vmem:[#allocation2 + $0x20] sm:$0x3] }
 0x57a   :  { %5055 = vmatpush.msra.mxu2 %v7573_v45  ;;  %5081 = vmatpush.msra.mxu3 %v7611_v29  ;;  %v4900_v47 = vrot.slane %v4879_v34, 2  ;;  %v5277_v34 = vld [vmem:[%s14725_s10 + $0x1d8] sm:$0xff] }
 0x57b   :  { %4998 = vmatpush.msra.mxu0 %v7570_v58  ;;  %5024 = vmatpush.msra.mxu1 %v7608_v48 }
 0x57c   :  { %5056 = vmatpush.msra.mxu2 %v7571_v16  ;;  %5082 = vmatpush.msra.mxu3 %v7609_v49  ;;  %v4901_v56 = vsel %vm542_vm2, %v4896_v17, %v4900_v47  ;;  %v5229_v17 = vld [vmem:[%s14725_s10 + $0x58] sm:$0xff]  ;;  %v5260_v47 = vld [vmem:[%s14725_s10 + $0x150] sm:$0xff] }
 0x57d   :  { %4999 = vmatpush.msra.mxu0 %v7568_v52  ;;  %5025 = vmatpush.msra.mxu1 %v7606_v9 }
 0x57e   :  { %5057 = vmatpush.msra.mxu2 %v7569_v50  ;;  %5083 = vmatpush.msra.mxu3 %v7607_v5  ;;  %v5233_v50 = vld [vmem:[%s14725_s10 + $0x78] sm:$0xff] }
 0x57f   :  { %4808 = vmatmul.f32.gmra.mxu1 %v12697_v20  ;;  %4866 = vmatmul.f32.gmra.mxu3 %v12697_v20  ;;  %v4881_v20 = vld [vmem:[#allocation2 + $0x38] sm:$0xfc]  ;;  %v5265_v5 = vld [vmem:[%s14725_s10 + $0x178] sm:$0xff] }
 0x580   :  { %5000 = vmatpush.msra.mxu0 %v7566_v14  ;;  %5026 = vmatpush.msra.mxu1 %v7604_v3  ;;  %v4905_v51 = vrot.slane %v4881_v20, 2  ;;  %v5281_v14 = vld [vmem:[%s14725_s10 + $0x1f8] sm:$0xff]  ;;  %v5232_v3 = vld [vmem:[%s14725_s10 + $0x70] sm:$0xff]  ;;  %v5227_v20 = vld [vmem:[%s14725_s10 + $0x48] sm:$0xff] }
 0x581   :  { %4782 = vmatmul.f32.gmra.mxu0 %v4462_v37  ;;  %4840 = vmatmul.f32.gmra.mxu2 %v4462_v37  ;;  %v5249_v37 = vld [vmem:[%s14725_s10 + $0xf8] sm:$0xff] }
 0x582   :  { %5058 = vmatpush.msra.mxu2 %v7567_v63  ;;  %5084 = vmatpush.msra.mxu3 %v7605_v62  ;;  %v4907_v4 = vsel %vm542_vm2, %v4905_v51, %v4906_v28  ;;  %v5248_v63 = vld [vmem:[%s14725_s10 + $0xf0] sm:$0xff] }
 0x583   :  { %5027 = vmatpush.msra.mxu1 %v7602_v24  ;;  %5815 = vmatpush.msrb.mxu0 %v5233_v50  ;;  %v5264_v62 = vld [vmem:[%s14725_s10 + $0x170] sm:$0xff] }
 0x584   :  { %5085 = vmatpush.msra.mxu3 %v7603_v43  ;;  %5855 = vmatpush.msrb.mxu2 %v5265_v5  ;;  %v5280_v24 = vld [vmem:[%s14725_s10 + $0x1f0] sm:$0xff] }
 0x585   :  { %5028 = vmatpush.msra.mxu1 %v7600_v41  ;;  %5816 = vmatpush.msrb.mxu0 %v5232_v3  ;;  %v5231_v41 = vld [vmem:[%s14725_s10 + $0x68] sm:$0xff]  ;;  %v5224_v5 = vld [vmem:[%s14725_s10 + $0x30] sm:$0xff] }
 0x586   :  { %5086 = vmatpush.msra.mxu3 %v7601_v15  ;;  %5856 = vmatpush.msrb.mxu2 %v5264_v62  ;;  %v5263_v15 = vld [vmem:[%s14725_s10 + $0x168] sm:$0xff]  ;;  %v5256_v3 = vld [vmem:[%s14725_s10 + $0x130] sm:$0xff] }
 0x587   :  { %4811 = vmatmul.f32.gmra.mxu1 %v4463_v30  ;;  %4869 = vmatmul.f32.gmra.mxu3 %v4463_v30  ;;  %v5247_v30 = vld [vmem:[%s14725_s10 + $0xe8] sm:$0xff] }
 0x588   :  { %5029 = vmatpush.msra.mxu1 %v7598_v38  ;;  %5087 = vmatpush.msra.mxu3 %v7599_v0  ;;  %v5279_v0 = vld [vmem:[%s14725_s10 + $0x1e8] sm:$0xff] }
 0x589   :  { %4785 = vmatmul.f32.gmra.mxu0 %v12750_v59  ;;  %4843 = vmatmul.f32.gmra.mxu2 %v12750_v59  ;;  %v4909_v59 = vsel %vm542_vm2, %v4903_v53, %v4908_v8  ;;  %v5275_v8 = vld [vmem:[%s14725_s10 + $0x1c8] sm:$0xff] }
 0x58a   :  { %5835 = vmatpush.msrb.mxu1 %v5249_v37  ;;  %5875 = vmatpush.msrb.mxu3 %v5281_v14  ;;  %v5240_v14 = vld [vmem:[%s14725_s10 + $0xb0] sm:$0xff] }
 0x58b   :  { %5817 = vmatpush.msrb.mxu0 %v5231_v41  ;;  %5857 = vmatpush.msrb.mxu2 %v5263_v15  ;;  %v5239_v15 = vld [vmem:[%s14725_s10 + $0xa8] sm:$0xff] }
 0x58c   :  { %5836 = vmatpush.msrb.mxu1 %v5248_v63  ;;  %5876 = vmatpush.msrb.mxu3 %v5280_v24  ;;  %v5272_v24 = vld [vmem:[%s14725_s10 + $0x1b0] sm:$0xff] }
 0x58d   :  { %5818 = vmatpush.msrb.mxu0 %v5230_v22  ;;  %v5254_v22 = vld [vmem:[%s14725_s10 + $0x120] sm:$0xff] }
 0x58e   :  { %5837 = vmatpush.msrb.mxu1 %v5247_v30  ;;  %5877 = vmatpush.msrb.mxu3 %v5279_v0  ;;  %v5223_v30 = vld [vmem:[%s14725_s10 + $0x28] sm:$0xff]  ;;  %v5238_v0 = vld [vmem:[%s14725_s10 + $0xa0] sm:$0xff] }
 0x58f   :  { %4814 = vmatmul.f32.gmra.mxu1 %v12787_v54  ;;  %4872 = vmatmul.f32.gmra.mxu3 %v12787_v54 }
 0x590   :  { %5838 = vmatpush.msrb.mxu1 %v5246_v27  ;;  %5878 = vmatpush.msrb.mxu3 %v5278_v10  ;;  %v5270_v27 = vld [vmem:[%s14725_s10 + $0x1a0] sm:$0xff]  ;;  %v5221_v10 = vld [vmem:[%s14725_s10 + $0x18] sm:$0xff] }
 0x591   :  { %5001 = vmatmul.f32.vlgmr.msra.gmra.mxu0 %v4894_v21  ;;  %5059 = vmatmul.f32.vlgmr.msra.gmra.mxu2 %v4894_v21  ;;  %v5262_v21 = vld [vmem:[%s14725_s10 + $0x160] sm:$0xff] }
 0x592   :  { %5858 = vmatpush.msrb.mxu2 %v5262_v21  ;;  %5819 = vmatpush.msrb.mxu0 %v5229_v17  ;;  %v5237_v17 = vld [vmem:[%s14725_s10 + $0x98] sm:$0xff] }
 0x593   :  { %5839 = vmatpush.msrb.mxu1 %v5245_v13  ;;  %5879 = vmatpush.msrb.mxu3 %v5277_v34  ;;  %v5253_v13 = vld [vmem:[%s14725_s10 + $0x118] sm:$0xff] }
 0x594   :  { %v5269_v34 = vld [vmem:[%s14725_s10 + $0x198] sm:$0xff] }
 0x595   :  { %5840 = vmatpush.msrb.mxu1 %v5244_v1  ;;  %5880 = vmatpush.msrb.mxu3 %v5276_v25  ;;  %v5236_v25 = vld [vmem:[%s14725_s10 + $0x90] sm:$0xff] }
 0x597   :  { %5030 = vmatmul.f32.vlgmr.msra.gmra.mxu1 %v4897_v57  ;;  %5088 = vmatmul.f32.vlgmr.msra.gmra.mxu3 %v4897_v57  ;;  %v5261_v57 = vld [vmem:[%s14725_s10 + $0x158] sm:$0xff] }
 0x598   :  { %5859 = vmatpush.msrb.mxu2 %v5261_v57  ;;  %5881 = vmatpush.msrb.mxu3 %v5275_v8  ;;  %v5235_v8 = vld [vmem:[%s14725_s10 + $0x88] sm:$0xff] }
 0x599   :  { %5004 = vmatmul.f32.gmra.mxu0 %v4899_v2  ;;  %5062 = vmatmul.f32.gmra.mxu2 %v4899_v2  ;;  %v5228_v2 = vld [vmem:[%s14725_s10 + $0x50] sm:$0xff] }
 0x59a   :  { %5820 = vmatpush.msrb.mxu0 %v5228_v2  ;;  %5860 = vmatpush.msrb.mxu2 %v5260_v47  ;;  %v5220_v47 = vld [vmem:[%s14725_s10 + $0x10] sm:$0xff] }
 0x59c   :  { %5821 = vmatpush.msrb.mxu0 %v5227_v20  ;;  %5861 = vmatpush.msrb.mxu2 %v5259_v18  ;;  %v5268_v20 = vld [vmem:[%s14725_s10 + $0x190] sm:$0xff]  ;;  %v5219_v18 = vld [vmem:[%s14725_s10 + $0x8] sm:$0xff] }
 0x59f   :  { %5033 = vmatmul.f32.gmra.mxu1 %v4901_v56  ;;  %5091 = vmatmul.f32.gmra.mxu3 %v4901_v56 }
 0x5a1   :  { %5007 = vmatmul.f32.gmra.mxu0 %v4904_v42  ;;  %5065 = vmatmul.f32.gmra.mxu2 %v4904_v42  ;;  %v5243_v42 = vld [vmem:[%s14725_s10 + $0xc8] sm:$0xff] }
 0x5a2   :  { %5841 = vmatpush.msrb.mxu1 %v5243_v42 }
 0x5a4   :  { %5842 = vmatpush.msrb.mxu1 %v5242_v61  ;;  %v5234_v61 = vld [vmem:[%s14725_s10 + $0x80] sm:$0xff] }
 0x5a7   :  { %5036 = vmatmul.f32.gmra.mxu1 %v4907_v4  ;;  %5094 = vmatmul.f32.gmra.mxu3 %v4907_v4 }
 0x5a9   :  { %5010 = vmatmul.f32.gmra.mxu0 %v4909_v59  ;;  %5068 = vmatmul.f32.gmra.mxu2 %v4909_v59  ;;  %v5226_v59 = vld [vmem:[%s14725_s10 + $0x40] sm:$0xff] }
 0x5aa   :  { %5822 = vmatpush.msrb.mxu0 %v5226_v59  ;;  %v5218_v59 = vld [vmem:[%s14725_s10] sm:$0xff] }
 0x5af   :  { %5039 = vmatmul.f32.gmra.mxu1 %v4911_v46  ;;  %5097 = vmatmul.f32.gmra.mxu3 %v4911_v46  ;;  %v5258_v46 = vld [vmem:[%s14725_s10 + $0x140] sm:$0xff] }
 0x5b0   :  { %5862 = vmatpush.msrb.mxu2 %v5258_v46  ;;  %v5250_v46 = vld [vmem:[%s14725_s10 + $0x100] sm:$0xff] }
 0x5ce   :  { %v12972_v12 = vpop.f32.mrf.mxu0 }
 0x5d4   :  { %v12974_v32 = vpop.f32.mrf.mxu1  ;;  %v12976_v54 = vpop.f32.mrf.mxu2 }
 0x5d6   :  { %v4664_v35 = vpop.f32.mrf.mxu0 }
 0x5da   :  { %v12978_v6 = vpop.f32.mrf.mxu3 }
 0x5dc   :  { %v4693_v44 = vpop.f32.mrf.mxu1  ;;  %v4722_v45 = vpop.f32.mrf.mxu2 }
 0x5dd   :  { %v12980_v29 = vadd.f32 %v4693_v44, %v4664_v35  ;;  %v5274_v35 = vld [vmem:[%s14725_s10 + $0x1c0] sm:$0xff] }
 0x5de   :  { %v12982_v58 = vpop.f32.mrf.mxu0  ;;  %5882 = vmatpush.msrb.mxu3 %v5274_v35  ;;  %v5266_v35 = vld [vmem:[%s14725_s10 + $0x180] sm:$0xff] }
 0x5e2   :  { %v4751_v48 = vpop.f32.mrf.mxu3 }
 0x5e3   :  { %v12984_v16 = vadd.f32 %v4751_v48, %v4722_v45  ;;  %v5225_v45 = vld [vmem:[%s14725_s10 + $0x38] sm:$0xff] }
 0x5e4   :  { %v12986_v49 = vpop.f32.mrf.mxu1  ;;  %v12988_v52 = vpop.f32.mrf.mxu2  ;;  %v5257_v48 = vld [vmem:[%s14725_s10 + $0x138] sm:$0xff]  ;;  %5823 = vmatpush.msrb.mxu0 %v5225_v45 }
 0x5e5   :  { %5863 = vmatpush.msrb.mxu2 %v5257_v48  ;;  %v5297_v45 = vld [vmem:[%s14725_s10 + $0x278] sm:$0xff] }
 0x5e6   :  { %v4670_v9 = vpop.f32.mrf.mxu0  ;;  %5824 = vmatpush.msrb.mxu0 %v5224_v5  ;;  %v5312_v5 = vld [vmem:[%s14725_s10 + $0x2f0] sm:$0xff] }
 0x5e7   :  { %5864 = vmatpush.msrb.mxu2 %v5256_v3 }
 0x5e8   :  { %5825 = vmatpush.msrb.mxu0 %v5223_v30  ;;  %v5295_v30 = vld [vmem:[%s14725_s10 + $0x268] sm:$0xff] }
 0x5ea   :  { %v13014_v43 = vpop.f32.mrf.mxu3 }
 0x5ec   :  { %v4699_v38 = vpop.f32.mrf.mxu1  ;;  %v4728_v55 = vpop.f32.mrf.mxu2 }
 0x5ed   :  { %v13028_v40 = vadd.f32 %v4699_v38, %v4670_v9  ;;  %v5273_v9 = vld [vmem:[%s14725_s10 + $0x1b8] sm:$0xff]  ;;  %v5271_v38 = vld [vmem:[%s14725_s10 + $0x1a8] sm:$0xff] }
 0x5ee   :  { %v13039_v7 = vpop.f32.mrf.mxu0  ;;  %5883 = vmatpush.msrb.mxu3 %v5273_v9  ;;  %v5329_v9 = vld [vmem:[%s14725_s10 + $0x378] sm:$0xff] }
 0x5f0   :  { %5884 = vmatpush.msrb.mxu3 %v5272_v24  ;;  %v5344_v24 = vld [vmem:[%s14725_s10 + $0x3f0] sm:$0xff] }
 0x5f2   :  { %v4757_v53 = vpop.f32.mrf.mxu3  ;;  %5885 = vmatpush.msrb.mxu3 %v5271_v38 }
 0x5f3   :  { %v13068_v56 = vadd.f32 %v4757_v53, %v4728_v55  ;;  %v5222_v55 = vld [vmem:[%s14725_s10 + $0x20] sm:$0xff]  ;;  %v5252_v53 = vld [vmem:[%s14725_s10 + $0x110] sm:$0xff] }
 0x5f4   :  { %v13079_v51 = vpop.f32.mrf.mxu1  ;;  %v13081_v28 = vpop.f32.mrf.mxu2  ;;  %5826 = vmatpush.msrb.mxu0 %v5222_v55  ;;  %5886 = vmatpush.msrb.mxu3 %v5270_v27  ;;  %v5343_v55 = vld [vmem:[%s14725_s10 + $0x3e8] sm:$0xff]  ;;  %v5326_v27 = vld [vmem:[%s14725_s10 + $0x360] sm:$0xff] }
 0x5f6   :  { %v4780_v4 = vpop.f32.mrf.mxu0  ;;  %5827 = vmatpush.msrb.mxu0 %v5221_v10  ;;  %5887 = vmatpush.msrb.mxu3 %v5269_v34  ;;  %v4691_v10 = vadd.f32 %v12974_v32, %v12972_v12  ;;  %v5325_v34 = vld [vmem:[%s14725_s10 + $0x358] sm:$0xff] }
 0x5f7   :  { %v4781_v11 = vadd.f32 %v4780_v4, %v12980_v29  ;;  %v5241_v29 = vld [vmem:[%s14725_s10 + $0xb8] sm:$0xff]  ;;  %v5251_v4 = vld [vmem:[%s14725_s10 + $0x108] sm:$0xff] }
 0x5f8   :  { %5843 = vmatpush.msrb.mxu1 %v5241_v29  ;;  %5828 = vmatpush.msrb.mxu0 %v5220_v47  ;;  %v5313_v29 = vld [vmem:[%s14725_s10 + $0x2f8] sm:$0xff]  ;;  %v4778_v32 = vadd.f32 %v13039_v7, %v4691_v10  ;;  %v5340_v7 = vld [vmem:[%s14725_s10 + $0x3d0] sm:$0xff] }
 0x5f9   :  { %5888 = vmatpush.msrb.mxu3 %v5268_v20  ;;  %v5341_v12 = vld [vmem:[%s14725_s10 + $0x3d8] sm:$0xff]  ;;  %v5324_v20 = vld [vmem:[%s14725_s10 + $0x350] sm:$0xff] }
 0x5fa   :  { %v13099_v44 = vpop.f32.mrf.mxu3  ;;  %5844 = vmatpush.msrb.mxu1 %v5240_v14  ;;  %5829 = vmatpush.msrb.mxu0 %v5219_v18  ;;  %v5328_v14 = vld [vmem:[%s14725_s10 + $0x370] sm:$0xff] }
 0x5fb   :  { %v5320_v10 = vld [vmem:[%s14725_s10 + $0x330] sm:$0xff] }
 0x5fc   :  { %v4809_v50 = vpop.f32.mrf.mxu1  ;;  %v4838_v37 = vpop.f32.mrf.mxu2  ;;  %5845 = vmatpush.msrb.mxu1 %v5239_v15  ;;  %5830 = vmatpush.msrb.mxu0 %v5218_v59  ;;  %v5311_v15 = vld [vmem:[%s14725_s10 + $0x2e8] sm:$0xff] }
 0x5fd   :  { %v13122_v63 = vadd.f32 %v4809_v50, %v4781_v11  ;;  %v4839_v62 = vadd.f32 %v4838_v37, %v12984_v16  ;;  %v5255_v16 = vld [vmem:[%s14725_s10 + $0x128] sm:$0xff]  ;;  %v5345_v50 = vld [vmem:[%s14725_s10 + $0x3f8] sm:$0xff]  ;;  %v5296_v37 = vld [vmem:[%s14725_s10 + $0x270] sm:$0xff] }
 0x5fe   :  { %v13128_v41 = vpop.f32.mrf.mxu0  ;;  %5865 = vmatpush.msrb.mxu2 %v5255_v16  ;;  %5846 = vmatpush.msrb.mxu1 %v5238_v0  ;;  %v5267_v11 = vld [vmem:[%s14725_s10 + $0x188] sm:$0xff]  ;;  %v5294_v0 = vld [vmem:[%s14725_s10 + $0x260] sm:$0xff] }
 0x5ff   :  { %5889 = vmatpush.msrb.mxu3 %v5267_v11  ;;  %5895 = vmatpush.msra.mxu0 %v5297_v45  ;;  %v5327_v16 = vld [vmem:[%s14725_s10 + $0x368] sm:$0xff] }
 0x600   :  { %5866 = vmatpush.msrb.mxu2 %v5254_v22  ;;  %5847 = vmatpush.msrb.mxu1 %v5237_v17  ;;  %v5310_v22 = vld [vmem:[%s14725_s10 + $0x2e0] sm:$0xff]  ;;  %v5293_v17 = vld [vmem:[%s14725_s10 + $0x258] sm:$0xff]  ;;  %v5291_v59 = vld [vmem:[%s14725_s10 + $0x248] sm:$0xff] }
 0x601   :  { %5890 = vmatpush.msrb.mxu3 %v5266_v35  ;;  %5896 = vmatpush.msra.mxu0 %v5296_v37  ;;  %v4749_v35 = vadd.f32 %v12978_v6, %v12976_v54  ;;  %v5117_v37 = vld [vmem:[%s14723_s8] sm:$0x3] }
 0x602   :  { %v4867_v21 = vpop.f32.mrf.mxu3  ;;  %5867 = vmatpush.msrb.mxu2 %v5253_v13  ;;  %5848 = vmatpush.msrb.mxu1 %v5236_v25  ;;  %v5309_v13 = vld [vmem:[%s14725_s10 + $0x2d8] sm:$0xff]  ;;  %v5292_v25 = vld [vmem:[%s14725_s10 + $0x250] sm:$0xff]  ;;  %v5338_v6 = vld [vmem:[%s14725_s10 + $0x3c0] sm:$0xff] }
 0x603   :  { %v13163_v57 = vadd.f32 %v4867_v21, %v4839_v62  ;;  %5955 = vmatpush.msra.mxu3 %v5345_v50  ;;  %5897 = vmatpush.msra.mxu0 %v5295_v30  ;;  %v5342_v21 = vld [vmem:[%s14725_s10 + $0x3e0] sm:$0xff]  ;;  %v5321_v30 = vld [vmem:[%s14725_s10 + $0x338] sm:$0xff] }
 0x604   :  { %v13168_v2 = vpop.f32.mrf.mxu1  ;;  %v13170_v1 = vpop.f32.mrf.mxu2  ;;  %5868 = vmatpush.msrb.mxu2 %v5252_v53  ;;  %5849 = vmatpush.msrb.mxu1 %v5235_v8  ;;  %v5308_v53 = vld [vmem:[%s14725_s10 + $0x2d0] sm:$0xff]  ;;  %v5322_v50 = vld [vmem:[%s14725_s10 + $0x340] sm:$0xff] }
 0x605   :  { %5956 = vmatpush.msra.mxu3 %v5344_v24  ;;  %5898 = vmatpush.msra.mxu0 %v5294_v0  ;;  %v5305_v24 = vld [vmem:[%s14725_s10 + $0x2b8] sm:$0xff]  ;;  %v13341_v0 = vperm.slane %v5117_v37, 0 }
 0x606   :  { %v13184_v42 = vpop.f32.mrf.mxu0  ;;  %5869 = vmatpush.msrb.mxu2 %v5251_v4  ;;  %5850 = vmatpush.msrb.mxu1 %v5234_v61  ;;  %v4807_v4 = vadd.f32 %v13079_v51, %v4778_v32  ;;  %v5307_v61 = vld [vmem:[%s14725_s10 + $0x2c8] sm:$0xff] }
 0x607   :  { %5957 = vmatpush.msra.mxu3 %v5343_v55  ;;  %5899 = vmatpush.msra.mxu0 %v5293_v17  ;;  %v5339_v51 = vld [vmem:[%s14725_s10 + $0x3c8] sm:$0xff] }
 0x608   :  { %5870 = vmatpush.msrb.mxu2 %v5250_v46  ;;  %5915 = vmatpush.msra.mxu1 %v5313_v29  ;;  %v5323_v46 = vld [vmem:[%s14725_s10 + $0x348] sm:$0xff]  ;;  %v5290_v29 = vld [vmem:[%s14725_s10 + $0x240] sm:$0xff] }
 0x609   :  { %5958 = vmatpush.msra.mxu3 %v5342_v21  ;;  %5900 = vmatpush.msra.mxu0 %v5292_v25  ;;  %v5304_v21 = vld [vmem:[%s14725_s10 + $0x2b0] sm:$0xff]  ;;  %v5303_v32 = vld [vmem:[%s14725_s10 + $0x2a8] sm:$0xff] }
 0x60a   :  { %v13216_v48 = vpop.f32.mrf.mxu3  ;;  %5935 = vmatpush.msra.mxu2 %v5329_v9  ;;  %5916 = vmatpush.msra.mxu1 %v5312_v5  ;;  %v5306_v9 = vld [vmem:[%s14725_s10 + $0x2c0] sm:$0xff]  ;;  %v4836_v5 = vadd.f32 %v13081_v28, %v4749_v35  ;;  %v5337_v28 = vld [vmem:[%s14725_s10 + $0x3b8] sm:$0xff]  ;;  %v5319_v25 = vld [vmem:[%s14725_s10 + $0x328] sm:$0xff] }
 0x60b   :  { %5959 = vmatpush.msra.mxu3 %v5341_v12  ;;  %5901 = vmatpush.msra.mxu0 %v5291_v59  ;;  %v5287_v12 = vld [vmem:[%s14725_s10 + $0x228] sm:$0xff]  ;;  %v5286_v59 = vld [vmem:[%s14725_s10 + $0x220] sm:$0xff]  ;;  %v5285_v35 = vld [vmem:[%s14725_s10 + $0x218] sm:$0xff] }
 0x60c   :  { %v13233_v3 = vpop.f32.mrf.mxu1  ;;  %v13235_v62 = vpop.f32.mrf.mxu2  ;;  %5936 = vmatpush.msra.mxu2 %v5328_v14  ;;  %5917 = vmatpush.msra.mxu1 %v5311_v15  ;;  %v5289_v14 = vld [vmem:[%s14725_s10 + $0x238] sm:$0xff]  ;;  %v5131_v15 = vld [vmem:[%s14724_s9] sm:$0x3] }
 0x60d   :  { %5960 = vmatpush.msra.mxu3 %v5340_v7  ;;  %5902 = vmatpush.msra.mxu0 %v5290_v29  ;;  %v7661_v29 = vmov 1935823168  }
 0x60e   :  { %v5002_v38 = vpop.f32.mrf.mxu0  ;;  %5937 = vmatpush.msra.mxu2 %v5327_v16  ;;  %5918 = vmatpush.msra.mxu1 %v5310_v22 }
 0x60f   :  { %5961 = vmatpush.msra.mxu3 %v5339_v51  ;;  %5903 = vmatpush.msra.mxu0 %v5289_v14  ;;  %v4697_v51 = vadd.f32 %v12986_v49, %v12982_v58  ;;  %v5317_v58 = vld [vmem:[%s14725_s10 + $0x318] sm:$0xff] }
 0x610   :  { %5938 = vmatpush.msra.mxu2 %v5326_v27  ;;  %5919 = vmatpush.msra.mxu1 %v5309_v13  ;;  %v5288_v27 = vld [vmem:[%s14725_s10 + $0x230] sm:$0xff]  ;;  %v13355_v13 = vperm.slane %v5117_v37, 1 }
 0x611   :  { %5962 = vmatpush.msra.mxu3 %v5338_v6  ;;  %5904 = vmatpush.msra.mxu0 %v5288_v27  ;;  %v4784_v49 = vadd.f32 %v13128_v41, %v4697_v51  ;;  %v5333_v6 = vld [vmem:[%s14725_s10 + $0x398] sm:$0xff]  ;;  %v5300_v41 = vld [vmem:[%s14725_s10 + $0x290] sm:$0xff] }
 0x612   :  { %v13275_v47 = vpop.f32.mrf.mxu3  ;;  %5939 = vmatpush.msra.mxu2 %v5325_v34  ;;  %5920 = vmatpush.msra.mxu1 %v5308_v53  ;;  %v13366_v53 = vperm.slane %v5131_v15, 0 }
 0x613   :  { %5963 = vmatpush.msra.mxu3 %v5337_v28  ;;  %5905 = vmatpush.msra.mxu0 %v5287_v12  ;;  %v5283_v28 = vld [vmem:[%s14725_s10 + $0x208] sm:$0xff] }
 0x614   :  { %v5031_v18 = vpop.f32.mrf.mxu1  ;;  %v5060_v8 = vpop.f32.mrf.mxu2  ;;  %5940 = vmatpush.msra.mxu2 %v5324_v20  ;;  %5921 = vmatpush.msra.mxu1 %v5307_v61  ;;  %v13368_v20 = vperm.slane %v5131_v15, 1  ;;  %v5302_v61 = vld [vmem:[%s14725_s10 + $0x2a0] sm:$0xff] }
 0x615   :  { %v5032_v11 = vadd.f32 %v5031_v18, %v5002_v38  ;;  %v4865_v38 = vadd.f32 %v13099_v44, %v4836_v5  ;;  %5906 = vmatpush.msra.mxu0 %v5286_v59 }
 0x616   :  { %v5005_v54 = vpop.f32.mrf.mxu0  ;;  %5941 = vmatpush.msra.mxu2 %v5323_v46  ;;  %5922 = vmatpush.msra.mxu1 %v5306_v9  ;;  %v5318_v46 = vld [vmem:[%s14725_s10 + $0x320] sm:$0xff]  ;;  %v5187_v9 = vunpack.c.l.s4 %v7661_v29 }
 0x617   :  { %v5101_v45 = vadd.f32 %v5032_v11, %v4807_v4  ;;  %5907 = vmatpush.msra.mxu0 %v5285_v35 }
 0x618   :  { %5942 = vmatpush.msra.mxu2 %v5322_v50  ;;  %5923 = vmatpush.msra.mxu1 %v5305_v24 }
 0x619   :  { %v5109_v55 = vadd.f32 %v5101_v45, %v11729_v23  ;;  %v5336_v23 = vld [vmem:[%s14725_s10 + $0x3b0] sm:$0xff]  ;;  %v5301_v45 = vld [vmem:[%s14725_s10 + $0x298] sm:$0xff] }
 0x61a   :  { %v5089_v16 = vpop.f32.mrf.mxu3  ;;  %5943 = vmatpush.msra.mxu2 %v5321_v30  ;;  %5924 = vmatpush.msra.mxu1 %v5304_v21  ;;  %v5316_v30 = vld [vmem:[%s14725_s10 + $0x310] sm:$0xff] }
 0x61b   :  { %v5090_v22 = vadd.f32 %v5089_v16, %v5060_v8  ;;  %5964 = vmatpush.msra.mxu3 %v5336_v23  ;;  %v5335_v8 = vld [vmem:[%s14725_s10 + $0x3a8] sm:$0xff]  ;;  %v5123_v7 = vmul.f32 %v13341_v0, %v5109_v55  ;;  %v5332_v16 = vld [vmem:[%s14725_s10 + $0x390] sm:$0xff]  ;;  %v4813_v55 = vadd.f32 %v13168_v2, %v4784_v49  ;;  %v4755_v23 = vadd.f32 %v13014_v43, %v12988_v52  ;;  %v5298_v52 = vld [vmem:[%s14725_s10 + $0x280] sm:$0xff] }
 0x61c   :  { %v5034_v44 = vpop.f32.mrf.mxu1  ;;  %v5063_v18 = vpop.f32.mrf.mxu2  ;;  %5944 = vmatpush.msra.mxu2 %v5320_v10  ;;  %5925 = vmatpush.msra.mxu1 %v5303_v32  ;;  %v5315_v10 = vld [vmem:[%s14725_s10 + $0x308] sm:$0xff]  ;;  %v5314_v43 = vld [vmem:[%s14725_s10 + $0x300] sm:$0xff] }
 0x61d   :  { %v5102_v17 = vadd.f32 %v5090_v22, %v4865_v38  ;;  %v5035_v34 = vadd.f32 %v5034_v44, %v5005_v54  ;;  %5965 = vmatpush.msra.mxu3 %v5335_v8  ;;  %v13406_v5 = vadd.f32 %v13366_v53, %v5123_v7  ;;  %v5299_v38 = vld [vmem:[%s14725_s10 + $0x288] sm:$0xff]  ;;  %v5330_v8 = vld [vmem:[%s14725_s10 + $0x380] sm:$0xff] }
 0x61e   :  { %5945 = vmatpush.msra.mxu2 %v5319_v25  ;;  %5926 = vmatpush.msra.mxu1 %v5302_v61  ;;  %v5008_v37 = vpop.f32.mrf.mxu0  ;;  %v5331_v44 = vld [vmem:[%s14725_s10 + $0x388] sm:$0xff] }
 0x61f   :  { %v5110_v4 = vadd.f32 %v5102_v17, %v11782_v19  ;;  %v5103_v11 = vadd.f32 %v5035_v34, %v13122_v63  ;;  %v5334_v19 = vld [vmem:[%s14725_s10 + $0x3a0] sm:$0xff]  ;;  %v13437_v17 = vunpack.c.0.s8 %v5187_v9  ;;  %v5145_v34 = vmax.f32 %v13406_v5, 0.0  ;;  %v5393_v5 = vld [vmem:[%s14725_s10 + $0x578] sm:$0xff] }
 0x620   :  { %5946 = vmatpush.msra.mxu2 %v5318_v46  ;;  %5966 = vmatpush.msra.mxu3 %v5334_v19 }
 0x621   :  { %v5124_v63 = vmul.f32 %v13355_v13, %v5110_v4  ;;  %v5111_v50 = vadd.f32 %v5103_v11, %v11807_v36  ;;  %5927 = vmatpush.msra.mxu1 %v5301_v45  ;;  %v5284_v36 = vld [vmem:[%s14725_s10 + $0x210] sm:$0xff]  ;;  %v4787_v11 = vadd.f32 %v13184_v42, %v13028_v40 }
 0x622   :  { %v5092_v54 = vpop.f32.mrf.mxu3  ;;  %5947 = vmatpush.msra.mxu2 %v5317_v58  ;;  %5967 = vmatpush.msra.mxu3 %v5333_v6 }
 0x623   :  { %v5138_v14 = vadd.f32 %v13368_v20, %v5124_v63  ;;  %v5093_v24 = vadd.f32 %v5092_v54, %v5063_v18  ;;  %5908 = vmatpush.msra.mxu0 %v5284_v36  ;;  %5928 = vmatpush.msra.mxu1 %v5300_v41  ;;  %v5125_v2 = vmul.f32 %v13341_v0, %v5111_v50 }
 0x624   :  { %v5037_v15 = vpop.f32.mrf.mxu1  ;;  %5948 = vmatpush.msra.mxu2 %v5316_v30  ;;  %5968 = vmatpush.msra.mxu3 %v5332_v16  ;;  %v5066_v18 = vpop.f32.mrf.mxu2  ;;  %v4816_v40 = vadd.f32 %v13233_v3, %v4787_v11  ;;  %v5376_v11 = vld [vmem:[%s14725_s10 + $0x4f0] sm:$0xff] }
 0x625   :  { %v5146_v22 = vmax.f32 %v5138_v14, 0.0  ;;  %v5104_v27 = vadd.f32 %v5093_v24, %v13163_v57  ;;  %v5038_v21 = vadd.f32 %v5037_v15, %v5008_v37  ;;  %v5282_v57 = vld [vmem:[%s14725_s10 + $0x200] sm:$0xff]  ;;  %5909 = vmatpush.msra.mxu0 %v5283_v28  ;;  %5929 = vmatpush.msra.mxu1 %v5299_v38  ;;  %v5139_v61 = vadd.f32 %v13366_v53, %v5125_v2 }
 0x626   :  { %5949 = vmatpush.msra.mxu2 %v5315_v10  ;;  %5969 = vmatpush.msra.mxu3 %v5331_v44  ;;  %v5011_v35 = vpop.f32.mrf.mxu0 }
 0x627   :  { %v5161_v12 = vrot.slane %v5146_v22, 4  ;;  %v5112_v32 = vadd.f32 %v5104_v27, %v11867_v33  ;;  %v5105_v25 = vadd.f32 %v5038_v21, %v4813_v55  ;;  %v4842_v33 = vadd.f32 %v13170_v1, %v4755_v23  ;;  %5910 = vmatpush.msra.mxu0 %v5282_v57  ;;  %5930 = vmatpush.msra.mxu1 %v5298_v52 }
 0x628   :  { %5950 = vmatpush.msra.mxu2 %v5314_v43  ;;  %5970 = vmatpush.msra.mxu3 %v5330_v8  ;;  %v5147_v29 = vmax.f32 %v5139_v61, 0.0  ;;  %v5360_v43 = vld [vmem:[%s14725_s10 + $0x470] sm:$0xff] }
 0x629   :  { %v5166_v7 = vsel %vm5165_vm3, %v5145_v34, %v5161_v12  ;;  %v5126_v4 = vmul.f32 %v13355_v13, %v5112_v32  ;;  %v4871_v51 = vadd.f32 %v13216_v48, %v4842_v33  ;;  %v5113_v19 = vadd.f32 %v5105_v25, %v11882_v26 }
 0x62a   :  { %v5189_v59 = vperm.slane %v5166_v7, %v13437_v17  ;;  %v5095_v46 = vpop.f32.mrf.mxu3  ;;  %v4845_v26 = vadd.f32 %v13235_v62, %v13068_v56 }
 0x62b   :  { %v5140_v1 = vadd.f32 %v13368_v20, %v5126_v4  ;;  %v5096_v63 = vadd.f32 %v5095_v46, %v5066_v18  ;;  %v5127_v50 = vmul.f32 %v13341_v0, %v5113_v19  ;;  %v5392_v46 = vld [vmem:[%s14725_s10 + $0x570] sm:$0xff]  ;;  %v5375_v19 = vld [vmem:[%s14725_s10 + $0x4e8] sm:$0xff] }
 0x62c   :  { %5742 = vst [vmem:[#allocation1] ss:$9 sm:$0xff] %v5189_v59  ;;  %v5040_v45 = vpop.f32.mrf.mxu1  ;;  %v4874_v14 = vadd.f32 %v13275_v47, %v4845_v26  ;;  %v5069_v24 = vpop.f32.mrf.mxu2  ;;  %v5388_v26 = vld [vmem:[%s14725_s10 + $0x550] sm:$0xff] }
 0x62d   :  { %v5148_v42 = vmax.f32 %v5140_v1, 0.0  ;;  %v5106_v58 = vadd.f32 %v5096_v63, %v4871_v51  ;;  %v5041_v49 = vadd.f32 %v5040_v45, %v5011_v35  ;;  %v5141_v41 = vadd.f32 %v13366_v53, %v5127_v50  ;;  %v5408_v51 = vld [vmem:[%s14725_s10 + $0x5f0] sm:$0xff]  ;;  %v5359_v1 = vld [vmem:[%s14725_s10 + $0x468] sm:$0xff]  ;;  %v5358_v45 = vld [vmem:[%s14725_s10 + $0x460] sm:$0xff] }
 0x62e   :  { %v5391_v63 = vld [vmem:[%s14725_s10 + $0x568] sm:$0xff]  ;;  %v5405_v50 = vld [vmem:[%s14725_s10 + $0x5d8] sm:$0xff] }
 0x62f   :  { %v5162_v9 = vrot.slane %v5148_v42, 4  ;;  %v5114_v48 = vadd.f32 %v5106_v58, %v11927_v39  ;;  %v5107_v37 = vadd.f32 %v5041_v49, %v4816_v40  ;;  %v5149_v16 = vmax.f32 %v5141_v41, 0.0  ;;  %v5407_v35 = vld [vmem:[%s14725_s10 + $0x5e8] sm:$0xff]  ;;  %v5374_v40 = vld [vmem:[%s14725_s10 + $0x4e0] sm:$0xff]  ;;  %v5357_v49 = vld [vmem:[%s14725_s10 + $0x458] sm:$0xff] }
 0x630   :  { %v5390_v42 = vld [vmem:[%s14725_s10 + $0x560] sm:$0xff]  ;;  %v5403_v41 = vld [vmem:[%s14725_s10 + $0x5c8] sm:$0xff] }
 0x631   :  { %v13472_v54 = vsel %vm5165_vm3, %v5147_v29, %v5162_v9  ;;  %v13475_v6 = vsel %vm5165_vm3, %v5162_v9, %v5147_v29  ;;  %v5128_v3 = vmul.f32 %v13355_v13, %v5114_v48  ;;  %v5115_v30 = vadd.f32 %v5107_v37, %v11946_v60  ;;  %v5406_v58 = vld [vmem:[%s14725_s10 + $0x5e0] sm:$0xff]  ;;  %v5373_v29 = vld [vmem:[%s14725_s10 + $0x4d8] sm:$0xff]  ;;  %v5356_v48 = vld [vmem:[%s14725_s10 + $0x450] sm:$0xff] }
 0x632   :  { %v5098_v36 = vpop.f32.mrf.mxu3  ;;  %v5167_v60 = vsel %vm5165_vm3, %v5161_v12, %v5145_v34  ;;  %v5409_v34 = vld [vmem:[%s14725_s10 + $0x5f8] sm:$0xff]  ;;  %v5372_v37 = vld [vmem:[%s14725_s10 + $0x4d0] sm:$0xff] }
 0x633   :  { %v5142_v39 = vadd.f32 %v13368_v20, %v5128_v3  ;;  %v5099_v15 = vadd.f32 %v5098_v36, %v5069_v24  ;;  %v5129_v38 = vmul.f32 %v13341_v0, %v5115_v30  ;;  %v5168_v2 = vrot.slane %v5167_v60, 4  ;;  %v5389_v9 = vld [vmem:[%s14725_s10 + $0x558] sm:$0xff]  ;;  %v5404_v3 = vld [vmem:[%s14725_s10 + $0x5d0] sm:$0xff]  ;;  %v5371_v24 = vld [vmem:[%s14725_s10 + $0x4c8] sm:$0xff] }
 0x634   :  { %v5387_v36 = vld [vmem:[%s14725_s10 + $0x548] sm:$0xff]  ;;  %v5370_v30 = vld [vmem:[%s14725_s10 + $0x4c0] sm:$0xff] }
 0x635   :  { %v5150_v56 = vmax.f32 %v5142_v39, 0.0  ;;  %v5108_v62 = vadd.f32 %v5099_v15, %v4874_v14  ;;  %v5143_v21 = vadd.f32 %v13366_v53, %v5129_v38  ;;  %v5361_v53 = vld [vmem:[%s14725_s10 + $0x478] sm:$0xff]  ;;  %v5193_v18 = vperm.slane %v5168_v2, %v13437_v17  ;;  %v5355_v14 = vld [vmem:[%s14725_s10 + $0x448] sm:$0xff]  ;;  %v5354_v39 = vld [vmem:[%s14725_s10 + $0x440] sm:$0xff] }
 0x636   :  { %v5384_v2 = vld [vmem:[%s14725_s10 + $0x530] sm:$0xff] }
 0x637   :  { %v5163_v28 = vrot.slane %v5150_v56, 4  ;;  %v5116_v55 = vadd.f32 %v5108_v62, %v11981_v31  ;;  %v5151_v23 = vmax.f32 %v5143_v21, 0.0 }
 0x639   :  { %v5172_v22 = vsel %vm5165_vm3, %v5149_v16, %v5163_v28  ;;  %v5130_v47 = vmul.f32 %v13355_v13, %v5116_v55  ;;  %v5173_v0 = vsel %vm5165_vm3, %v5163_v28, %v5149_v16  ;;  %v5197_v55 = vperm.slane %v13472_v54, %v13437_v17  ;;  %v5369_v54 = vld [vmem:[%s14725_s10 + $0x4b8] sm:$0xff] }
 0x63a   :  { %v5205_v27 = vperm.slane %v5172_v22, %v13437_v17  ;;  %v5174_v57 = vrot.slane %v5173_v0, 4  ;;  %v5386_v22 = vld [vmem:[%s14725_s10 + $0x540] sm:$0xff]  ;;  %v5401_v0 = vld [vmem:[%s14725_s10 + $0x5b8] sm:$0xff] }
 0x63b   :  { %v5144_v10 = vadd.f32 %v13368_v20, %v5130_v47  ;;  %v5377_v20 = vld [vmem:[%s14725_s10 + $0x4f8] sm:$0xff]  ;;  %v5402_v47 = vld [vmem:[%s14725_s10 + $0x5c0] sm:$0xff] }
 0x63c   :  { %5744 = vst [vmem:[#allocation1 + $0x1] ss:$9 sm:$0xff] %v5205_v27  ;;  %v5209_v4 = vperm.slane %v5174_v57, %v13437_v17  ;;  %v5353_v27 = vld [vmem:[%s14725_s10 + $0x438] sm:$0xff]  ;;  %v5400_v57 = vld [vmem:[%s14725_s10 + $0x5b0] sm:$0xff] }
 0x63d   :  { %v5152_v44 = vmax.f32 %v5144_v10, 0.0 }
 0x63f   :  { %v5164_v31 = vrot.slane %v5152_v44, 4  ;;  %v5385_v44 = vld [vmem:[%s14725_s10 + $0x538] sm:$0xff] }
 0x641   :  { %v13494_v13 = vsel %vm5165_vm3, %v5151_v23, %v5164_v31  ;;  %v13497_v32 = vsel %vm5165_vm3, %v5164_v31, %v5151_v23  ;;  %v5352_v23 = vld [vmem:[%s14725_s10 + $0x430] sm:$0xff] }
 0x642   :  { %v5213_v21 = vperm.slane %v13494_v13, %v13437_v17  ;;  %v5368_v31 = vld [vmem:[%s14725_s10 + $0x4b0] sm:$0xff]  ;;  %v5351_v13 = vld [vmem:[%s14725_s10 + $0x428] sm:$0xff] }
 0x643   :  { %v5745_v12 = vld [vmem:[#allocation1] sm:$0xff]  ;;  %v5746_v25 = vld [vmem:[#allocation1 + $0x9] sm:$0xff]  ;;  %v5747_v52 = vld [vmem:[#allocation1 + $0x12] sm:$0xff] }
 0x644   :  { %5831 = vmatmul.f32.vlgmr.msrb.gmra.mxu0 %v5745_v12  ;;  %5851 = vmatmul.f32.vlgmr.msrb.gmra.mxu1 %v5746_v25  ;;  %v5748_v8 = vld [vmem:[#allocation1 + $0x1b] sm:$0xff]  ;;  %v5749_v33 = vld [vmem:[#allocation1 + $0x24] sm:$0xff]  ;;  %v5750_v7 = vld [vmem:[#allocation1 + $0x2d] sm:$0xff] }
 0x645   :  { %5871 = vmatmul.f32.vlgmr.msrb.gmra.mxu2 %v5747_v52  ;;  %5891 = vmatmul.f32.vlgmr.msrb.gmra.mxu3 %v5748_v8  ;;  %v5751_v59 = vld [vmem:[#allocation1 + $0x36] sm:$0xff]  ;;  %v5752_v61 = vld [vmem:[#allocation1 + $0x3f] sm:$0xff] }
 0x646   :  { %5975 = vmatpush.msrb.mxu0 %v5361_v53  ;;  %5995 = vmatpush.msrb.mxu1 %v5377_v20  ;;  %5753 = vst [vmem:[#allocation1] ss:$9 sm:$0xff] %v5193_v18  ;;  %v5367_v53 = vld [vmem:[%s14725_s10 + $0x4a8] sm:$0xff]  ;;  %v5366_v12 = vld [vmem:[%s14725_s10 + $0x4a0] sm:$0xff]  ;;  %v5365_v18 = vld [vmem:[%s14725_s10 + $0x498] sm:$0xff] }
 0x647   :  { %6015 = vmatpush.msrb.mxu2 %v5393_v5  ;;  %6035 = vmatpush.msrb.mxu3 %v5409_v34  ;;  %5754 = vst [vmem:[#allocation1 + $0x1] ss:$9 sm:$0xff] %v5209_v4  ;;  %v5383_v20 = vld [vmem:[%s14725_s10 + $0x528] sm:$0xff]  ;;  %v5350_v34 = vld [vmem:[%s14725_s10 + $0x420] sm:$0xff]  ;;  %v5381_v8 = vld [vmem:[%s14725_s10 + $0x518] sm:$0xff] }
 0x648   :  { %5976 = vmatpush.msrb.mxu0 %v5360_v43  ;;  %5996 = vmatpush.msrb.mxu1 %v5376_v11  ;;  %v5399_v5 = vld [vmem:[%s14725_s10 + $0x5a8] sm:$0xff]  ;;  %v5382_v25 = vld [vmem:[%s14725_s10 + $0x520] sm:$0xff]  ;;  %v5349_v43 = vld [vmem:[%s14725_s10 + $0x418] sm:$0xff] }
 0x649   :  { %6016 = vmatpush.msrb.mxu2 %v5392_v46  ;;  %6036 = vmatpush.msrb.mxu3 %v5408_v51  ;;  %v5398_v52 = vld [vmem:[%s14725_s10 + $0x5a0] sm:$0xff]  ;;  %v5364_v4 = vld [vmem:[%s14725_s10 + $0x490] sm:$0xff]  ;;  %v5347_v46 = vld [vmem:[%s14725_s10 + $0x408] sm:$0xff] }
 0x64a   :  { %5977 = vmatpush.msrb.mxu0 %v5359_v1  ;;  %5997 = vmatpush.msrb.mxu1 %v5375_v19  ;;  %v5380_v11 = vld [vmem:[%s14725_s10 + $0x510] sm:$0xff]  ;;  %v5363_v51 = vld [vmem:[%s14725_s10 + $0x488] sm:$0xff]  ;;  %v5177_v19 = vrot.slane %v13497_v32, 4 }
 0x64b   :  { %6017 = vmatpush.msrb.mxu2 %v5391_v63  ;;  %6037 = vmatpush.msrb.mxu3 %v5407_v35  ;;  %v5379_v1 = vld [vmem:[%s14725_s10 + $0x508] sm:$0xff]  ;;  %v5346_v63 = vld [vmem:[%s14725_s10 + $0x400] sm:$0xff] }
 0x64c   :  { %5978 = vmatpush.msrb.mxu0 %v5358_v45  ;;  %5998 = vmatpush.msrb.mxu1 %v5374_v40  ;;  %v5362_v35 = vld [vmem:[%s14725_s10 + $0x480] sm:$0xff] }
 0x64d   :  { %6018 = vmatpush.msrb.mxu2 %v5390_v42  ;;  %6038 = vmatpush.msrb.mxu3 %v5406_v58 }
 0x64e   :  { %5911 = vmatmul.f32.vlgmr.msra.gmra.mxu0 %v5749_v33  ;;  %5931 = vmatmul.f32.vlgmr.msra.gmra.mxu1 %v5750_v7  ;;  %v13591_v15 = vld [vmem:[#allocation1] sm:$0xff]  ;;  %v13593_v56 = vld [vmem:[#allocation1 + $0x9] sm:$0xff]  ;;  %v13595_v62 = vld [vmem:[#allocation1 + $0x12] sm:$0xff] }
 0x64f   :  { %5951 = vmatmul.f32.vlgmr.msra.gmra.mxu2 %v5751_v59  ;;  %5971 = vmatmul.f32.vlgmr.msra.gmra.mxu3 %v5752_v61  ;;  %v13597_v16 = vld [vmem:[#allocation1 + $0x1b] sm:$0xff]  ;;  %v13599_v28 = vld [vmem:[#allocation1 + $0x24] sm:$0xff]  ;;  %v13601_v38 = vld [vmem:[#allocation1 + $0x2d] sm:$0xff]  ;;  %v5171_v61 = vrot.slane %v13475_v6, 4 }
 0x650   :  { %5979 = vmatpush.msrb.mxu0 %v5357_v49  ;;  %5999 = vmatpush.msrb.mxu1 %v5373_v29  ;;  %v13619_v10 = vld [vmem:[#allocation1 + $0x36] sm:$0xff]  ;;  %v13621_v60 = vld [vmem:[#allocation1 + $0x3f] sm:$0xff]  ;;  %v5395_v6 = vld [vmem:[%s14725_s10 + $0x588] sm:$0xff] }
 0x651   :  { %6019 = vmatpush.msrb.mxu2 %v5389_v9  ;;  %6039 = vmatpush.msrb.mxu3 %v5405_v50  ;;  %5763 = vst [vmem:[#allocation1] ss:$9 sm:$0xff] %v5197_v55  ;;  %v5397_v33 = vld [vmem:[%s14725_s10 + $0x598] sm:$0xff]  ;;  %v5348_v7 = vld [vmem:[%s14725_s10 + $0x410] sm:$0xff]  ;;  %v5201_v29 = vperm.slane %v5171_v61, %v13437_v17  ;;  %v5378_v9 = vld [vmem:[%s14725_s10 + $0x500] sm:$0xff] }
 0x652   :  { %5980 = vmatpush.msrb.mxu0 %v5356_v48  ;;  %6000 = vmatpush.msrb.mxu1 %v5372_v37  ;;  %5764 = vst [vmem:[#allocation1 + $0x1] ss:$9 sm:$0xff] %v5213_v21  ;;  %v5396_v59 = vld [vmem:[%s14725_s10 + $0x590] sm:$0xff]  ;;  %v5394_v50 = vld [vmem:[%s14725_s10 + $0x580] sm:$0xff]  ;;  %v5217_v48 = vperm.slane %v5177_v19, %v13437_v17  ;;  %v5457_v17 = vld [vmem:[%s14725_s10 + $0x778] sm:$0xff] }
 0x653   :  { %6020 = vmatpush.msrb.mxu2 %v5388_v26  ;;  %6040 = vmatpush.msrb.mxu3 %v5404_v3  ;;  %v5425_v3 = vld [vmem:[%s14725_s10 + $0x678] sm:$0xff]  ;;  %v5422_v55 = vld [vmem:[%s14725_s10 + $0x660] sm:$0xff]  ;;  %v5415_v61 = vld [vmem:[%s14725_s10 + $0x628] sm:$0xff] }
 0x654   :  { %5981 = vmatpush.msrb.mxu0 %v5355_v14  ;;  %6001 = vmatpush.msrb.mxu1 %v5371_v24  ;;  %v5441_v14 = vld [vmem:[%s14725_s10 + $0x6f8] sm:$0xff]  ;;  %v5414_v19 = vld [vmem:[%s14725_s10 + $0x620] sm:$0xff] }
 0x655   :  { %6021 = vmatpush.msrb.mxu2 %v5387_v36  ;;  %6041 = vmatpush.msrb.mxu3 %v5403_v41  ;;  %v5473_v24 = vld [vmem:[%s14725_s10 + $0x7f8] sm:$0xff]  ;;  %v5424_v36 = vld [vmem:[%s14725_s10 + $0x670] sm:$0xff] }
 0x656   :  { %5982 = vmatpush.msrb.mxu0 %v5354_v39  ;;  %6002 = vmatpush.msrb.mxu1 %v5370_v30  ;;  %v5440_v41 = vld [vmem:[%s14725_s10 + $0x6f0] sm:$0xff]  ;;  %v5421_v21 = vld [vmem:[%s14725_s10 + $0x658] sm:$0xff] }
 0x657   :  { %6022 = vmatpush.msrb.mxu2 %v5386_v22  ;;  %6042 = vmatpush.msrb.mxu3 %v5402_v47  ;;  %v5456_v39 = vld [vmem:[%s14725_s10 + $0x770] sm:$0xff]  ;;  %v5438_v22 = vld [vmem:[%s14725_s10 + $0x6e0] sm:$0xff] }
 0x658   :  { %5983 = vmatpush.msrb.mxu0 %v5353_v27  ;;  %6003 = vmatpush.msrb.mxu1 %v5369_v54  ;;  %v5472_v30 = vld [vmem:[%s14725_s10 + $0x7f0] sm:$0xff]  ;;  %v5454_v47 = vld [vmem:[%s14725_s10 + $0x760] sm:$0xff]  ;;  %v5437_v54 = vld [vmem:[%s14725_s10 + $0x6d8] sm:$0xff] }
 0x659   :  { %6023 = vmatpush.msrb.mxu2 %v5385_v44  ;;  %6043 = vmatpush.msrb.mxu3 %v5401_v0  ;;  %v13709_v45 = vld [vmem:[#allocation1] sm:$0xff]  ;;  %v13711_v40 = vld [vmem:[#allocation1 + $0x9] sm:$0xff]  ;;  %v13713_v32 = vld [vmem:[#allocation1 + $0x12] sm:$0xff] }
 0x65a   :  { %5984 = vmatpush.msrb.mxu0 %v5352_v23  ;;  %6004 = vmatpush.msrb.mxu1 %v5368_v31  ;;  %v13715_v42 = vld [vmem:[#allocation1 + $0x1b] sm:$0xff]  ;;  %v13717_v58 = vld [vmem:[#allocation1 + $0x24] sm:$0xff]  ;;  %v13719_v49 = vld [vmem:[#allocation1 + $0x2d] sm:$0xff] }
 0x65b   :  { %6024 = vmatpush.msrb.mxu2 %v5384_v2  ;;  %6044 = vmatpush.msrb.mxu3 %v5400_v57  ;;  %v13729_v37 = vld [vmem:[#allocation1 + $0x36] sm:$0xff]  ;;  %v13731_v26 = vld [vmem:[#allocation1 + $0x3f] sm:$0xff] }
 0x65c   :  { %5985 = vmatpush.msrb.mxu0 %v5351_v13  ;;  %6005 = vmatpush.msrb.mxu1 %v5367_v53  ;;  %5773 = vst [vmem:[#allocation1] ss:$9 sm:$0xff] %v5201_v29  ;;  %v5470_v27 = vld [vmem:[%s14725_s10 + $0x7e0] sm:$0xff]  ;;  %v5453_v44 = vld [vmem:[%s14725_s10 + $0x758] sm:$0xff]  ;;  %v5420_v23 = vld [vmem:[%s14725_s10 + $0x650] sm:$0xff] }
 0x65d   :  { %6025 = vmatpush.msrb.mxu2 %v5383_v20  ;;  %6045 = vmatpush.msrb.mxu3 %v5399_v5  ;;  %5774 = vst [vmem:[#allocation1 + $0x1] ss:$9 sm:$0xff] %v5217_v48  ;;  %v5469_v0 = vld [vmem:[%s14725_s10 + $0x7d8] sm:$0xff]  ;;  %v5436_v31 = vld [vmem:[%s14725_s10 + $0x6d0] sm:$0xff]  ;;  %v5419_v13 = vld [vmem:[%s14725_s10 + $0x648] sm:$0xff] }
 0x65e   :  { %5986 = vmatpush.msrb.mxu0 %v5350_v34  ;;  %6006 = vmatpush.msrb.mxu1 %v5366_v12  ;;  %v5452_v2 = vld [vmem:[%s14725_s10 + $0x750] sm:$0xff]  ;;  %v5435_v53 = vld [vmem:[%s14725_s10 + $0x6c8] sm:$0xff]  ;;  %v5418_v34 = vld [vmem:[%s14725_s10 + $0x640] sm:$0xff] }
 0x65f   :  { %6026 = vmatpush.msrb.mxu2 %v5382_v25  ;;  %6046 = vmatpush.msrb.mxu3 %v5398_v52  ;;  %v5468_v57 = vld [vmem:[%s14725_s10 + $0x7d0] sm:$0xff]  ;;  %v5451_v20 = vld [vmem:[%s14725_s10 + $0x748] sm:$0xff]  ;;  %v5434_v12 = vld [vmem:[%s14725_s10 + $0x6c0] sm:$0xff] }
 0x660   :  { %5987 = vmatpush.msrb.mxu0 %v5349_v43  ;;  %6007 = vmatpush.msrb.mxu1 %v5365_v18  ;;  %v5467_v5 = vld [vmem:[%s14725_s10 + $0x7c8] sm:$0xff]  ;;  %v5450_v25 = vld [vmem:[%s14725_s10 + $0x740] sm:$0xff]  ;;  %v5417_v43 = vld [vmem:[%s14725_s10 + $0x638] sm:$0xff] }
 0x661   :  { %6027 = vmatpush.msrb.mxu2 %v5381_v8  ;;  %6047 = vmatpush.msrb.mxu3 %v5397_v33  ;;  %v5466_v52 = vld [vmem:[%s14725_s10 + $0x7c0] sm:$0xff]  ;;  %v5433_v18 = vld [vmem:[%s14725_s10 + $0x6b8] sm:$0xff] }
 0x662   :  { %5988 = vmatpush.msrb.mxu0 %v5348_v7  ;;  %6008 = vmatpush.msrb.mxu1 %v5364_v4  ;;  %v5449_v8 = vld [vmem:[%s14725_s10 + $0x738] sm:$0xff]  ;;  %v5416_v7 = vld [vmem:[%s14725_s10 + $0x630] sm:$0xff] }
 0x663   :  { %6028 = vmatpush.msrb.mxu2 %v5380_v11  ;;  %6048 = vmatpush.msrb.mxu3 %v5396_v59  ;;  %v5465_v33 = vld [vmem:[%s14725_s10 + $0x7b8] sm:$0xff]  ;;  %v5432_v4 = vld [vmem:[%s14725_s10 + $0x6b0] sm:$0xff] }
 0x664   :  { %5989 = vmatpush.msrb.mxu0 %v5347_v46  ;;  %6009 = vmatpush.msrb.mxu1 %v5363_v51  ;;  %v5448_v11 = vld [vmem:[%s14725_s10 + $0x730] sm:$0xff]  ;;  %v5431_v46 = vld [vmem:[%s14725_s10 + $0x6a8] sm:$0xff]  ;;  %v5413_v29 = vld [vmem:[%s14725_s10 + $0x618] sm:$0xff] }
 0x665   :  { %6029 = vmatpush.msrb.mxu2 %v5379_v1  ;;  %6049 = vmatpush.msrb.mxu3 %v5395_v6  ;;  %v5464_v59 = vld [vmem:[%s14725_s10 + $0x7b0] sm:$0xff]  ;;  %v5447_v51 = vld [vmem:[%s14725_s10 + $0x728] sm:$0xff]  ;;  %v5430_v6 = vld [vmem:[%s14725_s10 + $0x6a0] sm:$0xff] }
 0x666   :  { %5990 = vmatpush.msrb.mxu0 %v5346_v63  ;;  %6010 = vmatpush.msrb.mxu1 %v5362_v35  ;;  %v5463_v1 = vld [vmem:[%s14725_s10 + $0x7a8] sm:$0xff]  ;;  %v5446_v63 = vld [vmem:[%s14725_s10 + $0x720] sm:$0xff]  ;;  %v5461_v48 = vld [vmem:[%s14725_s10 + $0x798] sm:$0xff] }
 0x667   :  { %6030 = vmatpush.msrb.mxu2 %v5378_v9  ;;  %6050 = vmatpush.msrb.mxu3 %v5394_v50  ;;  %v5462_v35 = vld [vmem:[%s14725_s10 + $0x7a0] sm:$0xff]  ;;  %v5429_v9 = vld [vmem:[%s14725_s10 + $0x698] sm:$0xff] }
 0x668   :  { %5991 = vmatmul.f32.vlgmr.msrb.gmra.mxu0 %v13591_v15  ;;  %6011 = vmatmul.f32.vlgmr.msrb.gmra.mxu1 %v13593_v56  ;;  %v5423_v15 = vld [vmem:[%s14725_s10 + $0x668] sm:$0xff]  ;;  %v5445_v50 = vld [vmem:[%s14725_s10 + $0x718] sm:$0xff] }
 0x669   :  { %6031 = vmatmul.f32.vlgmr.msrb.gmra.mxu2 %v13595_v62  ;;  %6051 = vmatmul.f32.vlgmr.msrb.gmra.mxu3 %v13597_v16  ;;  %v5439_v56 = vld [vmem:[%s14725_s10 + $0x6e8] sm:$0xff] }
 0x66a   :  { %6055 = vmatpush.msra.mxu0 %v5425_v3  ;;  %6075 = vmatpush.msra.mxu1 %v5441_v14  ;;  %v5455_v62 = vld [vmem:[%s14725_s10 + $0x768] sm:$0xff]  ;;  %v5412_v3 = vld [vmem:[%s14725_s10 + $0x610] sm:$0xff] }
 0x66b   :  { %6095 = vmatpush.msra.mxu2 %v5457_v17  ;;  %6115 = vmatpush.msra.mxu3 %v5473_v24  ;;  %v5471_v16 = vld [vmem:[%s14725_s10 + $0x7e8] sm:$0xff]  ;;  %v5428_v14 = vld [vmem:[%s14725_s10 + $0x690] sm:$0xff] }
 0x66c   :  { %6056 = vmatpush.msra.mxu0 %v5424_v36  ;;  %6076 = vmatpush.msra.mxu1 %v5440_v41  ;;  %v5444_v17 = vld [vmem:[%s14725_s10 + $0x710] sm:$0xff]  ;;  %v5411_v36 = vld [vmem:[%s14725_s10 + $0x608] sm:$0xff] }
 0x66d   :  { %6096 = vmatpush.msra.mxu2 %v5456_v39  ;;  %6116 = vmatpush.msra.mxu3 %v5472_v30  ;;  %v5460_v24 = vld [vmem:[%s14725_s10 + $0x790] sm:$0xff]  ;;  %v5427_v41 = vld [vmem:[%s14725_s10 + $0x688] sm:$0xff] }
 0x66e   :  { %6057 = vmatpush.msra.mxu0 %v5423_v15  ;;  %6077 = vmatpush.msra.mxu1 %v5439_v56  ;;  %v5443_v39 = vld [vmem:[%s14725_s10 + $0x708] sm:$0xff]  ;;  %v5410_v15 = vld [vmem:[%s14725_s10 + $0x600] sm:$0xff] }
 0x66f   :  { %6097 = vmatpush.msra.mxu2 %v5455_v62  ;;  %6117 = vmatpush.msra.mxu3 %v5471_v16  ;;  %v5459_v30 = vld [vmem:[%s14725_s10 + $0x788] sm:$0xff]  ;;  %v5426_v56 = vld [vmem:[%s14725_s10 + $0x680] sm:$0xff] }
 0x670   :  { %6058 = vmatpush.msra.mxu0 %v5422_v55  ;;  %6078 = vmatpush.msra.mxu1 %v5438_v22  ;;  %v5442_v62 = vld [vmem:[%s14725_s10 + $0x700] sm:$0xff]  ;;  %v5489_v55 = vld [vmem:[%s14725_s10 + $0x878] sm:$0xff] }
 0x671   :  { %6098 = vmatpush.msra.mxu2 %v5454_v47  ;;  %6118 = vmatpush.msra.mxu3 %v5470_v27  ;;  %v5458_v16 = vld [vmem:[%s14725_s10 + $0x780] sm:$0xff]  ;;  %v5505_v22 = vld [vmem:[%s14725_s10 + $0x8f8] sm:$0xff] }
 0x672   :  { %6059 = vmatpush.msra.mxu0 %v5421_v21  ;;  %6079 = vmatpush.msra.mxu1 %v5437_v54  ;;  %v5521_v47 = vld [vmem:[%s14725_s10 + $0x978] sm:$0xff]  ;;  %v5488_v21 = vld [vmem:[%s14725_s10 + $0x870] sm:$0xff]  ;;  %v5503_v54 = vld [vmem:[%s14725_s10 + $0x8e8] sm:$0xff] }
 0x673   :  { %6099 = vmatpush.msra.mxu2 %v5453_v44  ;;  %6119 = vmatpush.msra.mxu3 %v5469_v0  ;;  %v5537_v27 = vld [vmem:[%s14725_s10 + $0x9f8] sm:$0xff]  ;;  %v5519_v44 = vld [vmem:[%s14725_s10 + $0x968] sm:$0xff] }
 0x674   :  { %6060 = vmatpush.msra.mxu0 %v5420_v23  ;;  %6080 = vmatpush.msra.mxu1 %v5436_v31  ;;  %v5535_v0 = vld [vmem:[%s14725_s10 + $0x9e8] sm:$0xff]  ;;  %v5486_v23 = vld [vmem:[%s14725_s10 + $0x860] sm:$0xff] }
 0x675   :  { %6100 = vmatpush.msra.mxu2 %v5452_v2  ;;  %6120 = vmatpush.msra.mxu3 %v5468_v57  ;;  %v5502_v31 = vld [vmem:[%s14725_s10 + $0x8e0] sm:$0xff] }
 0x676   :  { %6061 = vmatpush.msra.mxu0 %v5419_v13  ;;  %6081 = vmatpush.msra.mxu1 %v5435_v53  ;;  %v5518_v2 = vld [vmem:[%s14725_s10 + $0x960] sm:$0xff]  ;;  %v5485_v13 = vld [vmem:[%s14725_s10 + $0x858] sm:$0xff] }
 0x677   :  { %6101 = vmatpush.msra.mxu2 %v5451_v20  ;;  %6121 = vmatpush.msra.mxu3 %v5467_v5  ;;  %v5534_v57 = vld [vmem:[%s14725_s10 + $0x9e0] sm:$0xff]  ;;  %v5501_v53 = vld [vmem:[%s14725_s10 + $0x8d8] sm:$0xff] }
 0x678   :  { %6062 = vmatpush.msra.mxu0 %v5418_v34  ;;  %6082 = vmatpush.msra.mxu1 %v5434_v12  ;;  %v5517_v20 = vld [vmem:[%s14725_s10 + $0x958] sm:$0xff]  ;;  %v5484_v34 = vld [vmem:[%s14725_s10 + $0x850] sm:$0xff] }
 0x679   :  { %6102 = vmatpush.msra.mxu2 %v5450_v25  ;;  %6122 = vmatpush.msra.mxu3 %v5466_v52  ;;  %v5533_v5 = vld [vmem:[%s14725_s10 + $0x9d8] sm:$0xff]  ;;  %v5500_v12 = vld [vmem:[%s14725_s10 + $0x8d0] sm:$0xff] }
 0x67a   :  { %6063 = vmatpush.msra.mxu0 %v5417_v43  ;;  %6083 = vmatpush.msra.mxu1 %v5433_v18  ;;  %v5516_v25 = vld [vmem:[%s14725_s10 + $0x950] sm:$0xff]  ;;  %v5483_v43 = vld [vmem:[%s14725_s10 + $0x848] sm:$0xff] }
 0x67b   :  { %6103 = vmatpush.msra.mxu2 %v5449_v8  ;;  %6123 = vmatpush.msra.mxu3 %v5465_v33  ;;  %v5532_v52 = vld [vmem:[%s14725_s10 + $0x9d0] sm:$0xff]  ;;  %v5499_v18 = vld [vmem:[%s14725_s10 + $0x8c8] sm:$0xff] }
 0x67c   :  { %6064 = vmatpush.msra.mxu0 %v5416_v7  ;;  %6084 = vmatpush.msra.mxu1 %v5432_v4  ;;  %v5515_v8 = vld [vmem:[%s14725_s10 + $0x948] sm:$0xff]  ;;  %v5482_v7 = vld [vmem:[%s14725_s10 + $0x840] sm:$0xff] }
 0x67d   :  { %6104 = vmatpush.msra.mxu2 %v5448_v11  ;;  %6124 = vmatpush.msra.mxu3 %v5464_v59  ;;  %v5531_v33 = vld [vmem:[%s14725_s10 + $0x9c8] sm:$0xff]  ;;  %v5498_v4 = vld [vmem:[%s14725_s10 + $0x8c0] sm:$0xff] }
 0x67e   :  { %6065 = vmatpush.msra.mxu0 %v5415_v61  ;;  %6085 = vmatpush.msra.mxu1 %v5431_v46  ;;  %v5514_v11 = vld [vmem:[%s14725_s10 + $0x940] sm:$0xff]  ;;  %v5481_v61 = vld [vmem:[%s14725_s10 + $0x838] sm:$0xff] }
 0x67f   :  { %6105 = vmatpush.msra.mxu2 %v5447_v51  ;;  %6125 = vmatpush.msra.mxu3 %v5463_v1  ;;  %v5530_v59 = vld [vmem:[%s14725_s10 + $0x9c0] sm:$0xff]  ;;  %v5497_v46 = vld [vmem:[%s14725_s10 + $0x8b8] sm:$0xff] }
 0x680   :  { %6066 = vmatpush.msra.mxu0 %v5414_v19  ;;  %6086 = vmatpush.msra.mxu1 %v5430_v6  ;;  %v5513_v51 = vld [vmem:[%s14725_s10 + $0x938] sm:$0xff]  ;;  %v5480_v19 = vld [vmem:[%s14725_s10 + $0x830] sm:$0xff] }
 0x681   :  { %6106 = vmatpush.msra.mxu2 %v5446_v63  ;;  %6126 = vmatpush.msra.mxu3 %v5462_v35  ;;  %v5529_v1 = vld [vmem:[%s14725_s10 + $0x9b8] sm:$0xff]  ;;  %v5496_v6 = vld [vmem:[%s14725_s10 + $0x8b0] sm:$0xff] }
 0x682   :  { %6067 = vmatpush.msra.mxu0 %v5413_v29  ;;  %6087 = vmatpush.msra.mxu1 %v5429_v9  ;;  %v5512_v63 = vld [vmem:[%s14725_s10 + $0x930] sm:$0xff]  ;;  %v5479_v29 = vld [vmem:[%s14725_s10 + $0x828] sm:$0xff] }
 0x683   :  { %6107 = vmatpush.msra.mxu2 %v5445_v50  ;;  %6127 = vmatpush.msra.mxu3 %v5461_v48  ;;  %v5528_v35 = vld [vmem:[%s14725_s10 + $0x9b0] sm:$0xff]  ;;  %v5495_v9 = vld [vmem:[%s14725_s10 + $0x8a8] sm:$0xff] }
 0x684   :  { %6068 = vmatpush.msra.mxu0 %v5412_v3  ;;  %6088 = vmatpush.msra.mxu1 %v5428_v14  ;;  %v5511_v50 = vld [vmem:[%s14725_s10 + $0x928] sm:$0xff]  ;;  %v5478_v3 = vld [vmem:[%s14725_s10 + $0x820] sm:$0xff] }
 0x685   :  { %6108 = vmatpush.msra.mxu2 %v5444_v17  ;;  %6128 = vmatpush.msra.mxu3 %v5460_v24  ;;  %v5527_v48 = vld [vmem:[%s14725_s10 + $0x9a8] sm:$0xff]  ;;  %v5494_v14 = vld [vmem:[%s14725_s10 + $0x8a0] sm:$0xff] }
 0x686   :  { %6069 = vmatpush.msra.mxu0 %v5411_v36  ;;  %6089 = vmatpush.msra.mxu1 %v5427_v41  ;;  %v5510_v17 = vld [vmem:[%s14725_s10 + $0x920] sm:$0xff]  ;;  %v5477_v36 = vld [vmem:[%s14725_s10 + $0x818] sm:$0xff] }
 0x687   :  { %6109 = vmatpush.msra.mxu2 %v5443_v39  ;;  %6129 = vmatpush.msra.mxu3 %v5459_v30  ;;  %v5526_v24 = vld [vmem:[%s14725_s10 + $0x9a0] sm:$0xff]  ;;  %v5493_v41 = vld [vmem:[%s14725_s10 + $0x898] sm:$0xff] }
 0x688   :  { %6070 = vmatpush.msra.mxu0 %v5410_v15  ;;  %6090 = vmatpush.msra.mxu1 %v5426_v56  ;;  %v5509_v39 = vld [vmem:[%s14725_s10 + $0x918] sm:$0xff]  ;;  %v5476_v15 = vld [vmem:[%s14725_s10 + $0x810] sm:$0xff] }
 0x689   :  { %6110 = vmatpush.msra.mxu2 %v5442_v62  ;;  %6130 = vmatpush.msra.mxu3 %v5458_v16  ;;  %v5525_v30 = vld [vmem:[%s14725_s10 + $0x998] sm:$0xff]  ;;  %v5492_v56 = vld [vmem:[%s14725_s10 + $0x890] sm:$0xff] }
 0x68a   :  { %6071 = vmatmul.f32.vlgmr.msra.gmra.mxu0 %v13599_v28  ;;  %6091 = vmatmul.f32.vlgmr.msra.gmra.mxu1 %v13601_v38  ;;  %v5504_v28 = vld [vmem:[%s14725_s10 + $0x8f0] sm:$0xff] }
 0x68b   :  { %6111 = vmatmul.f32.vlgmr.msra.gmra.mxu2 %v13619_v10  ;;  %6131 = vmatmul.f32.vlgmr.msra.gmra.mxu3 %v13621_v60  ;;  %v5520_v38 = vld [vmem:[%s14725_s10 + $0x970] sm:$0xff]  ;;  %v5487_v60 = vld [vmem:[%s14725_s10 + $0x868] sm:$0xff] }
 0x68c   :  { %6135 = vmatpush.msrb.mxu0 %v5489_v55  ;;  %6155 = vmatpush.msrb.mxu1 %v5505_v22  ;;  %v5536_v10 = vld [vmem:[%s14725_s10 + $0x9f0] sm:$0xff]  ;;  %v5475_v55 = vld [vmem:[%s14725_s10 + $0x808] sm:$0xff] }
 0x68d   :  { %6175 = vmatpush.msrb.mxu2 %v5521_v47  ;;  %6195 = vmatpush.msrb.mxu3 %v5537_v27  ;;  %v5508_v62 = vld [vmem:[%s14725_s10 + $0x910] sm:$0xff]  ;;  %v5491_v22 = vld [vmem:[%s14725_s10 + $0x888] sm:$0xff] }
 0x68e   :  { %6136 = vmatpush.msrb.mxu0 %v5488_v21  ;;  %6156 = vmatpush.msrb.mxu1 %v5504_v28  ;;  %v5524_v16 = vld [vmem:[%s14725_s10 + $0x990] sm:$0xff]  ;;  %v5507_v47 = vld [vmem:[%s14725_s10 + $0x908] sm:$0xff]  ;;  %v5474_v21 = vld [vmem:[%s14725_s10 + $0x800] sm:$0xff] }
 0x68f   :  { %6176 = vmatpush.msrb.mxu2 %v5520_v38  ;;  %6196 = vmatpush.msrb.mxu3 %v5536_v10  ;;  %v5523_v27 = vld [vmem:[%s14725_s10 + $0x988] sm:$0xff]  ;;  %v5490_v28 = vld [vmem:[%s14725_s10 + $0x880] sm:$0xff] }
 0x690   :  { %6137 = vmatpush.msrb.mxu0 %v5487_v60  ;;  %6157 = vmatpush.msrb.mxu1 %v5503_v54  ;;  %v5506_v38 = vld [vmem:[%s14725_s10 + $0x900] sm:$0xff]  ;;  %v5553_v60 = vld [vmem:[%s14725_s10 + $0xa78] sm:$0xff] }
 0x691   :  { %6177 = vmatpush.msrb.mxu2 %v5519_v44  ;;  %6197 = vmatpush.msrb.mxu3 %v5535_v0  ;;  %v5522_v10 = vld [vmem:[%s14725_s10 + $0x980] sm:$0xff]  ;;  %v5569_v54 = vld [vmem:[%s14725_s10 + $0xaf8] sm:$0xff] }
 0x692   :  { %6138 = vmatpush.msrb.mxu0 %v5486_v23  ;;  %6158 = vmatpush.msrb.mxu1 %v5502_v31  ;;  %v5585_v44 = vld [vmem:[%s14725_s10 + $0xb78] sm:$0xff]  ;;  %v5552_v23 = vld [vmem:[%s14725_s10 + $0xa70] sm:$0xff]  ;;  %v5567_v31 = vld [vmem:[%s14725_s10 + $0xae8] sm:$0xff] }
 0x693   :  { %6178 = vmatpush.msrb.mxu2 %v5518_v2  ;;  %6198 = vmatpush.msrb.mxu3 %v5534_v57  ;;  %v5601_v0 = vld [vmem:[%s14725_s10 + $0xbf8] sm:$0xff]  ;;  %v5583_v2 = vld [vmem:[%s14725_s10 + $0xb68] sm:$0xff] }
 0x694   :  { %6139 = vmatpush.msrb.mxu0 %v5485_v13  ;;  %6159 = vmatpush.msrb.mxu1 %v5501_v53  ;;  %v5599_v57 = vld [vmem:[%s14725_s10 + $0xbe8] sm:$0xff]  ;;  %v5550_v13 = vld [vmem:[%s14725_s10 + $0xa60] sm:$0xff] }
 0x695   :  { %6179 = vmatpush.msrb.mxu2 %v5517_v20  ;;  %6199 = vmatpush.msrb.mxu3 %v5533_v5  ;;  %v5566_v53 = vld [vmem:[%s14725_s10 + $0xae0] sm:$0xff] }
 0x696   :  { %6140 = vmatpush.msrb.mxu0 %v5484_v34  ;;  %6160 = vmatpush.msrb.mxu1 %v5500_v12  ;;  %v5582_v20 = vld [vmem:[%s14725_s10 + $0xb60] sm:$0xff]  ;;  %v5549_v34 = vld [vmem:[%s14725_s10 + $0xa58] sm:$0xff] }
 0x697   :  { %6180 = vmatpush.msrb.mxu2 %v5516_v25  ;;  %6200 = vmatpush.msrb.mxu3 %v5532_v52  ;;  %v5598_v5 = vld [vmem:[%s14725_s10 + $0xbe0] sm:$0xff]  ;;  %v5565_v12 = vld [vmem:[%s14725_s10 + $0xad8] sm:$0xff] }
 0x698   :  { %6141 = vmatpush.msrb.mxu0 %v5483_v43  ;;  %6161 = vmatpush.msrb.mxu1 %v5499_v18  ;;  %v5581_v25 = vld [vmem:[%s14725_s10 + $0xb58] sm:$0xff]  ;;  %v5548_v43 = vld [vmem:[%s14725_s10 + $0xa50] sm:$0xff] }
 0x699   :  { %6181 = vmatpush.msrb.mxu2 %v5515_v8  ;;  %6201 = vmatpush.msrb.mxu3 %v5531_v33  ;;  %v5597_v52 = vld [vmem:[%s14725_s10 + $0xbd8] sm:$0xff]  ;;  %v5564_v18 = vld [vmem:[%s14725_s10 + $0xad0] sm:$0xff] }
 0x69a   :  { %6142 = vmatpush.msrb.mxu0 %v5482_v7  ;;  %6162 = vmatpush.msrb.mxu1 %v5498_v4  ;;  %v5580_v8 = vld [vmem:[%s14725_s10 + $0xb50] sm:$0xff]  ;;  %v5547_v7 = vld [vmem:[%s14725_s10 + $0xa48] sm:$0xff] }
 0x69b   :  { %6182 = vmatpush.msrb.mxu2 %v5514_v11  ;;  %6202 = vmatpush.msrb.mxu3 %v5530_v59  ;;  %v5596_v33 = vld [vmem:[%s14725_s10 + $0xbd0] sm:$0xff]  ;;  %v5563_v4 = vld [vmem:[%s14725_s10 + $0xac8] sm:$0xff] }
 0x69c   :  { %6143 = vmatpush.msrb.mxu0 %v5481_v61  ;;  %6163 = vmatpush.msrb.mxu1 %v5497_v46  ;;  %v5579_v11 = vld [vmem:[%s14725_s10 + $0xb48] sm:$0xff]  ;;  %v5546_v61 = vld [vmem:[%s14725_s10 + $0xa40] sm:$0xff] }
 0x69d   :  { %6183 = vmatpush.msrb.mxu2 %v5513_v51  ;;  %6203 = vmatpush.msrb.mxu3 %v5529_v1  ;;  %v5595_v59 = vld [vmem:[%s14725_s10 + $0xbc8] sm:$0xff]  ;;  %v5562_v46 = vld [vmem:[%s14725_s10 + $0xac0] sm:$0xff] }
 0x69e   :  { %6144 = vmatpush.msrb.mxu0 %v5480_v19  ;;  %6164 = vmatpush.msrb.mxu1 %v5496_v6  ;;  %v5578_v51 = vld [vmem:[%s14725_s10 + $0xb40] sm:$0xff]  ;;  %v5545_v19 = vld [vmem:[%s14725_s10 + $0xa38] sm:$0xff] }
 0x69f   :  { %6184 = vmatpush.msrb.mxu2 %v5512_v63  ;;  %6204 = vmatpush.msrb.mxu3 %v5528_v35  ;;  %v5594_v1 = vld [vmem:[%s14725_s10 + $0xbc0] sm:$0xff]  ;;  %v5561_v6 = vld [vmem:[%s14725_s10 + $0xab8] sm:$0xff] }
 0x6a0   :  { %6145 = vmatpush.msrb.mxu0 %v5479_v29  ;;  %6165 = vmatpush.msrb.mxu1 %v5495_v9  ;;  %v5577_v63 = vld [vmem:[%s14725_s10 + $0xb38] sm:$0xff]  ;;  %v5544_v29 = vld [vmem:[%s14725_s10 + $0xa30] sm:$0xff] }
 0x6a1   :  { %6185 = vmatpush.msrb.mxu2 %v5511_v50  ;;  %6205 = vmatpush.msrb.mxu3 %v5527_v48  ;;  %v5593_v35 = vld [vmem:[%s14725_s10 + $0xbb8] sm:$0xff]  ;;  %v5560_v9 = vld [vmem:[%s14725_s10 + $0xab0] sm:$0xff] }
 0x6a2   :  { %6146 = vmatpush.msrb.mxu0 %v5478_v3  ;;  %6166 = vmatpush.msrb.mxu1 %v5494_v14  ;;  %v5576_v50 = vld [vmem:[%s14725_s10 + $0xb30] sm:$0xff]  ;;  %v5543_v3 = vld [vmem:[%s14725_s10 + $0xa28] sm:$0xff] }
 0x6a3   :  { %6186 = vmatpush.msrb.mxu2 %v5510_v17  ;;  %6206 = vmatpush.msrb.mxu3 %v5526_v24  ;;  %v5592_v48 = vld [vmem:[%s14725_s10 + $0xbb0] sm:$0xff]  ;;  %v5559_v14 = vld [vmem:[%s14725_s10 + $0xaa8] sm:$0xff] }
 0x6a4   :  { %6147 = vmatpush.msrb.mxu0 %v5477_v36  ;;  %6167 = vmatpush.msrb.mxu1 %v5493_v41  ;;  %v5575_v17 = vld [vmem:[%s14725_s10 + $0xb28] sm:$0xff]  ;;  %v5542_v36 = vld [vmem:[%s14725_s10 + $0xa20] sm:$0xff] }
 0x6a5   :  { %6187 = vmatpush.msrb.mxu2 %v5509_v39  ;;  %6207 = vmatpush.msrb.mxu3 %v5525_v30  ;;  %v5591_v24 = vld [vmem:[%s14725_s10 + $0xba8] sm:$0xff]  ;;  %v5558_v41 = vld [vmem:[%s14725_s10 + $0xaa0] sm:$0xff] }
 0x6a6   :  { %6148 = vmatpush.msrb.mxu0 %v5476_v15  ;;  %6168 = vmatpush.msrb.mxu1 %v5492_v56  ;;  %v5574_v39 = vld [vmem:[%s14725_s10 + $0xb20] sm:$0xff]  ;;  %v5541_v15 = vld [vmem:[%s14725_s10 + $0xa18] sm:$0xff] }
 0x6a7   :  { %6188 = vmatpush.msrb.mxu2 %v5508_v62  ;;  %6208 = vmatpush.msrb.mxu3 %v5524_v16  ;;  %v5590_v30 = vld [vmem:[%s14725_s10 + $0xba0] sm:$0xff]  ;;  %v5557_v56 = vld [vmem:[%s14725_s10 + $0xa98] sm:$0xff] }
 0x6a8   :  { %6149 = vmatpush.msrb.mxu0 %v5475_v55  ;;  %6169 = vmatpush.msrb.mxu1 %v5491_v22  ;;  %v5573_v62 = vld [vmem:[%s14725_s10 + $0xb18] sm:$0xff]  ;;  %v5540_v55 = vld [vmem:[%s14725_s10 + $0xa10] sm:$0xff] }
 0x6a9   :  { %6189 = vmatpush.msrb.mxu2 %v5507_v47  ;;  %6209 = vmatpush.msrb.mxu3 %v5523_v27  ;;  %v5589_v16 = vld [vmem:[%s14725_s10 + $0xb98] sm:$0xff]  ;;  %v5556_v22 = vld [vmem:[%s14725_s10 + $0xa90] sm:$0xff] }
 0x6aa   :  { %6150 = vmatpush.msrb.mxu0 %v5474_v21  ;;  %6170 = vmatpush.msrb.mxu1 %v5490_v28  ;;  %v5572_v47 = vld [vmem:[%s14725_s10 + $0xb10] sm:$0xff]  ;;  %v5539_v21 = vld [vmem:[%s14725_s10 + $0xa08] sm:$0xff] }
 0x6ab   :  { %6190 = vmatpush.msrb.mxu2 %v5506_v38  ;;  %6210 = vmatpush.msrb.mxu3 %v5522_v10  ;;  %v5588_v27 = vld [vmem:[%s14725_s10 + $0xb90] sm:$0xff]  ;;  %v5555_v28 = vld [vmem:[%s14725_s10 + $0xa88] sm:$0xff] }
 0x6ac   :  { %6151 = vmatmul.f32.vlgmr.msrb.gmra.mxu0 %v13709_v45  ;;  %6171 = vmatmul.f32.vlgmr.msrb.gmra.mxu1 %v13711_v40  ;;  %v5568_v45 = vld [vmem:[%s14725_s10 + $0xaf0] sm:$0xff]  ;;  %v5571_v38 = vld [vmem:[%s14725_s10 + $0xb08] sm:$0xff] }
 0x6ad   :  { %6191 = vmatmul.f32.vlgmr.msrb.gmra.mxu2 %v13713_v32  ;;  %6211 = vmatmul.f32.vlgmr.msrb.gmra.mxu3 %v13715_v42  ;;  %v5584_v40 = vld [vmem:[%s14725_s10 + $0xb70] sm:$0xff]  ;;  %v5551_v42 = vld [vmem:[%s14725_s10 + $0xa68] sm:$0xff] }
 0x6ae   :  { %6215 = vmatpush.msra.mxu0 %v5553_v60  ;;  %6235 = vmatpush.msra.mxu1 %v5569_v54  ;;  %v5600_v32 = vld [vmem:[%s14725_s10 + $0xbf0] sm:$0xff]  ;;  %v5587_v10 = vld [vmem:[%s14725_s10 + $0xb88] sm:$0xff]  ;;  %v5538_v60 = vld [vmem:[%s14725_s10 + $0xa00] sm:$0xff] }
 0x6af   :  { %6255 = vmatpush.msra.mxu2 %v5585_v44  ;;  %6275 = vmatpush.msra.mxu3 %v5601_v0  ;;  %v5554_v54 = vld [vmem:[%s14725_s10 + $0xa80] sm:$0xff] }
 0x6b0   :  { %6216 = vmatpush.msra.mxu0 %v5552_v23  ;;  %6236 = vmatpush.msra.mxu1 %v5568_v45  ;;  %v5570_v44 = vld [vmem:[%s14725_s10 + $0xb00] sm:$0xff]  ;;  %v5617_v23 = vld [vmem:[%s14725_s10 + $0xc78] sm:$0xff] }
 0x6b1   :  { %6256 = vmatpush.msra.mxu2 %v5584_v40  ;;  %6276 = vmatpush.msra.mxu3 %v5600_v32  ;;  %v5586_v0 = vld [vmem:[%s14725_s10 + $0xb80] sm:$0xff]  ;;  %v5633_v45 = vld [vmem:[%s14725_s10 + $0xcf8] sm:$0xff] }
 0x6b2   :  { %6217 = vmatpush.msra.mxu0 %v5551_v42  ;;  %6237 = vmatpush.msra.mxu1 %v5567_v31  ;;  %v5649_v40 = vld [vmem:[%s14725_s10 + $0xd78] sm:$0xff]  ;;  %v5616_v42 = vld [vmem:[%s14725_s10 + $0xc70] sm:$0xff]  ;;  %v5631_v31 = vld [vmem:[%s14725_s10 + $0xce8] sm:$0xff] }
 0x6b3   :  { %6257 = vmatpush.msra.mxu2 %v5583_v2  ;;  %6277 = vmatpush.msra.mxu3 %v5599_v57  ;;  %v5665_v32 = vld [vmem:[%s14725_s10 + $0xdf8] sm:$0xff]  ;;  %v5647_v2 = vld [vmem:[%s14725_s10 + $0xd68] sm:$0xff] }
 0x6b4   :  { %6218 = vmatpush.msra.mxu0 %v5550_v13  ;;  %6238 = vmatpush.msra.mxu1 %v5566_v53  ;;  %v5663_v57 = vld [vmem:[%s14725_s10 + $0xde8] sm:$0xff]  ;;  %v5614_v13 = vld [vmem:[%s14725_s10 + $0xc60] sm:$0xff] }
 0x6b5   :  { %6258 = vmatpush.msra.mxu2 %v5582_v20  ;;  %6278 = vmatpush.msra.mxu3 %v5598_v5  ;;  %v5630_v53 = vld [vmem:[%s14725_s10 + $0xce0] sm:$0xff] }
 0x6b6   :  { %6219 = vmatpush.msra.mxu0 %v5549_v34  ;;  %6239 = vmatpush.msra.mxu1 %v5565_v12  ;;  %v5646_v20 = vld [vmem:[%s14725_s10 + $0xd60] sm:$0xff]  ;;  %v5613_v34 = vld [vmem:[%s14725_s10 + $0xc58] sm:$0xff] }
 0x6b7   :  { %6259 = vmatpush.msra.mxu2 %v5581_v25  ;;  %6279 = vmatpush.msra.mxu3 %v5597_v52  ;;  %v5662_v5 = vld [vmem:[%s14725_s10 + $0xde0] sm:$0xff]  ;;  %v5629_v12 = vld [vmem:[%s14725_s10 + $0xcd8] sm:$0xff] }
 0x6b8   :  { %6220 = vmatpush.msra.mxu0 %v5548_v43  ;;  %6240 = vmatpush.msra.mxu1 %v5564_v18  ;;  %v5645_v25 = vld [vmem:[%s14725_s10 + $0xd58] sm:$0xff]  ;;  %v5612_v43 = vld [vmem:[%s14725_s10 + $0xc50] sm:$0xff] }
 0x6b9   :  { %6260 = vmatpush.msra.mxu2 %v5580_v8  ;;  %6280 = vmatpush.msra.mxu3 %v5596_v33  ;;  %v5661_v52 = vld [vmem:[%s14725_s10 + $0xdd8] sm:$0xff]  ;;  %v5628_v18 = vld [vmem:[%s14725_s10 + $0xcd0] sm:$0xff] }
 0x6ba   :  { %6221 = vmatpush.msra.mxu0 %v5547_v7  ;;  %6241 = vmatpush.msra.mxu1 %v5563_v4  ;;  %v5644_v8 = vld [vmem:[%s14725_s10 + $0xd50] sm:$0xff]  ;;  %v5611_v7 = vld [vmem:[%s14725_s10 + $0xc48] sm:$0xff] }
 0x6bb   :  { %6261 = vmatpush.msra.mxu2 %v5579_v11  ;;  %6281 = vmatpush.msra.mxu3 %v5595_v59  ;;  %v5660_v33 = vld [vmem:[%s14725_s10 + $0xdd0] sm:$0xff]  ;;  %v5627_v4 = vld [vmem:[%s14725_s10 + $0xcc8] sm:$0xff] }
 0x6bc   :  { %6222 = vmatpush.msra.mxu0 %v5546_v61  ;;  %6242 = vmatpush.msra.mxu1 %v5562_v46  ;;  %v5643_v11 = vld [vmem:[%s14725_s10 + $0xd48] sm:$0xff]  ;;  %v5610_v61 = vld [vmem:[%s14725_s10 + $0xc40] sm:$0xff] }
 0x6bd   :  { %6262 = vmatpush.msra.mxu2 %v5578_v51  ;;  %6282 = vmatpush.msra.mxu3 %v5594_v1  ;;  %v5659_v59 = vld [vmem:[%s14725_s10 + $0xdc8] sm:$0xff]  ;;  %v5626_v46 = vld [vmem:[%s14725_s10 + $0xcc0] sm:$0xff] }
 0x6be   :  { %6223 = vmatpush.msra.mxu0 %v5545_v19  ;;  %6243 = vmatpush.msra.mxu1 %v5561_v6  ;;  %v5642_v51 = vld [vmem:[%s14725_s10 + $0xd40] sm:$0xff]  ;;  %v5609_v19 = vld [vmem:[%s14725_s10 + $0xc38] sm:$0xff] }
 0x6bf   :  { %6263 = vmatpush.msra.mxu2 %v5577_v63  ;;  %6283 = vmatpush.msra.mxu3 %v5593_v35  ;;  %v5658_v1 = vld [vmem:[%s14725_s10 + $0xdc0] sm:$0xff]  ;;  %v5625_v6 = vld [vmem:[%s14725_s10 + $0xcb8] sm:$0xff] }
 0x6c0   :  { %6224 = vmatpush.msra.mxu0 %v5544_v29  ;;  %6244 = vmatpush.msra.mxu1 %v5560_v9  ;;  %v5641_v63 = vld [vmem:[%s14725_s10 + $0xd38] sm:$0xff]  ;;  %v5608_v29 = vld [vmem:[%s14725_s10 + $0xc30] sm:$0xff] }
 0x6c1   :  { %6264 = vmatpush.msra.mxu2 %v5576_v50  ;;  %6284 = vmatpush.msra.mxu3 %v5592_v48  ;;  %v5657_v35 = vld [vmem:[%s14725_s10 + $0xdb8] sm:$0xff]  ;;  %v5624_v9 = vld [vmem:[%s14725_s10 + $0xcb0] sm:$0xff] }
 0x6c2   :  { %6225 = vmatpush.msra.mxu0 %v5543_v3  ;;  %6245 = vmatpush.msra.mxu1 %v5559_v14  ;;  %v5640_v50 = vld [vmem:[%s14725_s10 + $0xd30] sm:$0xff]  ;;  %v5607_v3 = vld [vmem:[%s14725_s10 + $0xc28] sm:$0xff] }
 0x6c3   :  { %6265 = vmatpush.msra.mxu2 %v5575_v17  ;;  %6285 = vmatpush.msra.mxu3 %v5591_v24  ;;  %v5656_v48 = vld [vmem:[%s14725_s10 + $0xdb0] sm:$0xff]  ;;  %v5623_v14 = vld [vmem:[%s14725_s10 + $0xca8] sm:$0xff] }
 0x6c4   :  { %6226 = vmatpush.msra.mxu0 %v5542_v36  ;;  %6246 = vmatpush.msra.mxu1 %v5558_v41  ;;  %v5639_v17 = vld [vmem:[%s14725_s10 + $0xd28] sm:$0xff]  ;;  %v5606_v36 = vld [vmem:[%s14725_s10 + $0xc20] sm:$0xff] }
 0x6c5   :  { %6266 = vmatpush.msra.mxu2 %v5574_v39  ;;  %6286 = vmatpush.msra.mxu3 %v5590_v30  ;;  %v5655_v24 = vld [vmem:[%s14725_s10 + $0xda8] sm:$0xff]  ;;  %v5622_v41 = vld [vmem:[%s14725_s10 + $0xca0] sm:$0xff] }
 0x6c6   :  { %6227 = vmatpush.msra.mxu0 %v5541_v15  ;;  %6247 = vmatpush.msra.mxu1 %v5557_v56  ;;  %v5638_v39 = vld [vmem:[%s14725_s10 + $0xd20] sm:$0xff]  ;;  %v5605_v15 = vld [vmem:[%s14725_s10 + $0xc18] sm:$0xff] }
 0x6c7   :  { %6267 = vmatpush.msra.mxu2 %v5573_v62  ;;  %6287 = vmatpush.msra.mxu3 %v5589_v16  ;;  %v5654_v30 = vld [vmem:[%s14725_s10 + $0xda0] sm:$0xff]  ;;  %v5621_v56 = vld [vmem:[%s14725_s10 + $0xc98] sm:$0xff] }
 0x6c8   :  { %6228 = vmatpush.msra.mxu0 %v5540_v55  ;;  %6248 = vmatpush.msra.mxu1 %v5556_v22  ;;  %v5637_v62 = vld [vmem:[%s14725_s10 + $0xd18] sm:$0xff]  ;;  %v5604_v55 = vld [vmem:[%s14725_s10 + $0xc10] sm:$0xff] }
 0x6c9   :  { %6268 = vmatpush.msra.mxu2 %v5572_v47  ;;  %6288 = vmatpush.msra.mxu3 %v5588_v27  ;;  %v5653_v16 = vld [vmem:[%s14725_s10 + $0xd98] sm:$0xff]  ;;  %v5620_v22 = vld [vmem:[%s14725_s10 + $0xc90] sm:$0xff] }
 0x6ca   :  { %6229 = vmatpush.msra.mxu0 %v5539_v21  ;;  %6249 = vmatpush.msra.mxu1 %v5555_v28  ;;  %v5636_v47 = vld [vmem:[%s14725_s10 + $0xd10] sm:$0xff]  ;;  %v5603_v21 = vld [vmem:[%s14725_s10 + $0xc08] sm:$0xff] }
 0x6cb   :  { %6269 = vmatpush.msra.mxu2 %v5571_v38  ;;  %6289 = vmatpush.msra.mxu3 %v5587_v10  ;;  %v5652_v27 = vld [vmem:[%s14725_s10 + $0xd90] sm:$0xff]  ;;  %v5619_v28 = vld [vmem:[%s14725_s10 + $0xc88] sm:$0xff] }
 0x6cc   :  { %6230 = vmatpush.msra.mxu0 %v5538_v60  ;;  %6250 = vmatpush.msra.mxu1 %v5554_v54  ;;  %v5635_v38 = vld [vmem:[%s14725_s10 + $0xd08] sm:$0xff]  ;;  %v5602_v60 = vld [vmem:[%s14725_s10 + $0xc00] sm:$0xff] }
 0x6cd   :  { %6270 = vmatpush.msra.mxu2 %v5570_v44  ;;  %6290 = vmatpush.msra.mxu3 %v5586_v0  ;;  %v5651_v10 = vld [vmem:[%s14725_s10 + $0xd88] sm:$0xff]  ;;  %v5618_v54 = vld [vmem:[%s14725_s10 + $0xc80] sm:$0xff] }
 0x6ce   :  { %6231 = vmatmul.f32.vlgmr.msra.gmra.mxu0 %v13717_v58  ;;  %6251 = vmatmul.f32.vlgmr.msra.gmra.mxu1 %v13719_v49  ;;  %v5632_v58 = vld [vmem:[%s14725_s10 + $0xcf0] sm:$0xff]  ;;  %v5634_v44 = vld [vmem:[%s14725_s10 + $0xd00] sm:$0xff] }
 0x6cf   :  { %6271 = vmatmul.f32.vlgmr.msra.gmra.mxu2 %v13729_v37  ;;  %6291 = vmatmul.f32.vlgmr.msra.gmra.mxu3 %v13731_v26  ;;  %v5648_v49 = vld [vmem:[%s14725_s10 + $0xd70] sm:$0xff]  ;;  %v5615_v26 = vld [vmem:[%s14725_s10 + $0xc68] sm:$0xff]  ;;  %v5650_v0 = vld [vmem:[%s14725_s10 + $0xd80] sm:$0xff] }
 0x6d0   :  { %6295 = vmatpush.msrb.mxu0 %v5617_v23  ;;  %6315 = vmatpush.msrb.mxu1 %v5633_v45  ;;  %v5664_v37 = vld [vmem:[%s14725_s10 + $0xdf0] sm:$0xff]  ;;  %v5775_v23 = vld [vmem:[#allocation1] sm:$0xff] }
 0x6d1   :  { %6335 = vmatpush.msrb.mxu2 %v5649_v40  ;;  %6355 = vmatpush.msrb.mxu3 %v5665_v32  ;;  %v5776_v45 = vld [vmem:[#allocation1 + $0x9] sm:$0xff]  ;;  %v5777_v40 = vld [vmem:[#allocation1 + $0x12] sm:$0xff] }
 0x6d2   :  { %6296 = vmatpush.msrb.mxu0 %v5616_v42  ;;  %6316 = vmatpush.msrb.mxu1 %v5632_v58  ;;  %v5681_v32 = vld [vmem:[%s14725_s10 + $0xe78] sm:$0xff] }
 0x6d3   :  { %6336 = vmatpush.msrb.mxu2 %v5648_v49  ;;  %6356 = vmatpush.msrb.mxu3 %v5664_v37  ;;  %v5697_v42 = vld [vmem:[%s14725_s10 + $0xef8] sm:$0xff] }
 0x6d4   :  { %6297 = vmatpush.msrb.mxu0 %v5615_v26  ;;  %6317 = vmatpush.msrb.mxu1 %v5631_v31  ;;  %v5778_v58 = vld [vmem:[#allocation1 + $0x1b] sm:$0xff]  ;;  %v5680_v26 = vld [vmem:[%s14725_s10 + $0xe70] sm:$0xff] }
 0x6d5   :  { %6337 = vmatpush.msrb.mxu2 %v5647_v2  ;;  %6357 = vmatpush.msrb.mxu3 %v5663_v57  ;;  %v5713_v49 = vld [vmem:[%s14725_s10 + $0xf78] sm:$0xff]  ;;  %v5696_v31 = vld [vmem:[%s14725_s10 + $0xef0] sm:$0xff] }
 0x6d6   :  { %6298 = vmatpush.msrb.mxu0 %v5614_v13  ;;  %6318 = vmatpush.msrb.mxu1 %v5630_v53  ;;  %v5729_v37 = vld [vmem:[%s14725_s10 + $0xff8] sm:$0xff]  ;;  %v5712_v2 = vld [vmem:[%s14725_s10 + $0xf70] sm:$0xff]  ;;  %v5679_v13 = vld [vmem:[%s14725_s10 + $0xe68] sm:$0xff] }
 0x6d7   :  { %6338 = vmatpush.msrb.mxu2 %v5646_v20  ;;  %6358 = vmatpush.msrb.mxu3 %v5662_v5  ;;  %v5728_v57 = vld [vmem:[%s14725_s10 + $0xff0] sm:$0xff]  ;;  %v5695_v53 = vld [vmem:[%s14725_s10 + $0xee8] sm:$0xff] }
 0x6d8   :  { %6299 = vmatpush.msrb.mxu0 %v5613_v34  ;;  %6319 = vmatpush.msrb.mxu1 %v5629_v12  ;;  %v5711_v20 = vld [vmem:[%s14725_s10 + $0xf68] sm:$0xff]  ;;  %v5678_v34 = vld [vmem:[%s14725_s10 + $0xe60] sm:$0xff] }
 0x6d9   :  { %6339 = vmatpush.msrb.mxu2 %v5645_v25  ;;  %6359 = vmatpush.msrb.mxu3 %v5661_v52  ;;  %v5727_v5 = vld [vmem:[%s14725_s10 + $0xfe8] sm:$0xff]  ;;  %v5694_v12 = vld [vmem:[%s14725_s10 + $0xee0] sm:$0xff] }
 0x6da   :  { %6300 = vmatpush.msrb.mxu0 %v5612_v43  ;;  %6320 = vmatpush.msrb.mxu1 %v5628_v18  ;;  %v5710_v25 = vld [vmem:[%s14725_s10 + $0xf60] sm:$0xff]  ;;  %v5677_v43 = vld [vmem:[%s14725_s10 + $0xe58] sm:$0xff] }
 0x6db   :  { %6340 = vmatpush.msrb.mxu2 %v5644_v8  ;;  %6360 = vmatpush.msrb.mxu3 %v5660_v33  ;;  %v5726_v52 = vld [vmem:[%s14725_s10 + $0xfe0] sm:$0xff]  ;;  %v5693_v18 = vld [vmem:[%s14725_s10 + $0xed8] sm:$0xff] }
 0x6dc   :  { %6301 = vmatpush.msrb.mxu0 %v5611_v7  ;;  %6321 = vmatpush.msrb.mxu1 %v5627_v4  ;;  %v5709_v8 = vld [vmem:[%s14725_s10 + $0xf58] sm:$0xff]  ;;  %v5676_v7 = vld [vmem:[%s14725_s10 + $0xe50] sm:$0xff] }
 0x6dd   :  { %6341 = vmatpush.msrb.mxu2 %v5643_v11  ;;  %6361 = vmatpush.msrb.mxu3 %v5659_v59  ;;  %v5725_v33 = vld [vmem:[%s14725_s10 + $0xfd8] sm:$0xff]  ;;  %v5692_v4 = vld [vmem:[%s14725_s10 + $0xed0] sm:$0xff] }
 0x6de   :  { %6302 = vmatpush.msrb.mxu0 %v5610_v61  ;;  %6322 = vmatpush.msrb.mxu1 %v5626_v46  ;;  %v5708_v11 = vld [vmem:[%s14725_s10 + $0xf50] sm:$0xff]  ;;  %v5675_v61 = vld [vmem:[%s14725_s10 + $0xe48] sm:$0xff] }
 0x6df   :  { %6342 = vmatpush.msrb.mxu2 %v5642_v51  ;;  %6362 = vmatpush.msrb.mxu3 %v5658_v1  ;;  %v5724_v59 = vld [vmem:[%s14725_s10 + $0xfd0] sm:$0xff]  ;;  %v5691_v46 = vld [vmem:[%s14725_s10 + $0xec8] sm:$0xff] }
 0x6e0   :  { %6303 = vmatpush.msrb.mxu0 %v5609_v19  ;;  %6323 = vmatpush.msrb.mxu1 %v5625_v6  ;;  %v5707_v51 = vld [vmem:[%s14725_s10 + $0xf48] sm:$0xff]  ;;  %v5674_v19 = vld [vmem:[%s14725_s10 + $0xe40] sm:$0xff] }
 0x6e1   :  { %6343 = vmatpush.msrb.mxu2 %v5641_v63  ;;  %6363 = vmatpush.msrb.mxu3 %v5657_v35  ;;  %v5723_v1 = vld [vmem:[%s14725_s10 + $0xfc8] sm:$0xff]  ;;  %v5690_v6 = vld [vmem:[%s14725_s10 + $0xec0] sm:$0xff] }
 0x6e2   :  { %6304 = vmatpush.msrb.mxu0 %v5608_v29  ;;  %6324 = vmatpush.msrb.mxu1 %v5624_v9  ;;  %v5706_v63 = vld [vmem:[%s14725_s10 + $0xf40] sm:$0xff]  ;;  %v5673_v29 = vld [vmem:[%s14725_s10 + $0xe38] sm:$0xff] }
 0x6e3   :  { %6344 = vmatpush.msrb.mxu2 %v5640_v50  ;;  %6364 = vmatpush.msrb.mxu3 %v5656_v48  ;;  %v5722_v35 = vld [vmem:[%s14725_s10 + $0xfc0] sm:$0xff]  ;;  %v5689_v9 = vld [vmem:[%s14725_s10 + $0xeb8] sm:$0xff] }
 0x6e4   :  { %6305 = vmatpush.msrb.mxu0 %v5607_v3  ;;  %6325 = vmatpush.msrb.mxu1 %v5623_v14  ;;  %v5705_v50 = vld [vmem:[%s14725_s10 + $0xf38] sm:$0xff]  ;;  %v5672_v3 = vld [vmem:[%s14725_s10 + $0xe30] sm:$0xff] }
 0x6e5   :  { %6345 = vmatpush.msrb.mxu2 %v5639_v17  ;;  %6365 = vmatpush.msrb.mxu3 %v5655_v24  ;;  %v5721_v48 = vld [vmem:[%s14725_s10 + $0xfb8] sm:$0xff]  ;;  %v5688_v14 = vld [vmem:[%s14725_s10 + $0xeb0] sm:$0xff] }
 0x6e6   :  { %6306 = vmatpush.msrb.mxu0 %v5606_v36  ;;  %6326 = vmatpush.msrb.mxu1 %v5622_v41  ;;  %v5704_v17 = vld [vmem:[%s14725_s10 + $0xf30] sm:$0xff]  ;;  %v5671_v36 = vld [vmem:[%s14725_s10 + $0xe28] sm:$0xff] }
 0x6e7   :  { %6346 = vmatpush.msrb.mxu2 %v5638_v39  ;;  %6366 = vmatpush.msrb.mxu3 %v5654_v30  ;;  %v5720_v24 = vld [vmem:[%s14725_s10 + $0xfb0] sm:$0xff]  ;;  %v5687_v41 = vld [vmem:[%s14725_s10 + $0xea8] sm:$0xff] }
 0x6e8   :  { %6307 = vmatpush.msrb.mxu0 %v5605_v15  ;;  %6327 = vmatpush.msrb.mxu1 %v5621_v56  ;;  %v5703_v39 = vld [vmem:[%s14725_s10 + $0xf28] sm:$0xff]  ;;  %v5670_v15 = vld [vmem:[%s14725_s10 + $0xe20] sm:$0xff] }
 0x6e9   :  { %6347 = vmatpush.msrb.mxu2 %v5637_v62  ;;  %6367 = vmatpush.msrb.mxu3 %v5653_v16  ;;  %v5719_v30 = vld [vmem:[%s14725_s10 + $0xfa8] sm:$0xff]  ;;  %v5686_v56 = vld [vmem:[%s14725_s10 + $0xea0] sm:$0xff] }
 0x6ea   :  { %6308 = vmatpush.msrb.mxu0 %v5604_v55  ;;  %6328 = vmatpush.msrb.mxu1 %v5620_v22  ;;  %v5702_v62 = vld [vmem:[%s14725_s10 + $0xf20] sm:$0xff]  ;;  %v5669_v55 = vld [vmem:[%s14725_s10 + $0xe18] sm:$0xff] }
 0x6eb   :  { %6348 = vmatpush.msrb.mxu2 %v5636_v47  ;;  %6368 = vmatpush.msrb.mxu3 %v5652_v27  ;;  %v5718_v16 = vld [vmem:[%s14725_s10 + $0xfa0] sm:$0xff]  ;;  %v5685_v22 = vld [vmem:[%s14725_s10 + $0xe98] sm:$0xff] }
 0x6ec   :  { %6309 = vmatpush.msrb.mxu0 %v5603_v21  ;;  %6329 = vmatpush.msrb.mxu1 %v5619_v28  ;;  %v5701_v47 = vld [vmem:[%s14725_s10 + $0xf18] sm:$0xff]  ;;  %v5668_v21 = vld [vmem:[%s14725_s10 + $0xe10] sm:$0xff] }
 0x6ed   :  { %6349 = vmatpush.msrb.mxu2 %v5635_v38  ;;  %6369 = vmatpush.msrb.mxu3 %v5651_v10  ;;  %v5717_v27 = vld [vmem:[%s14725_s10 + $0xf98] sm:$0xff]  ;;  %v5684_v28 = vld [vmem:[%s14725_s10 + $0xe90] sm:$0xff] }
 0x6ee   :  { %6310 = vmatpush.msrb.mxu0 %v5602_v60  ;;  %6330 = vmatpush.msrb.mxu1 %v5618_v54  ;;  %v5700_v38 = vld [vmem:[%s14725_s10 + $0xf10] sm:$0xff]  ;;  %v5667_v60 = vld [vmem:[%s14725_s10 + $0xe08] sm:$0xff] }
 0x6ef   :  { %6350 = vmatpush.msrb.mxu2 %v5634_v44  ;;  %6370 = vmatpush.msrb.mxu3 %v5650_v0  ;;  %v5716_v10 = vld [vmem:[%s14725_s10 + $0xf90] sm:$0xff]  ;;  %v5683_v54 = vld [vmem:[%s14725_s10 + $0xe88] sm:$0xff] }
 0x6f0   :  { %6311 = vmatmul.f32.vlgmr.msrb.gmra.mxu0 %v5775_v23  ;;  %6331 = vmatmul.f32.vlgmr.msrb.gmra.mxu1 %v5776_v45  ;;  %v5699_v44 = vld [vmem:[%s14725_s10 + $0xf08] sm:$0xff]  ;;  %v5666_v23 = vld [vmem:[%s14725_s10 + $0xe00] sm:$0xff] }
 0x6f1   :  { %6351 = vmatmul.f32.vlgmr.msrb.gmra.mxu2 %v5777_v40  ;;  %6371 = vmatmul.f32.vlgmr.msrb.gmra.mxu3 %v5778_v58  ;;  %v5715_v0 = vld [vmem:[%s14725_s10 + $0xf88] sm:$0xff]  ;;  %v5682_v45 = vld [vmem:[%s14725_s10 + $0xe80] sm:$0xff] }
 0x6f2   :  { %6375 = vmatpush.msra.mxu0 %v5681_v32  ;;  %6395 = vmatpush.msra.mxu1 %v5697_v42  ;;  %v5698_v40 = vld [vmem:[%s14725_s10 + $0xf00] sm:$0xff]  ;;  %v5780_v58 = vld [vmem:[#allocation1 + $0x2d] sm:$0xff] }
 0x6f3   :  { %6415 = vmatpush.msra.mxu2 %v5713_v49  ;;  %6435 = vmatpush.msra.mxu3 %v5729_v37  ;;  %v5714_v32 = vld [vmem:[%s14725_s10 + $0xf80] sm:$0xff]  ;;  %v5781_v49 = vld [vmem:[#allocation1 + $0x36] sm:$0xff]  ;;  %s7662_s10 = smov [#allocation3]  }
 0x6f4   :  { %6376 = vmatpush.msra.mxu0 %v5680_v26  ;;  %6396 = vmatpush.msra.mxu1 %v5696_v31  ;;  %v5779_v42 = vld [vmem:[#allocation1 + $0x24] sm:$0xff]  ;;  %v7633_v26 = vld [vmem:[%s14726_s11] ss:$0 sm:$0xff]  ;;  %v5832_v31 = vpop.f32.mrf.mxu0  ;;  %s6461_s11 = sshll.u32 %s7662_s10, 4  ;;  %s6462_s11 = int_to_ptr.vmem [resolvable:$true] %s6461_s11 }
 0x6f5   :  { %6416 = vmatpush.msra.mxu2 %v5712_v2  ;;  %6436 = vmatpush.msra.mxu3 %v5728_v57  ;;  %v5782_v37 = vld [vmem:[#allocation1 + $0x3f] sm:$0xff]  ;;  %v5833_v2 = vadd.f32 %v7633_v26, %v5832_v31  ;;  %v5852_v57 = vpop.f32.mrf.mxu1 }
 0x6f6   :  { %6377 = vmatpush.msra.mxu0 %v5679_v13  ;;  %6397 = vmatpush.msra.mxu1 %v5695_v53  ;;  %v5872_v13 = vpop.f32.mrf.mxu2 }
 0x6f7   :  { %6417 = vmatpush.msra.mxu2 %v5711_v20  ;;  %6437 = vmatpush.msra.mxu3 %v5727_v5  ;;  %v5853_v53 = vadd.f32 %v5852_v57, %v5833_v2  ;;  %v5892_v5 = vpop.f32.mrf.mxu3 }
 0x6f8   :  { %6378 = vmatpush.msra.mxu0 %v5678_v34  ;;  %6398 = vmatpush.msra.mxu1 %v5694_v12 }
 0x6f9   :  { %6418 = vmatpush.msra.mxu2 %v5710_v25  ;;  %6438 = vmatpush.msra.mxu3 %v5726_v52  ;;  %v5873_v20 = vadd.f32 %v5872_v13, %v5853_v53 }
 0x6fa   :  { %6379 = vmatpush.msra.mxu0 %v5677_v43  ;;  %6399 = vmatpush.msra.mxu1 %v5693_v18 }
 0x6fb   :  { %6419 = vmatpush.msra.mxu2 %v5709_v8  ;;  %6439 = vmatpush.msra.mxu3 %v5725_v33  ;;  %v5893_v34 = vadd.f32 %v5892_v5, %v5873_v20 }
 0x6fc   :  { %6380 = vmatpush.msra.mxu0 %v5676_v7  ;;  %6400 = vmatpush.msra.mxu1 %v5692_v4  ;;  %v5912_v12 = vpop.f32.mrf.mxu0 }
 0x6fd   :  { %6420 = vmatpush.msra.mxu2 %v5708_v11  ;;  %6440 = vmatpush.msra.mxu3 %v5724_v59  ;;  %v5913_v25 = vadd.f32 %v5912_v12, %v5893_v34  ;;  %v5932_v52 = vpop.f32.mrf.mxu1 }
 0x6fe   :  { %6381 = vmatpush.msra.mxu0 %v5675_v61  ;;  %6401 = vmatpush.msra.mxu1 %v5691_v46  ;;  %v5952_v18 = vpop.f32.mrf.mxu2 }
 0x6ff   :  { %6421 = vmatpush.msra.mxu2 %v5707_v51  ;;  %6441 = vmatpush.msra.mxu3 %v5723_v1  ;;  %v5933_v43 = vadd.f32 %v5932_v52, %v5913_v25  ;;  %v5972_v33 = vpop.f32.mrf.mxu3 }
 0x700   :  { %6382 = vmatpush.msra.mxu0 %v5674_v19  ;;  %6402 = vmatpush.msra.mxu1 %v5690_v6 }
 0x701   :  { %6422 = vmatpush.msra.mxu2 %v5706_v63  ;;  %6442 = vmatpush.msra.mxu3 %v5722_v35  ;;  %v5953_v8 = vadd.f32 %v5952_v18, %v5933_v43 }
 0x702   :  { %6383 = vmatpush.msra.mxu0 %v5673_v29  ;;  %6403 = vmatpush.msra.mxu1 %v5689_v9 }
 0x703   :  { %6423 = vmatpush.msra.mxu2 %v5705_v50  ;;  %6443 = vmatpush.msra.mxu3 %v5721_v48  ;;  %v5973_v4 = vadd.f32 %v5972_v33, %v5953_v8 }
 0x704   :  { %6384 = vmatpush.msra.mxu0 %v5672_v3  ;;  %6404 = vmatpush.msra.mxu1 %v5688_v14  ;;  %v5992_v7 = vpop.f32.mrf.mxu0 }
 0x705   :  { %6424 = vmatpush.msra.mxu2 %v5704_v17  ;;  %6444 = vmatpush.msra.mxu3 %v5720_v24  ;;  %v5993_v11 = vadd.f32 %v5992_v7, %v5973_v4  ;;  %v6012_v59 = vpop.f32.mrf.mxu1 }
 0x706   :  { %6385 = vmatpush.msra.mxu0 %v5671_v36  ;;  %6405 = vmatpush.msra.mxu1 %v5687_v41  ;;  %v6032_v61 = vpop.f32.mrf.mxu2 }
 0x707   :  { %6425 = vmatpush.msra.mxu2 %v5703_v39  ;;  %6445 = vmatpush.msra.mxu3 %v5719_v30  ;;  %v6013_v46 = vadd.f32 %v6012_v59, %v5993_v11  ;;  %v6052_v1 = vpop.f32.mrf.mxu3 }
 0x708   :  { %6386 = vmatpush.msra.mxu0 %v5670_v15  ;;  %6406 = vmatpush.msra.mxu1 %v5686_v56 }
 0x709   :  { %6426 = vmatpush.msra.mxu2 %v5702_v62  ;;  %6446 = vmatpush.msra.mxu3 %v5718_v16  ;;  %v6033_v51 = vadd.f32 %v6032_v61, %v6013_v46 }
 0x70a   :  { %6387 = vmatpush.msra.mxu0 %v5669_v55  ;;  %6407 = vmatpush.msra.mxu1 %v5685_v22 }
 0x70b   :  { %6427 = vmatpush.msra.mxu2 %v5701_v47  ;;  %6447 = vmatpush.msra.mxu3 %v5717_v27  ;;  %v6053_v6 = vadd.f32 %v6052_v1, %v6033_v51 }
 0x70c   :  { %6388 = vmatpush.msra.mxu0 %v5668_v21  ;;  %6408 = vmatpush.msra.mxu1 %v5684_v28  ;;  %v6072_v19 = vpop.f32.mrf.mxu0 }
 0x70d   :  { %6428 = vmatpush.msra.mxu2 %v5700_v38  ;;  %6448 = vmatpush.msra.mxu3 %v5716_v10  ;;  %v6073_v63 = vadd.f32 %v6072_v19, %v6053_v6  ;;  %v6092_v35 = vpop.f32.mrf.mxu1 }
 0x70e   :  { %6389 = vmatpush.msra.mxu0 %v5667_v60  ;;  %6409 = vmatpush.msra.mxu1 %v5683_v54  ;;  %v6112_v29 = vpop.f32.mrf.mxu2 }
 0x70f   :  { %6429 = vmatpush.msra.mxu2 %v5699_v44  ;;  %6449 = vmatpush.msra.mxu3 %v5715_v0  ;;  %v6093_v9 = vadd.f32 %v6092_v35, %v6073_v63  ;;  %v6132_v48 = vpop.f32.mrf.mxu3 }
 0x710   :  { %6390 = vmatpush.msra.mxu0 %v5666_v23  ;;  %6410 = vmatpush.msra.mxu1 %v5682_v45 }
 0x711   :  { %6430 = vmatpush.msra.mxu2 %v5698_v40  ;;  %6450 = vmatpush.msra.mxu3 %v5714_v32  ;;  %v6113_v50 = vadd.f32 %v6112_v29, %v6093_v9 }
 0x712   :  { %6391 = vmatmul.f32.vlgmr.msra.gmra.mxu0 %v5779_v42  ;;  %6411 = vmatmul.f32.vlgmr.msra.gmra.mxu1 %v5780_v58 }
 0x713   :  { %6431 = vmatmul.f32.vlgmr.msra.gmra.mxu2 %v5781_v49  ;;  %6451 = vmatmul.f32.vlgmr.msra.gmra.mxu3 %v5782_v37  ;;  %v6133_v14 = vadd.f32 %v6132_v48, %v6113_v50 }
 0x729   :  { %v6152_v3 = vpop.f32.mrf.mxu0  ;;  %v6172_v24 = vpop.f32.mrf.mxu1 }
 0x72a   :  { %v6153_v17 = vadd.f32 %v6152_v3, %v6133_v14 }
 0x72c   :  { %v6173_v41 = vadd.f32 %v6172_v24, %v6153_v17 }
 0x730   :  { %v6192_v36 = vpop.f32.mrf.mxu2  ;;  %v6212_v30 = vpop.f32.mrf.mxu3 }
 0x731   :  { %v6193_v39 = vadd.f32 %v6192_v36, %v6173_v41 }
 0x733   :  { %v6213_v56 = vadd.f32 %v6212_v30, %v6193_v39 }
 0x74b   :  { %v6232_v15 = vpop.f32.mrf.mxu0  ;;  %v6252_v16 = vpop.f32.mrf.mxu1 }
 0x74c   :  { %v6233_v62 = vadd.f32 %v6232_v15, %v6213_v56 }
 0x74e   :  { %v6253_v22 = vadd.f32 %v6252_v16, %v6233_v62 }
 0x752   :  { %v6272_v55 = vpop.f32.mrf.mxu2  ;;  %v6292_v27 = vpop.f32.mrf.mxu3 }
 0x753   :  { %v6273_v47 = vadd.f32 %v6272_v55, %v6253_v22 }
 0x755   :  { %v6293_v28 = vadd.f32 %v6292_v27, %v6273_v47 }
 0x76d   :  { %v6312_v21 = vpop.f32.mrf.mxu0  ;;  %v6332_v10 = vpop.f32.mrf.mxu1 }
 0x76e   :  { %v6313_v38 = vadd.f32 %v6312_v21, %v6293_v28 }
 0x770   :  { %v6333_v54 = vadd.f32 %v6332_v10, %v6313_v38 }
 0x774   :  { %v6352_v60 = vpop.f32.mrf.mxu2  ;;  %v6372_v0 = vpop.f32.mrf.mxu3 }
 0x775   :  { %v6353_v44 = vadd.f32 %v6352_v60, %v6333_v54 }
 0x777   :  { %v6373_v23 = vadd.f32 %v6372_v0, %v6353_v44 }
 0x78f   :  { %v6392_v45 = vpop.f32.mrf.mxu0  ;;  %v6412_v32 = vpop.f32.mrf.mxu1 }
 0x790   :  { %v6393_v40 = vadd.f32 %v6392_v45, %v6373_v23 }
 0x792   :  { %v6413_v42 = vadd.f32 %v6412_v32, %v6393_v40 }
 0x796   :  { %v6432_v58 = vpop.f32.mrf.mxu2  ;;  %v6452_v37 = vpop.f32.mrf.mxu3 }
 0x797   :  { %v6433_v49 = vadd.f32 %v6432_v58, %v6413_v42 }
 0x799   :  { %v6453_v26 = vadd.f32 %v6452_v37, %v6433_v49 }
 0x79b   :  { %6455 = vst [vmem:[#allocation3] sm:$0x3] %v6453_v26 }
 0x79c   :  { %6466 = dma.vmem_to_hbm [thread:$0]  %s6462_s11, 32, %s6464_s3, [#allocation4]  }
 0x79d   :  { %7658 = dma.done.wait [#allocation4], 32  }
 0x79e   :  { %7659 = vsyncadd [#allocation4], 4294967264 }
 0x79f   :  { %6471 = vsyncpa [#allocation4], 1 }

</bundles_post_ra>
